<compile_context>
chip_gen: v6e
topology: v6e:2x2x1
jax: 0.10.0
libtpu: 0.0.40
codegen_flags: <defaults>
</compile_context>

<pallas_src>
import math

import jax
import jax.numpy as jnp
from jax.experimental import pallas as pl
from jax.experimental.pallas import tpu as pltpu

_HIDDEN_DIMS = (2048, 1024, 256, 64)
_LANE = 128  # TPU lane width; pad the output head to this for a dense store.


def _fnn_fused_kernel(x_ref,
                      w1_ref, b1_ref,
                      w2_hbm, b2_ref,
                      w3_hbm, b3_ref,
                      w4_hbm, b4_ref,
                      w5_hbm, b5_ref,
                      o_ref,
                      w2_buf, w3_buf, w4_buf, w5_buf,
                      sem):
    """Whole forward pass in one kernel.

    x/W1/biases arrive via the normal Pallas prologue DMA; W2..W5 are fetched
    manually so their transfers overlap the earlier layers' compute.
    """
    # Kick off all later-layer weight fetches immediately.
    cp2 = pltpu.make_async_copy(w2_hbm, w2_buf, sem.at[0]); cp2.start()
    cp3 = pltpu.make_async_copy(w3_hbm, w3_buf, sem.at[1]); cp3.start()
    cp4 = pltpu.make_async_copy(w4_hbm, w4_buf, sem.at[2]); cp4.start()
    cp5 = pltpu.make_async_copy(w5_hbm, w5_buf, sem.at[3]); cp5.start()

    def layer(h, w, b_ref, relu):
        # bf16 x bf16 -> f32 accumulate on the MXU; bias add / ReLU in f32.
        y = jnp.dot(h.astype(jnp.bfloat16), w,
                    preferred_element_type=jnp.float32)
        y = y + b_ref[...]  # bias is (1, N): broadcast over batch rows
        if relu:
            y = jnp.maximum(y, 0.0)
        return y

    h = layer(x_ref[...], w1_ref[...], b1_ref, relu=True)
    cp2.wait()
    h = layer(h, w2_buf[...], b2_ref, relu=True)
    cp3.wait()
    h = layer(h, w3_buf[...], b3_ref, relu=True)
    cp4.wait()
    h = layer(h, w4_buf[...], b4_ref, relu=True)
    cp5.wait()
    h = layer(h, w5_buf[...], b5_ref, relu=False)

    o_ref[...] = h.astype(o_ref.dtype)


def prepare_fnn_params(params):
    """One-time parameter prep (run once, outside the hot path).

    * weights -> bf16 (f32 accumulation happens in the kernel)
    * last layer padded to a 128-lane output head (padding columns are zero)
    * biases reshaped to (1, N) f32 for clean row broadcast
    """
    n = len(params)
    prepped = []
    for i, (w, b) in enumerate(params):
        if i == n - 1:
            out_dim = w.shape[1]
            out_pad = max(_LANE, pl.cdiv(out_dim, _LANE) * _LANE)
            if out_pad != out_dim:
                w = jnp.pad(w, ((0, 0), (0, out_pad - out_dim)))
                b = jnp.pad(b, (0, out_pad - out_dim))
        prepped.append((w.astype(jnp.bfloat16),
                        b.astype(jnp.float32).reshape(1, -1)))
    return prepped


def _fnn_forward_impl(prepped, x, *, output_dim):
    """FNN.forward: 4x (Linear+ReLU) then Linear, fused into one pallas_call."""
    batch, input_dim = x.shape
    (w1, b1), (w2, b2), (w3, b3), (w4, b4), (w5, b5) = prepped
    assert w1.shape[0] == input_dim
    out_pad = w5.shape[1]

    vmem = pl.BlockSpec(memory_space=pltpu.MemorySpace.VMEM)
    hbm = pl.BlockSpec(memory_space=pl.ANY)  # raw HBM ref; DMA'd manually

    out_padded = pl.pallas_call(
        _fnn_fused_kernel,
        out_shape=jax.ShapeDtypeStruct((batch, out_pad), x.dtype),
        in_specs=[vmem,              # x
                  vmem, vmem,        # w1, b1
                  hbm, vmem,         # w2, b2
                  hbm, vmem,         # w3, b3
                  hbm, vmem,         # w4, b4
                  hbm, vmem],        # w5, b5
        out_specs=vmem,
        scratch_shapes=[
            pltpu.VMEM(w2.shape, w2.dtype),
            pltpu.VMEM(w3.shape, w3.dtype),
            pltpu.VMEM(w4.shape, w4.dtype),
            pltpu.VMEM(w5.shape, w5.dtype),
            pltpu.SemaphoreType.DMA((4,)),
        ],
        compiler_params=pltpu.CompilerParams(
            # ~5.2 MiB resident (bf16 weights + scratch + activations);
            # stays well inside v7x's 64 MiB physical VMEM.
            vmem_limit_bytes=32 * 1024 * 1024,
        ),
    )(x, w1, b1, w2, b2, w3, b3, w4, b4, w5, b5)

    return out_padded[:, :output_dim]


# Hot path: a single jitted call (pre-padded params -> one pallas_call + slice).
fnn_forward = jax.jit(_fnn_forward_impl, static_argnames=("output_dim",))


def init_fnn_params(key, input_dim, output_dim):
    """Deterministic init matching nn.Linear's U(-1/sqrt(fan_in), 1/sqrt(fan_in))."""
    dims = [input_dim, *_HIDDEN_DIMS, output_dim]
    params = []
    for layer_idx in range(5):
        fan_in, fan_out = dims[layer_idx], dims[layer_idx + 1]
        key, kw, kb = jax.random.split(key, 3)
        bound = 1.0 / math.sqrt(fan_in)
        # stored as (in, out) so the kernel computes x @ W (== torch x @ weight.T)
        w = jax.random.uniform(
            kw, (fan_in, fan_out), jnp.float32, minval=-bound, maxval=bound
        )
        b = jax.random.uniform(
            kb, (fan_out,), jnp.float32, minval=-bound, maxval=bound
        )
        params.append((w, b))
    return params


if __name__ == "__main__":
    batch = 8
    input_dim = 128
    output_dim = 10

    key = jax.random.PRNGKey(0)
    key, kx = jax.random.split(key)
    x = jax.random.normal(kx, (batch, input_dim), dtype=jnp.float32)

    params = init_fnn_params(key, input_dim, output_dim)
    prepped = prepare_fnn_params(params)  # one-time, outside the hot path

    out = fnn_forward(prepped, x, output_dim=output_dim)
    out = jax.block_until_ready(out)
    assert out.shape == (batch, output_dim)

    # Reference 1: plain-JAX forward using the same bf16 weights (matches the
    # kernel's math closely).
    ref_bf16 = x
    for i, (w, b) in enumerate(prepped):
        ref_bf16 = jnp.dot(ref_bf16.astype(jnp.bfloat16), w,
                           preferred_element_type=jnp.float32) + b
        if i < 4:
            ref_bf16 = jnp.maximum(ref_bf16, 0.0)
    ref_bf16 = ref_bf16[:, :output_dim]
    assert jnp.allclose(out, ref_bf16, atol=2e-2, rtol=2e-2)

    # Reference 2: original f32 forward; bf16 weight quantization stays well
    # within a loose tolerance.
    ref_f32 = x
    for i, (w, b) in enumerate(params):
        ref_f32 = ref_f32 @ w + b
        if i < 4:
            ref_f32 = jnp.maximum(ref_f32, 0.0)
    assert jnp.allclose(out, ref_f32, atol=7e-2, rtol=7e-2)

    print("KERNEL_OK")
</pallas_src>

<mosaic_0001>
module attributes {stable_mosaic.version = 11 : i64} {
  func.func @_fnn_fused_kernel(%arg0: memref<8x128xf32, #tpu.memory_space<vmem>>, %arg1: memref<128x2048xbf16, #tpu.memory_space<vmem>>, %arg2: memref<1x2048xf32, #tpu.memory_space<vmem>>, %arg3: memref<2048x1024xbf16, #tpu.memory_space<any>>, %arg4: memref<1x1024xf32, #tpu.memory_space<vmem>>, %arg5: memref<1024x256xbf16, #tpu.memory_space<any>>, %arg6: memref<1x256xf32, #tpu.memory_space<vmem>>, %arg7: memref<256x64xbf16, #tpu.memory_space<any>>, %arg8: memref<1x64xf32, #tpu.memory_space<vmem>>, %arg9: memref<64x128xbf16, #tpu.memory_space<any>>, %arg10: memref<1x128xf32, #tpu.memory_space<vmem>>, %arg11: memref<8x128xf32, #tpu.memory_space<vmem>>, %arg12: memref<2048x1024xbf16, #tpu.memory_space<vmem>>, %arg13: memref<1024x256xbf16, #tpu.memory_space<vmem>>, %arg14: memref<256x64xbf16, #tpu.memory_space<vmem>>, %arg15: memref<64x128xbf16, #tpu.memory_space<vmem>>, %arg16: memref<4x!tpu.dma_semaphore, #tpu.memory_space<semaphore_mem>>) attributes {dimension_semantics = [], scalar_prefetch = 0 : i64, scratch_operands = 5 : i64, tpu.core_type = #tpu.core_type<tc>} {
    %c0_i32 = arith.constant 0 : i32
    %0 = tpu.memref_slice %arg16[%c0_i32] : memref<4x!tpu.dma_semaphore, #tpu.memory_space<semaphore_mem>> -> memref<1x!tpu.dma_semaphore, #tpu.memory_space<semaphore_mem>>
    %1 = tpu.memref_squeeze %0 : memref<1x!tpu.dma_semaphore, #tpu.memory_space<semaphore_mem>> -> memref<!tpu.dma_semaphore, #tpu.memory_space<semaphore_mem>>
    tpu.enqueue_dma source(%arg3 : memref<2048x1024xbf16, #tpu.memory_space<any>>) target(%arg12 : memref<2048x1024xbf16, #tpu.memory_space<vmem>>) target_semaphore(%1 : memref<!tpu.dma_semaphore, #tpu.memory_space<semaphore_mem>>)
    %c1_i32 = arith.constant 1 : i32
    %2 = tpu.memref_slice %arg16[%c1_i32] : memref<4x!tpu.dma_semaphore, #tpu.memory_space<semaphore_mem>> -> memref<1x!tpu.dma_semaphore, #tpu.memory_space<semaphore_mem>>
    %3 = tpu.memref_squeeze %2 : memref<1x!tpu.dma_semaphore, #tpu.memory_space<semaphore_mem>> -> memref<!tpu.dma_semaphore, #tpu.memory_space<semaphore_mem>>
    tpu.enqueue_dma source(%arg5 : memref<1024x256xbf16, #tpu.memory_space<any>>) target(%arg13 : memref<1024x256xbf16, #tpu.memory_space<vmem>>) target_semaphore(%3 : memref<!tpu.dma_semaphore, #tpu.memory_space<semaphore_mem>>)
    %c2_i32 = arith.constant 2 : i32
    %4 = tpu.memref_slice %arg16[%c2_i32] : memref<4x!tpu.dma_semaphore, #tpu.memory_space<semaphore_mem>> -> memref<1x!tpu.dma_semaphore, #tpu.memory_space<semaphore_mem>>
    %5 = tpu.memref_squeeze %4 : memref<1x!tpu.dma_semaphore, #tpu.memory_space<semaphore_mem>> -> memref<!tpu.dma_semaphore, #tpu.memory_space<semaphore_mem>>
    tpu.enqueue_dma source(%arg7 : memref<256x64xbf16, #tpu.memory_space<any>>) target(%arg14 : memref<256x64xbf16, #tpu.memory_space<vmem>>) target_semaphore(%5 : memref<!tpu.dma_semaphore, #tpu.memory_space<semaphore_mem>>)
    %c3_i32 = arith.constant 3 : i32
    %6 = tpu.memref_slice %arg16[%c3_i32] : memref<4x!tpu.dma_semaphore, #tpu.memory_space<semaphore_mem>> -> memref<1x!tpu.dma_semaphore, #tpu.memory_space<semaphore_mem>>
    %7 = tpu.memref_squeeze %6 : memref<1x!tpu.dma_semaphore, #tpu.memory_space<semaphore_mem>> -> memref<!tpu.dma_semaphore, #tpu.memory_space<semaphore_mem>>
    tpu.enqueue_dma source(%arg9 : memref<64x128xbf16, #tpu.memory_space<any>>) target(%arg15 : memref<64x128xbf16, #tpu.memory_space<vmem>>) target_semaphore(%7 : memref<!tpu.dma_semaphore, #tpu.memory_space<semaphore_mem>>)
    %c0 = arith.constant 0 : index
    %c0_0 = arith.constant 0 : index
    %8 = vector.load %arg0[%c0, %c0_0] : memref<8x128xf32, #tpu.memory_space<vmem>>, vector<8x128xf32>
    %c0_1 = arith.constant 0 : index
    %c0_2 = arith.constant 0 : index
    %9 = vector.load %arg1[%c0_1, %c0_2] : memref<128x2048xbf16, #tpu.memory_space<vmem>>, vector<128x2048xbf16>
    %10 = arith.truncf %8 : vector<8x128xf32> to vector<8x128xbf16>
    %cst = arith.constant dense<0.000000e+00> : vector<8x2048xf32>
    %11 = tpu.matmul %10, %9, %cst {dimension_numbers = #tpu.dot_dimension_numbers<[1], [0], [0], [1], [0, 0, 1, 1], [], []>} : vector<8x128xbf16>, vector<128x2048xbf16>, vector<8x2048xf32> -> vector<8x2048xf32>
    %c0_3 = arith.constant 0 : index
    %c0_4 = arith.constant 0 : index
    %12 = vector.load %arg2[%c0_3, %c0_4] : memref<1x2048xf32, #tpu.memory_space<vmem>>, vector<1x2048xf32>
    %13 = vector.broadcast %12 : vector<1x2048xf32> to vector<8x2048xf32>
    %14 = arith.addf %11, %13 : vector<8x2048xf32>
    %cst_5 = arith.constant 0.000000e+00 : f32
    %15 = vector.broadcast %cst_5 : f32 to vector<8x2048xf32>
    %16 = arith.maximumf %14, %15 : vector<8x2048xf32>
    %c0_i32_6 = arith.constant 0 : i32
    %17 = tpu.memref_slice %arg16[%c0_i32_6] : memref<4x!tpu.dma_semaphore, #tpu.memory_space<semaphore_mem>> -> memref<1x!tpu.dma_semaphore, #tpu.memory_space<semaphore_mem>>
    %18 = tpu.memref_squeeze %17 : memref<1x!tpu.dma_semaphore, #tpu.memory_space<semaphore_mem>> -> memref<!tpu.dma_semaphore, #tpu.memory_space<semaphore_mem>>
    tpu.wait_dma2 semaphore(%18 : memref<!tpu.dma_semaphore, #tpu.memory_space<semaphore_mem>>) src(%arg3 : memref<2048x1024xbf16, #tpu.memory_space<any>>) dst(%arg12 : memref<2048x1024xbf16, #tpu.memory_space<vmem>>)
    %c0_7 = arith.constant 0 : index
    %c0_8 = arith.constant 0 : index
    %19 = vector.load %arg12[%c0_7, %c0_8] : memref<2048x1024xbf16, #tpu.memory_space<vmem>>, vector<2048x1024xbf16>
    %20 = arith.truncf %16 : vector<8x2048xf32> to vector<8x2048xbf16>
    %cst_9 = arith.constant dense<0.000000e+00> : vector<8x1024xf32>
    %21 = tpu.matmul %20, %19, %cst_9 {dimension_numbers = #tpu.dot_dimension_numbers<[1], [0], [0], [1], [0, 0, 1, 1], [], []>} : vector<8x2048xbf16>, vector<2048x1024xbf16>, vector<8x1024xf32> -> vector<8x1024xf32>
    %c0_10 = arith.constant 0 : index
    %c0_11 = arith.constant 0 : index
    %22 = vector.load %arg4[%c0_10, %c0_11] : memref<1x1024xf32, #tpu.memory_space<vmem>>, vector<1x1024xf32>
    %23 = vector.broadcast %22 : vector<1x1024xf32> to vector<8x1024xf32>
    %24 = arith.addf %21, %23 : vector<8x1024xf32>
    %cst_12 = arith.constant 0.000000e+00 : f32
    %25 = vector.broadcast %cst_12 : f32 to vector<8x1024xf32>
    %26 = arith.maximumf %24, %25 : vector<8x1024xf32>
    %c1_i32_13 = arith.constant 1 : i32
    %27 = tpu.memref_slice %arg16[%c1_i32_13] : memref<4x!tpu.dma_semaphore, #tpu.memory_space<semaphore_mem>> -> memref<1x!tpu.dma_semaphore, #tpu.memory_space<semaphore_mem>>
    %28 = tpu.memref_squeeze %27 : memref<1x!tpu.dma_semaphore, #tpu.memory_space<semaphore_mem>> -> memref<!tpu.dma_semaphore, #tpu.memory_space<semaphore_mem>>
    tpu.wait_dma2 semaphore(%28 : memref<!tpu.dma_semaphore, #tpu.memory_space<semaphore_mem>>) src(%arg5 : memref<1024x256xbf16, #tpu.memory_space<any>>) dst(%arg13 : memref<1024x256xbf16, #tpu.memory_space<vmem>>)
    %c0_14 = arith.constant 0 : index
    %c0_15 = arith.constant 0 : index
    %29 = vector.load %arg13[%c0_14, %c0_15] : memref<1024x256xbf16, #tpu.memory_space<vmem>>, vector<1024x256xbf16>
    %30 = arith.truncf %26 : vector<8x1024xf32> to vector<8x1024xbf16>
    %cst_16 = arith.constant dense<0.000000e+00> : vector<8x256xf32>
    %31 = tpu.matmul %30, %29, %cst_16 {dimension_numbers = #tpu.dot_dimension_numbers<[1], [0], [0], [1], [0, 0, 1, 1], [], []>} : vector<8x1024xbf16>, vector<1024x256xbf16>, vector<8x256xf32> -> vector<8x256xf32>
    %c0_17 = arith.constant 0 : index
    %c0_18 = arith.constant 0 : index
    %32 = vector.load %arg6[%c0_17, %c0_18] : memref<1x256xf32, #tpu.memory_space<vmem>>, vector<1x256xf32>
    %33 = vector.broadcast %32 : vector<1x256xf32> to vector<8x256xf32>
    %34 = arith.addf %31, %33 : vector<8x256xf32>
    %cst_19 = arith.constant 0.000000e+00 : f32
    %35 = vector.broadcast %cst_19 : f32 to vector<8x256xf32>
    %36 = arith.maximumf %34, %35 : vector<8x256xf32>
    %c2_i32_20 = arith.constant 2 : i32
    %37 = tpu.memref_slice %arg16[%c2_i32_20] : memref<4x!tpu.dma_semaphore, #tpu.memory_space<semaphore_mem>> -> memref<1x!tpu.dma_semaphore, #tpu.memory_space<semaphore_mem>>
    %38 = tpu.memref_squeeze %37 : memref<1x!tpu.dma_semaphore, #tpu.memory_space<semaphore_mem>> -> memref<!tpu.dma_semaphore, #tpu.memory_space<semaphore_mem>>
    tpu.wait_dma2 semaphore(%38 : memref<!tpu.dma_semaphore, #tpu.memory_space<semaphore_mem>>) src(%arg7 : memref<256x64xbf16, #tpu.memory_space<any>>) dst(%arg14 : memref<256x64xbf16, #tpu.memory_space<vmem>>)
    %c0_21 = arith.constant 0 : index
    %c0_22 = arith.constant 0 : index
    %39 = vector.load %arg14[%c0_21, %c0_22] : memref<256x64xbf16, #tpu.memory_space<vmem>>, vector<256x64xbf16>
    %40 = arith.truncf %36 : vector<8x256xf32> to vector<8x256xbf16>
    %cst_23 = arith.constant dense<0.000000e+00> : vector<8x64xf32>
    %41 = tpu.matmul %40, %39, %cst_23 {dimension_numbers = #tpu.dot_dimension_numbers<[1], [0], [0], [1], [0, 0, 1, 1], [], []>} : vector<8x256xbf16>, vector<256x64xbf16>, vector<8x64xf32> -> vector<8x64xf32>
    %c0_24 = arith.constant 0 : index
    %c0_25 = arith.constant 0 : index
    %42 = vector.load %arg8[%c0_24, %c0_25] : memref<1x64xf32, #tpu.memory_space<vmem>>, vector<1x64xf32>
    %43 = vector.broadcast %42 : vector<1x64xf32> to vector<8x64xf32>
    %44 = arith.addf %41, %43 : vector<8x64xf32>
    %cst_26 = arith.constant 0.000000e+00 : f32
    %45 = vector.broadcast %cst_26 : f32 to vector<8x64xf32>
    %46 = arith.maximumf %44, %45 : vector<8x64xf32>
    %c3_i32_27 = arith.constant 3 : i32
    %47 = tpu.memref_slice %arg16[%c3_i32_27] : memref<4x!tpu.dma_semaphore, #tpu.memory_space<semaphore_mem>> -> memref<1x!tpu.dma_semaphore, #tpu.memory_space<semaphore_mem>>
    %48 = tpu.memref_squeeze %47 : memref<1x!tpu.dma_semaphore, #tpu.memory_space<semaphore_mem>> -> memref<!tpu.dma_semaphore, #tpu.memory_space<semaphore_mem>>
    tpu.wait_dma2 semaphore(%48 : memref<!tpu.dma_semaphore, #tpu.memory_space<semaphore_mem>>) src(%arg9 : memref<64x128xbf16, #tpu.memory_space<any>>) dst(%arg15 : memref<64x128xbf16, #tpu.memory_space<vmem>>)
    %c0_28 = arith.constant 0 : index
    %c0_29 = arith.constant 0 : index
    %49 = vector.load %arg15[%c0_28, %c0_29] : memref<64x128xbf16, #tpu.memory_space<vmem>>, vector<64x128xbf16>
    %50 = arith.truncf %46 : vector<8x64xf32> to vector<8x64xbf16>
    %cst_30 = arith.constant dense<0.000000e+00> : vector<8x128xf32>
    %51 = tpu.matmul %50, %49, %cst_30 {dimension_numbers = #tpu.dot_dimension_numbers<[1], [0], [0], [1], [0, 0, 1, 1], [], []>} : vector<8x64xbf16>, vector<64x128xbf16>, vector<8x128xf32> -> vector<8x128xf32>
    %c0_31 = arith.constant 0 : index
    %c0_32 = arith.constant 0 : index
    %52 = vector.load %arg10[%c0_31, %c0_32] : memref<1x128xf32, #tpu.memory_space<vmem>>, vector<1x128xf32>
    %53 = vector.broadcast %52 : vector<1x128xf32> to vector<8x128xf32>
    %54 = arith.addf %51, %53 : vector<8x128xf32>
    %c0_33 = arith.constant 0 : index
    %c0_34 = arith.constant 0 : index
    %55 = vector.load %arg11[%c0_33, %c0_34] : memref<8x128xf32, #tpu.memory_space<vmem>>, vector<8x128xf32>
    tpu.vector_store %arg11[%c0_33, %c0_34], %54 {strides = array<i32>} : memref<8x128xf32, #tpu.memory_space<vmem>>, vector<8x128xf32>,
    return
  }
}

</mosaic_0001>

<bundles_post_ra>
// kernel: _fnn_forward_impl.1
= control target key start
LH: loop header
LB: loop body
LE: loop exit
PB: predicated region body
PF: predicated region fallthrough
CT: control target
= control target key end

     0   :  { %16 = vsyncpa [#allocation8], 0  ;;  %s12556_s0 = inlined_call_operand.hbm [shape: f32[8,128], index: 0, kind: input, shape index: {}]   ;;  %s12557_s1 = inlined_call_operand.hbm [shape: bf16[128,2048], index: 1, kind: input, shape index: {}]   ;;  %s12558_s2 = inlined_call_operand.hbm [shape: f32[1,2048], index: 2, kind: input, shape index: {}]   ;;  %s12559_s3 = inlined_call_operand.hbm [shape: bf16[2048,1024], index: 3, kind: input, shape index: {}]   ;;  %s12560_s4 = inlined_call_operand.hbm [shape: f32[1,1024], index: 4, kind: input, shape index: {}]   ;;  %s12561_s5 = inlined_call_operand.hbm [shape: bf16[1024,256], index: 5, kind: input, shape index: {}]   ;;  %s12562_s6 = inlined_call_operand.hbm [shape: f32[1,256], index: 6, kind: input, shape index: {}]   ;;  %s12563_s7 = inlined_call_operand.vmem [shape: bf16[256,64], index: 7, kind: input, shape index: {}]   ;;  %s12564_s8 = inlined_call_operand.hbm [shape: f32[1,64], index: 8, kind: input, shape index: {}]   ;;  %s12565_s9 = inlined_call_operand.hbm [shape: bf16[64,128], index: 9, kind: input, shape index: {}]   ;;  %s12566_s10 = inlined_call_operand.hbm [shape: f32[1,128], index: 10, kind: input, shape index: {}]   ;;  %s12567_s11 = inlined_call_operand.hbm [shape: f32[8,128], index: 11, kind: output, shape index: {}]  }
   0x1   :  { %17 = vsyncpa [#allocation11], 0 }
   0x2   :  { %18 = vsyncpa [#allocation14], 0 }
   0x3   :  { %19 = vsyncpa [#allocation17], 0 }
   0x4   :  { %20 = vsyncpa [#allocation9], 0  ;;  %s12045_s17 = smov [#allocation10]  }
   0x5   :  { %s36_s18 = sshll.u32 %s12045_s17, 4  ;;  %s37_s18 = int_to_ptr.vmem [resolvable:$true] %s36_s18 }
   0x6   :  { %s11815_s19 = scalar_lea.vmem %s37_s18, 16384  ;;  %p11820_p1 = scmp.lt.s32.totalorder %s37_s18, %s37_s18 }
   0x7   :  { %p11816_p0 = scmp.ne.s32.totalorder %s37_s18, %s11815_s19  ;;  %p11821_p2 = scmp.lt.s32.totalorder %s11815_s19, %s11815_s19 }
   0x9   :  { %p11822_p3 = por %p11821_p2, %p11820_p1 }
   0xb   :  { %p11823_p4 = pnand %p11822_p3, %p11816_p0 }
   0xd   :  { %11826 = shalt.err (!%p11823_p4)
}
   0xe   :  { %s12046_s20 = smov 1024   ;;  %s12047_s21 = smov 64  }
   0xf   :  { %42 = dma.hbm_to_vmem [thread:$0]  %s12557_s1, 16384, %s37_s18, [#allocation11], %s12046_s20, %s12046_s20, %s12047_s21  }
  0x10   :  { %s12048_s24 = smov [#allocation13]   ;;  %s12049_s26 = smov [#allocation16]  }
  0x11   :  { %s59_s25 = sshll.u32 %s12048_s24, 4  ;;  %s79_s27 = sshll.u32 %s12049_s26, 4  ;;  %s60_s25 = int_to_ptr.vmem [resolvable:$true] %s59_s25  ;;  %s80_s27 = int_to_ptr.vmem [resolvable:$true] %s79_s27 }
  0x12   :  { %s11835_s28 = scalar_lea.vmem %s60_s25, 128  ;;  %p11840_p6 = scmp.lt.s32.totalorder %s60_s25, %s60_s25 }
  0x13   :  { %p11836_p5 = scmp.ne.s32.totalorder %s60_s25, %s11835_s28  ;;  %p11841_p7 = scmp.lt.s32.totalorder %s11835_s28, %s11835_s28 }
  0x15   :  { %p11842_p8 = por %p11841_p7, %p11840_p6 }
  0x17   :  { %p11843_p9 = pnand %p11842_p8, %p11836_p5 }
  0x19   :  { %11846 = shalt.err (!%p11843_p9)
}
  0x1a   :  { %62 = dma.hbm_to_vmem [thread:$0]  %s12560_s4, 128, %s60_s25, [#allocation14]  }
  0x1b   :  { %s11855_s12 = scalar_lea.vmem %s80_s27, 16  ;;  %s11859_s1 = scalar_lea.vmem %s80_s27, 32 }
  0x1c   :  { %p11856_p10 = scmp.ne.s32.totalorder %s80_s27, %s11855_s12  ;;  %p11860_p11 = scmp.lt.s32.totalorder %s80_s27, %s80_s27 }
  0x1d   :  { %p11861_p12 = scmp.lt.s32.totalorder %s11859_s1, %s11855_s12 }
  0x1f   :  { %p11862_p13 = por %p11861_p12, %p11860_p11 }
  0x21   :  { %p11863_p0 = pnand %p11862_p13, %p11856_p10 }
  0x23   :  { %11866 = shalt.err (!%p11863_p0)
}
  0x24   :  { %82 = dma.hbm_to_vmem [thread:$0]  %s12564_s8, 16, %s80_s27, [#allocation17]  }
  0x25   :  { %s12050_s15 = smov [#allocation7]   ;;  %s12051_s17 = smov [#allocation12]  }
  0x26   :  { %s27_s16 = sshll.u32 %s12050_s15, 4  ;;  %s49_s18 = sshll.u32 %s12051_s17, 4  ;;  %s28_s16 = int_to_ptr.vmem [resolvable:$true] %s27_s16  ;;  %s50_s18 = int_to_ptr.vmem [resolvable:$true] %s49_s18 }
  0x27   :  { %s11875_s19 = scalar_lea.vmem %s28_s16, 128  ;;  %p11880_p2 = scmp.lt.s32.totalorder %s28_s16, %s28_s16 }
  0x28   :  { %p11876_p1 = scmp.ne.s32.totalorder %s28_s16, %s11875_s19  ;;  %p11881_p3 = scmp.lt.s32.totalorder %s11875_s19, %s11875_s19 }
  0x2a   :  { %p11882_p4 = por %p11881_p3, %p11880_p2 }
  0x2c   :  { %p11883_p5 = pnand %p11882_p4, %p11876_p1 }
  0x2e   :  { %11886 = shalt.err (!%p11883_p5)
}
  0x2f   :  { %30 = dma.hbm_to_vmem [thread:$0]  %s12556_s0, 128, %s28_s16, [#allocation8]  }
  0x30   :  { %s11895_s21 = scalar_lea.vmem %s50_s18, 256  ;;  %p11900_p7 = scmp.lt.s32.totalorder %s50_s18, %s50_s18 }
  0x31   :  { %p11896_p6 = scmp.ne.s32.totalorder %s50_s18, %s11895_s21  ;;  %p11901_p8 = scmp.lt.s32.totalorder %s11895_s21, %s11895_s21 }
  0x33   :  { %p11902_p9 = por %p11901_p8, %p11900_p7 }
  0x35   :  { %p11903_p10 = pnand %p11902_p9, %p11896_p6 }
  0x37   :  { %11906 = shalt.err (!%p11903_p10)
}
  0x38   :  { %52 = dma.hbm_to_vmem [thread:$0]  %s12558_s2, 256, %s50_s18, [#allocation11]  }
  0x39   :  { %s12052_s23 = smov [#allocation15]   ;;  %s12053_s25 = smov [#allocation18]  }
  0x3a   :  { %s69_s24 = sshll.u32 %s12052_s23, 4  ;;  %s89_s26 = sshll.u32 %s12053_s25, 4  ;;  %s70_s24 = int_to_ptr.vmem [resolvable:$true] %s69_s24  ;;  %s90_s26 = int_to_ptr.vmem [resolvable:$true] %s89_s26 }
  0x3b   :  { %s11915_s27 = scalar_lea.vmem %s70_s24, 32  ;;  %p11920_p12 = scmp.lt.s32.totalorder %s70_s24, %s70_s24 }
  0x3c   :  { %p11916_p11 = scmp.ne.s32.totalorder %s70_s24, %s11915_s27  ;;  %p11921_p13 = scmp.lt.s32.totalorder %s11915_s27, %s11915_s27 }
  0x3e   :  { %p11922_p0 = por %p11921_p13, %p11920_p12 }
  0x40   :  { %p11923_p1 = pnand %p11922_p0, %p11916_p11 }
  0x42   :  { %11926 = shalt.err (!%p11923_p1)
}
  0x43   :  { %72 = dma.hbm_to_vmem [thread:$0]  %s12562_s6, 32, %s70_s24, [#allocation14]  }
  0x44   :  { %s11935_s29 = scalar_lea.vmem %s90_s26, 16  ;;  %s11939_s2 = scalar_lea.vmem %s90_s26, 32 }
  0x45   :  { %p11936_p2 = scmp.ne.s32.totalorder %s90_s26, %s11935_s29  ;;  %p11940_p3 = scmp.lt.s32.totalorder %s90_s26, %s90_s26 }
  0x46   :  { %p11941_p4 = scmp.lt.s32.totalorder %s11939_s2, %s11935_s29 }
  0x48   :  { %p11942_p5 = por %p11941_p4, %p11940_p3 }
  0x4a   :  { %p11943_p6 = pnand %p11942_p5, %p11936_p2 }
  0x4c   :  { %11946 = shalt.err (!%p11943_p6)
}
  0x4d   :  { %92 = dma.hbm_to_vmem [thread:$0]  %s12566_s10, 16, %s90_s26, [#allocation17]  }
  0x4e   :  { %12027 = dma.done.wait [#allocation8], 128  }
  0x4f   :  { %12028 = vsyncadd [#allocation8], 4294967168 }
  0x50   :  { %12029 = dma.done.wait [#allocation11], 16640  }
  0x51   :  { %12030 = vsyncadd [#allocation11], 4294950656 }
  0x52   :  { %12031 = dma.done.wait [#allocation14], 160  }
  0x53   :  { %12032 = vsyncadd [#allocation14], 4294967136 }
  0x54   :  { %12033 = dma.done.wait [#allocation17], 32  }
  0x55   :  { %12034 = vsyncadd [#allocation17], 4294967264  ;;  %s12054_s6 = smov [#allocation2]   ;;  %s12055_s13 = smov [#allocation3]  }
  0x56   :  { %s122_s1 = sshll.u32 %s12054_s6, 4  ;;  %s134_s14 = sshll.u32 %s12055_s13, 4  ;;  %s123_s1 = int_to_ptr.vmem [resolvable:$true] %s122_s1  ;;  %s135_s14 = int_to_ptr.vmem [resolvable:$true] %s134_s14 }
  0x57   :  { %s11955_s15 = scalar_lea.vmem %s123_s1, 131072  ;;  %p11960_p8 = scmp.lt.s32.totalorder %s123_s1, %s123_s1 }
  0x58   :  { %p11956_p7 = scmp.ne.s32.totalorder %s123_s1, %s11955_s15  ;;  %p11961_p9 = scmp.lt.s32.totalorder %s11955_s15, %s11955_s15 }
  0x5a   :  { %p11962_p10 = por %p11961_p9, %p11960_p8 }
  0x5c   :  { %p11963_p11 = pnand %p11962_p10, %p11956_p7 }
  0x5e   :  { %11966 = shalt.err (!%p11963_p11)  }
  0x5f   :  { %125 = dma.hbm_to_vmem [thread:$0]  %s12559_s3, 131072, %s123_s1, [#allocation6] }
  0x60   :  { %s11975_s17 = scalar_lea.vmem %s135_s14, 16384  ;;  %p11980_p13 = scmp.lt.s32.totalorder %s135_s14, %s135_s14 }
  0x61   :  { %p11976_p12 = scmp.ne.s32.totalorder %s135_s14, %s11975_s17  ;;  %p11981_p0 = scmp.lt.s32.totalorder %s11975_s17, %s11975_s17 }
  0x63   :  { %p11982_p1 = por %p11981_p0, %p11980_p13 }
  0x65   :  { %p11983_p2 = pnand %p11982_p1, %p11976_p12 }
  0x67   :  { %11986 = shalt.err (!%p11983_p2)  }
  0x68   :  { %137 = dma.hbm_to_vmem [thread:$0]  %s12561_s5, 16384, %s135_s14, [#allocation6 + $0x1]  ;;  %v172_v0 = vld [vmem:[%s12563_s7] sm:$0xff]  ;;  %v174_v1 = vld [vmem:[%s12563_s7 + $0x8] sm:$0xff]  ;;  %v176_v2 = vld [vmem:[%s12563_s7 + $0x10] sm:$0xff]  ;;  %v12056_v24 = vmov 0  }
  0x69   :  { %173 = vst [vmem:[#allocation4] sm:$0xff] %v172_v0  ;;  %175 = vst [vmem:[#allocation4 + $0x8] sm:$0xff] %v174_v1  ;;  %v178_v3 = vld [vmem:[%s12563_s7 + $0x18] sm:$0xff]  ;;  %v180_v4 = vld [vmem:[%s12563_s7 + $0x20] sm:$0xff]  ;;  %1110 = vmatprep.mubr.bf16.mxu0 %v12056_v24  ;;  %1151 = vmatprep.mubr.bf16.mxu1 %v12056_v24 }
  0x6a   :  { %177 = vst [vmem:[#allocation4 + $0x10] sm:$0xff] %v176_v2  ;;  %v182_v5 = vld [vmem:[%s12563_s7 + $0x28] sm:$0xff]  ;;  %179 = vst [vmem:[#allocation4 + $0x18] sm:$0xff] %v178_v3  ;;  %v184_v6 = vld [vmem:[%s12563_s7 + $0x30] sm:$0xff] }
  0x6b   :  { %181 = vst [vmem:[#allocation4 + $0x20] sm:$0xff] %v180_v4  ;;  %183 = vst [vmem:[#allocation4 + $0x28] sm:$0xff] %v182_v5  ;;  %v186_v7 = vld [vmem:[%s12563_s7 + $0x38] sm:$0xff]  ;;  %v188_v8 = vld [vmem:[%s12563_s7 + $0x40] sm:$0xff] }
  0x6c   :  { %185 = vst [vmem:[#allocation4 + $0x30] sm:$0xff] %v184_v6  ;;  %187 = vst [vmem:[#allocation4 + $0x38] sm:$0xff] %v186_v7  ;;  %v190_v9 = vld [vmem:[%s12563_s7 + $0x48] sm:$0xff]  ;;  %v192_v10 = vld [vmem:[%s12563_s7 + $0x50] sm:$0xff] }
  0x6d   :  { %189 = vst [vmem:[#allocation4 + $0x40] sm:$0xff] %v188_v8  ;;  %v194_v11 = vld [vmem:[%s12563_s7 + $0x58] sm:$0xff]  ;;  %191 = vst [vmem:[#allocation4 + $0x48] sm:$0xff] %v190_v9  ;;  %v196_v12 = vld [vmem:[%s12563_s7 + $0x60] sm:$0xff] }
  0x6e   :  { %193 = vst [vmem:[#allocation4 + $0x50] sm:$0xff] %v192_v10  ;;  %195 = vst [vmem:[#allocation4 + $0x58] sm:$0xff] %v194_v11  ;;  %v198_v13 = vld [vmem:[%s12563_s7 + $0x68] sm:$0xff]  ;;  %v200_v14 = vld [vmem:[%s12563_s7 + $0x70] sm:$0xff] }
  0x6f   :  { %197 = vst [vmem:[#allocation4 + $0x60] sm:$0xff] %v196_v12  ;;  %199 = vst [vmem:[#allocation4 + $0x68] sm:$0xff] %v198_v13  ;;  %v202_v15 = vld [vmem:[%s12563_s7 + $0x78] sm:$0xff]  ;;  %v337_v16 = vld [vmem:[#allocation10 + $0x380] sm:$0xff] }
  0x70   :  { %201 = vst [vmem:[#allocation4 + $0x70] sm:$0xff] %v200_v14  ;;  %203 = vst [vmem:[#allocation4 + $0x78] sm:$0xff] %v202_v15  ;;  %v345_v17 = vld [vmem:[#allocation10 + $0x3c0] sm:$0xff]  ;;  %v338_v18 = vld [vmem:[#allocation10 + $0x388] sm:$0xff] }
  0x71   :  { %v10343_v19 = vcombine.high %v337_v16, %v345_v17  ;;  %v346_v20 = vld [vmem:[#allocation10 + $0x3c8] sm:$0xff]  ;;  %v10342_v21 = vcombine.low %v337_v16, %v345_v17  ;;  %v321_v22 = vld [vmem:[#allocation10 + $0x300] sm:$0xff]  ;;  %v339_v15 = vld [vmem:[#allocation10 + $0x390] sm:$0xff] }
  0x72   :  { %v329_v23 = vld [vmem:[#allocation10 + $0x340] sm:$0xff]  ;;  %v10345_v25 = vcombine.high %v338_v18, %v346_v20  ;;  %v10344_v26 = vcombine.low %v338_v18, %v346_v20  ;;  %v322_v28 = vld [vmem:[#allocation10 + $0x308] sm:$0xff]  ;;  %v347_v16 = vld [vmem:[#allocation10 + $0x3d0] sm:$0xff] }
  0x73   :  { %v10327_v27 = vcombine.high %v321_v22, %v329_v23  ;;  %v330_v29 = vld [vmem:[#allocation10 + $0x348] sm:$0xff]  ;;  %v305_v30 = vld [vmem:[#allocation10 + $0x280] sm:$0xff]  ;;  %1078 = vmatprep.subr.bf16.mxu0 %v10343_v19  ;;  %v10326_v35 = vcombine.low %v321_v22, %v329_v23  ;;  %v340_v17 = vld [vmem:[#allocation10 + $0x398] sm:$0xff]  ;;  %v10347_v22 = vcombine.high %v339_v15, %v347_v16 }
  0x74   :  { %v10329_v31 = vcombine.high %v322_v28, %v330_v29  ;;  %v313_v32 = vld [vmem:[#allocation10 + $0x2c0] sm:$0xff]  ;;  %v306_v33 = vld [vmem:[#allocation10 + $0x288] sm:$0xff]  ;;  %1119 = vmatprep.subr.bf16.mxu1 %v10345_v25  ;;  %1079 = vmatpush1.bf16.msra.mxu0 %v10342_v21  ;;  %v10328_v36 = vcombine.low %v322_v28, %v330_v29  ;;  %v348_v18 = vld [vmem:[#allocation10 + $0x3d8] sm:$0xff] }
  0x75   :  { %v314_v34 = vld [vmem:[#allocation10 + $0x2c8] sm:$0xff]  ;;  %1120 = vmatpush1.bf16.msra.mxu1 %v10344_v26  ;;  %1080 = vmatprep.subr.bf16.mxu0 %v10327_v27  ;;  %v10311_v37 = vcombine.high %v305_v30, %v313_v32  ;;  %v289_v39 = vld [vmem:[#allocation10 + $0x200] sm:$0xff]  ;;  %v10310_v43 = vcombine.low %v305_v30, %v313_v32  ;;  %v224_v20 = vld [vmem:[#allocation7] sm:$0xff]  ;;  %v10349_v23 = vcombine.high %v340_v17, %v348_v18 }
  0x76   :  { %1121 = vmatprep.subr.bf16.mxu1 %v10329_v31  ;;  %v10313_v38 = vcombine.high %v306_v33, %v314_v34  ;;  %v297_v40 = vld [vmem:[#allocation10 + $0x240] sm:$0xff]  ;;  %v290_v41 = vld [vmem:[#allocation10 + $0x208] sm:$0xff]  ;;  %v10312_v44 = vcombine.low %v306_v33, %v314_v34  ;;  %v323_v25 = vld [vmem:[#allocation10 + $0x310] sm:$0xff]  ;;  %v12198_v27 = vpack.c.bf16 %v224_v20, %v224_v20  ;;  %v10346_v30 = vcombine.low %v339_v15, %v347_v16 }
  0x77   :  { %v298_v42 = vld [vmem:[#allocation10 + $0x248] sm:$0xff]  ;;  %v10295_v45 = vcombine.high %v289_v39, %v297_v40  ;;  %v273_v47 = vld [vmem:[#allocation10 + $0x180] sm:$0xff]  ;;  %v10294_v51 = vcombine.low %v289_v39, %v297_v40  ;;  %v331_v26 = vld [vmem:[#allocation10 + $0x350] sm:$0xff]  ;;  %v10348_v31 = vcombine.low %v340_v17, %v348_v18 }
  0x78   :  { %1081 = vmatpush1.bf16.msra.mxu0 %v10326_v35  ;;  %v10297_v46 = vcombine.high %v290_v41, %v298_v42  ;;  %v281_v48 = vld [vmem:[#allocation10 + $0x1c0] sm:$0xff]  ;;  %v274_v49 = vld [vmem:[#allocation10 + $0x188] sm:$0xff]  ;;  %v10296_v52 = vcombine.low %v290_v41, %v298_v42  ;;  %v324_v28 = vld [vmem:[#allocation10 + $0x318] sm:$0xff]  ;;  %v10331_v32 = vcombine.high %v323_v25, %v331_v26 }
  0x79   :  { %1122 = vmatpush1.bf16.msra.mxu1 %v10328_v36  ;;  %1082 = vmatprep.subr.bf16.mxu0 %v10311_v37  ;;  %v282_v50 = vld [vmem:[#allocation10 + $0x1c8] sm:$0xff]  ;;  %v10279_v53 = vcombine.high %v273_v47, %v281_v48  ;;  %v257_v55 = vld [vmem:[#allocation10 + $0x100] sm:$0xff]  ;;  %v10278_v59 = vcombine.low %v273_v47, %v281_v48  ;;  %v332_v29 = vld [vmem:[#allocation10 + $0x358] sm:$0xff] }
  0x7a   :  { %1123 = vmatprep.subr.bf16.mxu1 %v10313_v38  ;;  %v10281_v54 = vcombine.high %v274_v49, %v282_v50  ;;  %v265_v56 = vld [vmem:[#allocation10 + $0x140] sm:$0xff]  ;;  %v258_v57 = vld [vmem:[#allocation10 + $0x108] sm:$0xff]  ;;  %v10280_v60 = vcombine.low %v274_v49, %v282_v50  ;;  %v10333_v33 = vcombine.high %v324_v28, %v332_v29  ;;  %v307_v34 = vld [vmem:[#allocation10 + $0x290] sm:$0xff]  ;;  %v10330_v38 = vcombine.low %v323_v25, %v331_v26 }
  0x7b   :  { %v266_v58 = vld [vmem:[#allocation10 + $0x148] sm:$0xff]  ;;  %v10263_v61 = vcombine.high %v257_v55, %v265_v56  ;;  %v241_v63 = vld [vmem:[#allocation10 + $0x80] sm:$0xff]  ;;  %v10262_v3 = vcombine.low %v257_v55, %v265_v56  ;;  %v315_v35 = vld [vmem:[#allocation10 + $0x2d0] sm:$0xff]  ;;  %v10332_v39 = vcombine.low %v324_v28, %v332_v29 }
  0x7c   :  { %1083 = vmatpush1.bf16.msra.mxu0 %v10310_v43  ;;  %v10265_v62 = vcombine.high %v258_v57, %v266_v58  ;;  %v249_v0 = vld [vmem:[#allocation10 + $0xc0] sm:$0xff]  ;;  %v242_v1 = vld [vmem:[#allocation10 + $0x88] sm:$0xff]  ;;  %v10264_v4 = vcombine.low %v258_v57, %v266_v58  ;;  %v308_v36 = vld [vmem:[#allocation10 + $0x298] sm:$0xff]  ;;  %v10315_v40 = vcombine.high %v307_v34, %v315_v35 }
  0x7d   :  { %1124 = vmatpush1.bf16.msra.mxu1 %v10312_v44  ;;  %1084 = vmatprep.subr.bf16.mxu0 %v10295_v45  ;;  %v250_v2 = vld [vmem:[#allocation10 + $0xc8] sm:$0xff]  ;;  %v10247_v5 = vcombine.high %v241_v63, %v249_v0  ;;  %v225_v7 = vld [vmem:[#allocation10] sm:$0xff]  ;;  %v10246_v11 = vcombine.low %v241_v63, %v249_v0  ;;  %v316_v37 = vld [vmem:[#allocation10 + $0x2d8] sm:$0xff] }
  0x7e   :  { %1125 = vmatprep.subr.bf16.mxu1 %v10297_v46  ;;  %v10249_v6 = vcombine.high %v242_v1, %v250_v2  ;;  %v233_v8 = vld [vmem:[#allocation10 + $0x40] sm:$0xff]  ;;  %v226_v9 = vld [vmem:[#allocation10 + $0x8] sm:$0xff]  ;;  %v10248_v12 = vcombine.low %v242_v1, %v250_v2  ;;  %v10317_v41 = vcombine.high %v308_v36, %v316_v37  ;;  %v291_v42 = vld [vmem:[#allocation10 + $0x210] sm:$0xff]  ;;  %v10314_v46 = vcombine.low %v307_v34, %v315_v35 }
  0x7f   :  { %v234_v10 = vld [vmem:[#allocation10 + $0x48] sm:$0xff]  ;;  %v10231_v13 = vcombine.high %v225_v7, %v233_v8  ;;  %v10230_v19 = vcombine.low %v225_v7, %v233_v8  ;;  %v299_v43 = vld [vmem:[#allocation10 + $0x250] sm:$0xff]  ;;  %v292_v44 = vld [vmem:[#allocation10 + $0x218] sm:$0xff]  ;;  %v10316_v47 = vcombine.low %v308_v36, %v316_v37 }
  0x80   :  { %1085 = vmatpush1.bf16.msra.mxu0 %v10294_v51  ;;  %v10233_v14 = vcombine.high %v226_v9, %v234_v10  ;;  %v10232_v21 = vcombine.low %v226_v9, %v234_v10  ;;  %v300_v45 = vld [vmem:[#allocation10 + $0x258] sm:$0xff]  ;;  %v10299_v48 = vcombine.high %v291_v42, %v299_v43  ;;  %v275_v50 = vld [vmem:[#allocation10 + $0x190] sm:$0xff] }
  0x81   :  { %1126 = vmatpush1.bf16.msra.mxu1 %v10296_v52  ;;  %1086 = vmatprep.subr.bf16.mxu0 %v10279_v53  ;;  %v10301_v49 = vcombine.high %v292_v44, %v300_v45  ;;  %v283_v51 = vld [vmem:[#allocation10 + $0x1d0] sm:$0xff]  ;;  %v276_v52 = vld [vmem:[#allocation10 + $0x198] sm:$0xff] }
  0x82   :  { %1127 = vmatprep.subr.bf16.mxu1 %v10281_v54  ;;  %v284_v53 = vld [vmem:[#allocation10 + $0x1d8] sm:$0xff] }
  0x84   :  { %1087 = vmatpush1.bf16.msra.mxu0 %v10278_v59 }
  0x85   :  { %1128 = vmatpush1.bf16.msra.mxu1 %v10280_v60  ;;  %1088 = vmatprep.subr.bf16.mxu0 %v10263_v61 }
  0x86   :  { %1129 = vmatprep.subr.bf16.mxu1 %v10265_v62 }
  0x88   :  { %1089 = vmatpush1.bf16.msra.mxu0 %v10262_v3 }
  0x89   :  { %1130 = vmatpush1.bf16.msra.mxu1 %v10264_v4  ;;  %1090 = vmatprep.subr.bf16.mxu0 %v10247_v5 }
  0x8a   :  { %1131 = vmatprep.subr.bf16.mxu1 %v10249_v6 }
  0x8c   :  { %1091 = vmatpush1.bf16.msra.mxu0 %v10246_v11 }
  0x8d   :  { %1132 = vmatpush1.bf16.msra.mxu1 %v10248_v12  ;;  %1092 = vmatprep.subr.bf16.mxu0 %v10231_v13 }
  0x8e   :  { %1133 = vmatprep.subr.bf16.mxu1 %v10233_v14 }
  0x90   :  { %1093 = vmatpush1.bf16.msra.mxu0 %v10230_v19 }
  0x91   :  { %1134 = vmatpush1.bf16.msra.mxu1 %v10232_v21  ;;  %1160 = vmatprep.subr.bf16.mxu0 %v10347_v22 }
  0x92   :  { %1201 = vmatprep.subr.bf16.mxu1 %v10349_v23 }
  0x93   :  { %1111 = vmatmul.mubr.bf16.vlgmr.msra.gmra.mxu0 %v12198_v27 }
  0x94   :  { %1152 = vmatmul.mubr.bf16.vlgmr.msra.gmra.mxu1 %v12198_v27  ;;  %1161 = vmatpush1.bf16.msra.mxu0 %v10346_v30 }
  0x95   :  { %1202 = vmatpush1.bf16.msra.mxu1 %v10348_v31  ;;  %1162 = vmatprep.subr.bf16.mxu0 %v10331_v32 }
  0x96   :  { %1203 = vmatprep.subr.bf16.mxu1 %v10333_v33  ;;  %1192 = vmatprep.mubr.bf16.mxu0 %v12056_v24 }
  0x97   :  { %1233 = vmatprep.mubr.bf16.mxu1 %v12056_v24 }
  0x98   :  { %1163 = vmatpush1.bf16.msra.mxu0 %v10330_v38 }
  0x99   :  { %1204 = vmatpush1.bf16.msra.mxu1 %v10332_v39  ;;  %1164 = vmatprep.subr.bf16.mxu0 %v10315_v40 }
  0x9a   :  { %1205 = vmatprep.subr.bf16.mxu1 %v10317_v41 }
  0x9b   :  { %211 = vsyncadd [#allocation6 + $0x2], 2048  ;;  %v10298_v54 = vcombine.low %v291_v42, %v299_v43  ;;  %v10300_v55 = vcombine.low %v292_v44, %v300_v45  ;;  %v10283_v56 = vcombine.high %v275_v50, %v283_v51  ;;  %v10285_v57 = vcombine.high %v276_v52, %v284_v53  ;;  %v259_v58 = vld [vmem:[#allocation10 + $0x110] sm:$0xff]  ;;  %v260_v60 = vld [vmem:[#allocation10 + $0x118] sm:$0xff]  ;;  %s12057_s7 = smov [#allocation5]  }
  0x9c   :  { %1165 = vmatpush1.bf16.msra.mxu0 %v10314_v46  ;;  %v267_v59 = vld [vmem:[#allocation10 + $0x150] sm:$0xff]  ;;  %v268_v61 = vld [vmem:[#allocation10 + $0x158] sm:$0xff]  ;;  %v10282_v62 = vcombine.low %v275_v50, %v283_v51  ;;  %v10284_v63 = vcombine.low %v276_v52, %v284_v53  ;;  %v341_v18 = vld [vmem:[#allocation10 + $0x3a0] sm:$0xff]  ;;  %s220_s3 = sshll.u32 %s12057_s7, 4  ;;  %s221_s3 = int_to_ptr.vmem [resolvable:$true] %s220_s3 }
  0x9d   :  { %1206 = vmatpush1.bf16.msra.mxu1 %v10316_v47  ;;  %1166 = vmatprep.subr.bf16.mxu0 %v10299_v48  ;;  %v10267_v0 = vcombine.high %v259_v58, %v267_v59  ;;  %v10269_v1 = vcombine.high %v260_v60, %v268_v61  ;;  %v243_v2 = vld [vmem:[#allocation10 + $0x90] sm:$0xff]  ;;  %v244_v4 = vld [vmem:[#allocation10 + $0x98] sm:$0xff]  ;;  %v10266_v6 = vcombine.low %v259_v58, %v267_v59  ;;  %v349_v19 = vld [vmem:[#allocation10 + $0x3e0] sm:$0xff]  ;;  %s11995_s22 = scalar_lea.vmem %s221_s3, 512  ;;  %p12000_p4 = scmp.lt.s32.totalorder %s221_s3, %s221_s3 }
  0x9e   :  { %1207 = vmatprep.subr.bf16.mxu1 %v10301_v49  ;;  %v251_v3 = vld [vmem:[#allocation10 + $0xd0] sm:$0xff]  ;;  %v252_v5 = vld [vmem:[#allocation10 + $0xd8] sm:$0xff]  ;;  %v10268_v7 = vcombine.low %v260_v60, %v268_v61  ;;  %v342_v20 = vld [vmem:[#allocation10 + $0x3a8] sm:$0xff]  ;;  %v10351_v25 = vcombine.high %v341_v18, %v349_v19  ;;  %v10350_v32 = vcombine.low %v341_v18, %v349_v19  ;;  %p11996_p3 = scmp.ne.s32.totalorder %s221_s3, %s11995_s22  ;;  %p12001_p5 = scmp.lt.s32.totalorder %s11995_s22, %s11995_s22 }
  0x9f   :  { %v10251_v8 = vcombine.high %v243_v2, %v251_v3  ;;  %v10253_v9 = vcombine.high %v244_v4, %v252_v5  ;;  %v227_v10 = vld [vmem:[#allocation10 + $0x10] sm:$0xff]  ;;  %v228_v12 = vld [vmem:[#allocation10 + $0x18] sm:$0xff]  ;;  %v10250_v14 = vcombine.low %v243_v2, %v251_v3  ;;  %v10252_v15 = vcombine.low %v244_v4, %v252_v5  ;;  %v350_v21 = vld [vmem:[#allocation10 + $0x3e8] sm:$0xff] }
  0xa0   :  { %1167 = vmatpush1.bf16.msra.mxu0 %v10298_v54  ;;  %v235_v11 = vld [vmem:[#allocation10 + $0x50] sm:$0xff]  ;;  %v236_v13 = vld [vmem:[#allocation10 + $0x58] sm:$0xff]  ;;  %v10353_v26 = vcombine.high %v342_v20, %v350_v21  ;;  %v325_v28 = vld [vmem:[#allocation10 + $0x320] sm:$0xff]  ;;  %v10352_v33 = vcombine.low %v342_v20, %v350_v21  ;;  %p12002_p6 = por %p12001_p5, %p12000_p4 }
  0xa1   :  { %1208 = vmatpush1.bf16.msra.mxu1 %v10300_v55  ;;  %1168 = vmatprep.subr.bf16.mxu0 %v10283_v56  ;;  %v10235_v16 = vcombine.high %v227_v10, %v235_v11  ;;  %v10237_v17 = vcombine.high %v228_v12, %v236_v13  ;;  %v10234_v22 = vcombine.low %v227_v10, %v235_v11  ;;  %v333_v29 = vld [vmem:[#allocation10 + $0x360] sm:$0xff]  ;;  %v326_v30 = vld [vmem:[#allocation10 + $0x328] sm:$0xff]  ;;  %v343_v20 = vld [vmem:[#allocation10 + $0x3b0] sm:$0xff] }
  0xa2   :  { %1209 = vmatprep.subr.bf16.mxu1 %v10285_v57  ;;  %v10236_v23 = vcombine.low %v228_v12, %v236_v13  ;;  %v334_v31 = vld [vmem:[#allocation10 + $0x368] sm:$0xff]  ;;  %v10335_v34 = vcombine.high %v325_v28, %v333_v29  ;;  %v309_v36 = vld [vmem:[#allocation10 + $0x2a0] sm:$0xff]  ;;  %v10334_v40 = vcombine.low %v325_v28, %v333_v29  ;;  %v351_v21 = vld [vmem:[#allocation10 + $0x3f0] sm:$0xff]  ;;  %p12003_p7 = pnand %p12002_p6, %p11996_p3 }
  0xa3   :  { %v10337_v35 = vcombine.high %v326_v30, %v334_v31  ;;  %v317_v37 = vld [vmem:[#allocation10 + $0x2e0] sm:$0xff]  ;;  %v310_v38 = vld [vmem:[#allocation10 + $0x2a8] sm:$0xff]  ;;  %v10336_v41 = vcombine.low %v326_v30, %v334_v31  ;;  %v10355_v28 = vcombine.high %v343_v20, %v351_v21  ;;  %v327_v30 = vld [vmem:[#allocation10 + $0x330] sm:$0xff] }
  0xa4   :  { %1169 = vmatpush1.bf16.msra.mxu0 %v10282_v62  ;;  %v318_v39 = vld [vmem:[#allocation10 + $0x2e8] sm:$0xff]  ;;  %v10319_v42 = vcombine.high %v309_v36, %v317_v37  ;;  %v293_v44 = vld [vmem:[#allocation10 + $0x220] sm:$0xff]  ;;  %v10318_v48 = vcombine.low %v309_v36, %v317_v37  ;;  %v335_v31 = vld [vmem:[#allocation10 + $0x370] sm:$0xff] }
  0xa5   :  { %1210 = vmatpush1.bf16.msra.mxu1 %v10284_v63  ;;  %1170 = vmatprep.subr.bf16.mxu0 %v10267_v0  ;;  %v10321_v43 = vcombine.high %v310_v38, %v318_v39  ;;  %v301_v45 = vld [vmem:[#allocation10 + $0x260] sm:$0xff]  ;;  %v294_v46 = vld [vmem:[#allocation10 + $0x228] sm:$0xff]  ;;  %v10320_v49 = vcombine.low %v310_v38, %v318_v39  ;;  %v10339_v36 = vcombine.high %v327_v30, %v335_v31  ;;  %v311_v38 = vld [vmem:[#allocation10 + $0x2b0] sm:$0xff] }
  0xa6   :  { %1211 = vmatprep.subr.bf16.mxu1 %v10269_v1  ;;  %v302_v47 = vld [vmem:[#allocation10 + $0x268] sm:$0xff]  ;;  %v10303_v50 = vcombine.high %v293_v44, %v301_v45  ;;  %v277_v52 = vld [vmem:[#allocation10 + $0x1a0] sm:$0xff]  ;;  %v10302_v56 = vcombine.low %v293_v44, %v301_v45  ;;  %v319_v39 = vld [vmem:[#allocation10 + $0x2f0] sm:$0xff] }
  0xa7   :  { %v10305_v51 = vcombine.high %v294_v46, %v302_v47  ;;  %v285_v53 = vld [vmem:[#allocation10 + $0x1e0] sm:$0xff]  ;;  %v278_v54 = vld [vmem:[#allocation10 + $0x1a8] sm:$0xff]  ;;  %v10304_v57 = vcombine.low %v294_v46, %v302_v47  ;;  %v10323_v44 = vcombine.high %v311_v38, %v319_v39  ;;  %v295_v46 = vld [vmem:[#allocation10 + $0x230] sm:$0xff] }
  0xa8   :  { %1171 = vmatpush1.bf16.msra.mxu0 %v10266_v6  ;;  %v286_v55 = vld [vmem:[#allocation10 + $0x1e8] sm:$0xff]  ;;  %v10287_v58 = vcombine.high %v277_v52, %v285_v53  ;;  %v261_v60 = vld [vmem:[#allocation10 + $0x120] sm:$0xff]  ;;  %v10286_v0 = vcombine.low %v277_v52, %v285_v53  ;;  %v303_v47 = vld [vmem:[#allocation10 + $0x270] sm:$0xff] }
  0xa9   :  { %1212 = vmatpush1.bf16.msra.mxu1 %v10268_v7  ;;  %1172 = vmatprep.subr.bf16.mxu0 %v10251_v8  ;;  %v10289_v59 = vcombine.high %v278_v54, %v286_v55  ;;  %v269_v61 = vld [vmem:[#allocation10 + $0x160] sm:$0xff]  ;;  %v262_v62 = vld [vmem:[#allocation10 + $0x128] sm:$0xff]  ;;  %v10288_v1 = vcombine.low %v278_v54, %v286_v55  ;;  %v10307_v52 = vcombine.high %v295_v46, %v303_v47  ;;  %v279_v54 = vld [vmem:[#allocation10 + $0x1b0] sm:$0xff] }
  0xaa   :  { %1213 = vmatprep.subr.bf16.mxu1 %v10253_v9  ;;  %v270_v63 = vld [vmem:[#allocation10 + $0x168] sm:$0xff]  ;;  %v10271_v2 = vcombine.high %v261_v60, %v269_v61  ;;  %v245_v4 = vld [vmem:[#allocation10 + $0xa0] sm:$0xff]  ;;  %v10270_v8 = vcombine.low %v261_v60, %v269_v61  ;;  %v287_v55 = vld [vmem:[#allocation10 + $0x1f0] sm:$0xff] }
  0xab   :  { %v10273_v3 = vcombine.high %v262_v62, %v270_v63  ;;  %v253_v5 = vld [vmem:[#allocation10 + $0xe0] sm:$0xff]  ;;  %v246_v6 = vld [vmem:[#allocation10 + $0xa8] sm:$0xff]  ;;  %v10272_v9 = vcombine.low %v262_v62, %v270_v63  ;;  %v10291_v60 = vcombine.high %v279_v54, %v287_v55  ;;  %v263_v61 = vld [vmem:[#allocation10 + $0x130] sm:$0xff] }
  0xac   :  { %1173 = vmatpush1.bf16.msra.mxu0 %v10250_v14  ;;  %v254_v7 = vld [vmem:[#allocation10 + $0xe8] sm:$0xff]  ;;  %v10255_v10 = vcombine.high %v245_v4, %v253_v5  ;;  %v229_v12 = vld [vmem:[#allocation10 + $0x20] sm:$0xff]  ;;  %v271_v62 = vld [vmem:[#allocation10 + $0x170] sm:$0xff] }
  0xad   :  { %1214 = vmatpush1.bf16.msra.mxu1 %v10252_v15  ;;  %1174 = vmatprep.subr.bf16.mxu0 %v10235_v16  ;;  %v10257_v11 = vcombine.high %v246_v6, %v254_v7  ;;  %v237_v13 = vld [vmem:[#allocation10 + $0x60] sm:$0xff]  ;;  %v230_v14 = vld [vmem:[#allocation10 + $0x28] sm:$0xff]  ;;  %v10254_v16 = vcombine.low %v245_v4, %v253_v5  ;;  %v264_v63 = vld [vmem:[#allocation10 + $0x138] sm:$0xff] }
  0xae   :  { %1215 = vmatprep.subr.bf16.mxu1 %v10237_v17  ;;  %v238_v15 = vld [vmem:[#allocation10 + $0x68] sm:$0xff]  ;;  %v10256_v17 = vcombine.low %v246_v6, %v254_v7  ;;  %v10239_v18 = vcombine.high %v229_v12, %v237_v13  ;;  %v247_v5 = vld [vmem:[#allocation10 + $0xb0] sm:$0xff]  ;;  %v248_v7 = vld [vmem:[#allocation10 + $0xb8] sm:$0xff] }
  0xaf   :  { %v10241_v19 = vcombine.high %v230_v14, %v238_v15  ;;  %v255_v6 = vld [vmem:[#allocation10 + $0xf0] sm:$0xff] }
  0xb0   :  { %1175 = vmatpush1.bf16.msra.mxu0 %v10234_v22  ;;  %v344_v22 = vld [vmem:[#allocation10 + $0x3b8] sm:$0xff] }
  0xb1   :  { %1216 = vmatpush1.bf16.msra.mxu1 %v10236_v23  ;;  %1242 = vmatprep.subr.bf16.mxu0 %v10351_v25  ;;  %v352_v23 = vld [vmem:[#allocation10 + $0x3f8] sm:$0xff]  ;;  %v10238_v25 = vcombine.low %v229_v12, %v237_v13  ;;  %v231_v13 = vld [vmem:[#allocation10 + $0x30] sm:$0xff] }
  0xb2   :  { %1283 = vmatprep.subr.bf16.mxu1 %v10353_v26  ;;  %v10240_v26 = vcombine.low %v230_v14, %v238_v15  ;;  %v10357_v29 = vcombine.high %v344_v22, %v352_v23  ;;  %v239_v14 = vld [vmem:[#allocation10 + $0x70] sm:$0xff]  ;;  %v232_v15 = vld [vmem:[#allocation10 + $0x38] sm:$0xff] }
  0xb3   :  { %1193 = vmatmul.mubr.bf16.vlgmr.msra.gmra.mxu0 %v12198_v27 }
  0xb4   :  { %1234 = vmatmul.mubr.bf16.vlgmr.msra.gmra.mxu1 %v12198_v27  ;;  %1243 = vmatpush1.bf16.msra.mxu0 %v10350_v32  ;;  %v328_v32 = vld [vmem:[#allocation10 + $0x338] sm:$0xff] }
  0xb5   :  { %1284 = vmatpush1.bf16.msra.mxu1 %v10352_v33  ;;  %1244 = vmatprep.subr.bf16.mxu0 %v10335_v34  ;;  %v336_v33 = vld [vmem:[#allocation10 + $0x378] sm:$0xff]  ;;  %v10354_v34 = vcombine.low %v343_v20, %v351_v21  ;;  %v10242_v21 = vcombine.low %v231_v13, %v239_v14 }
  0xb6   :  { %1285 = vmatprep.subr.bf16.mxu1 %v10337_v35  ;;  %1274 = vmatprep.mubr.bf16.mxu0 %v12056_v24  ;;  %v10356_v35 = vcombine.low %v344_v22, %v352_v23  ;;  %v10341_v37 = vcombine.high %v328_v32, %v336_v33 }
  0xb7   :  { %1315 = vmatprep.mubr.bf16.mxu1 %v12056_v24 }
  0xb8   :  { %1245 = vmatpush1.bf16.msra.mxu0 %v10334_v40  ;;  %v312_v40 = vld [vmem:[#allocation10 + $0x2b8] sm:$0xff] }
  0xb9   :  { %1286 = vmatpush1.bf16.msra.mxu1 %v10336_v41  ;;  %1246 = vmatprep.subr.bf16.mxu0 %v10319_v42  ;;  %v320_v41 = vld [vmem:[#allocation10 + $0x2f8] sm:$0xff]  ;;  %v10338_v42 = vcombine.low %v327_v30, %v335_v31 }
  0xba   :  { %1287 = vmatprep.subr.bf16.mxu1 %v10321_v43  ;;  %v10340_v43 = vcombine.low %v328_v32, %v336_v33  ;;  %v10325_v45 = vcombine.high %v312_v40, %v320_v41 }
  0xbc   :  { %1247 = vmatpush1.bf16.msra.mxu0 %v10318_v48  ;;  %v296_v48 = vld [vmem:[#allocation10 + $0x238] sm:$0xff] }
  0xbd   :  { %1288 = vmatpush1.bf16.msra.mxu1 %v10320_v49  ;;  %1248 = vmatprep.subr.bf16.mxu0 %v10303_v50  ;;  %v304_v49 = vld [vmem:[#allocation10 + $0x278] sm:$0xff]  ;;  %v10322_v50 = vcombine.low %v311_v38, %v319_v39 }
  0xbe   :  { %1289 = vmatprep.subr.bf16.mxu1 %v10305_v51  ;;  %v10324_v51 = vcombine.low %v312_v40, %v320_v41  ;;  %v10309_v53 = vcombine.high %v296_v48, %v304_v49 }
  0xc0   :  { %1249 = vmatpush1.bf16.msra.mxu0 %v10302_v56  ;;  %v280_v56 = vld [vmem:[#allocation10 + $0x1b8] sm:$0xff] }
  0xc1   :  { %1290 = vmatpush1.bf16.msra.mxu1 %v10304_v57  ;;  %1250 = vmatprep.subr.bf16.mxu0 %v10287_v58  ;;  %v288_v57 = vld [vmem:[#allocation10 + $0x1f8] sm:$0xff]  ;;  %v10306_v58 = vcombine.low %v295_v46, %v303_v47 }
  0xc2   :  { %1291 = vmatprep.subr.bf16.mxu1 %v10289_v59  ;;  %v10308_v59 = vcombine.low %v296_v48, %v304_v49 }
  0xc4   :  { %1251 = vmatpush1.bf16.msra.mxu0 %v10286_v0  ;;  %v272_v0 = vld [vmem:[#allocation10 + $0x178] sm:$0xff] }
  0xc5   :  { %1292 = vmatpush1.bf16.msra.mxu1 %v10288_v1  ;;  %1252 = vmatprep.subr.bf16.mxu0 %v10271_v2  ;;  %v10290_v1 = vcombine.low %v279_v54, %v287_v55  ;;  %v10292_v2 = vcombine.low %v280_v56, %v288_v57  ;;  %v10277_v4 = vcombine.high %v264_v63, %v272_v0 }
  0xc6   :  { %1293 = vmatprep.subr.bf16.mxu1 %v10273_v3  ;;  %v10275_v3 = vcombine.high %v263_v61, %v271_v62 }
  0xc8   :  { %1253 = vmatpush1.bf16.msra.mxu0 %v10270_v8  ;;  %v256_v8 = vld [vmem:[#allocation10 + $0xf8] sm:$0xff] }
  0xc9   :  { %1294 = vmatpush1.bf16.msra.mxu1 %v10272_v9  ;;  %1254 = vmatprep.subr.bf16.mxu0 %v10255_v10  ;;  %v10274_v9 = vcombine.low %v263_v61, %v271_v62  ;;  %v10276_v10 = vcombine.low %v264_v63, %v272_v0  ;;  %v10261_v12 = vcombine.high %v248_v7, %v256_v8 }
  0xca   :  { %1295 = vmatprep.subr.bf16.mxu1 %v10257_v11  ;;  %v10259_v11 = vcombine.high %v247_v5, %v255_v6 }
  0xcc   :  { %1255 = vmatpush1.bf16.msra.mxu0 %v10254_v16  ;;  %v240_v16 = vld [vmem:[#allocation10 + $0x78] sm:$0xff] }
  0xcd   :  { %1296 = vmatpush1.bf16.msra.mxu1 %v10256_v17  ;;  %1256 = vmatprep.subr.bf16.mxu0 %v10239_v18  ;;  %v10258_v17 = vcombine.low %v247_v5, %v255_v6  ;;  %v10260_v18 = vcombine.low %v248_v7, %v256_v8  ;;  %v10245_v20 = vcombine.high %v232_v15, %v240_v16 }
  0xce   :  { %1297 = vmatprep.subr.bf16.mxu1 %v10241_v19  ;;  %v10243_v19 = vcombine.high %v231_v13, %v239_v14  ;;  %v10244_v22 = vcombine.low %v232_v15, %v240_v16 }
  0xd0   :  { %1257 = vmatpush1.bf16.msra.mxu0 %v10238_v25 }
  0xd1   :  { %1298 = vmatpush1.bf16.msra.mxu1 %v10240_v26  ;;  %1324 = vmatprep.subr.bf16.mxu0 %v10355_v28 }
  0xd2   :  { %1365 = vmatprep.subr.bf16.mxu1 %v10357_v29 }
  0xd3   :  { %1275 = vmatmul.mubr.bf16.vlgmr.msra.gmra.mxu0 %v12198_v27 }
  0xd4   :  { %1316 = vmatmul.mubr.bf16.vlgmr.msra.gmra.mxu1 %v12198_v27  ;;  %1325 = vmatpush1.bf16.msra.mxu0 %v10354_v34 }
  0xd5   :  { %1366 = vmatpush1.bf16.msra.mxu1 %v10356_v35  ;;  %1326 = vmatprep.subr.bf16.mxu0 %v10339_v36 }
  0xd6   :  { %1367 = vmatprep.subr.bf16.mxu1 %v10341_v37  ;;  %1356 = vmatprep.mubr.bf16.mxu0 %v12056_v24 }
  0xd7   :  { %1397 = vmatprep.mubr.bf16.mxu1 %v12056_v24  ;;  %v10293_v24 = vcombine.high %v280_v56, %v288_v57 }
  0xd8   :  { %1327 = vmatpush1.bf16.msra.mxu0 %v10338_v42 }
  0xd9   :  { %1368 = vmatpush1.bf16.msra.mxu1 %v10340_v43  ;;  %1328 = vmatprep.subr.bf16.mxu0 %v10323_v44 }
  0xda   :  { %1369 = vmatprep.subr.bf16.mxu1 %v10325_v45 }
  0xdc   :  { %1329 = vmatpush1.bf16.msra.mxu0 %v10322_v50 }
  0xdd   :  { %1370 = vmatpush1.bf16.msra.mxu1 %v10324_v51  ;;  %1330 = vmatprep.subr.bf16.mxu0 %v10307_v52 }
  0xde   :  { %1371 = vmatprep.subr.bf16.mxu1 %v10309_v53 }
  0xe0   :  { %1331 = vmatpush1.bf16.msra.mxu0 %v10306_v58 }
  0xe1   :  { %1372 = vmatpush1.bf16.msra.mxu1 %v10308_v59  ;;  %1332 = vmatprep.subr.bf16.mxu0 %v10291_v60 }
  0xe2   :  { %1373 = vmatprep.subr.bf16.mxu1 %v10293_v24 }
  0xe4   :  { %1333 = vmatpush1.bf16.msra.mxu0 %v10290_v1 }
  0xe5   :  { %1374 = vmatpush1.bf16.msra.mxu1 %v10292_v2  ;;  %1334 = vmatprep.subr.bf16.mxu0 %v10275_v3 }
  0xe6   :  { %1375 = vmatprep.subr.bf16.mxu1 %v10277_v4 }
  0xe8   :  { %1335 = vmatpush1.bf16.msra.mxu0 %v10274_v9 }
  0xe9   :  { %1376 = vmatpush1.bf16.msra.mxu1 %v10276_v10  ;;  %1336 = vmatprep.subr.bf16.mxu0 %v10259_v11 }
  0xea   :  { %1377 = vmatprep.subr.bf16.mxu1 %v10261_v12 }
  0xec   :  { %1337 = vmatpush1.bf16.msra.mxu0 %v10258_v17 }
  0xed   :  { %1378 = vmatpush1.bf16.msra.mxu1 %v10260_v18  ;;  %1338 = vmatprep.subr.bf16.mxu0 %v10243_v19 }
  0xee   :  { %1379 = vmatprep.subr.bf16.mxu1 %v10245_v20 }
  0xf0   :  { %1339 = vmatpush1.bf16.msra.mxu0 %v10242_v21 }
  0xf1   :  { %1380 = vmatpush1.bf16.msra.mxu1 %v10244_v22 }
  0xf3   :  { %1357 = vmatmul.mubr.bf16.vlgmr.msra.gmra.mxu0 %v12198_v27 }
  0xf4   :  { %1398 = vmatmul.mubr.bf16.vlgmr.msra.gmra.mxu1 %v12198_v27 }
  0xf5   :  { %12006 = shalt.err (!%p12003_p7)  }
  0xf6   :  { %223 = dma.hbm_to_vmem [thread:$0]  %s12565_s9, 512, %s221_s3, [#allocation6 + $0x3]  ;;  %v358_v23 = vlaneseq  ;;  %v354_v28 = vld [vmem:[#allocation12] sm:$0xff]  ;;  %v355_v10 = vld [vmem:[#allocation12 + $0x8] sm:$0xff] }
  0xf8   :  { %v359_v25 = vshrl.u32 %v358_v23, 7 }
  0xfa   :  { %v12217_v26 = vsub.s32 0, %v359_v25  ;;  %v12219_v27 = vsub.s32 2, %v359_v25  ;;  %v12221_v29 = vsub.s32 1, %v359_v25  ;;  %v12223_v30 = vsub.s32 3, %v359_v25 }
  0xfb   :  { %v12241_v51 = vsub.s32 4, %v359_v25  ;;  %v12243_v52 = vsub.s32 6, %v359_v25  ;;  %v12245_v53 = vsub.s32 5, %v359_v25  ;;  %v12247_v54 = vsub.s32 7, %v359_v25 }
  0xfc   :  { %v361_v31 = vrot.slane %v354_v28, %v12217_v26  ;;  %v369_v32 = vrot.slane %v354_v28, %v12219_v27  ;;  %v365_v33 = vrot.slane %v354_v28, %v12221_v29  ;;  %v373_v35 = vrot.slane %v354_v28, %v12223_v30 }
  0xfd   :  { %v377_v55 = vrot.slane %v354_v28, %v12241_v51  ;;  %v385_v56 = vrot.slane %v354_v28, %v12243_v52  ;;  %v381_v57 = vrot.slane %v354_v28, %v12245_v53  ;;  %v389_v59 = vrot.slane %v354_v28, %v12247_v54 }
  0xfe   :  { %v393_v11 = vrot.slane %v355_v10, %v12217_v26  ;;  %v401_v12 = vrot.slane %v355_v10, %v12219_v27  ;;  %v397_v13 = vrot.slane %v355_v10, %v12221_v29  ;;  %v405_v15 = vrot.slane %v355_v10, %v12223_v30 }
 0x153   :  { %v1112_v34 = vpop.f32.mrf.mxu0 }
 0x154   :  { %v12229_v36 = vadd.f32 %v1112_v34, %v361_v31  ;;  %v1153_v37 = vpop.f32.mrf.mxu1 }
 0x155   :  { %v12231_v38 = vadd.f32 %v1153_v37, %v369_v32  ;;  %v1114_v39 = vpop.f32.mrf.mxu0  ;;  %v409_v37 = vrot.slane %v355_v10, %v12241_v51 }
 0x156   :  { %v1406_v40 = vmax.f32 %v12229_v36, 0.0  ;;  %v12234_v41 = vadd.f32 %v1114_v39, %v365_v33  ;;  %v1155_v42 = vpop.f32.mrf.mxu1  ;;  %v417_v39 = vrot.slane %v355_v10, %v12243_v52 }
 0x157   :  { %v1408_v43 = vmax.f32 %v12231_v38, 0.0  ;;  %v12237_v44 = vadd.f32 %v1155_v42, %v373_v35  ;;  %v1116_v45 = vpop.f32.mrf.mxu0  ;;  %v413_v42 = vrot.slane %v355_v10, %v12245_v53 }
 0x158   :  { %v1407_v46 = vmax.f32 %v12234_v41, 0.0  ;;  %v1157_v47 = vpop.f32.mrf.mxu1 }
 0x159   :  { %v1409_v48 = vmax.f32 %v12237_v44, 0.0  ;;  %v1117_v49 = vpop.f32.mrf.mxu0  ;;  %v421_v47 = vrot.slane %v355_v10, %v12247_v54 }
 0x15a   :  { %v1158_v50 = vpop.f32.mrf.mxu1 }
 0x173   :  { %v1194_v58 = vpop.f32.mrf.mxu0 }
 0x174   :  { %v12253_v60 = vadd.f32 %v1194_v58, %v377_v55  ;;  %v1235_v24 = vpop.f32.mrf.mxu1 }
 0x175   :  { %v12255_v61 = vadd.f32 %v1235_v24, %v385_v56  ;;  %v1196_v62 = vpop.f32.mrf.mxu0 }
 0x176   :  { %v1410_v63 = vmax.f32 %v12253_v60, 0.0  ;;  %v12258_v0 = vadd.f32 %v1196_v62, %v381_v57  ;;  %v1237_v1 = vpop.f32.mrf.mxu1 }
 0x177   :  { %v1412_v2 = vmax.f32 %v12255_v61, 0.0  ;;  %v12261_v3 = vadd.f32 %v1237_v1, %v389_v59  ;;  %v1198_v4 = vpop.f32.mrf.mxu0 }
 0x178   :  { %v1411_v5 = vmax.f32 %v12258_v0, 0.0  ;;  %v1239_v6 = vpop.f32.mrf.mxu1 }
 0x179   :  { %v1413_v7 = vmax.f32 %v12261_v3, 0.0  ;;  %v1199_v8 = vpop.f32.mrf.mxu0 }
 0x17a   :  { %v1240_v9 = vpop.f32.mrf.mxu1 }
 0x193   :  { %v1276_v14 = vpop.f32.mrf.mxu0 }
 0x194   :  { %v12269_v16 = vadd.f32 %v1276_v14, %v393_v11  ;;  %v1317_v17 = vpop.f32.mrf.mxu1 }
 0x195   :  { %v12271_v18 = vadd.f32 %v1317_v17, %v401_v12  ;;  %v1278_v19 = vpop.f32.mrf.mxu0 }
 0x196   :  { %v1414_v20 = vmax.f32 %v12269_v16, 0.0  ;;  %v12274_v21 = vadd.f32 %v1278_v19, %v397_v13  ;;  %v1319_v22 = vpop.f32.mrf.mxu1 }
 0x197   :  { %v1416_v23 = vmax.f32 %v12271_v18, 0.0  ;;  %v12277_v25 = vadd.f32 %v1319_v22, %v405_v15  ;;  %v1280_v28 = vpop.f32.mrf.mxu0 }
 0x198   :  { %v1415_v31 = vmax.f32 %v12274_v21, 0.0  ;;  %v1321_v32 = vpop.f32.mrf.mxu1 }
 0x199   :  { %v1417_v33 = vmax.f32 %v12277_v25, 0.0  ;;  %v1281_v34 = vpop.f32.mrf.mxu0 }
 0x19a   :  { %v1322_v35 = vpop.f32.mrf.mxu1 }
 0x1b3   :  { %v1358_v45 = vpop.f32.mrf.mxu0 }
 0x1b4   :  { %v12285_v49 = vadd.f32 %v1358_v45, %v409_v37  ;;  %v1399_v50 = vpop.f32.mrf.mxu1 }
 0x1b5   :  { %v12287_v55 = vadd.f32 %v1399_v50, %v417_v39  ;;  %v1360_v56 = vpop.f32.mrf.mxu0 }
 0x1b6   :  { %v1418_v57 = vmax.f32 %v12285_v49, 0.0  ;;  %v12290_v58 = vadd.f32 %v1360_v56, %v413_v42  ;;  %v1401_v59 = vpop.f32.mrf.mxu1 }
 0x1b7   :  { %v1420_v24 = vmax.f32 %v12287_v55, 0.0  ;;  %v12293_v62 = vadd.f32 %v1401_v59, %v421_v47  ;;  %v1362_v1 = vpop.f32.mrf.mxu0 }
 0x1b8   :  { %v1419_v4 = vmax.f32 %v12290_v58, 0.0  ;;  %v1403_v6 = vpop.f32.mrf.mxu1 }
 0x1b9   :  { %v1421_v8 = vmax.f32 %v12293_v62, 0.0  ;;  %v1363_v9 = vpop.f32.mrf.mxu0 }
 0x1ba   :  { %v1404_v10 = vpop.f32.mrf.mxu1 }
 0x1bb   :  { %12035 = dma.done.wait [#allocation6], 131072 }
 0x1bc   :  { %12036 = vsyncadd [#allocation6], 4294836224  ;;  %v12300_v11 = vpack.c.bf16 %v1407_v46, %v1407_v46  ;;  %v12305_v12 = vpack.c.bf16 %v1409_v48, %v1409_v48  ;;  %v1482_v13 = vld [vmem:[#allocation2 + $0x1c0] sm:$0xff] }
 0x1bd   :  { %v1486_v14 = vld [vmem:[#allocation2 + $0x1e0] sm:$0xff] }
 0x1be   :  { %7660 = vmatprep.mubr.bf16.mxu0 %v12300_v11  ;;  %7701 = vmatprep.mubr.bf16.mxu1 %v12305_v12  ;;  %v1610_v15 = vld [vmem:[#allocation2 + $0x5c0] sm:$0xff]  ;;  %v10415_v17 = vcombine.high %v1482_v13, %v1486_v14  ;;  %v10414_v22 = vcombine.low %v1482_v13, %v1486_v14 }
 0x1bf   :  { %v1614_v19 = vld [vmem:[#allocation2 + $0x5e0] sm:$0xff] }
 0x1c0   :  { %v1474_v28 = vld [vmem:[#allocation2 + $0x180] sm:$0xff]  ;;  %v10543_v32 = vcombine.high %v1610_v15, %v1614_v19  ;;  %v10542_v46 = vcombine.low %v1610_v15, %v1614_v19  ;;  %7628 = vmatprep.subr.bf16.mxu0 %v10415_v17 }
 0x1c1   :  { %v1478_v41 = vld [vmem:[#allocation2 + $0x1a0] sm:$0xff]  ;;  %7629 = vmatpush1.bf16.msra.mxu0 %v10414_v22 }
 0x1c2   :  { %v10407_v34 = vcombine.high %v1474_v28, %v1478_v41  ;;  %v1602_v35 = vld [vmem:[#allocation2 + $0x580] sm:$0xff]  ;;  %7669 = vmatprep.subr.bf16.mxu1 %v10543_v32  ;;  %v10406_v47 = vcombine.low %v1474_v28, %v1478_v41 }
 0x1c3   :  { %v1606_v44 = vld [vmem:[#allocation2 + $0x5a0] sm:$0xff]  ;;  %7670 = vmatpush1.bf16.msra.mxu1 %v10542_v46 }
 0x1c4   :  { %v1466_v37 = vld [vmem:[#allocation2 + $0x140] sm:$0xff]  ;;  %v10535_v48 = vcombine.high %v1602_v35, %v1606_v44  ;;  %7630 = vmatprep.subr.bf16.mxu0 %v10407_v34  ;;  %v10534_v50 = vcombine.low %v1602_v35, %v1606_v44 }
 0x1c5   :  { %v1470_v39 = vld [vmem:[#allocation2 + $0x160] sm:$0xff]  ;;  %7631 = vmatpush1.bf16.msra.mxu0 %v10406_v47 }
 0x1c6   :  { %v1594_v42 = vld [vmem:[#allocation2 + $0x540] sm:$0xff]  ;;  %v10399_v56 = vcombine.high %v1466_v37, %v1470_v39  ;;  %7671 = vmatprep.subr.bf16.mxu1 %v10535_v48  ;;  %v10398_v13 = vcombine.low %v1466_v37, %v1470_v39 }
 0x1c7   :  { %v1598_v45 = vld [vmem:[#allocation2 + $0x560] sm:$0xff]  ;;  %7672 = vmatpush1.bf16.msra.mxu1 %v10534_v50 }
 0x1c8   :  { %v10527_v59 = vcombine.high %v1594_v42, %v1598_v45  ;;  %v1458_v1 = vld [vmem:[#allocation2 + $0x100] sm:$0xff]  ;;  %7632 = vmatprep.subr.bf16.mxu0 %v10399_v56  ;;  %v10526_v14 = vcombine.low %v1594_v42, %v1598_v45 }
 0x1c9   :  { %v1462_v6 = vld [vmem:[#allocation2 + $0x120] sm:$0xff]  ;;  %7633 = vmatpush1.bf16.msra.mxu0 %v10398_v13 }
 0x1ca   :  { %v1586_v9 = vld [vmem:[#allocation2 + $0x500] sm:$0xff]  ;;  %v10391_v15 = vcombine.high %v1458_v1, %v1462_v6  ;;  %7673 = vmatprep.subr.bf16.mxu1 %v10527_v59  ;;  %v10390_v32 = vcombine.low %v1458_v1, %v1462_v6 }
 0x1cb   :  { %v1590_v10 = vld [vmem:[#allocation2 + $0x520] sm:$0xff]  ;;  %7674 = vmatpush1.bf16.msra.mxu1 %v10526_v14 }
 0x1cc   :  { %v10519_v17 = vcombine.high %v1586_v9, %v1590_v10  ;;  %v1450_v19 = vld [vmem:[#allocation2 + $0xc0] sm:$0xff]  ;;  %7634 = vmatprep.subr.bf16.mxu0 %v10391_v15  ;;  %v10518_v46 = vcombine.low %v1586_v9, %v1590_v10 }
 0x1cd   :  { %v1454_v22 = vld [vmem:[#allocation2 + $0xe0] sm:$0xff]  ;;  %7635 = vmatpush1.bf16.msra.mxu0 %v10390_v32 }
 0x1ce   :  { %v1578_v28 = vld [vmem:[#allocation2 + $0x4c0] sm:$0xff]  ;;  %v10383_v34 = vcombine.high %v1450_v19, %v1454_v22  ;;  %7675 = vmatprep.subr.bf16.mxu1 %v10519_v17  ;;  %v10382_v42 = vcombine.low %v1450_v19, %v1454_v22 }
 0x1cf   :  { %v1582_v41 = vld [vmem:[#allocation2 + $0x4e0] sm:$0xff]  ;;  %7676 = vmatpush1.bf16.msra.mxu1 %v10518_v46 }
 0x1d0   :  { %v10511_v35 = vcombine.high %v1578_v28, %v1582_v41  ;;  %v1442_v44 = vld [vmem:[#allocation2 + $0x80] sm:$0xff]  ;;  %7636 = vmatprep.subr.bf16.mxu0 %v10383_v34  ;;  %v10510_v45 = vcombine.low %v1578_v28, %v1582_v41 }
 0x1d1   :  { %v1446_v37 = vld [vmem:[#allocation2 + $0xa0] sm:$0xff]  ;;  %7637 = vmatpush1.bf16.msra.mxu0 %v10382_v42 }
 0x1d2   :  { %v1570_v48 = vld [vmem:[#allocation2 + $0x480] sm:$0xff]  ;;  %v10375_v47 = vcombine.high %v1442_v44, %v1446_v37  ;;  %7677 = vmatprep.subr.bf16.mxu1 %v10511_v35  ;;  %v10374_v9 = vcombine.low %v1442_v44, %v1446_v37 }
 0x1d3   :  { %v1574_v39 = vld [vmem:[#allocation2 + $0x4a0] sm:$0xff]  ;;  %7678 = vmatpush1.bf16.msra.mxu1 %v10510_v45 }
 0x1d4   :  { %v10503_v50 = vcombine.high %v1570_v48, %v1574_v39  ;;  %v1434_v56 = vld [vmem:[#allocation2 + $0x40] sm:$0xff]  ;;  %7638 = vmatprep.subr.bf16.mxu0 %v10375_v47  ;;  %v10502_v10 = vcombine.low %v1570_v48, %v1574_v39 }
 0x1d5   :  { %v1438_v59 = vld [vmem:[#allocation2 + $0x60] sm:$0xff]  ;;  %7639 = vmatpush1.bf16.msra.mxu0 %v10374_v9 }
 0x1d6   :  { %v1562_v1 = vld [vmem:[#allocation2 + $0x440] sm:$0xff]  ;;  %v10367_v13 = vcombine.high %v1434_v56, %v1438_v59  ;;  %7679 = vmatprep.subr.bf16.mxu1 %v10503_v50  ;;  %v10366_v28 = vcombine.low %v1434_v56, %v1438_v59 }
 0x1d7   :  { %v1566_v6 = vld [vmem:[#allocation2 + $0x460] sm:$0xff]  ;;  %7680 = vmatpush1.bf16.msra.mxu1 %v10502_v10 }
 0x1d8   :  { %v10495_v14 = vcombine.high %v1562_v1, %v1566_v6  ;;  %v1426_v15 = vld [vmem:[#allocation2] sm:$0xff]  ;;  %7640 = vmatprep.subr.bf16.mxu0 %v10367_v13  ;;  %v10494_v41 = vcombine.low %v1562_v1, %v1566_v6 }
 0x1d9   :  { %v1430_v17 = vld [vmem:[#allocation2 + $0x20] sm:$0xff]  ;;  %7641 = vmatpush1.bf16.msra.mxu0 %v10366_v28 }
 0x1da   :  { %v1554_v19 = vld [vmem:[#allocation2 + $0x400] sm:$0xff]  ;;  %v10359_v32 = vcombine.high %v1426_v15, %v1430_v17  ;;  %7681 = vmatprep.subr.bf16.mxu1 %v10495_v14  ;;  %v10358_v48 = vcombine.low %v1426_v15, %v1430_v17 }
 0x1db   :  { %v1558_v22 = vld [vmem:[#allocation2 + $0x420] sm:$0xff]  ;;  %7682 = vmatpush1.bf16.msra.mxu1 %v10494_v41 }
 0x1dc   :  { %v10487_v46 = vcombine.high %v1554_v19, %v1558_v22  ;;  %v1546_v34 = vld [vmem:[#allocation2 + $0x3c0] sm:$0xff]  ;;  %7642 = vmatprep.subr.bf16.mxu0 %v10359_v32  ;;  %v10486_v39 = vcombine.low %v1554_v19, %v1558_v22 }
 0x1dd   :  { %v1550_v35 = vld [vmem:[#allocation2 + $0x3e0] sm:$0xff]  ;;  %7643 = vmatpush1.bf16.msra.mxu0 %v10358_v48 }
 0x1de   :  { %v1674_v44 = vld [vmem:[#allocation2 + $0x7c0] sm:$0xff]  ;;  %v10479_v42 = vcombine.high %v1546_v34, %v1550_v35  ;;  %7683 = vmatprep.subr.bf16.mxu1 %v10487_v46  ;;  %v10478_v1 = vcombine.low %v1546_v34, %v1550_v35 }
 0x1df   :  { %v1678_v37 = vld [vmem:[#allocation2 + $0x7e0] sm:$0xff]  ;;  %7684 = vmatpush1.bf16.msra.mxu1 %v10486_v39 }
 0x1e0   :  { %v10607_v45 = vcombine.high %v1674_v44, %v1678_v37  ;;  %v1538_v47 = vld [vmem:[#allocation2 + $0x380] sm:$0xff]  ;;  %7644 = vmatprep.subr.bf16.mxu0 %v10479_v42  ;;  %v10606_v6 = vcombine.low %v1674_v44, %v1678_v37 }
 0x1e1   :  { %v1542_v50 = vld [vmem:[#allocation2 + $0x3a0] sm:$0xff]  ;;  %7645 = vmatpush2.bf16.msra.mxu0 %v10478_v1 }
 0x1e2   :  { %v1666_v56 = vld [vmem:[#allocation2 + $0x780] sm:$0xff]  ;;  %v10471_v9 = vcombine.high %v1538_v47, %v1542_v50  ;;  %7685 = vmatprep.subr.bf16.mxu1 %v10607_v45  ;;  %v10470_v19 = vcombine.low %v1538_v47, %v1542_v50 }
 0x1e3   :  { %v1670_v59 = vld [vmem:[#allocation2 + $0x7a0] sm:$0xff]  ;;  %7686 = vmatpush2.bf16.msra.mxu1 %v10606_v6 }
 0x1e4   :  { %v10599_v10 = vcombine.high %v1666_v56, %v1670_v59  ;;  %v1530_v13 = vld [vmem:[#allocation2 + $0x340] sm:$0xff]  ;;  %7646 = vmatprep.subr.bf16.mxu0 %v10471_v9  ;;  %v10598_v22 = vcombine.low %v1666_v56, %v1670_v59 }
 0x1e5   :  { %v1534_v14 = vld [vmem:[#allocation2 + $0x360] sm:$0xff]  ;;  %7647 = vmatpush2.bf16.msra.mxu0 %v10470_v19 }
 0x1e6   :  { %v1658_v15 = vld [vmem:[#allocation2 + $0x740] sm:$0xff]  ;;  %v10463_v28 = vcombine.high %v1530_v13, %v1534_v14  ;;  %7687 = vmatprep.subr.bf16.mxu1 %v10599_v10  ;;  %v10462_v44 = vcombine.low %v1530_v13, %v1534_v14 }
 0x1e7   :  { %v1662_v17 = vld [vmem:[#allocation2 + $0x760] sm:$0xff]  ;;  %7688 = vmatpush2.bf16.msra.mxu1 %v10598_v22 }
 0x1e8   :  { %v10591_v41 = vcombine.high %v1658_v15, %v1662_v17  ;;  %v1522_v32 = vld [vmem:[#allocation2 + $0x300] sm:$0xff]  ;;  %7648 = vmatprep.subr.bf16.mxu0 %v10463_v28  ;;  %v10590_v37 = vcombine.low %v1658_v15, %v1662_v17 }
 0x1e9   :  { %v1526_v46 = vld [vmem:[#allocation2 + $0x320] sm:$0xff]  ;;  %7649 = vmatpush2.bf16.msra.mxu0 %v10462_v44 }
 0x1ea   :  { %v1650_v34 = vld [vmem:[#allocation2 + $0x700] sm:$0xff]  ;;  %v10455_v48 = vcombine.high %v1522_v32, %v1526_v46  ;;  %7689 = vmatprep.subr.bf16.mxu1 %v10591_v41  ;;  %v10454_v56 = vcombine.low %v1522_v32, %v1526_v46 }
 0x1eb   :  { %v1654_v35 = vld [vmem:[#allocation2 + $0x720] sm:$0xff]  ;;  %7690 = vmatpush2.bf16.msra.mxu1 %v10590_v37 }
 0x1ec   :  { %v10583_v39 = vcombine.high %v1650_v34, %v1654_v35  ;;  %v1514_v42 = vld [vmem:[#allocation2 + $0x2c0] sm:$0xff]  ;;  %7650 = vmatprep.subr.bf16.mxu0 %v10455_v48  ;;  %v10582_v59 = vcombine.low %v1650_v34, %v1654_v35 }
 0x1ed   :  { %v1518_v45 = vld [vmem:[#allocation2 + $0x2e0] sm:$0xff]  ;;  %7651 = vmatpush2.bf16.msra.mxu0 %v10454_v56 }
 0x1ee   :  { %v1642_v47 = vld [vmem:[#allocation2 + $0x6c0] sm:$0xff]  ;;  %v10447_v1 = vcombine.high %v1514_v42, %v1518_v45  ;;  %7691 = vmatprep.subr.bf16.mxu1 %v10583_v39  ;;  %v10446_v15 = vcombine.low %v1514_v42, %v1518_v45 }
 0x1ef   :  { %v1646_v50 = vld [vmem:[#allocation2 + $0x6e0] sm:$0xff]  ;;  %7692 = vmatpush2.bf16.msra.mxu1 %v10582_v59 }
 0x1f0   :  { %v10575_v6 = vcombine.high %v1642_v47, %v1646_v50  ;;  %v1506_v9 = vld [vmem:[#allocation2 + $0x280] sm:$0xff]  ;;  %7652 = vmatprep.subr.bf16.mxu0 %v10447_v1  ;;  %v10574_v17 = vcombine.low %v1642_v47, %v1646_v50 }
 0x1f1   :  { %v1510_v10 = vld [vmem:[#allocation2 + $0x2a0] sm:$0xff]  ;;  %7653 = vmatpush2.bf16.msra.mxu0 %v10446_v15 }
 0x1f2   :  { %v1634_v13 = vld [vmem:[#allocation2 + $0x680] sm:$0xff]  ;;  %v10439_v19 = vcombine.high %v1506_v9, %v1510_v10  ;;  %7693 = vmatprep.subr.bf16.mxu1 %v10575_v6  ;;  %v10438_v34 = vcombine.low %v1506_v9, %v1510_v10 }
 0x1f3   :  { %v1638_v14 = vld [vmem:[#allocation2 + $0x6a0] sm:$0xff]  ;;  %7694 = vmatpush2.bf16.msra.mxu1 %v10574_v17 }
 0x1f4   :  { %v10567_v22 = vcombine.high %v1634_v13, %v1638_v14  ;;  %v1498_v28 = vld [vmem:[#allocation2 + $0x240] sm:$0xff]  ;;  %7654 = vmatprep.subr.bf16.mxu0 %v10439_v19  ;;  %v10566_v35 = vcombine.low %v1634_v13, %v1638_v14 }
 0x1f5   :  { %v1502_v41 = vld [vmem:[#allocation2 + $0x260] sm:$0xff]  ;;  %7655 = vmatpush2.bf16.msra.mxu0 %v10438_v34 }
 0x1f6   :  { %v1626_v32 = vld [vmem:[#allocation2 + $0x640] sm:$0xff]  ;;  %v10431_v44 = vcombine.high %v1498_v28, %v1502_v41  ;;  %7695 = vmatprep.subr.bf16.mxu1 %v10567_v22  ;;  %v10430_v47 = vcombine.low %v1498_v28, %v1502_v41  ;;  %v12312_v28 = vpack.c.bf16 %v1406_v40, %v1406_v40  ;;  %v12322_v40 = vpack.c.bf16 %v1411_v5, %v1411_v5 }
 0x1f7   :  { %v1630_v46 = vld [vmem:[#allocation2 + $0x660] sm:$0xff]  ;;  %7696 = vmatpush2.bf16.msra.mxu1 %v10566_v35 }
 0x1f8   :  { %v10559_v37 = vcombine.high %v1626_v32, %v1630_v46  ;;  %v1490_v48 = vld [vmem:[#allocation2 + $0x200] sm:$0xff]  ;;  %7656 = vmatprep.subr.bf16.mxu0 %v10431_v44  ;;  %v10558_v50 = vcombine.low %v1626_v32, %v1630_v46  ;;  %v12317_v46 = vpack.c.bf16 %v1408_v43, %v1408_v43  ;;  %v12328_v43 = vpack.c.bf16 %v1413_v7, %v1413_v7 }
 0x1f9   :  { %v1494_v39 = vld [vmem:[#allocation2 + $0x220] sm:$0xff]  ;;  %7657 = vmatpush2.bf16.msra.mxu0 %v10430_v47 }
 0x1fa   :  { %v1618_v42 = vld [vmem:[#allocation2 + $0x600] sm:$0xff]  ;;  %v10423_v56 = vcombine.high %v1490_v48, %v1494_v39  ;;  %7697 = vmatprep.subr.bf16.mxu1 %v10559_v37  ;;  %v10422_v13 = vcombine.low %v1490_v48, %v1494_v39 }
 0x1fb   :  { %v1622_v45 = vld [vmem:[#allocation2 + $0x620] sm:$0xff]  ;;  %7698 = vmatpush2.bf16.msra.mxu1 %v10558_v50 }
 0x1fc   :  { %v10551_v59 = vcombine.high %v1618_v42, %v1622_v45  ;;  %v1738_v1 = vld [vmem:[#allocation2 + $0x9c0] sm:$0xff]  ;;  %7658 = vmatprep.subr.bf16.mxu0 %v10423_v56  ;;  %v10550_v14 = vcombine.low %v1618_v42, %v1622_v45 }
 0x1fd   :  { %v1742_v6 = vld [vmem:[#allocation2 + $0x9e0] sm:$0xff]  ;;  %7659 = vmatpush2.bf16.msra.mxu0 %v10422_v13 }
 0x1fe   :  { %v1866_v9 = vld [vmem:[#allocation2 + $0xdc0] sm:$0xff]  ;;  %v10671_v15 = vcombine.high %v1738_v1, %v1742_v6  ;;  %7699 = vmatprep.subr.bf16.mxu1 %v10551_v59  ;;  %v10670_v34 = vcombine.low %v1738_v1, %v1742_v6 }
 0x1ff   :  { %v1870_v10 = vld [vmem:[#allocation2 + $0xde0] sm:$0xff]  ;;  %7700 = vmatpush2.bf16.msra.mxu1 %v10550_v14 }
 0x200   :  { %v10799_v17 = vcombine.high %v1866_v9, %v1870_v10  ;;  %v1730_v19 = vld [vmem:[#allocation2 + $0x980] sm:$0xff]  ;;  %7710 = vmatprep.subr.bf16.mxu0 %v10671_v15  ;;  %v10798_v35 = vcombine.low %v1866_v9, %v1870_v10  ;;  %7661 = vmatmul.mubr.bf16.vlgmr.msra.gmra.mxu0 %v12312_v28 }
 0x201   :  { %v1734_v22 = vld [vmem:[#allocation2 + $0x9a0] sm:$0xff]  ;;  %7711 = vmatpush1.bf16.msra.mxu0 %v10670_v34  ;;  %7742 = vmatprep.mubr.bf16.mxu0 %v12322_v40 }
 0x202   :  { %v1858_v41 = vld [vmem:[#allocation2 + $0xd80] sm:$0xff]  ;;  %v10663_v44 = vcombine.high %v1730_v19, %v1734_v22  ;;  %7751 = vmatprep.subr.bf16.mxu1 %v10799_v17  ;;  %7702 = vmatmul.mubr.bf16.vlgmr.msra.gmra.mxu1 %v12317_v46  ;;  %v10662_v42 = vcombine.low %v1730_v19, %v1734_v22 }
 0x203   :  { %v1862_v32 = vld [vmem:[#allocation2 + $0xda0] sm:$0xff]  ;;  %7752 = vmatpush1.bf16.msra.mxu1 %v10798_v35  ;;  %7783 = vmatprep.mubr.bf16.mxu1 %v12328_v43 }
 0x204   :  { %v10791_v37 = vcombine.high %v1858_v41, %v1862_v32  ;;  %v1722_v48 = vld [vmem:[#allocation2 + $0x940] sm:$0xff]  ;;  %7712 = vmatprep.subr.bf16.mxu0 %v10663_v44  ;;  %v10790_v45 = vcombine.low %v1858_v41, %v1862_v32 }
 0x205   :  { %v1726_v36 = vld [vmem:[#allocation2 + $0x960] sm:$0xff]  ;;  %7713 = vmatpush1.bf16.msra.mxu0 %v10662_v42 }
 0x206   :  { %v1850_v38 = vld [vmem:[#allocation2 + $0xd40] sm:$0xff]  ;;  %v10655_v0 = vcombine.high %v1722_v48, %v1726_v36  ;;  %7753 = vmatprep.subr.bf16.mxu1 %v10791_v37  ;;  %v10654_v3 = vcombine.low %v1722_v48, %v1726_v36 }
 0x207   :  { %v1854_v39 = vld [vmem:[#allocation2 + $0xd60] sm:$0xff]  ;;  %7754 = vmatpush1.bf16.msra.mxu1 %v10790_v45 }
 0x208   :  { %v10783_v5 = vcombine.high %v1850_v38, %v1854_v39  ;;  %v1714_v47 = vld [vmem:[#allocation2 + $0x900] sm:$0xff]  ;;  %7714 = vmatprep.subr.bf16.mxu0 %v10655_v0  ;;  %v10782_v7 = vcombine.low %v1850_v38, %v1854_v39 }
 0x209   :  { %v1718_v50 = vld [vmem:[#allocation2 + $0x920] sm:$0xff]  ;;  %7715 = vmatpush1.bf16.msra.mxu0 %v10654_v3 }
 0x20a   :  { %v1842_v56 = vld [vmem:[#allocation2 + $0xd00] sm:$0xff]  ;;  %v10647_v1 = vcombine.high %v1714_v47, %v1718_v50  ;;  %7755 = vmatprep.subr.bf16.mxu1 %v10783_v5  ;;  %v10646_v15 = vcombine.low %v1714_v47, %v1718_v50 }
 0x20b   :  { %v1846_v59 = vld [vmem:[#allocation2 + $0xd20] sm:$0xff]  ;;  %7756 = vmatpush1.bf16.msra.mxu1 %v10782_v7 }
 0x20c   :  { %v10775_v6 = vcombine.high %v1842_v56, %v1846_v59  ;;  %v1706_v9 = vld [vmem:[#allocation2 + $0x8c0] sm:$0xff]  ;;  %7716 = vmatprep.subr.bf16.mxu0 %v10647_v1  ;;  %v10774_v17 = vcombine.low %v1842_v56, %v1846_v59 }
 0x20d   :  { %v1710_v10 = vld [vmem:[#allocation2 + $0x8e0] sm:$0xff]  ;;  %7717 = vmatpush1.bf16.msra.mxu0 %v10646_v15 }
 0x20e   :  { %v1834_v13 = vld [vmem:[#allocation2 + $0xcc0] sm:$0xff]  ;;  %v10639_v19 = vcombine.high %v1706_v9, %v1710_v10  ;;  %7757 = vmatprep.subr.bf16.mxu1 %v10775_v6  ;;  %v10638_v44 = vcombine.low %v1706_v9, %v1710_v10 }
 0x20f   :  { %v1838_v14 = vld [vmem:[#allocation2 + $0xce0] sm:$0xff]  ;;  %7758 = vmatpush1.bf16.msra.mxu1 %v10774_v17 }
 0x210   :  { %v10767_v22 = vcombine.high %v1834_v13, %v1838_v14  ;;  %v1698_v41 = vld [vmem:[#allocation2 + $0x880] sm:$0xff]  ;;  %7718 = vmatprep.subr.bf16.mxu0 %v10639_v19  ;;  %v10766_v37 = vcombine.low %v1834_v13, %v1838_v14 }
 0x211   :  { %v1702_v32 = vld [vmem:[#allocation2 + $0x8a0] sm:$0xff]  ;;  %7719 = vmatpush1.bf16.msra.mxu0 %v10638_v44 }
 0x212   :  { %v1826_v34 = vld [vmem:[#allocation2 + $0xc80] sm:$0xff]  ;;  %v10631_v48 = vcombine.high %v1698_v41, %v1702_v32  ;;  %7759 = vmatprep.subr.bf16.mxu1 %v10767_v22  ;;  %v10630_v0 = vcombine.low %v1698_v41, %v1702_v32 }
 0x213   :  { %v1830_v35 = vld [vmem:[#allocation2 + $0xca0] sm:$0xff]  ;;  %7760 = vmatpush1.bf16.msra.mxu1 %v10766_v37 }
 0x214   :  { %v10759_v36 = vcombine.high %v1826_v34, %v1830_v35  ;;  %v1690_v38 = vld [vmem:[#allocation2 + $0x840] sm:$0xff]  ;;  %7720 = vmatprep.subr.bf16.mxu0 %v10631_v48  ;;  %v10758_v5 = vcombine.low %v1826_v34, %v1830_v35 }
 0x215   :  { %v1694_v39 = vld [vmem:[#allocation2 + $0x860] sm:$0xff]  ;;  %7721 = vmatpush1.bf16.msra.mxu0 %v10630_v0 }
 0x216   :  { %v1818_v42 = vld [vmem:[#allocation2 + $0xc40] sm:$0xff]  ;;  %v10623_v47 = vcombine.high %v1690_v38, %v1694_v39  ;;  %7761 = vmatprep.subr.bf16.mxu1 %v10759_v36  ;;  %v10622_v1 = vcombine.low %v1690_v38, %v1694_v39 }
 0x217   :  { %v1822_v45 = vld [vmem:[#allocation2 + $0xc60] sm:$0xff]  ;;  %7762 = vmatpush1.bf16.msra.mxu1 %v10758_v5 }
 0x218   :  { %v10751_v50 = vcombine.high %v1818_v42, %v1822_v45  ;;  %v1682_v56 = vld [vmem:[#allocation2 + $0x800] sm:$0xff]  ;;  %7722 = vmatprep.subr.bf16.mxu0 %v10623_v47  ;;  %v10750_v6 = vcombine.low %v1818_v42, %v1822_v45 }
 0x219   :  { %v1686_v59 = vld [vmem:[#allocation2 + $0x820] sm:$0xff]  ;;  %7723 = vmatpush1.bf16.msra.mxu0 %v10622_v1 }
 0x21a   :  { %v1810_v3 = vld [vmem:[#allocation2 + $0xc00] sm:$0xff]  ;;  %v10615_v9 = vcombine.high %v1682_v56, %v1686_v59  ;;  %7763 = vmatprep.subr.bf16.mxu1 %v10751_v50  ;;  %v10614_v19 = vcombine.low %v1682_v56, %v1686_v59 }
 0x21b   :  { %v1814_v7 = vld [vmem:[#allocation2 + $0xc20] sm:$0xff]  ;;  %7764 = vmatpush1.bf16.msra.mxu1 %v10750_v6 }
 0x21c   :  { %v10743_v10 = vcombine.high %v1810_v3, %v1814_v7  ;;  %v1802_v13 = vld [vmem:[#allocation2 + $0xbc0] sm:$0xff]  ;;  %7724 = vmatprep.subr.bf16.mxu0 %v10615_v9  ;;  %v10742_v22 = vcombine.low %v1810_v3, %v1814_v7 }
 0x21d   :  { %v1806_v14 = vld [vmem:[#allocation2 + $0xbe0] sm:$0xff]  ;;  %7725 = vmatpush1.bf16.msra.mxu0 %v10614_v19 }
 0x21e   :  { %v1930_v15 = vld [vmem:[#allocation2 + $0xfc0] sm:$0xff]  ;;  %v10735_v41 = vcombine.high %v1802_v13, %v1806_v14  ;;  %7765 = vmatprep.subr.bf16.mxu1 %v10743_v10  ;;  %v10734_v48 = vcombine.low %v1802_v13, %v1806_v14 }
 0x21f   :  { %v1934_v17 = vld [vmem:[#allocation2 + $0xfe0] sm:$0xff]  ;;  %7766 = vmatpush1.bf16.msra.mxu1 %v10742_v22 }
 0x220   :  { %v10863_v32 = vcombine.high %v1930_v15, %v1934_v17  ;;  %v1794_v34 = vld [vmem:[#allocation2 + $0xb80] sm:$0xff]  ;;  %7726 = vmatprep.subr.bf16.mxu0 %v10735_v41  ;;  %v10862_v36 = vcombine.low %v1930_v15, %v1934_v17 }
 0x221   :  { %v1798_v35 = vld [vmem:[#allocation2 + $0xba0] sm:$0xff]  ;;  %7727 = vmatpush2.bf16.msra.mxu0 %v10734_v48 }
 0x222   :  { %v1922_v44 = vld [vmem:[#allocation2 + $0xf80] sm:$0xff]  ;;  %v10727_v38 = vcombine.high %v1794_v34, %v1798_v35  ;;  %7767 = vmatprep.subr.bf16.mxu1 %v10863_v32  ;;  %v10726_v47 = vcombine.low %v1794_v34, %v1798_v35 }
 0x223   :  { %v1926_v37 = vld [vmem:[#allocation2 + $0xfa0] sm:$0xff]  ;;  %7768 = vmatpush2.bf16.msra.mxu1 %v10862_v36 }
 0x224   :  { %v10855_v39 = vcombine.high %v1922_v44, %v1926_v37  ;;  %v1786_v42 = vld [vmem:[#allocation2 + $0xb40] sm:$0xff]  ;;  %7728 = vmatprep.subr.bf16.mxu0 %v10727_v38  ;;  %v10854_v50 = vcombine.low %v1922_v44, %v1926_v37 }
 0x225   :  { %v1790_v45 = vld [vmem:[#allocation2 + $0xb60] sm:$0xff]  ;;  %7729 = vmatpush2.bf16.msra.mxu0 %v10726_v47 }
 0x226   :  { %v1914_v0 = vld [vmem:[#allocation2 + $0xf40] sm:$0xff]  ;;  %v10719_v56 = vcombine.high %v1786_v42, %v1790_v45  ;;  %7769 = vmatprep.subr.bf16.mxu1 %v10855_v39  ;;  %v10718_v9 = vcombine.low %v1786_v42, %v1790_v45 }
 0x227   :  { %v1918_v5 = vld [vmem:[#allocation2 + $0xf60] sm:$0xff]  ;;  %7770 = vmatpush2.bf16.msra.mxu1 %v10854_v50 }
 0x228   :  { %v10847_v59 = vcombine.high %v1914_v0, %v1918_v5  ;;  %v1778_v3 = vld [vmem:[#allocation2 + $0xb00] sm:$0xff]  ;;  %7730 = vmatprep.subr.bf16.mxu0 %v10719_v56  ;;  %v10846_v10 = vcombine.low %v1914_v0, %v1918_v5 }
 0x229   :  { %v1782_v7 = vld [vmem:[#allocation2 + $0xb20] sm:$0xff]  ;;  %7731 = vmatpush2.bf16.msra.mxu0 %v10718_v9 }
 0x22a   :  { %v1906_v1 = vld [vmem:[#allocation2 + $0xf00] sm:$0xff]  ;;  %v10711_v13 = vcombine.high %v1778_v3, %v1782_v7  ;;  %7771 = vmatprep.subr.bf16.mxu1 %v10847_v59  ;;  %v10710_v41 = vcombine.low %v1778_v3, %v1782_v7 }
 0x22b   :  { %v1910_v6 = vld [vmem:[#allocation2 + $0xf20] sm:$0xff]  ;;  %7772 = vmatpush2.bf16.msra.mxu1 %v10846_v10 }
 0x22c   :  { %v10839_v14 = vcombine.high %v1906_v1, %v1910_v6  ;;  %v1770_v15 = vld [vmem:[#allocation2 + $0xac0] sm:$0xff]  ;;  %7732 = vmatprep.subr.bf16.mxu0 %v10711_v13  ;;  %v10838_v32 = vcombine.low %v1906_v1, %v1910_v6 }
 0x22d   :  { %v1774_v17 = vld [vmem:[#allocation2 + $0xae0] sm:$0xff]  ;;  %7733 = vmatpush2.bf16.msra.mxu0 %v10710_v41 }
 0x22e   :  { %v1898_v19 = vld [vmem:[#allocation2 + $0xec0] sm:$0xff]  ;;  %v10703_v34 = vcombine.high %v1770_v15, %v1774_v17  ;;  %7773 = vmatprep.subr.bf16.mxu1 %v10839_v14  ;;  %v10702_v38 = vcombine.low %v1770_v15, %v1774_v17 }
 0x22f   :  { %v1902_v22 = vld [vmem:[#allocation2 + $0xee0] sm:$0xff]  ;;  %7774 = vmatpush2.bf16.msra.mxu1 %v10838_v32 }
 0x230   :  { %v10831_v35 = vcombine.high %v1898_v19, %v1902_v22  ;;  %v1762_v44 = vld [vmem:[#allocation2 + $0xa80] sm:$0xff]  ;;  %7734 = vmatprep.subr.bf16.mxu0 %v10703_v34  ;;  %v10830_v39 = vcombine.low %v1898_v19, %v1902_v22 }
 0x231   :  { %v1766_v37 = vld [vmem:[#allocation2 + $0xaa0] sm:$0xff]  ;;  %7735 = vmatpush2.bf16.msra.mxu0 %v10702_v38  ;;  %v12336_v38 = vpack.c.bf16 %v1410_v63, %v1410_v63  ;;  %v12346_v63 = vpack.c.bf16 %v1415_v31, %v1415_v31 }
 0x232   :  { %v1890_v48 = vld [vmem:[#allocation2 + $0xe80] sm:$0xff]  ;;  %v10695_v42 = vcombine.high %v1762_v44, %v1766_v37  ;;  %7775 = vmatprep.subr.bf16.mxu1 %v10831_v35  ;;  %v10694_v56 = vcombine.low %v1762_v44, %v1766_v37 }
 0x233   :  { %v1894_v36 = vld [vmem:[#allocation2 + $0xea0] sm:$0xff]  ;;  %7776 = vmatpush2.bf16.msra.mxu1 %v10830_v39 }
 0x234   :  { %v10823_v45 = vcombine.high %v1890_v48, %v1894_v36  ;;  %v1754_v0 = vld [vmem:[#allocation2 + $0xa40] sm:$0xff]  ;;  %7736 = vmatprep.subr.bf16.mxu0 %v10695_v42  ;;  %v10822_v59 = vcombine.low %v1890_v48, %v1894_v36 }
 0x235   :  { %v1758_v5 = vld [vmem:[#allocation2 + $0xa60] sm:$0xff]  ;;  %7737 = vmatpush2.bf16.msra.mxu0 %v10694_v56 }
 0x236   :  { %v1882_v47 = vld [vmem:[#allocation2 + $0xe40] sm:$0xff]  ;;  %v10687_v3 = vcombine.high %v1754_v0, %v1758_v5  ;;  %7777 = vmatprep.subr.bf16.mxu1 %v10823_v45  ;;  %v10686_v13 = vcombine.low %v1754_v0, %v1758_v5  ;;  %v12341_v45 = vpack.c.bf16 %v1412_v2, %v1412_v2  ;;  %v12352_v2 = vpack.c.bf16 %v1417_v33, %v1417_v33 }
 0x237   :  { %v1886_v50 = vld [vmem:[#allocation2 + $0xe60] sm:$0xff]  ;;  %7778 = vmatpush2.bf16.msra.mxu1 %v10822_v59 }
 0x238   :  { %v10815_v7 = vcombine.high %v1882_v47, %v1886_v50  ;;  %v1746_v1 = vld [vmem:[#allocation2 + $0xa00] sm:$0xff]  ;;  %7738 = vmatprep.subr.bf16.mxu0 %v10687_v3  ;;  %v10814_v14 = vcombine.low %v1882_v47, %v1886_v50 }
 0x239   :  { %v1750_v6 = vld [vmem:[#allocation2 + $0xa20] sm:$0xff]  ;;  %7739 = vmatpush2.bf16.msra.mxu0 %v10686_v13 }
 0x23a   :  { %v1874_v9 = vld [vmem:[#allocation2 + $0xe00] sm:$0xff]  ;;  %v10679_v15 = vcombine.high %v1746_v1, %v1750_v6  ;;  %7779 = vmatprep.subr.bf16.mxu1 %v10815_v7  ;;  %v10678_v34 = vcombine.low %v1746_v1, %v1750_v6 }
 0x23b   :  { %v1878_v10 = vld [vmem:[#allocation2 + $0xe20] sm:$0xff]  ;;  %7780 = vmatpush2.bf16.msra.mxu1 %v10814_v14 }
 0x23c   :  { %v10807_v17 = vcombine.high %v1874_v9, %v1878_v10  ;;  %v1994_v19 = vld [vmem:[#allocation2 + $0x11c0] sm:$0xff]  ;;  %7740 = vmatprep.subr.bf16.mxu0 %v10679_v15  ;;  %v10806_v35 = vcombine.low %v1874_v9, %v1878_v10 }
 0x23d   :  { %v1998_v22 = vld [vmem:[#allocation2 + $0x11e0] sm:$0xff]  ;;  %7741 = vmatpush2.bf16.msra.mxu0 %v10678_v34 }
 0x23e   :  { %v2122_v41 = vld [vmem:[#allocation2 + $0x15c0] sm:$0xff]  ;;  %v10927_v44 = vcombine.high %v1994_v19, %v1998_v22  ;;  %7781 = vmatprep.subr.bf16.mxu1 %v10807_v17  ;;  %v10926_v0 = vcombine.low %v1994_v19, %v1998_v22 }
 0x23f   :  { %v2126_v32 = vld [vmem:[#allocation2 + $0x15e0] sm:$0xff]  ;;  %7782 = vmatpush2.bf16.msra.mxu1 %v10806_v35 }
 0x240   :  { %v11055_v37 = vcombine.high %v2122_v41, %v2126_v32  ;;  %v1986_v48 = vld [vmem:[#allocation2 + $0x1180] sm:$0xff]  ;;  %7792 = vmatprep.subr.bf16.mxu0 %v10927_v44  ;;  %v11054_v5 = vcombine.low %v2122_v41, %v2126_v32  ;;  %7743 = vmatmul.mubr.bf16.vlgmr.msra.gmra.mxu0 %v12336_v38 }
 0x241   :  { %v1990_v36 = vld [vmem:[#allocation2 + $0x11a0] sm:$0xff]  ;;  %7793 = vmatpush1.bf16.msra.mxu0 %v10926_v0  ;;  %7824 = vmatprep.mubr.bf16.mxu0 %v12346_v63 }
 0x242   :  { %v2114_v39 = vld [vmem:[#allocation2 + $0x1580] sm:$0xff]  ;;  %v10919_v47 = vcombine.high %v1986_v48, %v1990_v36  ;;  %7833 = vmatprep.subr.bf16.mxu1 %v11055_v37  ;;  %7784 = vmatmul.mubr.bf16.vlgmr.msra.gmra.mxu1 %v12341_v45  ;;  %v10918_v3 = vcombine.low %v1986_v48, %v1990_v36 }
 0x243   :  { %v2118_v42 = vld [vmem:[#allocation2 + $0x15a0] sm:$0xff]  ;;  %7834 = vmatpush1.bf16.msra.mxu1 %v11054_v5  ;;  %7865 = vmatprep.mubr.bf16.mxu1 %v12352_v2 }
 0x244   :  { %v11047_v50 = vcombine.high %v2114_v39, %v2118_v42  ;;  %v1978_v56 = vld [vmem:[#allocation2 + $0x1140] sm:$0xff]  ;;  %7794 = vmatprep.subr.bf16.mxu0 %v10919_v47  ;;  %v11046_v7 = vcombine.low %v2114_v39, %v2118_v42 }
 0x245   :  { %v1982_v60 = vld [vmem:[#allocation2 + $0x1160] sm:$0xff]  ;;  %7795 = vmatpush1.bf16.msra.mxu0 %v10918_v3 }
 0x246   :  { %v2106_v61 = vld [vmem:[#allocation2 + $0x1540] sm:$0xff]  ;;  %v10911_v21 = vcombine.high %v1978_v56, %v1982_v60  ;;  %7835 = vmatprep.subr.bf16.mxu1 %v11047_v50  ;;  %v10910_v25 = vcombine.low %v1978_v56, %v1982_v60 }
 0x247   :  { %v2110_v59 = vld [vmem:[#allocation2 + $0x1560] sm:$0xff]  ;;  %7836 = vmatpush1.bf16.msra.mxu1 %v11046_v7 }
 0x248   :  { %v11039_v31 = vcombine.high %v2106_v61, %v2110_v59  ;;  %v1970_v1 = vld [vmem:[#allocation2 + $0x1100] sm:$0xff]  ;;  %7796 = vmatprep.subr.bf16.mxu0 %v10911_v21  ;;  %v11038_v33 = vcombine.low %v2106_v61, %v2110_v59 }
 0x249   :  { %v1974_v6 = vld [vmem:[#allocation2 + $0x1120] sm:$0xff]  ;;  %7797 = vmatpush1.bf16.msra.mxu0 %v10910_v25 }
 0x24a   :  { %v2098_v9 = vld [vmem:[#allocation2 + $0x1500] sm:$0xff]  ;;  %v10903_v13 = vcombine.high %v1970_v1, %v1974_v6  ;;  %7837 = vmatprep.subr.bf16.mxu1 %v11039_v31  ;;  %v10902_v41 = vcombine.low %v1970_v1, %v1974_v6 }
 0x24b   :  { %v2102_v10 = vld [vmem:[#allocation2 + $0x1520] sm:$0xff]  ;;  %7838 = vmatpush1.bf16.msra.mxu1 %v11038_v33 }
 0x24c   :  { %v11031_v14 = vcombine.high %v2098_v9, %v2102_v10  ;;  %v1962_v15 = vld [vmem:[#allocation2 + $0x10c0] sm:$0xff]  ;;  %7798 = vmatprep.subr.bf16.mxu0 %v10903_v13  ;;  %v11030_v32 = vcombine.low %v2098_v9, %v2102_v10 }
 0x24d   :  { %v1966_v17 = vld [vmem:[#allocation2 + $0x10e0] sm:$0xff]  ;;  %7799 = vmatpush1.bf16.msra.mxu0 %v10902_v41 }
 0x24e   :  { %v2090_v19 = vld [vmem:[#allocation2 + $0x14c0] sm:$0xff]  ;;  %v10895_v34 = vcombine.high %v1962_v15, %v1966_v17  ;;  %7839 = vmatprep.subr.bf16.mxu1 %v11031_v14  ;;  %v10894_v39 = vcombine.low %v1962_v15, %v1966_v17 }
 0x24f   :  { %v2094_v22 = vld [vmem:[#allocation2 + $0x14e0] sm:$0xff]  ;;  %7840 = vmatpush1.bf16.msra.mxu1 %v11030_v32 }
 0x250   :  { %v11023_v35 = vcombine.high %v2090_v19, %v2094_v22  ;;  %v1954_v44 = vld [vmem:[#allocation2 + $0x1080] sm:$0xff]  ;;  %7800 = vmatprep.subr.bf16.mxu0 %v10895_v34  ;;  %v11022_v42 = vcombine.low %v2090_v19, %v2094_v22 }
 0x251   :  { %v1958_v37 = vld [vmem:[#allocation2 + $0x10a0] sm:$0xff]  ;;  %7801 = vmatpush1.bf16.msra.mxu0 %v10894_v39 }
 0x252   :  { %v2082_v48 = vld [vmem:[#allocation2 + $0x1480] sm:$0xff]  ;;  %v10887_v0 = vcombine.high %v1954_v44, %v1958_v37  ;;  %7841 = vmatprep.subr.bf16.mxu1 %v11023_v35  ;;  %v10886_v61 = vcombine.low %v1954_v44, %v1958_v37 }
 0x253   :  { %v2086_v36 = vld [vmem:[#allocation2 + $0x14a0] sm:$0xff]  ;;  %7842 = vmatpush1.bf16.msra.mxu1 %v11022_v42 }
 0x254   :  { %v11015_v5 = vcombine.high %v2082_v48, %v2086_v36  ;;  %v1946_v47 = vld [vmem:[#allocation2 + $0x1040] sm:$0xff]  ;;  %7802 = vmatprep.subr.bf16.mxu0 %v10887_v0  ;;  %v11014_v59 = vcombine.low %v2082_v48, %v2086_v36 }
 0x255   :  { %v1950_v50 = vld [vmem:[#allocation2 + $0x1060] sm:$0xff]  ;;  %7803 = vmatpush1.bf16.msra.mxu0 %v10886_v61 }
 0x256   :  { %v2074_v56 = vld [vmem:[#allocation2 + $0x1440] sm:$0xff]  ;;  %v10879_v3 = vcombine.high %v1946_v47, %v1950_v50  ;;  %7843 = vmatprep.subr.bf16.mxu1 %v11015_v5  ;;  %v10878_v9 = vcombine.low %v1946_v47, %v1950_v50 }
 0x257   :  { %v2078_v60 = vld [vmem:[#allocation2 + $0x1460] sm:$0xff]  ;;  %7844 = vmatpush1.bf16.msra.mxu1 %v11014_v59 }
 0x258   :  { %v11007_v7 = vcombine.high %v2074_v56, %v2078_v60  ;;  %v1938_v21 = vld [vmem:[#allocation2 + $0x1000] sm:$0xff]  ;;  %7804 = vmatprep.subr.bf16.mxu0 %v10879_v3  ;;  %v11006_v10 = vcombine.low %v2074_v56, %v2078_v60 }
 0x259   :  { %v1942_v31 = vld [vmem:[#allocation2 + $0x1020] sm:$0xff]  ;;  %7805 = vmatpush1.bf16.msra.mxu0 %v10878_v9 }
 0x25a   :  { %v2066_v1 = vld [vmem:[#allocation2 + $0x1400] sm:$0xff]  ;;  %v10871_v25 = vcombine.high %v1938_v21, %v1942_v31  ;;  %7845 = vmatprep.subr.bf16.mxu1 %v11007_v7  ;;  %v10870_v19 = vcombine.low %v1938_v21, %v1942_v31 }
 0x25b   :  { %v2070_v6 = vld [vmem:[#allocation2 + $0x1420] sm:$0xff]  ;;  %7846 = vmatpush1.bf16.msra.mxu1 %v11006_v10 }
 0x25c   :  { %v10999_v33 = vcombine.high %v2066_v1, %v2070_v6  ;;  %v2058_v13 = vld [vmem:[#allocation2 + $0x13c0] sm:$0xff]  ;;  %7806 = vmatprep.subr.bf16.mxu0 %v10871_v25  ;;  %v10998_v22 = vcombine.low %v2066_v1, %v2070_v6 }
 0x25d   :  { %v2062_v14 = vld [vmem:[#allocation2 + $0x13e0] sm:$0xff]  ;;  %7807 = vmatpush1.bf16.msra.mxu0 %v10870_v19 }
 0x25e   :  { %v2186_v15 = vld [vmem:[#allocation2 + $0x17c0] sm:$0xff]  ;;  %v10991_v41 = vcombine.high %v2058_v13, %v2062_v14  ;;  %7847 = vmatprep.subr.bf16.mxu1 %v10999_v33  ;;  %v10990_v48 = vcombine.low %v2058_v13, %v2062_v14 }
 0x25f   :  { %v2190_v17 = vld [vmem:[#allocation2 + $0x17e0] sm:$0xff]  ;;  %7848 = vmatpush1.bf16.msra.mxu1 %v10998_v22 }
 0x260   :  { %v11119_v32 = vcombine.high %v2186_v15, %v2190_v17  ;;  %v2050_v34 = vld [vmem:[#allocation2 + $0x1380] sm:$0xff]  ;;  %7808 = vmatprep.subr.bf16.mxu0 %v10991_v41  ;;  %v11118_v36 = vcombine.low %v2186_v15, %v2190_v17 }
 0x261   :  { %v2054_v35 = vld [vmem:[#allocation2 + $0x13a0] sm:$0xff]  ;;  %7809 = vmatpush2.bf16.msra.mxu0 %v10990_v48 }
 0x262   :  { %v2178_v44 = vld [vmem:[#allocation2 + $0x1780] sm:$0xff]  ;;  %v10983_v39 = vcombine.high %v2050_v34, %v2054_v35  ;;  %7849 = vmatprep.subr.bf16.mxu1 %v11119_v32  ;;  %v10982_v56 = vcombine.low %v2050_v34, %v2054_v35 }
 0x263   :  { %v2182_v37 = vld [vmem:[#allocation2 + $0x17a0] sm:$0xff]  ;;  %7850 = vmatpush2.bf16.msra.mxu1 %v11118_v36 }
 0x264   :  { %v11111_v42 = vcombine.high %v2178_v44, %v2182_v37  ;;  %v2042_v0 = vld [vmem:[#allocation2 + $0x1340] sm:$0xff]  ;;  %7810 = vmatprep.subr.bf16.mxu0 %v10983_v39  ;;  %v11110_v60 = vcombine.low %v2178_v44, %v2182_v37 }
 0x265   :  { %v2046_v5 = vld [vmem:[#allocation2 + $0x1360] sm:$0xff]  ;;  %7811 = vmatpush2.bf16.msra.mxu0 %v10982_v56 }
 0x266   :  { %v2170_v47 = vld [vmem:[#allocation2 + $0x1740] sm:$0xff]  ;;  %v10975_v61 = vcombine.high %v2042_v0, %v2046_v5  ;;  %7851 = vmatprep.subr.bf16.mxu1 %v11111_v42  ;;  %v10974_v1 = vcombine.low %v2042_v0, %v2046_v5 }
 0x267   :  { %v2174_v50 = vld [vmem:[#allocation2 + $0x1760] sm:$0xff]  ;;  %7852 = vmatpush2.bf16.msra.mxu1 %v11110_v60 }
 0x268   :  { %v11103_v59 = vcombine.high %v2170_v47, %v2174_v50  ;;  %v2034_v3 = vld [vmem:[#allocation2 + $0x1300] sm:$0xff]  ;;  %7812 = vmatprep.subr.bf16.mxu0 %v10975_v61  ;;  %v11102_v6 = vcombine.low %v2170_v47, %v2174_v50 }
 0x269   :  { %v2038_v7 = vld [vmem:[#allocation2 + $0x1320] sm:$0xff]  ;;  %7813 = vmatpush2.bf16.msra.mxu0 %v10974_v1 }
 0x26a   :  { %v2162_v21 = vld [vmem:[#allocation2 + $0x1700] sm:$0xff]  ;;  %v10967_v9 = vcombine.high %v2034_v3, %v2038_v7  ;;  %7853 = vmatprep.subr.bf16.mxu1 %v11103_v59  ;;  %v10966_v15 = vcombine.low %v2034_v3, %v2038_v7 }
 0x26b   :  { %v2166_v31 = vld [vmem:[#allocation2 + $0x1720] sm:$0xff]  ;;  %7854 = vmatpush2.bf16.msra.mxu1 %v11102_v6 }
 0x26c   :  { %v11095_v10 = vcombine.high %v2162_v21, %v2166_v31  ;;  %v2026_v25 = vld [vmem:[#allocation2 + $0x12c0] sm:$0xff]  ;;  %7814 = vmatprep.subr.bf16.mxu0 %v10967_v9  ;;  %v11094_v17 = vcombine.low %v2162_v21, %v2166_v31 }
 0x26d   :  { %v2030_v33 = vld [vmem:[#allocation2 + $0x12e0] sm:$0xff]  ;;  %7815 = vmatpush2.bf16.msra.mxu0 %v10966_v15 }
 0x26e   :  { %v2154_v13 = vld [vmem:[#allocation2 + $0x16c0] sm:$0xff]  ;;  %v10959_v19 = vcombine.high %v2026_v25, %v2030_v33  ;;  %7855 = vmatprep.subr.bf16.mxu1 %v11095_v10  ;;  %v10958_v44 = vcombine.low %v2026_v25, %v2030_v33 }
 0x26f   :  { %v2158_v14 = vld [vmem:[#allocation2 + $0x16e0] sm:$0xff]  ;;  %7856 = vmatpush2.bf16.msra.mxu1 %v11094_v17 }
 0x270   :  { %v11087_v22 = vcombine.high %v2154_v13, %v2158_v14  ;;  %v2018_v41 = vld [vmem:[#allocation2 + $0x1280] sm:$0xff]  ;;  %7816 = vmatprep.subr.bf16.mxu0 %v10959_v19  ;;  %v11086_v37 = vcombine.low %v2154_v13, %v2158_v14 }
 0x271   :  { %v2022_v32 = vld [vmem:[#allocation2 + $0x12a0] sm:$0xff]  ;;  %7817 = vmatpush2.bf16.msra.mxu0 %v10958_v44 }
 0x272   :  { %v2146_v34 = vld [vmem:[#allocation2 + $0x1680] sm:$0xff]  ;;  %v10951_v48 = vcombine.high %v2018_v41, %v2022_v32  ;;  %7857 = vmatprep.subr.bf16.mxu1 %v11087_v22  ;;  %v10950_v47 = vcombine.low %v2018_v41, %v2022_v32  ;;  %v12360_v41 = vpack.c.bf16 %v1414_v20, %v1414_v20  ;;  %v12370_v20 = vpack.c.bf16 %v1419_v4, %v1419_v4 }
 0x273   :  { %v2150_v35 = vld [vmem:[#allocation2 + $0x16a0] sm:$0xff]  ;;  %7858 = vmatpush2.bf16.msra.mxu1 %v11086_v37 }
 0x274   :  { %v11079_v36 = vcombine.high %v2146_v34, %v2150_v35  ;;  %v2010_v39 = vld [vmem:[#allocation2 + $0x1240] sm:$0xff]  ;;  %7818 = vmatprep.subr.bf16.mxu0 %v10951_v48  ;;  %v11078_v50 = vcombine.low %v2146_v34, %v2150_v35  ;;  %v12365_v35 = vpack.c.bf16 %v1416_v23, %v1416_v23  ;;  %v12376_v23 = vpack.c.bf16 %v1421_v8, %v1421_v8 }
 0x275   :  { %v2014_v42 = vld [vmem:[#allocation2 + $0x1260] sm:$0xff]  ;;  %7819 = vmatpush2.bf16.msra.mxu0 %v10950_v47 }
 0x276   :  { %v2138_v0 = vld [vmem:[#allocation2 + $0x1640] sm:$0xff]  ;;  %v10943_v56 = vcombine.high %v2010_v39, %v2014_v42  ;;  %7859 = vmatprep.subr.bf16.mxu1 %v11079_v36  ;;  %v10942_v21 = vcombine.low %v2010_v39, %v2014_v42 }
 0x277   :  { %v2142_v5 = vld [vmem:[#allocation2 + $0x1660] sm:$0xff]  ;;  %7860 = vmatpush2.bf16.msra.mxu1 %v11078_v50 }
 0x278   :  { %v11071_v60 = vcombine.high %v2138_v0, %v2142_v5  ;;  %v2002_v61 = vld [vmem:[#allocation2 + $0x1200] sm:$0xff]  ;;  %7820 = vmatprep.subr.bf16.mxu0 %v10943_v56  ;;  %v11070_v31 = vcombine.low %v2138_v0, %v2142_v5 }
 0x279   :  { %v2006_v59 = vld [vmem:[#allocation2 + $0x1220] sm:$0xff]  ;;  %7821 = vmatpush2.bf16.msra.mxu0 %v10942_v21 }
 0x27a   :  { %v2130_v3 = vld [vmem:[#allocation2 + $0x1600] sm:$0xff]  ;;  %v10935_v1 = vcombine.high %v2002_v61, %v2006_v59  ;;  %7861 = vmatprep.subr.bf16.mxu1 %v11071_v60  ;;  %v10934_v13 = vcombine.low %v2002_v61, %v2006_v59 }
 0x27b   :  { %v2134_v7 = vld [vmem:[#allocation2 + $0x1620] sm:$0xff]  ;;  %7862 = vmatpush2.bf16.msra.mxu1 %v11070_v31 }
 0x27c   :  { %v11063_v6 = vcombine.high %v2130_v3, %v2134_v7  ;;  %v2250_v9 = vld [vmem:[#allocation2 + $0x19c0] sm:$0xff]  ;;  %7822 = vmatprep.subr.bf16.mxu0 %v10935_v1  ;;  %v11062_v14 = vcombine.low %v2130_v3, %v2134_v7 }
 0x27d   :  { %v2254_v10 = vld [vmem:[#allocation2 + $0x19e0] sm:$0xff]  ;;  %7823 = vmatpush2.bf16.msra.mxu0 %v10934_v13 }
 0x27e   :  { %v2378_v25 = vld [vmem:[#allocation2 + $0x1dc0] sm:$0xff]  ;;  %v11183_v15 = vcombine.high %v2250_v9, %v2254_v10  ;;  %7863 = vmatprep.subr.bf16.mxu1 %v11063_v6  ;;  %v11182_v44 = vcombine.low %v2250_v9, %v2254_v10 }
 0x27f   :  { %v2382_v33 = vld [vmem:[#allocation2 + $0x1de0] sm:$0xff]  ;;  %7864 = vmatpush2.bf16.msra.mxu1 %v11062_v14 }
 0x280   :  { %v11311_v17 = vcombine.high %v2378_v25, %v2382_v33  ;;  %v2242_v19 = vld [vmem:[#allocation2 + $0x1980] sm:$0xff]  ;;  %7874 = vmatprep.subr.bf16.mxu0 %v11183_v15  ;;  %v11310_v37 = vcombine.low %v2378_v25, %v2382_v33  ;;  %7825 = vmatmul.mubr.bf16.vlgmr.msra.gmra.mxu0 %v12360_v41 }
 0x281   :  { %v2246_v22 = vld [vmem:[#allocation2 + $0x19a0] sm:$0xff]  ;;  %7875 = vmatpush1.bf16.msra.mxu0 %v11182_v44  ;;  %7906 = vmatprep.mubr.bf16.mxu0 %v12370_v20 }
 0x282   :  { %v2370_v32 = vld [vmem:[#allocation2 + $0x1d80] sm:$0xff]  ;;  %v11175_v48 = vcombine.high %v2242_v19, %v2246_v22  ;;  %7915 = vmatprep.subr.bf16.mxu1 %v11311_v17  ;;  %7866 = vmatmul.mubr.bf16.vlgmr.msra.gmra.mxu1 %v12365_v35  ;;  %v11174_v0 = vcombine.low %v2242_v19, %v2246_v22 }
 0x283   :  { %v2374_v34 = vld [vmem:[#allocation2 + $0x1da0] sm:$0xff]  ;;  %7916 = vmatpush1.bf16.msra.mxu1 %v11310_v37  ;;  %7947 = vmatprep.mubr.bf16.mxu1 %v12376_v23 }
 0x284   :  { %v11303_v36 = vcombine.high %v2370_v32, %v2374_v34  ;;  %v2234_v39 = vld [vmem:[#allocation2 + $0x1940] sm:$0xff]  ;;  %7876 = vmatprep.subr.bf16.mxu0 %v11175_v48  ;;  %v11302_v5 = vcombine.low %v2370_v32, %v2374_v34 }
 0x285   :  { %v2238_v16 = vld [vmem:[#allocation2 + $0x1960] sm:$0xff]  ;;  %7877 = vmatpush1.bf16.msra.mxu0 %v11174_v0 }
 0x286   :  { %v2362_v18 = vld [vmem:[#allocation2 + $0x1d40] sm:$0xff]  ;;  %v11167_v58 = vcombine.high %v2234_v39, %v2238_v16  ;;  %7917 = vmatprep.subr.bf16.mxu1 %v11303_v36  ;;  %v11166_v62 = vcombine.low %v2234_v39, %v2238_v16 }
 0x287   :  { %v2366_v42 = vld [vmem:[#allocation2 + $0x1d60] sm:$0xff]  ;;  %7918 = vmatpush1.bf16.msra.mxu1 %v11302_v5 }
 0x288   :  { %v11295_v4 = vcombine.high %v2362_v18, %v2366_v42  ;;  %v2226_v47 = vld [vmem:[#allocation2 + $0x1900] sm:$0xff]  ;;  %7878 = vmatprep.subr.bf16.mxu0 %v11167_v58  ;;  %v11294_v8 = vcombine.low %v2362_v18, %v2366_v42 }
 0x289   :  { %v2230_v50 = vld [vmem:[#allocation2 + $0x1920] sm:$0xff]  ;;  %7879 = vmatpush1.bf16.msra.mxu0 %v11166_v62 }
 0x28a   :  { %v2354_v56 = vld [vmem:[#allocation2 + $0x1d00] sm:$0xff]  ;;  %v11159_v61 = vcombine.high %v2226_v47, %v2230_v50  ;;  %7919 = vmatprep.subr.bf16.mxu1 %v11295_v4  ;;  %v11158_v1 = vcombine.low %v2226_v47, %v2230_v50 }
 0x28b   :  { %v2358_v60 = vld [vmem:[#allocation2 + $0x1d20] sm:$0xff]  ;;  %7920 = vmatpush1.bf16.msra.mxu1 %v11294_v8 }
 0x28c   :  { %v11287_v59 = vcombine.high %v2354_v56, %v2358_v60  ;;  %v2218_v3 = vld [vmem:[#allocation2 + $0x18c0] sm:$0xff]  ;;  %7880 = vmatprep.subr.bf16.mxu0 %v11159_v61  ;;  %v11286_v6 = vcombine.low %v2354_v56, %v2358_v60 }
 0x28d   :  { %v2222_v7 = vld [vmem:[#allocation2 + $0x18e0] sm:$0xff]  ;;  %7881 = vmatpush1.bf16.msra.mxu0 %v11158_v1 }
 0x28e   :  { %v2346_v21 = vld [vmem:[#allocation2 + $0x1cc0] sm:$0xff]  ;;  %v11151_v9 = vcombine.high %v2218_v3, %v2222_v7  ;;  %7921 = vmatprep.subr.bf16.mxu1 %v11287_v59  ;;  %v11150_v15 = vcombine.low %v2218_v3, %v2222_v7 }
 0x28f   :  { %v2350_v31 = vld [vmem:[#allocation2 + $0x1ce0] sm:$0xff]  ;;  %7922 = vmatpush1.bf16.msra.mxu1 %v11286_v6 }
 0x290   :  { %v11279_v10 = vcombine.high %v2346_v21, %v2350_v31  ;;  %v2210_v25 = vld [vmem:[#allocation2 + $0x1880] sm:$0xff]  ;;  %7882 = vmatprep.subr.bf16.mxu0 %v11151_v9  ;;  %v11278_v17 = vcombine.low %v2346_v21, %v2350_v31 }
 0x291   :  { %v2214_v33 = vld [vmem:[#allocation2 + $0x18a0] sm:$0xff]  ;;  %7883 = vmatpush1.bf16.msra.mxu0 %v11150_v15 }
 0x292   :  { %v2338_v13 = vld [vmem:[#allocation2 + $0x1c80] sm:$0xff]  ;;  %v11143_v19 = vcombine.high %v2210_v25, %v2214_v33  ;;  %7923 = vmatprep.subr.bf16.mxu1 %v11279_v10  ;;  %v11142_v48 = vcombine.low %v2210_v25, %v2214_v33 }
 0x293   :  { %v2342_v14 = vld [vmem:[#allocation2 + $0x1ca0] sm:$0xff]  ;;  %7924 = vmatpush1.bf16.msra.mxu1 %v11278_v17 }
 0x294   :  { %v11271_v22 = vcombine.high %v2338_v13, %v2342_v14  ;;  %v2202_v32 = vld [vmem:[#allocation2 + $0x1840] sm:$0xff]  ;;  %7884 = vmatprep.subr.bf16.mxu0 %v11143_v19  ;;  %v11270_v36 = vcombine.low %v2338_v13, %v2342_v14 }
 0x295   :  { %v2206_v34 = vld [vmem:[#allocation2 + $0x1860] sm:$0xff]  ;;  %7885 = vmatpush1.bf16.msra.mxu0 %v11142_v48 }
 0x296   :  { %v2330_v44 = vld [vmem:[#allocation2 + $0x1c40] sm:$0xff]  ;;  %v11135_v39 = vcombine.high %v2202_v32, %v2206_v34  ;;  %7925 = vmatprep.subr.bf16.mxu1 %v11271_v22  ;;  %v11134_v58 = vcombine.low %v2202_v32, %v2206_v34 }
 0x297   :  { %v2334_v37 = vld [vmem:[#allocation2 + $0x1c60] sm:$0xff]  ;;  %7926 = vmatpush1.bf16.msra.mxu1 %v11270_v36 }
 0x298   :  { %v11263_v16 = vcombine.high %v2330_v44, %v2334_v37  ;;  %v2194_v18 = vld [vmem:[#allocation2 + $0x1800] sm:$0xff]  ;;  %7886 = vmatprep.subr.bf16.mxu0 %v11135_v39  ;;  %v11262_v4 = vcombine.low %v2330_v44, %v2334_v37 }
 0x299   :  { %v2198_v42 = vld [vmem:[#allocation2 + $0x1820] sm:$0xff]  ;;  %7887 = vmatpush1.bf16.msra.mxu0 %v11134_v58 }
 0x29a   :  { %v2322_v0 = vld [vmem:[#allocation2 + $0x1c00] sm:$0xff]  ;;  %v11127_v47 = vcombine.high %v2194_v18, %v2198_v42  ;;  %7927 = vmatprep.subr.bf16.mxu1 %v11263_v16  ;;  %v11126_v61 = vcombine.low %v2194_v18, %v2198_v42 }
 0x29b   :  { %v2326_v5 = vld [vmem:[#allocation2 + $0x1c20] sm:$0xff]  ;;  %7928 = vmatpush1.bf16.msra.mxu1 %v11262_v4 }
 0x29c   :  { %v11255_v50 = vcombine.high %v2322_v0, %v2326_v5  ;;  %v2314_v56 = vld [vmem:[#allocation2 + $0x1bc0] sm:$0xff]  ;;  %7888 = vmatprep.subr.bf16.mxu0 %v11127_v47  ;;  %v11254_v59 = vcombine.low %v2322_v0, %v2326_v5 }
 0x29d   :  { %v2318_v60 = vld [vmem:[#allocation2 + $0x1be0] sm:$0xff]  ;;  %7889 = vmatpush1.bf16.msra.mxu0 %v11126_v61 }
 0x29e   :  { %v2442_v62 = vld [vmem:[#allocation2 + $0x1fc0] sm:$0xff]  ;;  %v11247_v3 = vcombine.high %v2314_v56, %v2318_v60  ;;  %7929 = vmatprep.subr.bf16.mxu1 %v11255_v50  ;;  %v11246_v9 = vcombine.low %v2314_v56, %v2318_v60 }
 0x29f   :  { %v2446_v8 = vld [vmem:[#allocation2 + $0x1fe0] sm:$0xff]  ;;  %7930 = vmatpush1.bf16.msra.mxu1 %v11254_v59 }
 0x2a0   :  { %v11375_v7 = vcombine.high %v2442_v62, %v2446_v8  ;;  %v2306_v21 = vld [vmem:[#allocation2 + $0x1b80] sm:$0xff]  ;;  %7890 = vmatprep.subr.bf16.mxu0 %v11247_v3  ;;  %v11374_v10 = vcombine.low %v2442_v62, %v2446_v8 }
 0x2a1   :  { %v2310_v31 = vld [vmem:[#allocation2 + $0x1ba0] sm:$0xff]  ;;  %7891 = vmatpush2.bf16.msra.mxu0 %v11246_v9 }
 0x2a2   :  { %v2434_v1 = vld [vmem:[#allocation2 + $0x1f80] sm:$0xff]  ;;  %v11239_v25 = vcombine.high %v2306_v21, %v2310_v31  ;;  %7931 = vmatprep.subr.bf16.mxu1 %v11375_v7  ;;  %v11238_v19 = vcombine.low %v2306_v21, %v2310_v31 }
 0x2a3   :  { %v2438_v6 = vld [vmem:[#allocation2 + $0x1fa0] sm:$0xff]  ;;  %7932 = vmatpush2.bf16.msra.mxu1 %v11374_v10 }
 0x2a4   :  { %v11367_v33 = vcombine.high %v2434_v1, %v2438_v6  ;;  %v2298_v13 = vld [vmem:[#allocation2 + $0x1b40] sm:$0xff]  ;;  %7892 = vmatprep.subr.bf16.mxu0 %v11239_v25  ;;  %v11366_v22 = vcombine.low %v2434_v1, %v2438_v6 }
 0x2a5   :  { %v2302_v14 = vld [vmem:[#allocation2 + $0x1b60] sm:$0xff]  ;;  %7893 = vmatpush2.bf16.msra.mxu0 %v11238_v19 }
 0x2a6   :  { %v2426_v15 = vld [vmem:[#allocation2 + $0x1f40] sm:$0xff]  ;;  %v11231_v32 = vcombine.high %v2298_v13, %v2302_v14  ;;  %7933 = vmatprep.subr.bf16.mxu1 %v11367_v33  ;;  %v11230_v39 = vcombine.low %v2298_v13, %v2302_v14 }
 0x2a7   :  { %v2430_v17 = vld [vmem:[#allocation2 + $0x1f60] sm:$0xff]  ;;  %7934 = vmatpush2.bf16.msra.mxu1 %v11366_v22 }
 0x2a8   :  { %v11359_v34 = vcombine.high %v2426_v15, %v2430_v17  ;;  %v2290_v44 = vld [vmem:[#allocation2 + $0x1b00] sm:$0xff]  ;;  %7894 = vmatprep.subr.bf16.mxu0 %v11231_v32  ;;  %v11358_v16 = vcombine.low %v2426_v15, %v2430_v17 }
 0x2a9   :  { %v2294_v37 = vld [vmem:[#allocation2 + $0x1b20] sm:$0xff]  ;;  %7895 = vmatpush2.bf16.msra.mxu0 %v11230_v39  ;;  %v1611_v39 = vld [vmem:[#allocation2 + $0x5c8] sm:$0xff] }
 0x2aa   :  { %v2418_v48 = vld [vmem:[#allocation2 + $0x1f00] sm:$0xff]  ;;  %v11223_v18 = vcombine.high %v2290_v44, %v2294_v37  ;;  %7935 = vmatprep.subr.bf16.mxu1 %v11359_v34  ;;  %v11222_v47 = vcombine.low %v2290_v44, %v2294_v37 }
 0x2ab   :  { %v2422_v36 = vld [vmem:[#allocation2 + $0x1f20] sm:$0xff]  ;;  %7936 = vmatpush2.bf16.msra.mxu1 %v11358_v16  ;;  %v1615_v16 = vld [vmem:[#allocation2 + $0x5e8] sm:$0xff] }
 0x2ac   :  { %v11351_v42 = vcombine.high %v2418_v48, %v2422_v36  ;;  %v2282_v0 = vld [vmem:[#allocation2 + $0x1ac0] sm:$0xff]  ;;  %7896 = vmatprep.subr.bf16.mxu0 %v11223_v18  ;;  %v11350_v50 = vcombine.low %v2418_v48, %v2422_v36  ;;  %v1483_v48 = vld [vmem:[#allocation2 + $0x1c8] sm:$0xff] }
 0x2ad   :  { %v2286_v5 = vld [vmem:[#allocation2 + $0x1ae0] sm:$0xff]  ;;  %7897 = vmatpush2.bf16.msra.mxu0 %v11222_v47  ;;  %v1487_v36 = vld [vmem:[#allocation2 + $0x1e8] sm:$0xff] }
 0x2ae   :  { %v2410_v58 = vld [vmem:[#allocation2 + $0x1ec0] sm:$0xff]  ;;  %v11215_v56 = vcombine.high %v2282_v0, %v2286_v5  ;;  %7937 = vmatprep.subr.bf16.mxu1 %v11351_v42  ;;  %v11214_v3 = vcombine.low %v2282_v0, %v2286_v5  ;;  %v2466_v0 = vld [vmem:[#allocation13] sm:$0xff]  ;;  %v10417_v5 = vcombine.high %v1483_v48, %v1487_v36  ;;  %v1479_v47 = vld [vmem:[#allocation2 + $0x1a8] sm:$0xff] }
 0x2af   :  { %v2414_v4 = vld [vmem:[#allocation2 + $0x1ee0] sm:$0xff]  ;;  %7938 = vmatpush2.bf16.msra.mxu1 %v11350_v50  ;;  %v12384_v50 = vpack.c.bf16 %v1418_v57, %v1418_v57  ;;  %v2475_v49 = vrot.slane %v2466_v0, %v12221_v29 }
 0x2b0   :  { %v11343_v60 = vcombine.high %v2410_v58, %v2414_v4  ;;  %v2274_v62 = vld [vmem:[#allocation2 + $0x1a80] sm:$0xff]  ;;  %7898 = vmatprep.subr.bf16.mxu0 %v11215_v56  ;;  %v11342_v7 = vcombine.low %v2410_v58, %v2414_v4  ;;  %v10545_v58 = vcombine.high %v1611_v39, %v1615_v16  ;;  %v1475_v4 = vld [vmem:[#allocation2 + $0x188] sm:$0xff] }
 0x2b1   :  { %v2278_v8 = vld [vmem:[#allocation2 + $0x1aa0] sm:$0xff]  ;;  %7899 = vmatpush2.bf16.msra.mxu0 %v11214_v3  ;;  %v1603_v56 = vld [vmem:[#allocation2 + $0x588] sm:$0xff]  ;;  %v10409_v3 = vcombine.high %v1475_v4, %v1479_v47 }
 0x2b2   :  { %v2402_v61 = vld [vmem:[#allocation2 + $0x1e80] sm:$0xff]  ;;  %v11207_v21 = vcombine.high %v2274_v62, %v2278_v8  ;;  %7939 = vmatprep.subr.bf16.mxu1 %v11343_v60  ;;  %v11206_v25 = vcombine.low %v2274_v62, %v2278_v8  ;;  %v1607_v60 = vld [vmem:[#allocation2 + $0x5a8] sm:$0xff]  ;;  %v2471_v62 = vrot.slane %v2466_v0, %v12217_v26  ;;  %v12390_v8 = vpack.c.bf16 %v1420_v24, %v1420_v24 }
 0x2b3   :  { %v2406_v59 = vld [vmem:[#allocation2 + $0x1ea0] sm:$0xff]  ;;  %7940 = vmatpush2.bf16.msra.mxu1 %v11342_v7  ;;  %v10537_v57 = vcombine.high %v1603_v56, %v1607_v60  ;;  %v1467_v7 = vld [vmem:[#allocation2 + $0x148] sm:$0xff]  ;;  %v10408_v24 = vcombine.low %v1475_v4, %v1479_v47 }
 0x2b4   :  { %v11335_v31 = vcombine.high %v2402_v61, %v2406_v59  ;;  %v2266_v1 = vld [vmem:[#allocation2 + $0x1a40] sm:$0xff]  ;;  %7900 = vmatprep.subr.bf16.mxu0 %v11207_v21  ;;  %v11334_v33 = vcombine.low %v2402_v61, %v2406_v59  ;;  %v10416_v61 = vcombine.low %v1483_v48, %v1487_v36  ;;  %v10544_v59 = vcombine.low %v1611_v39, %v1615_v16  ;;  %v1471_v21 = vld [vmem:[#allocation2 + $0x168] sm:$0xff] }
 0x2b5   :  { %v2270_v6 = vld [vmem:[#allocation2 + $0x1a60] sm:$0xff]  ;;  %7901 = vmatpush2.bf16.msra.mxu0 %v11206_v25  ;;  %v10536_v25 = vcombine.low %v1603_v56, %v1607_v60  ;;  %v10400_v36 = vcombine.low %v1467_v7, %v1471_v21  ;;  %v1579_v4 = vld [vmem:[#allocation2 + $0x4c8] sm:$0xff] }
 0x2b6   :  { %v2394_v9 = vld [vmem:[#allocation2 + $0x1e40] sm:$0xff]  ;;  %v11199_v13 = vcombine.high %v2266_v1, %v2270_v6  ;;  %7941 = vmatprep.subr.bf16.mxu1 %v11335_v31  ;;  %v11198_v32 = vcombine.low %v2266_v1, %v2270_v6  ;;  %v1595_v1 = vld [vmem:[#allocation2 + $0x548] sm:$0xff] }
 0x2b7   :  { %v2398_v10 = vld [vmem:[#allocation2 + $0x1e60] sm:$0xff]  ;;  %7942 = vmatpush2.bf16.msra.mxu1 %v11334_v33  ;;  %v1599_v6 = vld [vmem:[#allocation2 + $0x568] sm:$0xff]  ;;  %v10401_v33 = vcombine.high %v1467_v7, %v1471_v21 }
 0x2b8   :  { %v11327_v14 = vcombine.high %v2394_v9, %v2398_v10  ;;  %v2258_v15 = vld [vmem:[#allocation2 + $0x1a00] sm:$0xff]  ;;  %7902 = vmatprep.subr.bf16.mxu0 %v11199_v13  ;;  %v11326_v34 = vcombine.low %v2394_v9, %v2398_v10  ;;  %v10528_v16 = vcombine.low %v1595_v1, %v1599_v6  ;;  %v1583_v47 = vld [vmem:[#allocation2 + $0x4e8] sm:$0xff] }
 0x2b9   :  { %v2262_v17 = vld [vmem:[#allocation2 + $0x1a20] sm:$0xff]  ;;  %7903 = vmatpush2.bf16.msra.mxu0 %v11198_v32  ;;  %v10512_v21 = vcombine.low %v1579_v4, %v1583_v47 }
 0x2ba   :  { %v2386_v19 = vld [vmem:[#allocation2 + $0x1e00] sm:$0xff]  ;;  %v11191_v44 = vcombine.high %v2258_v15, %v2262_v17  ;;  %7943 = vmatprep.subr.bf16.mxu1 %v11327_v14  ;;  %v11190_v18 = vcombine.low %v2258_v15, %v2262_v17  ;;  %v10529_v17 = vcombine.high %v1595_v1, %v1599_v6  ;;  %v1435_v6 = vld [vmem:[#allocation2 + $0x48] sm:$0xff] }
 0x2bb   :  { %v2390_v22 = vld [vmem:[#allocation2 + $0x1e20] sm:$0xff]  ;;  %7944 = vmatpush2.bf16.msra.mxu1 %v11326_v34  ;;  %v1587_v34 = vld [vmem:[#allocation2 + $0x508] sm:$0xff] }
 0x2bc   :  { %v11319_v37 = vcombine.high %v2386_v19, %v2390_v22  ;;  %7904 = vmatprep.subr.bf16.mxu0 %v11191_v44  ;;  %v11318_v42 = vcombine.low %v2386_v19, %v2390_v22  ;;  %v1459_v19 = vld [vmem:[#allocation2 + $0x108] sm:$0xff] }
 0x2bd   :  { %7905 = vmatpush2.bf16.msra.mxu0 %v11190_v18  ;;  %v1463_v22 = vld [vmem:[#allocation2 + $0x128] sm:$0xff] }
 0x2be   :  { %7945 = vmatprep.subr.bf16.mxu1 %v11319_v37  ;;  %7956 = vmatprep.subr.bf16.mxu0 %v10417_v5  ;;  %v1591_v44 = vld [vmem:[#allocation2 + $0x528] sm:$0xff]  ;;  %v10393_v18 = vcombine.high %v1459_v19, %v1463_v22  ;;  %v10392_v56 = vcombine.low %v1459_v19, %v1463_v22 }
 0x2bf   :  { %7946 = vmatpush2.bf16.msra.mxu1 %v11318_v42  ;;  %v10521_v0 = vcombine.high %v1587_v34, %v1591_v44  ;;  %v1451_v5 = vld [vmem:[#allocation2 + $0xc8] sm:$0xff]  ;;  %v10520_v60 = vcombine.low %v1587_v34, %v1591_v44 }
 0x2c0   :  { %7997 = vmatprep.subr.bf16.mxu1 %v10545_v58  ;;  %v7662_v31 = vpop.f32.mrf.mxu0  ;;  %7907 = vmatmul.mubr.bf16.vlgmr.msra.gmra.mxu0 %v12384_v50  ;;  %v1455_v58 = vld [vmem:[#allocation2 + $0xe8] sm:$0xff] }
 0x2c1   :  { %v7663_v55 = vadd.f32 %v7662_v31, %v2471_v62  ;;  %7957 = vmatpush1.bf16.msra.mxu0 %v10416_v61  ;;  %7988 = vmatprep.mubr.bf16.mxu0 %v12300_v11  ;;  %v10385_v62 = vcombine.high %v1451_v5, %v1455_v58  ;;  %v10513_v61 = vcombine.high %v1579_v4, %v1583_v47  ;;  %v1555_v19 = vld [vmem:[#allocation2 + $0x408] sm:$0xff] }
 0x2c2   :  { %v7703_v9 = vpop.f32.mrf.mxu1  ;;  %7948 = vmatmul.mubr.bf16.vlgmr.msra.gmra.mxu1 %v12390_v8  ;;  %v7664_v10 = vpop.f32.mrf.mxu0  ;;  %7958 = vmatprep.subr.bf16.mxu0 %v10409_v3  ;;  %v1447_v3 = vld [vmem:[#allocation2 + $0xa8] sm:$0xff]  ;;  %v10384_v7 = vcombine.low %v1451_v5, %v1455_v58 }
 0x2c3   :  { %7998 = vmatpush1.bf16.msra.mxu1 %v10544_v59  ;;  %v12395_v13 = vadd.f32 %v7703_v9, %v7663_v55  ;;  %v7665_v14 = vadd.f32 %v7664_v10, %v2475_v49  ;;  %8029 = vmatprep.mubr.bf16.mxu1 %v12305_v12  ;;  %v1443_v59 = vld [vmem:[#allocation2 + $0x88] sm:$0xff] }
 0x2c4   :  { %v7705_v15 = vpop.f32.mrf.mxu1  ;;  %7999 = vmatprep.subr.bf16.mxu1 %v10537_v57  ;;  %v7666_v32 = vpop.f32.mrf.mxu0  ;;  %v1571_v49 = vld [vmem:[#allocation2 + $0x488] sm:$0xff]  ;;  %v10377_v31 = vcombine.high %v1443_v59, %v1447_v3  ;;  %v10376_v10 = vcombine.low %v1443_v59, %v1447_v3 }
 0x2c5   :  { %v12399_v37 = vadd.f32 %v7705_v15, %v7665_v14  ;;  %7959 = vmatpush1.bf16.msra.mxu0 %v10408_v24  ;;  %v1575_v57 = vld [vmem:[#allocation2 + $0x4a8] sm:$0xff] }
 0x2c6   :  { %v7707_v48 = vpop.f32.mrf.mxu1  ;;  %v7667_v39 = vpop.f32.mrf.mxu0  ;;  %7960 = vmatprep.subr.bf16.mxu0 %v10401_v33  ;;  %v10505_v1 = vcombine.high %v1571_v49, %v1575_v57  ;;  %v1439_v55 = vld [vmem:[#allocation2 + $0x68] sm:$0xff] }
 0x2c7   :  { %8000 = vmatpush1.bf16.msra.mxu1 %v10536_v25  ;;  %v1563_v9 = vld [vmem:[#allocation2 + $0x448] sm:$0xff]  ;;  %v10504_v25 = vcombine.low %v1571_v49, %v1575_v57  ;;  %v10369_v33 = vcombine.high %v1435_v6, %v1439_v55  ;;  %v10368_v32 = vcombine.low %v1435_v6, %v1439_v55 }
 0x2c8   :  { %v7708_v42 = vpop.f32.mrf.mxu1  ;;  %8001 = vmatprep.subr.bf16.mxu1 %v10529_v17  ;;  %v1567_v24 = vld [vmem:[#allocation2 + $0x468] sm:$0xff] }
 0x2c9   :  { %7961 = vmatpush1.bf16.msra.mxu0 %v10400_v36  ;;  %v10497_v14 = vcombine.high %v1563_v9, %v1567_v24  ;;  %v1427_v15 = vld [vmem:[#allocation2 + $0x8] sm:$0xff]  ;;  %v10496_v34 = vcombine.low %v1563_v9, %v1567_v24 }
 0x2ca   :  { %7962 = vmatprep.subr.bf16.mxu0 %v10393_v18  ;;  %v1431_v17 = vld [vmem:[#allocation2 + $0x28] sm:$0xff] }
 0x2cb   :  { %8002 = vmatpush1.bf16.msra.mxu1 %v10528_v16  ;;  %v1559_v22 = vld [vmem:[#allocation2 + $0x428] sm:$0xff]  ;;  %v10361_v44 = vcombine.high %v1427_v15, %v1431_v17  ;;  %v10360_v42 = vcombine.low %v1427_v15, %v1431_v17 }
 0x2cc   :  { %8003 = vmatprep.subr.bf16.mxu1 %v10521_v0  ;;  %v10489_v48 = vcombine.high %v1555_v19, %v1559_v22  ;;  %v1547_v36 = vld [vmem:[#allocation2 + $0x3c8] sm:$0xff]  ;;  %v10488_v0 = vcombine.low %v1555_v19, %v1559_v22 }
 0x2cd   :  { %7963 = vmatpush1.bf16.msra.mxu0 %v10392_v56  ;;  %v1551_v39 = vld [vmem:[#allocation2 + $0x3e8] sm:$0xff] }
 0x2ce   :  { %7964 = vmatprep.subr.bf16.mxu0 %v10385_v62  ;;  %v1675_v16 = vld [vmem:[#allocation2 + $0x7c8] sm:$0xff]  ;;  %v10481_v5 = vcombine.high %v1547_v36, %v1551_v39  ;;  %v10480_v62 = vcombine.low %v1547_v36, %v1551_v39 }
 0x2cf   :  { %8004 = vmatpush1.bf16.msra.mxu1 %v10520_v60  ;;  %v1679_v18 = vld [vmem:[#allocation2 + $0x7e8] sm:$0xff] }
 0x2d0   :  { %8005 = vmatprep.subr.bf16.mxu1 %v10513_v61  ;;  %v10609_v58 = vcombine.high %v1675_v16, %v1679_v18  ;;  %v1539_v4 = vld [vmem:[#allocation2 + $0x388] sm:$0xff]  ;;  %v10608_v61 = vcombine.low %v1675_v16, %v1679_v18 }
 0x2d1   :  { %7965 = vmatpush1.bf16.msra.mxu0 %v10384_v7  ;;  %v1543_v47 = vld [vmem:[#allocation2 + $0x3a8] sm:$0xff] }
 0x2d2   :  { %7966 = vmatprep.subr.bf16.mxu0 %v10377_v31  ;;  %v1667_v56 = vld [vmem:[#allocation2 + $0x788] sm:$0xff]  ;;  %v10473_v59 = vcombine.high %v1539_v4, %v1543_v47  ;;  %v10472_v31 = vcombine.low %v1539_v4, %v1543_v47 }
 0x2d3   :  { %8006 = vmatpush1.bf16.msra.mxu1 %v10512_v21  ;;  %v1671_v60 = vld [vmem:[#allocation2 + $0x7a8] sm:$0xff] }
 0x2d4   :  { %8007 = vmatprep.subr.bf16.mxu1 %v10505_v1  ;;  %v10601_v3 = vcombine.high %v1667_v56, %v1671_v60  ;;  %v1531_v49 = vld [vmem:[#allocation2 + $0x348] sm:$0xff]  ;;  %v10600_v1 = vcombine.low %v1667_v56, %v1671_v60 }
 0x2d5   :  { %7967 = vmatpush1.bf16.msra.mxu0 %v10376_v10  ;;  %v1535_v57 = vld [vmem:[#allocation2 + $0x368] sm:$0xff] }
 0x2d6   :  { %7968 = vmatprep.subr.bf16.mxu0 %v10369_v33  ;;  %v1659_v7 = vld [vmem:[#allocation2 + $0x748] sm:$0xff]  ;;  %v10465_v6 = vcombine.high %v1531_v49, %v1535_v57  ;;  %v10464_v33 = vcombine.low %v1531_v49, %v1535_v57 }
 0x2d7   :  { %8008 = vmatpush1.bf16.msra.mxu1 %v10504_v25  ;;  %v1663_v21 = vld [vmem:[#allocation2 + $0x768] sm:$0xff] }
 0x2d8   :  { %8009 = vmatprep.subr.bf16.mxu1 %v10497_v14  ;;  %v10593_v55 = vcombine.high %v1659_v7, %v1663_v21  ;;  %v1523_v9 = vld [vmem:[#allocation2 + $0x308] sm:$0xff]  ;;  %v10592_v14 = vcombine.low %v1659_v7, %v1663_v21 }
 0x2d9   :  { %7969 = vmatpush1.bf16.msra.mxu0 %v10368_v32  ;;  %v1527_v24 = vld [vmem:[#allocation2 + $0x328] sm:$0xff] }
 0x2da   :  { %7970 = vmatprep.subr.bf16.mxu0 %v10361_v44  ;;  %v1651_v10 = vld [vmem:[#allocation2 + $0x708] sm:$0xff]  ;;  %v10457_v15 = vcombine.high %v1523_v9, %v1527_v24  ;;  %v10456_v44 = vcombine.low %v1523_v9, %v1527_v24 }
 0x2db   :  { %8010 = vmatpush1.bf16.msra.mxu1 %v10496_v34  ;;  %v1655_v25 = vld [vmem:[#allocation2 + $0x728] sm:$0xff] }
 0x2dc   :  { %8011 = vmatprep.subr.bf16.mxu1 %v10489_v48  ;;  %v10585_v17 = vcombine.high %v1651_v10, %v1655_v25  ;;  %v1515_v19 = vld [vmem:[#allocation2 + $0x2c8] sm:$0xff]  ;;  %v10584_v48 = vcombine.low %v1651_v10, %v1655_v25 }
 0x2dd   :  { %7971 = vmatpush1.bf16.msra.mxu0 %v10360_v42  ;;  %v1519_v22 = vld [vmem:[#allocation2 + $0x2e8] sm:$0xff] }
 0x2de   :  { %7972 = vmatprep.subr.bf16.mxu0 %v10481_v5  ;;  %v1643_v32 = vld [vmem:[#allocation2 + $0x6c8] sm:$0xff]  ;;  %v10449_v36 = vcombine.high %v1515_v19, %v1519_v22  ;;  %v10448_v5 = vcombine.low %v1515_v19, %v1519_v22 }
 0x2df   :  { %8012 = vmatpush1.bf16.msra.mxu1 %v10488_v0  ;;  %v1647_v34 = vld [vmem:[#allocation2 + $0x6e8] sm:$0xff] }
 0x2e0   :  { %8013 = vmatprep.subr.bf16.mxu1 %v10609_v58  ;;  %v10577_v39 = vcombine.high %v1643_v32, %v1647_v34  ;;  %v1507_v16 = vld [vmem:[#allocation2 + $0x288] sm:$0xff]  ;;  %v10576_v58 = vcombine.low %v1643_v32, %v1647_v34 }
 0x2e1   :  { %7973 = vmatpush2.bf16.msra.mxu0 %v10480_v62  ;;  %v1511_v18 = vld [vmem:[#allocation2 + $0x2a8] sm:$0xff] }
 0x2e2   :  { %7974 = vmatprep.subr.bf16.mxu0 %v10473_v59  ;;  %v1635_v42 = vld [vmem:[#allocation2 + $0x688] sm:$0xff]  ;;  %v10441_v4 = vcombine.high %v1507_v16, %v1511_v18  ;;  %v10440_v59 = vcombine.low %v1507_v16, %v1511_v18 }
 0x2e3   :  { %8014 = vmatpush2.bf16.msra.mxu1 %v10608_v61  ;;  %v1639_v0 = vld [vmem:[#allocation2 + $0x6a8] sm:$0xff] }
 0x2e4   :  { %8015 = vmatprep.subr.bf16.mxu1 %v10601_v3  ;;  %v10569_v47 = vcombine.high %v1635_v42, %v1639_v0  ;;  %v1499_v56 = vld [vmem:[#allocation2 + $0x248] sm:$0xff]  ;;  %v10568_v3 = vcombine.low %v1635_v42, %v1639_v0 }
 0x2e5   :  { %7975 = vmatpush2.bf16.msra.mxu0 %v10472_v31  ;;  %v1503_v60 = vld [vmem:[#allocation2 + $0x268] sm:$0xff] }
 0x2e6   :  { %7976 = vmatprep.subr.bf16.mxu0 %v10465_v6  ;;  %v1627_v62 = vld [vmem:[#allocation2 + $0x648] sm:$0xff]  ;;  %v10433_v49 = vcombine.high %v1499_v56, %v1503_v60  ;;  %v10432_v6 = vcombine.low %v1499_v56, %v1503_v60 }
 0x2e7   :  { %8016 = vmatpush2.bf16.msra.mxu1 %v10600_v1  ;;  %v1631_v61 = vld [vmem:[#allocation2 + $0x668] sm:$0xff] }
 0x2e8   :  { %8017 = vmatprep.subr.bf16.mxu1 %v10593_v55  ;;  %v10561_v57 = vcombine.high %v1627_v62, %v1631_v61  ;;  %v1491_v7 = vld [vmem:[#allocation2 + $0x208] sm:$0xff]  ;;  %v10560_v55 = vcombine.low %v1627_v62, %v1631_v61 }
 0x2e9   :  { %7977 = vmatpush2.bf16.msra.mxu0 %v10464_v33  ;;  %v1495_v21 = vld [vmem:[#allocation2 + $0x228] sm:$0xff] }
 0x2ea   :  { %7978 = vmatprep.subr.bf16.mxu0 %v10457_v15  ;;  %v1619_v31 = vld [vmem:[#allocation2 + $0x608] sm:$0xff]  ;;  %v10425_v9 = vcombine.high %v1491_v7, %v1495_v21  ;;  %v10424_v15 = vcombine.low %v1491_v7, %v1495_v21 }
 0x2eb   :  { %8018 = vmatpush2.bf16.msra.mxu1 %v10592_v14  ;;  %v1623_v1 = vld [vmem:[#allocation2 + $0x628] sm:$0xff] }
 0x2ec   :  { %8019 = vmatprep.subr.bf16.mxu1 %v10585_v17  ;;  %v10553_v24 = vcombine.high %v1619_v31, %v1623_v1  ;;  %v1739_v10 = vld [vmem:[#allocation2 + $0x9c8] sm:$0xff]  ;;  %v10552_v17 = vcombine.low %v1619_v31, %v1623_v1 }
 0x2ed   :  { %7979 = vmatpush2.bf16.msra.mxu0 %v10456_v44  ;;  %v1743_v25 = vld [vmem:[#allocation2 + $0x9e8] sm:$0xff] }
 0x2ee   :  { %7980 = vmatprep.subr.bf16.mxu0 %v10449_v36  ;;  %v1867_v33 = vld [vmem:[#allocation2 + $0xdc8] sm:$0xff]  ;;  %v10673_v19 = vcombine.high %v1739_v10, %v1743_v25  ;;  %v10672_v36 = vcombine.low %v1739_v10, %v1743_v25 }
 0x2ef   :  { %8020 = vmatpush2.bf16.msra.mxu1 %v10584_v48  ;;  %v1871_v14 = vld [vmem:[#allocation2 + $0xde8] sm:$0xff] }
 0x2f0   :  { %8021 = vmatprep.subr.bf16.mxu1 %v10577_v39  ;;  %v10801_v22 = vcombine.high %v1867_v33, %v1871_v14  ;;  %v1731_v32 = vld [vmem:[#allocation2 + $0x988] sm:$0xff]  ;;  %v10800_v39 = vcombine.low %v1867_v33, %v1871_v14 }
 0x2f1   :  { %7981 = vmatpush2.bf16.msra.mxu0 %v10448_v5  ;;  %v1735_v34 = vld [vmem:[#allocation2 + $0x9a8] sm:$0xff] }
 0x2f2   :  { %7982 = vmatprep.subr.bf16.mxu0 %v10441_v4  ;;  %v1859_v44 = vld [vmem:[#allocation2 + $0xd88] sm:$0xff]  ;;  %v10665_v16 = vcombine.high %v1731_v32, %v1735_v34  ;;  %v10664_v60 = vcombine.low %v1731_v32, %v1735_v34 }
 0x2f3   :  { %8022 = vmatpush2.bf16.msra.mxu1 %v10576_v58  ;;  %v1863_v48 = vld [vmem:[#allocation2 + $0xda8] sm:$0xff] }
 0x2f4   :  { %8023 = vmatprep.subr.bf16.mxu1 %v10569_v47  ;;  %v10793_v18 = vcombine.high %v1859_v44, %v1863_v48  ;;  %v1723_v42 = vld [vmem:[#allocation2 + $0x948] sm:$0xff]  ;;  %v10792_v61 = vcombine.low %v1859_v44, %v1863_v48 }
 0x2f5   :  { %7983 = vmatpush2.bf16.msra.mxu0 %v10440_v59  ;;  %v1727_v0 = vld [vmem:[#allocation2 + $0x968] sm:$0xff] }
 0x2f6   :  { %7984 = vmatprep.subr.bf16.mxu0 %v10433_v49  ;;  %v1851_v58 = vld [vmem:[#allocation2 + $0xd48] sm:$0xff]  ;;  %v10657_v59 = vcombine.high %v1723_v42, %v1727_v0 }
 0x2f7   :  { %8024 = vmatpush2.bf16.msra.mxu1 %v10568_v3  ;;  %v1855_v4 = vld [vmem:[#allocation2 + $0xd68] sm:$0xff] }
 0x2f8   :  { %8025 = vmatprep.subr.bf16.mxu1 %v10561_v57  ;;  %v10785_v7 = vcombine.high %v1851_v58, %v1855_v4  ;;  %v1715_v21 = vld [vmem:[#allocation2 + $0x908] sm:$0xff] }
 0x2f9   :  { %7985 = vmatpush2.bf16.msra.mxu0 %v10432_v6  ;;  %v1719_v31 = vld [vmem:[#allocation2 + $0x928] sm:$0xff] }
 0x2fa   :  { %7986 = vmatprep.subr.bf16.mxu0 %v10425_v9  ;;  %v1843_v1 = vld [vmem:[#allocation2 + $0xd08] sm:$0xff]  ;;  %v10649_v25 = vcombine.high %v1715_v21, %v1719_v31  ;;  %v10648_v32 = vcombine.low %v1715_v21, %v1719_v31 }
 0x2fb   :  { %8026 = vmatpush2.bf16.msra.mxu1 %v10560_v55  ;;  %v1847_v6 = vld [vmem:[#allocation2 + $0xd28] sm:$0xff] }
 0x2fc   :  { %8027 = vmatprep.subr.bf16.mxu1 %v10553_v24  ;;  %v10656_v24 = vcombine.low %v1723_v42, %v1727_v0  ;;  %v10777_v14 = vcombine.high %v1843_v1, %v1847_v6  ;;  %v10776_v34 = vcombine.low %v1843_v1, %v1847_v6  ;;  %v1811_v21 = vld [vmem:[#allocation2 + $0xc08] sm:$0xff] }
 0x2fd   :  { %7987 = vmatpush2.bf16.msra.mxu0 %v10424_v15  ;;  %v1707_v15 = vld [vmem:[#allocation2 + $0x8c8] sm:$0xff] }
 0x2fe   :  { %8038 = vmatprep.subr.bf16.mxu0 %v10673_v19  ;;  %v1835_v19 = vld [vmem:[#allocation2 + $0xcc8] sm:$0xff] }
 0x2ff   :  { %8028 = vmatpush2.bf16.msra.mxu1 %v10552_v17  ;;  %v1711_v17 = vld [vmem:[#allocation2 + $0x8e8] sm:$0xff] }
 0x300   :  { %8079 = vmatprep.subr.bf16.mxu1 %v10801_v22  ;;  %v7744_v5 = vpop.f32.mrf.mxu0  ;;  %7989 = vmatmul.mubr.bf16.vlgmr.msra.gmra.mxu0 %v12312_v28  ;;  %v1839_v22 = vld [vmem:[#allocation2 + $0xce8] sm:$0xff]  ;;  %v10641_v44 = vcombine.high %v1707_v15, %v1711_v17  ;;  %v10640_v42 = vcombine.low %v1707_v15, %v1711_v17 }
 0x301   :  { %v7745_v47 = vadd.f32 %v7744_v5, %v12395_v13  ;;  %8039 = vmatpush1.bf16.msra.mxu0 %v10672_v36  ;;  %8070 = vmatprep.mubr.bf16.mxu0 %v12322_v40  ;;  %v10769_v48 = vcombine.high %v1835_v19, %v1839_v22  ;;  %v1699_v36 = vld [vmem:[#allocation2 + $0x888] sm:$0xff]  ;;  %v10768_v0 = vcombine.low %v1835_v19, %v1839_v22 }
 0x302   :  { %v7785_v56 = vpop.f32.mrf.mxu1  ;;  %8030 = vmatmul.mubr.bf16.vlgmr.msra.gmra.mxu1 %v12317_v46  ;;  %v7746_v62 = vpop.f32.mrf.mxu0  ;;  %8040 = vmatprep.subr.bf16.mxu0 %v10665_v16  ;;  %v1827_v16 = vld [vmem:[#allocation2 + $0xc88] sm:$0xff] }
 0x303   :  { %8080 = vmatpush1.bf16.msra.mxu1 %v10800_v39  ;;  %v12404_v3 = vadd.f32 %v7785_v56, %v7745_v47  ;;  %v7747_v49 = vadd.f32 %v7746_v62, %v12399_v37  ;;  %8111 = vmatprep.mubr.bf16.mxu1 %v12328_v43  ;;  %v10784_v37 = vcombine.low %v1851_v58, %v1855_v4  ;;  %v1703_v39 = vld [vmem:[#allocation2 + $0x8a8] sm:$0xff] }
 0x304   :  { %v7787_v57 = vpop.f32.mrf.mxu1  ;;  %8081 = vmatprep.subr.bf16.mxu1 %v10793_v18  ;;  %v7748_v13 = vpop.f32.mrf.mxu0  ;;  %v1831_v18 = vld [vmem:[#allocation2 + $0xca8] sm:$0xff]  ;;  %v10633_v5 = vcombine.high %v1699_v36, %v1703_v39  ;;  %v10632_v62 = vcombine.low %v1699_v36, %v1703_v39 }
 0x305   :  { %v12409_v55 = vadd.f32 %v7787_v57, %v7747_v49  ;;  %8041 = vmatpush1.bf16.msra.mxu0 %v10664_v60  ;;  %v10761_v58 = vcombine.high %v1827_v16, %v1831_v18  ;;  %v1691_v4 = vld [vmem:[#allocation2 + $0x848] sm:$0xff] }
 0x306   :  { %v7789_v9 = vpop.f32.mrf.mxu1  ;;  %v7749_v10 = vpop.f32.mrf.mxu0  ;;  %8042 = vmatprep.subr.bf16.mxu0 %v10657_v59  ;;  %v1695_v47 = vld [vmem:[#allocation2 + $0x868] sm:$0xff] }
 0x307   :  { %8082 = vmatpush1.bf16.msra.mxu1 %v10792_v61  ;;  %v1819_v56 = vld [vmem:[#allocation2 + $0xc48] sm:$0xff]  ;;  %v10760_v61 = vcombine.low %v1827_v16, %v1831_v18  ;;  %v10625_v59 = vcombine.high %v1691_v4, %v1695_v47  ;;  %v10624_v13 = vcombine.low %v1691_v4, %v1695_v47 }
 0x308   :  { %v7790_v33 = vpop.f32.mrf.mxu1  ;;  %8083 = vmatprep.subr.bf16.mxu1 %v10785_v7  ;;  %v1823_v60 = vld [vmem:[#allocation2 + $0xc68] sm:$0xff] }
 0x309   :  { %8043 = vmatpush1.bf16.msra.mxu0 %v10656_v24  ;;  %v10753_v49 = vcombine.high %v1819_v56, %v1823_v60  ;;  %v1683_v57 = vld [vmem:[#allocation2 + $0x808] sm:$0xff]  ;;  %v10752_v1 = vcombine.low %v1819_v56, %v1823_v60 }
 0x30a   :  { %8044 = vmatprep.subr.bf16.mxu0 %v10649_v25  ;;  %v1687_v7 = vld [vmem:[#allocation2 + $0x828] sm:$0xff] }
 0x30b   :  { %8084 = vmatpush1.bf16.msra.mxu1 %v10784_v37  ;;  %v1815_v31 = vld [vmem:[#allocation2 + $0xc28] sm:$0xff]  ;;  %v10617_v6 = vcombine.high %v1683_v57, %v1687_v7  ;;  %v10616_v33 = vcombine.low %v1683_v57, %v1687_v7 }
 0x30c   :  { %8085 = vmatprep.subr.bf16.mxu1 %v10777_v14  ;;  %v10745_v9 = vcombine.high %v1811_v21, %v1815_v31  ;;  %v1803_v24 = vld [vmem:[#allocation2 + $0xbc8] sm:$0xff]  ;;  %v10744_v14 = vcombine.low %v1811_v21, %v1815_v31 }
 0x30d   :  { %8045 = vmatpush1.bf16.msra.mxu0 %v10648_v32  ;;  %v1807_v10 = vld [vmem:[#allocation2 + $0xbe8] sm:$0xff] }
 0x30e   :  { %8046 = vmatprep.subr.bf16.mxu0 %v10641_v44  ;;  %v1931_v37 = vld [vmem:[#allocation2 + $0xfc8] sm:$0xff]  ;;  %v10737_v15 = vcombine.high %v1803_v24, %v1807_v10  ;;  %v10736_v44 = vcombine.low %v1803_v24, %v1807_v10 }
 0x30f   :  { %8086 = vmatpush1.bf16.msra.mxu1 %v10776_v34  ;;  %v1935_v25 = vld [vmem:[#allocation2 + $0xfe8] sm:$0xff] }
 0x310   :  { %8087 = vmatprep.subr.bf16.mxu1 %v10769_v48  ;;  %v10865_v17 = vcombine.high %v1931_v37, %v1935_v25  ;;  %v1795_v19 = vld [vmem:[#allocation2 + $0xb88] sm:$0xff]  ;;  %v10864_v48 = vcombine.low %v1931_v37, %v1935_v25 }
 0x311   :  { %8047 = vmatpush1.bf16.msra.mxu0 %v10640_v42  ;;  %v1799_v22 = vld [vmem:[#allocation2 + $0xba8] sm:$0xff] }
 0x312   :  { %8048 = vmatprep.subr.bf16.mxu0 %v10633_v5  ;;  %v1923_v32 = vld [vmem:[#allocation2 + $0xf88] sm:$0xff]  ;;  %v10729_v36 = vcombine.high %v1795_v19, %v1799_v22  ;;  %v10728_v5 = vcombine.low %v1795_v19, %v1799_v22 }
 0x313   :  { %8088 = vmatpush1.bf16.msra.mxu1 %v10768_v0  ;;  %v1927_v34 = vld [vmem:[#allocation2 + $0xfa8] sm:$0xff] }
 0x314   :  { %8089 = vmatprep.subr.bf16.mxu1 %v10761_v58  ;;  %v10857_v39 = vcombine.high %v1923_v32, %v1927_v34  ;;  %v1787_v16 = vld [vmem:[#allocation2 + $0xb48] sm:$0xff]  ;;  %v10856_v58 = vcombine.low %v1923_v32, %v1927_v34 }
 0x315   :  { %8049 = vmatpush1.bf16.msra.mxu0 %v10632_v62  ;;  %v1791_v18 = vld [vmem:[#allocation2 + $0xb68] sm:$0xff] }
 0x316   :  { %8050 = vmatprep.subr.bf16.mxu0 %v10625_v59  ;;  %v1915_v42 = vld [vmem:[#allocation2 + $0xf48] sm:$0xff]  ;;  %v10721_v4 = vcombine.high %v1787_v16, %v1791_v18  ;;  %v10720_v59 = vcombine.low %v1787_v16, %v1791_v18 }
 0x317   :  { %8090 = vmatpush1.bf16.msra.mxu1 %v10760_v61  ;;  %v1919_v0 = vld [vmem:[#allocation2 + $0xf68] sm:$0xff] }
 0x318   :  { %8091 = vmatprep.subr.bf16.mxu1 %v10753_v49  ;;  %v10849_v47 = vcombine.high %v1915_v42, %v1919_v0  ;;  %v1779_v56 = vld [vmem:[#allocation2 + $0xb08] sm:$0xff]  ;;  %v10848_v49 = vcombine.low %v1915_v42, %v1919_v0 }
 0x319   :  { %8051 = vmatpush1.bf16.msra.mxu0 %v10624_v13  ;;  %v1783_v60 = vld [vmem:[#allocation2 + $0xb28] sm:$0xff] }
 0x31a   :  { %8052 = vmatprep.subr.bf16.mxu0 %v10617_v6  ;;  %v1907_v62 = vld [vmem:[#allocation2 + $0xf08] sm:$0xff]  ;;  %v10713_v57 = vcombine.high %v1779_v56, %v1783_v60  ;;  %v10712_v6 = vcombine.low %v1779_v56, %v1783_v60 }
 0x31b   :  { %8092 = vmatpush1.bf16.msra.mxu1 %v10752_v1  ;;  %v1911_v61 = vld [vmem:[#allocation2 + $0xf28] sm:$0xff] }
 0x31c   :  { %8093 = vmatprep.subr.bf16.mxu1 %v10745_v9  ;;  %v10841_v7 = vcombine.high %v1907_v62, %v1911_v61  ;;  %v1771_v21 = vld [vmem:[#allocation2 + $0xac8] sm:$0xff]  ;;  %v10840_v9 = vcombine.low %v1907_v62, %v1911_v61 }
 0x31d   :  { %8053 = vmatpush1.bf16.msra.mxu0 %v10616_v33  ;;  %v1775_v31 = vld [vmem:[#allocation2 + $0xae8] sm:$0xff] }
 0x31e   :  { %8054 = vmatprep.subr.bf16.mxu0 %v10737_v15  ;;  %v1899_v13 = vld [vmem:[#allocation2 + $0xec8] sm:$0xff]  ;;  %v10705_v24 = vcombine.high %v1771_v21, %v1775_v31  ;;  %v10704_v15 = vcombine.low %v1771_v21, %v1775_v31 }
 0x31f   :  { %8094 = vmatpush1.bf16.msra.mxu1 %v10744_v14  ;;  %v1903_v1 = vld [vmem:[#allocation2 + $0xee8] sm:$0xff] }
 0x320   :  { %8095 = vmatprep.subr.bf16.mxu1 %v10865_v17  ;;  %v10833_v10 = vcombine.high %v1899_v13, %v1903_v1  ;;  %v1763_v37 = vld [vmem:[#allocation2 + $0xa88] sm:$0xff]  ;;  %v10832_v17 = vcombine.low %v1899_v13, %v1903_v1 }
 0x321   :  { %8055 = vmatpush2.bf16.msra.mxu0 %v10736_v44  ;;  %v1767_v25 = vld [vmem:[#allocation2 + $0xaa8] sm:$0xff] }
 0x322   :  { %8056 = vmatprep.subr.bf16.mxu0 %v10729_v36  ;;  %v1891_v33 = vld [vmem:[#allocation2 + $0xe88] sm:$0xff]  ;;  %v10697_v19 = vcombine.high %v1763_v37, %v1767_v25  ;;  %v10696_v36 = vcombine.low %v1763_v37, %v1767_v25 }
 0x323   :  { %8096 = vmatpush2.bf16.msra.mxu1 %v10864_v48  ;;  %v1895_v14 = vld [vmem:[#allocation2 + $0xea8] sm:$0xff] }
 0x324   :  { %8097 = vmatprep.subr.bf16.mxu1 %v10857_v39  ;;  %v10825_v22 = vcombine.high %v1891_v33, %v1895_v14  ;;  %v1755_v32 = vld [vmem:[#allocation2 + $0xa48] sm:$0xff]  ;;  %v10824_v39 = vcombine.low %v1891_v33, %v1895_v14 }
 0x325   :  { %8057 = vmatpush2.bf16.msra.mxu0 %v10728_v5  ;;  %v1759_v34 = vld [vmem:[#allocation2 + $0xa68] sm:$0xff] }
 0x326   :  { %8058 = vmatprep.subr.bf16.mxu0 %v10721_v4  ;;  %v1883_v44 = vld [vmem:[#allocation2 + $0xe48] sm:$0xff]  ;;  %v10689_v16 = vcombine.high %v1755_v32, %v1759_v34  ;;  %v10688_v4 = vcombine.low %v1755_v32, %v1759_v34 }
 0x327   :  { %8098 = vmatpush2.bf16.msra.mxu1 %v10856_v58  ;;  %v1887_v48 = vld [vmem:[#allocation2 + $0xe68] sm:$0xff] }
 0x328   :  { %8099 = vmatprep.subr.bf16.mxu1 %v10849_v47  ;;  %v10817_v18 = vcombine.high %v1883_v44, %v1887_v48  ;;  %v1747_v42 = vld [vmem:[#allocation2 + $0xa08] sm:$0xff]  ;;  %v10816_v47 = vcombine.low %v1883_v44, %v1887_v48 }
 0x329   :  { %8059 = vmatpush2.bf16.msra.mxu0 %v10720_v59  ;;  %v1751_v0 = vld [vmem:[#allocation2 + $0xa28] sm:$0xff] }
 0x32a   :  { %8060 = vmatprep.subr.bf16.mxu0 %v10713_v57  ;;  %v1875_v5 = vld [vmem:[#allocation2 + $0xe08] sm:$0xff]  ;;  %v10681_v56 = vcombine.high %v1747_v42, %v1751_v0  ;;  %v10680_v57 = vcombine.low %v1747_v42, %v1751_v0 }
 0x32b   :  { %8100 = vmatpush2.bf16.msra.mxu1 %v10848_v49  ;;  %v1879_v58 = vld [vmem:[#allocation2 + $0xe28] sm:$0xff] }
 0x32c   :  { %8101 = vmatprep.subr.bf16.mxu1 %v10841_v7  ;;  %v10809_v60 = vcombine.high %v1875_v5, %v1879_v58  ;;  %v1995_v62 = vld [vmem:[#allocation2 + $0x11c8] sm:$0xff]  ;;  %v10808_v7 = vcombine.low %v1875_v5, %v1879_v58 }
 0x32d   :  { %8061 = vmatpush2.bf16.msra.mxu0 %v10712_v6  ;;  %v1999_v61 = vld [vmem:[#allocation2 + $0x11e8] sm:$0xff] }
 0x32e   :  { %8062 = vmatprep.subr.bf16.mxu0 %v10705_v24  ;;  %v2123_v59 = vld [vmem:[#allocation2 + $0x15c8] sm:$0xff]  ;;  %v10929_v21 = vcombine.high %v1995_v62, %v1999_v61  ;;  %v10928_v24 = vcombine.low %v1995_v62, %v1999_v61 }
 0x32f   :  { %8102 = vmatpush2.bf16.msra.mxu1 %v10840_v9  ;;  %v2127_v49 = vld [vmem:[#allocation2 + $0x15e8] sm:$0xff] }
 0x330   :  { %8103 = vmatprep.subr.bf16.mxu1 %v10833_v10  ;;  %v11057_v31 = vcombine.high %v2123_v59, %v2127_v49  ;;  %v1987_v13 = vld [vmem:[#allocation2 + $0x1188] sm:$0xff]  ;;  %v11056_v10 = vcombine.low %v2123_v59, %v2127_v49 }
 0x331   :  { %8063 = vmatpush2.bf16.msra.mxu0 %v10704_v15  ;;  %v1991_v1 = vld [vmem:[#allocation2 + $0x11a8] sm:$0xff] }
 0x332   :  { %8064 = vmatprep.subr.bf16.mxu0 %v10697_v19  ;;  %v2115_v6 = vld [vmem:[#allocation2 + $0x1588] sm:$0xff]  ;;  %v10921_v37 = vcombine.high %v1987_v13, %v1991_v1  ;;  %v10920_v34 = vcombine.low %v1987_v13, %v1991_v1 }
 0x333   :  { %8104 = vmatpush2.bf16.msra.mxu1 %v10832_v17  ;;  %v2119_v9 = vld [vmem:[#allocation2 + $0x15a8] sm:$0xff] }
 0x334   :  { %8105 = vmatprep.subr.bf16.mxu1 %v10825_v22  ;;  %v11049_v25 = vcombine.high %v2115_v6, %v2119_v9  ;;  %v1979_v33 = vld [vmem:[#allocation2 + $0x1148] sm:$0xff]  ;;  %v11048_v48 = vcombine.low %v2115_v6, %v2119_v9 }
 0x335   :  { %8065 = vmatpush2.bf16.msra.mxu0 %v10696_v36  ;;  %v1983_v14 = vld [vmem:[#allocation2 + $0x1168] sm:$0xff] }
 0x336   :  { %8066 = vmatprep.subr.bf16.mxu0 %v10689_v16  ;;  %v2107_v17 = vld [vmem:[#allocation2 + $0x1548] sm:$0xff]  ;;  %v10913_v36 = vcombine.high %v1979_v33, %v1983_v14 }
 0x337   :  { %8106 = vmatpush2.bf16.msra.mxu1 %v10824_v39  ;;  %v2111_v19 = vld [vmem:[#allocation2 + $0x1568] sm:$0xff] }
 0x338   :  { %8107 = vmatprep.subr.bf16.mxu1 %v10817_v18  ;;  %v11041_v42 = vcombine.high %v2107_v17, %v2111_v19  ;;  %v1971_v0 = vld [vmem:[#allocation2 + $0x1108] sm:$0xff] }
 0x339   :  { %8067 = vmatpush2.bf16.msra.mxu0 %v10688_v4  ;;  %v1975_v5 = vld [vmem:[#allocation2 + $0x1128] sm:$0xff] }
 0x33a   :  { %8068 = vmatprep.subr.bf16.mxu0 %v10681_v56  ;;  %v2099_v58 = vld [vmem:[#allocation2 + $0x1508] sm:$0xff]  ;;  %v10905_v61 = vcombine.high %v1971_v0, %v1975_v5  ;;  %v10904_v13 = vcombine.low %v1971_v0, %v1975_v5 }
 0x33b   :  { %8108 = vmatpush2.bf16.msra.mxu1 %v10816_v47  ;;  %v2103_v4 = vld [vmem:[#allocation2 + $0x1528] sm:$0xff] }
 0x33c   :  { %8109 = vmatprep.subr.bf16.mxu1 %v10809_v60  ;;  %v10912_v60 = vcombine.low %v1979_v33, %v1983_v14  ;;  %v11033_v49 = vcombine.high %v2099_v58, %v2103_v4  ;;  %v11032_v1 = vcombine.low %v2099_v58, %v2103_v4  ;;  %v2067_v0 = vld [vmem:[#allocation2 + $0x1408] sm:$0xff] }
 0x33d   :  { %8069 = vmatpush2.bf16.msra.mxu0 %v10680_v57  ;;  %v1963_v57 = vld [vmem:[#allocation2 + $0x10c8] sm:$0xff] }
 0x33e   :  { %8120 = vmatprep.subr.bf16.mxu0 %v10929_v21  ;;  %v2091_v21 = vld [vmem:[#allocation2 + $0x14c8] sm:$0xff] }
 0x33f   :  { %8110 = vmatpush2.bf16.msra.mxu1 %v10808_v7  ;;  %v1967_v7 = vld [vmem:[#allocation2 + $0x10e8] sm:$0xff] }
 0x340   :  { %8161 = vmatprep.subr.bf16.mxu1 %v11057_v31  ;;  %v7826_v15 = vpop.f32.mrf.mxu0  ;;  %8071 = vmatmul.mubr.bf16.vlgmr.msra.gmra.mxu0 %v12336_v38  ;;  %v2095_v31 = vld [vmem:[#allocation2 + $0x14e8] sm:$0xff]  ;;  %v10897_v6 = vcombine.high %v1963_v57, %v1967_v7  ;;  %v10896_v33 = vcombine.low %v1963_v57, %v1967_v7 }
 0x341   :  { %v7827_v22 = vadd.f32 %v7826_v15, %v12404_v3  ;;  %8121 = vmatpush1.bf16.msra.mxu0 %v10928_v24  ;;  %8152 = vmatprep.mubr.bf16.mxu0 %v12346_v63  ;;  %v11025_v9 = vcombine.high %v2091_v21, %v2095_v31  ;;  %v1955_v24 = vld [vmem:[#allocation2 + $0x1088] sm:$0xff]  ;;  %v11024_v14 = vcombine.low %v2091_v21, %v2095_v31 }
 0x342   :  { %v7867_v32 = vpop.f32.mrf.mxu1  ;;  %8112 = vmatmul.mubr.bf16.vlgmr.msra.gmra.mxu1 %v12341_v45  ;;  %v7828_v44 = vpop.f32.mrf.mxu0  ;;  %8122 = vmatprep.subr.bf16.mxu0 %v10921_v37  ;;  %v2083_v37 = vld [vmem:[#allocation2 + $0x1488] sm:$0xff] }
 0x343   :  { %8162 = vmatpush1.bf16.msra.mxu1 %v11056_v10  ;;  %v12414_v39 = vadd.f32 %v7867_v32, %v7827_v22  ;;  %v7829_v16 = vadd.f32 %v7828_v44, %v12409_v55  ;;  %8193 = vmatprep.mubr.bf16.mxu1 %v12352_v2  ;;  %v11040_v55 = vcombine.low %v2107_v17, %v2111_v19  ;;  %v1959_v10 = vld [vmem:[#allocation2 + $0x10a8] sm:$0xff] }
 0x344   :  { %v7869_v18 = vpop.f32.mrf.mxu1  ;;  %8163 = vmatprep.subr.bf16.mxu1 %v11049_v25  ;;  %v7830_v3 = vpop.f32.mrf.mxu0  ;;  %v2087_v25 = vld [vmem:[#allocation2 + $0x14a8] sm:$0xff]  ;;  %v10889_v15 = vcombine.high %v1955_v24, %v1959_v10  ;;  %v10888_v44 = vcombine.low %v1955_v24, %v1959_v10 }
 0x345   :  { %v12419_v47 = vadd.f32 %v7869_v18, %v7829_v16  ;;  %8123 = vmatpush1.bf16.msra.mxu0 %v10920_v34  ;;  %v11017_v17 = vcombine.high %v2083_v37, %v2087_v25  ;;  %v1947_v19 = vld [vmem:[#allocation2 + $0x1048] sm:$0xff] }
 0x346   :  { %v7871_v56 = vpop.f32.mrf.mxu1  ;;  %v7831_v62 = vpop.f32.mrf.mxu0  ;;  %8124 = vmatprep.subr.bf16.mxu0 %v10913_v36  ;;  %v1951_v22 = vld [vmem:[#allocation2 + $0x1068] sm:$0xff] }
 0x347   :  { %8164 = vmatpush1.bf16.msra.mxu1 %v11048_v48  ;;  %v2075_v32 = vld [vmem:[#allocation2 + $0x1448] sm:$0xff]  ;;  %v11016_v48 = vcombine.low %v2083_v37, %v2087_v25  ;;  %v10881_v36 = vcombine.high %v1947_v19, %v1951_v22  ;;  %v10880_v3 = vcombine.low %v1947_v19, %v1951_v22 }
 0x348   :  { %v7872_v59 = vpop.f32.mrf.mxu1  ;;  %8165 = vmatprep.subr.bf16.mxu1 %v11041_v42  ;;  %v2079_v34 = vld [vmem:[#allocation2 + $0x1468] sm:$0xff] }
 0x349   :  { %8125 = vmatpush1.bf16.msra.mxu0 %v10912_v60  ;;  %v11009_v16 = vcombine.high %v2075_v32, %v2079_v34  ;;  %v1939_v18 = vld [vmem:[#allocation2 + $0x1008] sm:$0xff]  ;;  %v11008_v58 = vcombine.low %v2075_v32, %v2079_v34 }
 0x34a   :  { %8126 = vmatprep.subr.bf16.mxu0 %v10905_v61  ;;  %v1943_v42 = vld [vmem:[#allocation2 + $0x1028] sm:$0xff] }
 0x34b   :  { %8166 = vmatpush1.bf16.msra.mxu1 %v11040_v55  ;;  %v2071_v5 = vld [vmem:[#allocation2 + $0x1428] sm:$0xff]  ;;  %v10873_v4 = vcombine.high %v1939_v18, %v1943_v42  ;;  %v10872_v59 = vcombine.low %v1939_v18, %v1943_v42 }
 0x34c   :  { %8167 = vmatprep.subr.bf16.mxu1 %v11033_v49  ;;  %v11001_v56 = vcombine.high %v2067_v0, %v2071_v5  ;;  %v2059_v60 = vld [vmem:[#allocation2 + $0x13c8] sm:$0xff]  ;;  %v11000_v49 = vcombine.low %v2067_v0, %v2071_v5 }
 0x34d   :  { %8127 = vmatpush1.bf16.msra.mxu0 %v10904_v13  ;;  %v2063_v62 = vld [vmem:[#allocation2 + $0x13e8] sm:$0xff] }
 0x34e   :  { %8128 = vmatprep.subr.bf16.mxu0 %v10897_v6  ;;  %v2187_v55 = vld [vmem:[#allocation2 + $0x17c8] sm:$0xff]  ;;  %v10993_v57 = vcombine.high %v2059_v60, %v2063_v62  ;;  %v10992_v6 = vcombine.low %v2059_v60, %v2063_v62 }
 0x34f   :  { %8168 = vmatpush1.bf16.msra.mxu1 %v11032_v1  ;;  %v2191_v61 = vld [vmem:[#allocation2 + $0x17e8] sm:$0xff] }
 0x350   :  { %8169 = vmatprep.subr.bf16.mxu1 %v11025_v9  ;;  %v11121_v7 = vcombine.high %v2187_v55, %v2191_v61  ;;  %v2051_v21 = vld [vmem:[#allocation2 + $0x1388] sm:$0xff]  ;;  %v11120_v9 = vcombine.low %v2187_v55, %v2191_v61 }
 0x351   :  { %8129 = vmatpush1.bf16.msra.mxu0 %v10896_v33  ;;  %v2055_v31 = vld [vmem:[#allocation2 + $0x13a8] sm:$0xff] }
 0x352   :  { %8130 = vmatprep.subr.bf16.mxu0 %v10889_v15  ;;  %v2179_v13 = vld [vmem:[#allocation2 + $0x1788] sm:$0xff]  ;;  %v10985_v24 = vcombine.high %v2051_v21, %v2055_v31  ;;  %v10984_v15 = vcombine.low %v2051_v21, %v2055_v31 }
 0x353   :  { %8170 = vmatpush1.bf16.msra.mxu1 %v11024_v14  ;;  %v2183_v1 = vld [vmem:[#allocation2 + $0x17a8] sm:$0xff] }
 0x354   :  { %8171 = vmatprep.subr.bf16.mxu1 %v11017_v17  ;;  %v11113_v10 = vcombine.high %v2179_v13, %v2183_v1  ;;  %v2043_v37 = vld [vmem:[#allocation2 + $0x1348] sm:$0xff]  ;;  %v11112_v17 = vcombine.low %v2179_v13, %v2183_v1 }
 0x355   :  { %8131 = vmatpush1.bf16.msra.mxu0 %v10888_v44  ;;  %v2047_v25 = vld [vmem:[#allocation2 + $0x1368] sm:$0xff] }
 0x356   :  { %8132 = vmatprep.subr.bf16.mxu0 %v10881_v36  ;;  %v2171_v33 = vld [vmem:[#allocation2 + $0x1748] sm:$0xff]  ;;  %v10977_v19 = vcombine.high %v2043_v37, %v2047_v25  ;;  %v10976_v36 = vcombine.low %v2043_v37, %v2047_v25 }
 0x357   :  { %8172 = vmatpush1.bf16.msra.mxu1 %v11016_v48  ;;  %v2175_v14 = vld [vmem:[#allocation2 + $0x1768] sm:$0xff] }
 0x358   :  { %8173 = vmatprep.subr.bf16.mxu1 %v11009_v16  ;;  %v11105_v22 = vcombine.high %v2171_v33, %v2175_v14  ;;  %v2035_v32 = vld [vmem:[#allocation2 + $0x1308] sm:$0xff]  ;;  %v11104_v16 = vcombine.low %v2171_v33, %v2175_v14 }
 0x359   :  { %8133 = vmatpush1.bf16.msra.mxu0 %v10880_v3  ;;  %v2039_v34 = vld [vmem:[#allocation2 + $0x1328] sm:$0xff] }
 0x35a   :  { %8134 = vmatprep.subr.bf16.mxu0 %v10873_v4  ;;  %v2163_v44 = vld [vmem:[#allocation2 + $0x1708] sm:$0xff]  ;;  %v10969_v18 = vcombine.high %v2035_v32, %v2039_v34  ;;  %v10968_v4 = vcombine.low %v2035_v32, %v2039_v34 }
 0x35b   :  { %8174 = vmatpush1.bf16.msra.mxu1 %v11008_v58  ;;  %v2167_v48 = vld [vmem:[#allocation2 + $0x1728] sm:$0xff] }
 0x35c   :  { %8175 = vmatprep.subr.bf16.mxu1 %v11001_v56  ;;  %v11097_v42 = vcombine.high %v2163_v44, %v2167_v48  ;;  %v2027_v0 = vld [vmem:[#allocation2 + $0x12c8] sm:$0xff]  ;;  %v11096_v56 = vcombine.low %v2163_v44, %v2167_v48 }
 0x35d   :  { %8135 = vmatpush1.bf16.msra.mxu0 %v10872_v59  ;;  %v2031_v5 = vld [vmem:[#allocation2 + $0x12e8] sm:$0xff] }
 0x35e   :  { %8136 = vmatprep.subr.bf16.mxu0 %v10993_v57  ;;  %v2155_v3 = vld [vmem:[#allocation2 + $0x16c8] sm:$0xff]  ;;  %v10961_v60 = vcombine.high %v2027_v0, %v2031_v5  ;;  %v10960_v57 = vcombine.low %v2027_v0, %v2031_v5 }
 0x35f   :  { %8176 = vmatpush1.bf16.msra.mxu1 %v11000_v49  ;;  %v2159_v58 = vld [vmem:[#allocation2 + $0x16e8] sm:$0xff] }
 0x360   :  { %8177 = vmatprep.subr.bf16.mxu1 %v11121_v7  ;;  %v11089_v62 = vcombine.high %v2155_v3, %v2159_v58  ;;  %v2019_v55 = vld [vmem:[#allocation2 + $0x1288] sm:$0xff]  ;;  %v11088_v7 = vcombine.low %v2155_v3, %v2159_v58 }
 0x361   :  { %8137 = vmatpush2.bf16.msra.mxu0 %v10992_v6  ;;  %v2023_v61 = vld [vmem:[#allocation2 + $0x12a8] sm:$0xff] }
 0x362   :  { %8138 = vmatprep.subr.bf16.mxu0 %v10985_v24  ;;  %v2147_v59 = vld [vmem:[#allocation2 + $0x1688] sm:$0xff]  ;;  %v10953_v21 = vcombine.high %v2019_v55, %v2023_v61  ;;  %v10952_v24 = vcombine.low %v2019_v55, %v2023_v61 }
 0x363   :  { %8178 = vmatpush2.bf16.msra.mxu1 %v11120_v9  ;;  %v2151_v49 = vld [vmem:[#allocation2 + $0x16a8] sm:$0xff] }
 0x364   :  { %8179 = vmatprep.subr.bf16.mxu1 %v11113_v10  ;;  %v11081_v31 = vcombine.high %v2147_v59, %v2151_v49  ;;  %v2011_v13 = vld [vmem:[#allocation2 + $0x1248] sm:$0xff]  ;;  %v11080_v10 = vcombine.low %v2147_v59, %v2151_v49 }
 0x365   :  { %8139 = vmatpush2.bf16.msra.mxu0 %v10984_v15  ;;  %v2015_v1 = vld [vmem:[#allocation2 + $0x1268] sm:$0xff] }
 0x366   :  { %8140 = vmatprep.subr.bf16.mxu0 %v10977_v19  ;;  %v2139_v6 = vld [vmem:[#allocation2 + $0x1648] sm:$0xff]  ;;  %v10945_v37 = vcombine.high %v2011_v13, %v2015_v1  ;;  %v10944_v19 = vcombine.low %v2011_v13, %v2015_v1 }
 0x367   :  { %8180 = vmatpush2.bf16.msra.mxu1 %v11112_v17  ;;  %v2143_v9 = vld [vmem:[#allocation2 + $0x1668] sm:$0xff] }
 0x368   :  { %8181 = vmatprep.subr.bf16.mxu1 %v11105_v22  ;;  %v11073_v25 = vcombine.high %v2139_v6, %v2143_v9  ;;  %v2003_v33 = vld [vmem:[#allocation2 + $0x1208] sm:$0xff]  ;;  %v11072_v22 = vcombine.low %v2139_v6, %v2143_v9 }
 0x369   :  { %8141 = vmatpush2.bf16.msra.mxu0 %v10976_v36  ;;  %v2007_v14 = vld [vmem:[#allocation2 + $0x1228] sm:$0xff] }
 0x36a   :  { %8142 = vmatprep.subr.bf16.mxu0 %v10969_v18  ;;  %v2131_v15 = vld [vmem:[#allocation2 + $0x1608] sm:$0xff]  ;;  %v10937_v32 = vcombine.high %v2003_v33, %v2007_v14  ;;  %v10936_v18 = vcombine.low %v2003_v33, %v2007_v14 }
 0x36b   :  { %8182 = vmatpush2.bf16.msra.mxu1 %v11104_v16  ;;  %v2135_v17 = vld [vmem:[#allocation2 + $0x1628] sm:$0xff] }
 0x36c   :  { %8183 = vmatprep.subr.bf16.mxu1 %v11097_v42  ;;  %v11065_v34 = vcombine.high %v2131_v15, %v2135_v17  ;;  %v2251_v44 = vld [vmem:[#allocation2 + $0x19c8] sm:$0xff]  ;;  %v11064_v42 = vcombine.low %v2131_v15, %v2135_v17 }
 0x36d   :  { %8143 = vmatpush2.bf16.msra.mxu0 %v10968_v4  ;;  %v2255_v48 = vld [vmem:[#allocation2 + $0x19e8] sm:$0xff] }
 0x36e   :  { %8144 = vmatprep.subr.bf16.mxu0 %v10961_v60  ;;  %v2379_v36 = vld [vmem:[#allocation2 + $0x1dc8] sm:$0xff]  ;;  %v11185_v0 = vcombine.high %v2251_v44, %v2255_v48  ;;  %v11184_v60 = vcombine.low %v2251_v44, %v2255_v48 }
 0x36f   :  { %8184 = vmatpush2.bf16.msra.mxu1 %v11096_v56  ;;  %v2383_v16 = vld [vmem:[#allocation2 + $0x1de8] sm:$0xff] }
 0x370   :  { %8185 = vmatprep.subr.bf16.mxu1 %v11089_v62  ;;  %v11313_v5 = vcombine.high %v2379_v36, %v2383_v16  ;;  %v2243_v3 = vld [vmem:[#allocation2 + $0x1988] sm:$0xff]  ;;  %v11312_v62 = vcombine.low %v2379_v36, %v2383_v16 }
 0x371   :  { %8145 = vmatpush2.bf16.msra.mxu0 %v10960_v57  ;;  %v2247_v58 = vld [vmem:[#allocation2 + $0x19a8] sm:$0xff] }
 0x372   :  { %8146 = vmatprep.subr.bf16.mxu0 %v10953_v21  ;;  %v2371_v4 = vld [vmem:[#allocation2 + $0x1d88] sm:$0xff]  ;;  %v11177_v55 = vcombine.high %v2243_v3, %v2247_v58  ;;  %v11176_v1 = vcombine.low %v2243_v3, %v2247_v58 }
 0x373   :  { %8186 = vmatpush2.bf16.msra.mxu1 %v11088_v7  ;;  %v2375_v56 = vld [vmem:[#allocation2 + $0x1da8] sm:$0xff] }
 0x374   :  { %8187 = vmatprep.subr.bf16.mxu1 %v11081_v31  ;;  %v11305_v61 = vcombine.high %v2371_v4, %v2375_v56  ;;  %v2235_v59 = vld [vmem:[#allocation2 + $0x1948] sm:$0xff]  ;;  %v11304_v9 = vcombine.low %v2371_v4, %v2375_v56 }
 0x375   :  { %8147 = vmatpush2.bf16.msra.mxu0 %v10952_v24  ;;  %v2239_v49 = vld [vmem:[#allocation2 + $0x1968] sm:$0xff] }
 0x376   :  { %8148 = vmatprep.subr.bf16.mxu0 %v10945_v37  ;;  %v2363_v7 = vld [vmem:[#allocation2 + $0x1d48] sm:$0xff]  ;;  %v11169_v24 = vcombine.high %v2235_v59, %v2239_v49  ;;  %v11168_v44 = vcombine.low %v2235_v59, %v2239_v49 }
 0x377   :  { %8188 = vmatpush2.bf16.msra.mxu1 %v11080_v10  ;;  %v2367_v21 = vld [vmem:[#allocation2 + $0x1d68] sm:$0xff] }
 0x378   :  { %8189 = vmatprep.subr.bf16.mxu1 %v11073_v25  ;;  %v11297_v33 = vcombine.high %v2363_v7, %v2367_v21  ;;  %v2227_v14 = vld [vmem:[#allocation2 + $0x1908] sm:$0xff]  ;;  %v11296_v48 = vcombine.low %v2363_v7, %v2367_v21 }
 0x379   :  { %8149 = vmatpush2.bf16.msra.mxu0 %v10944_v19  ;;  %v2231_v15 = vld [vmem:[#allocation2 + $0x1928] sm:$0xff] }
 0x37a   :  { %8150 = vmatprep.subr.bf16.mxu0 %v10937_v32  ;;  %v2355_v17 = vld [vmem:[#allocation2 + $0x1d08] sm:$0xff]  ;;  %v11161_v36 = vcombine.high %v2227_v14, %v2231_v15  ;;  %v11160_v4 = vcombine.low %v2227_v14, %v2231_v15 }
 0x37b   :  { %8190 = vmatpush2.bf16.msra.mxu1 %v11072_v22  ;;  %v2359_v19 = vld [vmem:[#allocation2 + $0x1d28] sm:$0xff] }
 0x37c   :  { %8191 = vmatprep.subr.bf16.mxu1 %v11065_v34  ;;  %v2347_v3 = vld [vmem:[#allocation2 + $0x1cc8] sm:$0xff]  ;;  %v11288_v56 = vcombine.low %v2355_v17, %v2359_v19 }
 0x37d   :  { %8151 = vmatpush2.bf16.msra.mxu0 %v10936_v18  ;;  %v2351_v58 = vld [vmem:[#allocation2 + $0x1ce8] sm:$0xff] }
 0x37e   :  { %8202 = vmatprep.subr.bf16.mxu0 %v11185_v0  ;;  %v2219_v0 = vld [vmem:[#allocation2 + $0x18c8] sm:$0xff]  ;;  %v11280_v7 = vcombine.low %v2347_v3, %v2351_v58 }
 0x37f   :  { %8192 = vmatpush2.bf16.msra.mxu1 %v11064_v42  ;;  %v11289_v42 = vcombine.high %v2355_v17, %v2359_v19  ;;  %v2339_v59 = vld [vmem:[#allocation2 + $0x1c88] sm:$0xff] }
 0x380   :  { %8243 = vmatprep.subr.bf16.mxu1 %v11313_v5  ;;  %v7908_v57 = vpop.f32.mrf.mxu0  ;;  %8153 = vmatmul.mubr.bf16.vlgmr.msra.gmra.mxu0 %v12360_v41  ;;  %v2223_v5 = vld [vmem:[#allocation2 + $0x18e8] sm:$0xff] }
 0x381   :  { %v7909_v31 = vadd.f32 %v7908_v57, %v12414_v39  ;;  %8203 = vmatpush1.bf16.msra.mxu0 %v11184_v60  ;;  %8234 = vmatprep.mubr.bf16.mxu0 %v12370_v20  ;;  %v11153_v60 = vcombine.high %v2219_v0, %v2223_v5  ;;  %v2343_v49 = vld [vmem:[#allocation2 + $0x1ca8] sm:$0xff]  ;;  %v11152_v57 = vcombine.low %v2219_v0, %v2223_v5 }
 0x382   :  { %v7949_v13 = vpop.f32.mrf.mxu1  ;;  %8194 = vmatmul.mubr.bf16.vlgmr.msra.gmra.mxu1 %v12365_v35  ;;  %v7910_v6 = vpop.f32.mrf.mxu0  ;;  %8204 = vmatprep.subr.bf16.mxu0 %v11177_v55  ;;  %v2211_v55 = vld [vmem:[#allocation2 + $0x1888] sm:$0xff] }
 0x383   :  { %8244 = vmatpush1.bf16.msra.mxu1 %v11312_v62  ;;  %v12424_v10 = vadd.f32 %v7949_v13, %v7909_v31  ;;  %v7911_v37 = vadd.f32 %v7910_v6, %v12419_v47  ;;  %8275 = vmatprep.mubr.bf16.mxu1 %v12376_v23  ;;  %v11281_v62 = vcombine.high %v2347_v3, %v2351_v58  ;;  %v2203_v13 = vld [vmem:[#allocation2 + $0x1848] sm:$0xff] }
 0x384   :  { %v7951_v25 = vpop.f32.mrf.mxu1  ;;  %8245 = vmatprep.subr.bf16.mxu1 %v11305_v61  ;;  %v7912_v39 = vpop.f32.mrf.mxu0  ;;  %v2215_v61 = vld [vmem:[#allocation2 + $0x18a8] sm:$0xff]  ;;  %v11273_v31 = vcombine.high %v2339_v59, %v2343_v49 }
 0x385   :  { %v8940_v22 = vmax.f32 %v12424_v10, 0.0  ;;  %v12430_v32 = vadd.f32 %v7951_v25, %v7911_v37  ;;  %8205 = vmatpush1.bf16.msra.mxu0 %v11176_v1  ;;  %v11145_v21 = vcombine.high %v2211_v55, %v2215_v61  ;;  %v2207_v1 = vld [vmem:[#allocation2 + $0x1868] sm:$0xff]  ;;  %v11272_v37 = vcombine.low %v2339_v59, %v2343_v49 }
 0x386   :  { %v7953_v34 = vpop.f32.mrf.mxu1  ;;  %v7913_v47 = vpop.f32.mrf.mxu0  ;;  %8206 = vmatprep.subr.bf16.mxu0 %v11169_v24  ;;  %v2331_v6 = vld [vmem:[#allocation2 + $0x1c48] sm:$0xff]  ;;  %v11144_v24 = vcombine.low %v2211_v55, %v2215_v61  ;;  %v11137_v25 = vcombine.high %v2203_v13, %v2207_v1  ;;  %v11136_v19 = vcombine.low %v2203_v13, %v2207_v1 }
 0x387   :  { %8246 = vmatpush1.bf16.msra.mxu1 %v11304_v9  ;;  %v8941_v16 = vmax.f32 %v12430_v32, 0.0  ;;  %v2335_v9 = vld [vmem:[#allocation2 + $0x1c68] sm:$0xff] }
 0x388   :  { %v7954_v18 = vpop.f32.mrf.mxu1  ;;  %8247 = vmatprep.subr.bf16.mxu1 %v11297_v33  ;;  %v11265_v33 = vcombine.high %v2331_v6, %v2335_v9  ;;  %v2195_v14 = vld [vmem:[#allocation2 + $0x1808] sm:$0xff]  ;;  %v11264_v34 = vcombine.low %v2331_v6, %v2335_v9 }
 0x389   :  { %8207 = vmatpush1.bf16.msra.mxu0 %v11168_v44  ;;  %v2199_v15 = vld [vmem:[#allocation2 + $0x1828] sm:$0xff] }
 0x38a   :  { %8208 = vmatprep.subr.bf16.mxu0 %v11161_v36  ;;  %v2323_v39 = vld [vmem:[#allocation2 + $0x1c08] sm:$0xff]  ;;  %v11129_v44 = vcombine.high %v2195_v14, %v2199_v15  ;;  %v11128_v0 = vcombine.low %v2195_v14, %v2199_v15 }
 0x38b   :  { %8248 = vmatpush1.bf16.msra.mxu1 %v11296_v48  ;;  %v2327_v17 = vld [vmem:[#allocation2 + $0x1c28] sm:$0xff] }
 0x38c   :  { %8249 = vmatprep.subr.bf16.mxu1 %v11289_v42  ;;  %v11257_v47 = vcombine.high %v2323_v39, %v2327_v17  ;;  %v2315_v48 = vld [vmem:[#allocation2 + $0x1bc8] sm:$0xff]  ;;  %v11256_v5 = vcombine.low %v2323_v39, %v2327_v17 }
 0x38d   :  { %8209 = vmatpush1.bf16.msra.mxu0 %v11160_v4  ;;  %v2319_v36 = vld [vmem:[#allocation2 + $0x1be8] sm:$0xff] }
 0x38e   :  { %8210 = vmatprep.subr.bf16.mxu0 %v11153_v60  ;;  %v2443_v18 = vld [vmem:[#allocation2 + $0x1fc8] sm:$0xff]  ;;  %v11249_v3 = vcombine.high %v2315_v48, %v2319_v36  ;;  %v11248_v55 = vcombine.low %v2315_v48, %v2319_v36 }
 0x38f   :  { %8250 = vmatpush1.bf16.msra.mxu1 %v11288_v56  ;;  %v2447_v42 = vld [vmem:[#allocation2 + $0x1fe8] sm:$0xff] }
 0x390   :  { %8251 = vmatprep.subr.bf16.mxu1 %v11281_v62  ;;  %v11377_v58 = vcombine.high %v2443_v18, %v2447_v42  ;;  %v2307_v4 = vld [vmem:[#allocation2 + $0x1b88] sm:$0xff]  ;;  %v11376_v61 = vcombine.low %v2443_v18, %v2447_v42 }
 0x391   :  { %8211 = vmatpush1.bf16.msra.mxu0 %v11152_v57  ;;  %v2311_v56 = vld [vmem:[#allocation2 + $0x1ba8] sm:$0xff] }
 0x392   :  { %8212 = vmatprep.subr.bf16.mxu0 %v11145_v21  ;;  %v2435_v60 = vld [vmem:[#allocation2 + $0x1f88] sm:$0xff]  ;;  %v11241_v59 = vcombine.high %v2307_v4, %v2311_v56  ;;  %v11240_v13 = vcombine.low %v2307_v4, %v2311_v56 }
 0x393   :  { %8252 = vmatpush1.bf16.msra.mxu1 %v11280_v7  ;;  %v2439_v62 = vld [vmem:[#allocation2 + $0x1fa8] sm:$0xff] }
 0x394   :  { %8253 = vmatprep.subr.bf16.mxu1 %v11273_v31  ;;  %v11369_v49 = vcombine.high %v2435_v60, %v2439_v62  ;;  %v2299_v57 = vld [vmem:[#allocation2 + $0x1b48] sm:$0xff]  ;;  %v11368_v1 = vcombine.low %v2435_v60, %v2439_v62 }
 0x395   :  { %8213 = vmatpush1.bf16.msra.mxu0 %v11144_v24  ;;  %v2303_v7 = vld [vmem:[#allocation2 + $0x1b68] sm:$0xff] }
 0x396   :  { %8214 = vmatprep.subr.bf16.mxu0 %v11137_v25  ;;  %v2427_v21 = vld [vmem:[#allocation2 + $0x1f48] sm:$0xff]  ;;  %v11233_v6 = vcombine.high %v2299_v57, %v2303_v7  ;;  %v11232_v14 = vcombine.low %v2299_v57, %v2303_v7 }
 0x397   :  { %8254 = vmatpush1.bf16.msra.mxu1 %v11272_v37  ;;  %v2431_v31 = vld [vmem:[#allocation2 + $0x1f68] sm:$0xff] }
 0x398   :  { %8255 = vmatprep.subr.bf16.mxu1 %v11265_v33  ;;  %v11361_v9 = vcombine.high %v2427_v21, %v2431_v31  ;;  %v2291_v24 = vld [vmem:[#allocation2 + $0x1b08] sm:$0xff]  ;;  %v11360_v15 = vcombine.low %v2427_v21, %v2431_v31 }
 0x399   :  { %8215 = vmatpush1.bf16.msra.mxu0 %v11136_v19  ;;  %v2295_v37 = vld [vmem:[#allocation2 + $0x1b28] sm:$0xff] }
 0x39a   :  { %8216 = vmatprep.subr.bf16.mxu0 %v11129_v44  ;;  %v2419_v25 = vld [vmem:[#allocation2 + $0x1f08] sm:$0xff]  ;;  %v11225_v39 = vcombine.high %v2291_v24, %v2295_v37  ;;  %v11224_v48 = vcombine.low %v2291_v24, %v2295_v37 }
 0x39b   :  { %8256 = vmatpush1.bf16.msra.mxu1 %v11264_v34  ;;  %v2423_v33 = vld [vmem:[#allocation2 + $0x1f28] sm:$0xff] }
 0x39c   :  { %8257 = vmatprep.subr.bf16.mxu1 %v11257_v47  ;;  %v11353_v17 = vcombine.high %v2419_v25, %v2423_v33  ;;  %v2283_v19 = vld [vmem:[#allocation2 + $0x1ac8] sm:$0xff]  ;;  %v11352_v36 = vcombine.low %v2419_v25, %v2423_v33 }
 0x39d   :  { %8217 = vmatpush1.bf16.msra.mxu0 %v11128_v0  ;;  %v2287_v34 = vld [vmem:[#allocation2 + $0x1ae8] sm:$0xff] }
 0x39e   :  { %8218 = vmatprep.subr.bf16.mxu0 %v11249_v3  ;;  %v2411_v44 = vld [vmem:[#allocation2 + $0x1ec8] sm:$0xff]  ;;  %v11217_v18 = vcombine.high %v2283_v19, %v2287_v34  ;;  %v11216_v4 = vcombine.low %v2283_v19, %v2287_v34 }
 0x39f   :  { %8258 = vmatpush1.bf16.msra.mxu1 %v11256_v5  ;;  %v2415_v47 = vld [vmem:[#allocation2 + $0x1ee8] sm:$0xff] }
 0x3a0   :  { %8259 = vmatprep.subr.bf16.mxu1 %v11377_v58  ;;  %v11345_v42 = vcombine.high %v2411_v44, %v2415_v47  ;;  %v2275_v0 = vld [vmem:[#allocation2 + $0x1a88] sm:$0xff]  ;;  %v11344_v56 = vcombine.low %v2411_v44, %v2415_v47 }
 0x3a1   :  { %8219 = vmatpush2.bf16.msra.mxu0 %v11248_v55  ;;  %v2279_v5 = vld [vmem:[#allocation2 + $0x1aa8] sm:$0xff] }
 0x3a2   :  { %8220 = vmatprep.subr.bf16.mxu0 %v11241_v59  ;;  %v2403_v3 = vld [vmem:[#allocation2 + $0x1e88] sm:$0xff]  ;;  %v11209_v60 = vcombine.high %v2275_v0, %v2279_v5  ;;  %v11208_v57 = vcombine.low %v2275_v0, %v2279_v5  ;;  %v11592_v0 = vld [vmem:[#allocation13] sm:$0xff] }
 0x3a3   :  { %8260 = vmatpush2.bf16.msra.mxu1 %v11376_v61  ;;  %v2407_v58 = vld [vmem:[#allocation2 + $0x1ea8] sm:$0xff]  ;;  %v2479_v5 = vrot.slane %v11592_v0, %v12219_v27 }
 0x3a4   :  { %8261 = vmatprep.subr.bf16.mxu1 %v11369_v49  ;;  %v11337_v62 = vcombine.high %v2403_v3, %v2407_v58  ;;  %v2267_v55 = vld [vmem:[#allocation2 + $0x1a48] sm:$0xff]  ;;  %v11336_v7 = vcombine.low %v2403_v3, %v2407_v58 }
 0x3a5   :  { %8221 = vmatpush2.bf16.msra.mxu0 %v11240_v13  ;;  %v2271_v61 = vld [vmem:[#allocation2 + $0x1a68] sm:$0xff] }
 0x3a6   :  { %8222 = vmatprep.subr.bf16.mxu0 %v11233_v6  ;;  %v2395_v59 = vld [vmem:[#allocation2 + $0x1e48] sm:$0xff]  ;;  %v11201_v21 = vcombine.high %v2267_v55, %v2271_v61  ;;  %v11200_v24 = vcombine.low %v2267_v55, %v2271_v61  ;;  %v1472_v55 = vld [vmem:[#allocation2 + $0x170] sm:$0xff] }
 0x3a7   :  { %8262 = vmatpush2.bf16.msra.mxu1 %v11368_v1  ;;  %v2399_v49 = vld [vmem:[#allocation2 + $0x1e68] sm:$0xff] }
 0x3a8   :  { %8263 = vmatprep.subr.bf16.mxu1 %v11361_v9  ;;  %v11329_v31 = vcombine.high %v2395_v59, %v2399_v49  ;;  %v2259_v13 = vld [vmem:[#allocation2 + $0x1a08] sm:$0xff]  ;;  %v11328_v37 = vcombine.low %v2395_v59, %v2399_v49  ;;  %v1596_v59 = vld [vmem:[#allocation2 + $0x550] sm:$0xff] }
 0x3a9   :  { %8223 = vmatpush2.bf16.msra.mxu0 %v11232_v14  ;;  %v2263_v1 = vld [vmem:[#allocation2 + $0x1a28] sm:$0xff]  ;;  %v1484_v14 = vld [vmem:[#allocation2 + $0x1d0] sm:$0xff] }
 0x3aa   :  { %8224 = vmatprep.subr.bf16.mxu0 %v11225_v39  ;;  %v2387_v6 = vld [vmem:[#allocation2 + $0x1e08] sm:$0xff]  ;;  %v11193_v25 = vcombine.high %v2259_v13, %v2263_v1  ;;  %v1612_v39 = vld [vmem:[#allocation2 + $0x5d0] sm:$0xff]  ;;  %v11192_v19 = vcombine.low %v2259_v13, %v2263_v1 }
 0x3ab   :  { %8264 = vmatpush2.bf16.msra.mxu1 %v11360_v15  ;;  %v2391_v9 = vld [vmem:[#allocation2 + $0x1e28] sm:$0xff]  ;;  %v1488_v15 = vld [vmem:[#allocation2 + $0x1f0] sm:$0xff] }
 0x3ac   :  { %8265 = vmatprep.subr.bf16.mxu1 %v11353_v17  ;;  %v11321_v33 = vcombine.high %v2387_v6, %v2391_v9  ;;  %v1616_v17 = vld [vmem:[#allocation2 + $0x5f0] sm:$0xff]  ;;  %v11320_v34 = vcombine.low %v2387_v6, %v2391_v9  ;;  %v10419_v44 = vcombine.high %v1484_v14, %v1488_v15  ;;  %v10418_v3 = vcombine.low %v1484_v14, %v1488_v15 }
 0x3ad   :  { %8225 = vmatpush2.bf16.msra.mxu0 %v11224_v48  ;;  %v10547_v47 = vcombine.high %v1612_v39, %v1616_v17  ;;  %v1476_v48 = vld [vmem:[#allocation2 + $0x190] sm:$0xff]  ;;  %v10546_v58 = vcombine.low %v1612_v39, %v1616_v17 }
 0x3ae   :  { %8226 = vmatprep.subr.bf16.mxu0 %v11217_v18  ;;  %v1604_v18 = vld [vmem:[#allocation2 + $0x590] sm:$0xff] }
 0x3af   :  { %8266 = vmatpush2.bf16.msra.mxu1 %v11352_v36  ;;  %v1480_v36 = vld [vmem:[#allocation2 + $0x1b0] sm:$0xff] }
 0x3b0   :  { %8267 = vmatprep.subr.bf16.mxu1 %v11345_v42  ;;  %v1608_v42 = vld [vmem:[#allocation2 + $0x5b0] sm:$0xff]  ;;  %v10410_v27 = vcombine.low %v1476_v48, %v1480_v36 }
 0x3b1   :  { %8227 = vmatpush2.bf16.msra.mxu0 %v11216_v4  ;;  %v10411_v4 = vcombine.high %v1476_v48, %v1480_v36  ;;  %v1600_v49 = vld [vmem:[#allocation2 + $0x570] sm:$0xff] }
 0x3b2   :  { %8228 = vmatprep.subr.bf16.mxu0 %v11209_v60  ;;  %v10539_v60 = vcombine.high %v1604_v18, %v1608_v42  ;;  %v10531_v9 = vcombine.high %v1596_v59, %v1600_v49  ;;  %v1592_v14 = vld [vmem:[#allocation2 + $0x530] sm:$0xff] }
 0x3b3   :  { %8268 = vmatpush2.bf16.msra.mxu1 %v11344_v56  ;;  %v2483_v56 = vrot.slane %v11592_v0, %v12223_v30  ;;  %v1452_v36 = vld [vmem:[#allocation2 + $0xd0] sm:$0xff] }
 0x3b4   :  { %8269 = vmatprep.subr.bf16.mxu1 %v11337_v62  ;;  %v1468_v62 = vld [vmem:[#allocation2 + $0x150] sm:$0xff] }
 0x3b5   :  { %8229 = vmatpush2.bf16.msra.mxu0 %v11208_v57  ;;  %v10403_v13 = vcombine.high %v1468_v62, %v1472_v55  ;;  %v10402_v17 = vcombine.low %v1468_v62, %v1472_v55  ;;  %v1584_v0 = vld [vmem:[#allocation2 + $0x4f0] sm:$0xff] }
 0x3b6   :  { %8230 = vmatprep.subr.bf16.mxu0 %v11201_v21  ;;  %v1572_v62 = vld [vmem:[#allocation2 + $0x490] sm:$0xff] }
 0x3b7   :  { %8270 = vmatpush2.bf16.msra.mxu1 %v11336_v7  ;;  %v1576_v55 = vld [vmem:[#allocation2 + $0x4b0] sm:$0xff] }
 0x3b8   :  { %8271 = vmatprep.subr.bf16.mxu1 %v11329_v31  ;;  %v10538_v31 = vcombine.low %v1604_v18, %v1608_v42  ;;  %v1456_v18 = vld [vmem:[#allocation2 + $0xf0] sm:$0xff] }
 0x3b9   :  { %8231 = vmatpush2.bf16.msra.mxu0 %v11200_v24  ;;  %v1460_v24 = vld [vmem:[#allocation2 + $0x110] sm:$0xff] }
 0x3ba   :  { %8232 = vmatprep.subr.bf16.mxu0 %v11193_v25  ;;  %v1580_v42 = vld [vmem:[#allocation2 + $0x4d0] sm:$0xff] }
 0x3bb   :  { %8272 = vmatpush2.bf16.msra.mxu1 %v11328_v37  ;;  %v1464_v37 = vld [vmem:[#allocation2 + $0x130] sm:$0xff] }
 0x3bc   :  { %8273 = vmatprep.subr.bf16.mxu1 %v11321_v33  ;;  %v1588_v33 = vld [vmem:[#allocation2 + $0x510] sm:$0xff] }
 0x3bd   :  { %8233 = vmatpush2.bf16.msra.mxu0 %v11192_v19  ;;  %v10523_v48 = vcombine.high %v1588_v33, %v1592_v14 }
 0x3be   :  { %8284 = vmatprep.subr.bf16.mxu0 %v10419_v44  ;;  %v10395_v44 = vcombine.high %v1460_v24, %v1464_v37 }
 0x3bf   :  { %8274 = vmatpush2.bf16.msra.mxu1 %v11320_v34  ;;  %v10530_v34 = vcombine.low %v1596_v59, %v1600_v49  ;;  %v10514_v59 = vcombine.low %v1580_v42, %v1584_v0 }
 0x3c0   :  { %8325 = vmatprep.subr.bf16.mxu1 %v10547_v47  ;;  %v7990_v61 = vpop.f32.mrf.mxu0  ;;  %8235 = vmatmul.mubr.bf16.vlgmr.msra.gmra.mxu0 %v12384_v50 }
 0x3c1   :  { %v7991_v57 = vadd.f32 %v7990_v61, %v2479_v5  ;;  %8285 = vmatpush1.bf16.msra.mxu0 %v10418_v3  ;;  %8316 = vmatprep.mubr.bf16.mxu0 %v12300_v11  ;;  %v10394_v5 = vcombine.low %v1460_v24, %v1464_v37  ;;  %v10522_v3 = vcombine.low %v1588_v33, %v1592_v14  ;;  %v1428_v24 = vld [vmem:[#allocation2 + $0x10] sm:$0xff] }
 0x3c2   :  { %v8031_v7 = vpop.f32.mrf.mxu1  ;;  %8276 = vmatmul.mubr.bf16.vlgmr.msra.gmra.mxu1 %v12390_v8  ;;  %v7992_v21 = vpop.f32.mrf.mxu0  ;;  %8286 = vmatprep.subr.bf16.mxu0 %v10411_v4  ;;  %v10515_v4 = vcombine.high %v1580_v42, %v1584_v0  ;;  %v10386_v61 = vcombine.low %v1452_v36, %v1456_v18  ;;  %v1432_v37 = vld [vmem:[#allocation2 + $0x30] sm:$0xff] }
 0x3c3   :  { %8326 = vmatpush1.bf16.msra.mxu1 %v10546_v58  ;;  %v12437_v30 = vadd.f32 %v8031_v7, %v7991_v57  ;;  %v7993_v1 = vadd.f32 %v7992_v21, %v2483_v56  ;;  %8357 = vmatprep.mubr.bf16.mxu1 %v12305_v12  ;;  %v10387_v58 = vcombine.high %v1452_v36, %v1456_v18  ;;  %v1444_v56 = vld [vmem:[#allocation2 + $0x90] sm:$0xff] }
 0x3c4   :  { %v8033_v6 = vpop.f32.mrf.mxu1  ;;  %8327 = vmatprep.subr.bf16.mxu1 %v10539_v60  ;;  %v7994_v25 = vpop.f32.mrf.mxu0  ;;  %v1448_v60 = vld [vmem:[#allocation2 + $0xb0] sm:$0xff]  ;;  %v10507_v57 = vcombine.high %v1572_v62, %v1576_v55  ;;  %v10362_v36 = vcombine.low %v1428_v24, %v1432_v37 }
 0x3c5   :  { %v12441_v15 = vadd.f32 %v8033_v6, %v7993_v1  ;;  %8287 = vmatpush1.bf16.msra.mxu0 %v10410_v27  ;;  %v10379_v49 = vcombine.high %v1444_v56, %v1448_v60  ;;  %v1436_v7 = vld [vmem:[#allocation2 + $0x50] sm:$0xff]  ;;  %v10506_v1 = vcombine.low %v1572_v62, %v1576_v55 }
 0x3c6   :  { %v8035_v39 = vpop.f32.mrf.mxu1  ;;  %v7995_v19 = vpop.f32.mrf.mxu0  ;;  %8288 = vmatprep.subr.bf16.mxu0 %v10403_v13  ;;  %v1440_v27 = vld [vmem:[#allocation2 + $0x70] sm:$0xff]  ;;  %v10378_v13 = vcombine.low %v1444_v56, %v1448_v60 }
 0x3c7   :  { %8328 = vmatpush1.bf16.msra.mxu1 %v10538_v31  ;;  %v1564_v21 = vld [vmem:[#allocation2 + $0x450] sm:$0xff]  ;;  %v10371_v6 = vcombine.high %v1436_v7, %v1440_v27  ;;  %v10370_v14 = vcombine.low %v1436_v7, %v1440_v27 }
 0x3c8   :  { %v8036_v47 = vpop.f32.mrf.mxu1  ;;  %8329 = vmatprep.subr.bf16.mxu1 %v10531_v9  ;;  %v1568_v31 = vld [vmem:[#allocation2 + $0x470] sm:$0xff] }
 0x3c9   :  { %8289 = vmatpush1.bf16.msra.mxu0 %v10402_v17  ;;  %v10499_v9 = vcombine.high %v1564_v21, %v1568_v31  ;;  %v1556_v25 = vld [vmem:[#allocation2 + $0x410] sm:$0xff]  ;;  %v10498_v39 = vcombine.low %v1564_v21, %v1568_v31  ;;  %v10363_v17 = vcombine.high %v1428_v24, %v1432_v37 }
 0x3ca   :  { %8290 = vmatprep.subr.bf16.mxu0 %v10395_v44  ;;  %v1560_v33 = vld [vmem:[#allocation2 + $0x430] sm:$0xff] }
 0x3cb   :  { %8330 = vmatpush1.bf16.msra.mxu1 %v10530_v34  ;;  %v10491_v19 = vcombine.high %v1556_v25, %v1560_v33  ;;  %v1548_v34 = vld [vmem:[#allocation2 + $0x3d0] sm:$0xff]  ;;  %v10490_v18 = vcombine.low %v1556_v25, %v1560_v33 }
 0x3cc   :  { %8331 = vmatprep.subr.bf16.mxu1 %v10523_v48  ;;  %v1552_v44 = vld [vmem:[#allocation2 + $0x3f0] sm:$0xff] }
 0x3cd   :  { %8291 = vmatpush1.bf16.msra.mxu0 %v10394_v5  ;;  %v1676_v47 = vld [vmem:[#allocation2 + $0x7d0] sm:$0xff]  ;;  %v10483_v42 = vcombine.high %v1548_v34, %v1552_v44  ;;  %v10482_v56 = vcombine.low %v1548_v34, %v1552_v44 }
 0x3ce   :  { %8292 = vmatprep.subr.bf16.mxu0 %v10387_v58  ;;  %v1680_v48 = vld [vmem:[#allocation2 + $0x7f0] sm:$0xff] }
 0x3cf   :  { %8332 = vmatpush1.bf16.msra.mxu1 %v10522_v3  ;;  %v10611_v0 = vcombine.high %v1676_v47, %v1680_v48  ;;  %v1540_v5 = vld [vmem:[#allocation2 + $0x390] sm:$0xff]  ;;  %v10610_v60 = vcombine.low %v1676_v47, %v1680_v48 }
 0x3d0   :  { %8333 = vmatprep.subr.bf16.mxu1 %v10515_v4  ;;  %v1544_v3 = vld [vmem:[#allocation2 + $0x3b0] sm:$0xff] }
 0x3d1   :  { %8293 = vmatpush1.bf16.msra.mxu0 %v10386_v61  ;;  %v1668_v58 = vld [vmem:[#allocation2 + $0x790] sm:$0xff]  ;;  %v10475_v62 = vcombine.high %v1540_v5, %v1544_v3  ;;  %v10474_v7 = vcombine.low %v1540_v5, %v1544_v3 }
 0x3d2   :  { %8294 = vmatprep.subr.bf16.mxu0 %v10379_v49  ;;  %v1672_v4 = vld [vmem:[#allocation2 + $0x7b0] sm:$0xff] }
 0x3d3   :  { %8334 = vmatpush1.bf16.msra.mxu1 %v10514_v59  ;;  %v10603_v55 = vcombine.high %v1668_v58, %v1672_v4  ;;  %v1532_v61 = vld [vmem:[#allocation2 + $0x350] sm:$0xff]  ;;  %v10602_v27 = vcombine.low %v1668_v58, %v1672_v4 }
 0x3d4   :  { %8335 = vmatprep.subr.bf16.mxu1 %v10507_v57  ;;  %v1536_v59 = vld [vmem:[#allocation2 + $0x370] sm:$0xff] }
 0x3d5   :  { %8295 = vmatpush1.bf16.msra.mxu0 %v10378_v13  ;;  %v1660_v49 = vld [vmem:[#allocation2 + $0x750] sm:$0xff]  ;;  %v10467_v21 = vcombine.high %v1532_v61, %v1536_v59  ;;  %v10466_v24 = vcombine.low %v1532_v61, %v1536_v59 }
 0x3d6   :  { %8296 = vmatprep.subr.bf16.mxu0 %v10371_v6  ;;  %v1664_v57 = vld [vmem:[#allocation2 + $0x770] sm:$0xff] }
 0x3d7   :  { %8336 = vmatpush1.bf16.msra.mxu1 %v10506_v1  ;;  %v10595_v31 = vcombine.high %v1660_v49, %v1664_v57  ;;  %v1524_v13 = vld [vmem:[#allocation2 + $0x310] sm:$0xff]  ;;  %v10594_v37 = vcombine.low %v1660_v49, %v1664_v57 }
 0x3d8   :  { %8337 = vmatprep.subr.bf16.mxu1 %v10499_v9  ;;  %v1528_v1 = vld [vmem:[#allocation2 + $0x330] sm:$0xff] }
 0x3d9   :  { %8297 = vmatpush1.bf16.msra.mxu0 %v10370_v14  ;;  %v1652_v6 = vld [vmem:[#allocation2 + $0x710] sm:$0xff]  ;;  %v10459_v25 = vcombine.high %v1524_v13, %v1528_v1  ;;  %v10458_v34 = vcombine.low %v1524_v13, %v1528_v1 }
 0x3da   :  { %8298 = vmatprep.subr.bf16.mxu0 %v10363_v17  ;;  %v1656_v9 = vld [vmem:[#allocation2 + $0x730] sm:$0xff] }
 0x3db   :  { %8338 = vmatpush1.bf16.msra.mxu1 %v10498_v39  ;;  %v10587_v33 = vcombine.high %v1652_v6, %v1656_v9  ;;  %v1516_v14 = vld [vmem:[#allocation2 + $0x2d0] sm:$0xff]  ;;  %v10586_v44 = vcombine.low %v1652_v6, %v1656_v9 }
 0x3dc   :  { %8339 = vmatprep.subr.bf16.mxu1 %v10491_v19  ;;  %v1520_v39 = vld [vmem:[#allocation2 + $0x2f0] sm:$0xff] }
 0x3dd   :  { %8299 = vmatpush1.bf16.msra.mxu0 %v10362_v36  ;;  %v1644_v17 = vld [vmem:[#allocation2 + $0x6d0] sm:$0xff]  ;;  %v10451_v47 = vcombine.high %v1516_v14, %v1520_v39  ;;  %v10450_v5 = vcombine.low %v1516_v14, %v1520_v39 }
 0x3de   :  { %8300 = vmatprep.subr.bf16.mxu0 %v10483_v42  ;;  %v1648_v19 = vld [vmem:[#allocation2 + $0x6f0] sm:$0xff] }
 0x3df   :  { %8340 = vmatpush1.bf16.msra.mxu1 %v10490_v18  ;;  %v10579_v48 = vcombine.high %v1644_v17, %v1648_v19  ;;  %v1508_v36 = vld [vmem:[#allocation2 + $0x290] sm:$0xff]  ;;  %v10578_v3 = vcombine.low %v1644_v17, %v1648_v19 }
 0x3e0   :  { %8341 = vmatprep.subr.bf16.mxu1 %v10611_v0  ;;  %v1512_v18 = vld [vmem:[#allocation2 + $0x2b0] sm:$0xff] }
 0x3e1   :  { %8301 = vmatpush2.bf16.msra.mxu0 %v10482_v56  ;;  %v1636_v42 = vld [vmem:[#allocation2 + $0x690] sm:$0xff]  ;;  %v10443_v58 = vcombine.high %v1508_v36, %v1512_v18  ;;  %v10442_v61 = vcombine.low %v1508_v36, %v1512_v18 }
 0x3e2   :  { %8302 = vmatprep.subr.bf16.mxu0 %v10475_v62  ;;  %v1640_v0 = vld [vmem:[#allocation2 + $0x6b0] sm:$0xff] }
 0x3e3   :  { %8342 = vmatpush2.bf16.msra.mxu1 %v10610_v60  ;;  %v10571_v4 = vcombine.high %v1636_v42, %v1640_v0  ;;  %v1500_v56 = vld [vmem:[#allocation2 + $0x250] sm:$0xff]  ;;  %v10570_v59 = vcombine.low %v1636_v42, %v1640_v0 }
 0x3e4   :  { %8343 = vmatprep.subr.bf16.mxu1 %v10603_v55  ;;  %v1504_v60 = vld [vmem:[#allocation2 + $0x270] sm:$0xff] }
 0x3e5   :  { %8303 = vmatpush2.bf16.msra.mxu0 %v10474_v7  ;;  %v1628_v62 = vld [vmem:[#allocation2 + $0x650] sm:$0xff]  ;;  %v10435_v49 = vcombine.high %v1500_v56, %v1504_v60  ;;  %v10434_v13 = vcombine.low %v1500_v56, %v1504_v60 }
 0x3e6   :  { %8304 = vmatprep.subr.bf16.mxu0 %v10467_v21  ;;  %v1632_v55 = vld [vmem:[#allocation2 + $0x670] sm:$0xff] }
 0x3e7   :  { %8344 = vmatpush2.bf16.msra.mxu1 %v10602_v27  ;;  %v10563_v57 = vcombine.high %v1628_v62, %v1632_v55  ;;  %v1492_v7 = vld [vmem:[#allocation2 + $0x210] sm:$0xff]  ;;  %v10562_v1 = vcombine.low %v1628_v62, %v1632_v55 }
 0x3e8   :  { %8345 = vmatprep.subr.bf16.mxu1 %v10595_v31  ;;  %v1496_v27 = vld [vmem:[#allocation2 + $0x230] sm:$0xff] }
 0x3e9   :  { %8305 = vmatpush2.bf16.msra.mxu0 %v10466_v24  ;;  %v1620_v21 = vld [vmem:[#allocation2 + $0x610] sm:$0xff]  ;;  %v10427_v6 = vcombine.high %v1492_v7, %v1496_v27  ;;  %v10426_v14 = vcombine.low %v1492_v7, %v1496_v27 }
 0x3ea   :  { %8306 = vmatprep.subr.bf16.mxu0 %v10459_v25  ;;  %v1624_v31 = vld [vmem:[#allocation2 + $0x630] sm:$0xff] }
 0x3eb   :  { %8346 = vmatpush2.bf16.msra.mxu1 %v10594_v37  ;;  %v10555_v9 = vcombine.high %v1620_v21, %v1624_v31  ;;  %v1740_v24 = vld [vmem:[#allocation2 + $0x9d0] sm:$0xff]  ;;  %v10554_v39 = vcombine.low %v1620_v21, %v1624_v31 }
 0x3ec   :  { %8347 = vmatprep.subr.bf16.mxu1 %v10587_v33  ;;  %v1744_v37 = vld [vmem:[#allocation2 + $0x9f0] sm:$0xff] }
 0x3ed   :  { %8307 = vmatpush2.bf16.msra.mxu0 %v10458_v34  ;;  %v1868_v25 = vld [vmem:[#allocation2 + $0xdd0] sm:$0xff]  ;;  %v10675_v17 = vcombine.high %v1740_v24, %v1744_v37  ;;  %v10674_v36 = vcombine.low %v1740_v24, %v1744_v37 }
 0x3ee   :  { %8308 = vmatprep.subr.bf16.mxu0 %v10451_v47  ;;  %v1872_v33 = vld [vmem:[#allocation2 + $0xdf0] sm:$0xff] }
 0x3ef   :  { %8348 = vmatpush2.bf16.msra.mxu1 %v10586_v44  ;;  %v10803_v19 = vcombine.high %v1868_v25, %v1872_v33  ;;  %v1732_v34 = vld [vmem:[#allocation2 + $0x990] sm:$0xff]  ;;  %v10802_v18 = vcombine.low %v1868_v25, %v1872_v33 }
 0x3f0   :  { %8349 = vmatprep.subr.bf16.mxu1 %v10579_v48  ;;  %v1736_v44 = vld [vmem:[#allocation2 + $0x9b0] sm:$0xff] }
 0x3f1   :  { %8309 = vmatpush2.bf16.msra.mxu0 %v10450_v5  ;;  %v1860_v47 = vld [vmem:[#allocation2 + $0xd90] sm:$0xff]  ;;  %v10667_v42 = vcombine.high %v1732_v34, %v1736_v44  ;;  %v10666_v55 = vcombine.low %v1732_v34, %v1736_v44 }
 0x3f2   :  { %8310 = vmatprep.subr.bf16.mxu0 %v10443_v58  ;;  %v1864_v48 = vld [vmem:[#allocation2 + $0xdb0] sm:$0xff] }
 0x3f3   :  { %8350 = vmatpush2.bf16.msra.mxu1 %v10578_v3  ;;  %v10795_v0 = vcombine.high %v1860_v47, %v1864_v48  ;;  %v1724_v5 = vld [vmem:[#allocation2 + $0x950] sm:$0xff] }
 0x3f4   :  { %8351 = vmatprep.subr.bf16.mxu1 %v10571_v4  ;;  %v1728_v3 = vld [vmem:[#allocation2 + $0x970] sm:$0xff] }
 0x3f5   :  { %8311 = vmatpush2.bf16.msra.mxu0 %v10442_v61  ;;  %v1852_v4 = vld [vmem:[#allocation2 + $0xd50] sm:$0xff]  ;;  %v10658_v37 = vcombine.low %v1724_v5, %v1728_v3 }
 0x3f6   :  { %8312 = vmatprep.subr.bf16.mxu0 %v10435_v49  ;;  %v1856_v56 = vld [vmem:[#allocation2 + $0xd70] sm:$0xff]  ;;  %v10659_v49 = vcombine.high %v1724_v5, %v1728_v3 }
 0x3f7   :  { %8352 = vmatpush2.bf16.msra.mxu1 %v10570_v59  ;;  %v10794_v59 = vcombine.low %v1860_v47, %v1864_v48  ;;  %v10787_v21 = vcombine.high %v1852_v4, %v1856_v56  ;;  %v1716_v31 = vld [vmem:[#allocation2 + $0x910] sm:$0xff] }
 0x3f8   :  { %8353 = vmatprep.subr.bf16.mxu1 %v10563_v57  ;;  %v1836_v34 = vld [vmem:[#allocation2 + $0xcd0] sm:$0xff] }
 0x3f9   :  { %8313 = vmatpush2.bf16.msra.mxu0 %v10434_v13  ;;  %v1720_v13 = vld [vmem:[#allocation2 + $0x930] sm:$0xff] }
 0x3fa   :  { %8314 = vmatprep.subr.bf16.mxu0 %v10427_v6  ;;  %v1848_v6 = vld [vmem:[#allocation2 + $0xd30] sm:$0xff]  ;;  %v10651_v33 = vcombine.high %v1716_v31, %v1720_v13  ;;  %v10650_v47 = vcombine.low %v1716_v31, %v1720_v13 }
 0x3fb   :  { %8354 = vmatpush2.bf16.msra.mxu1 %v10562_v1  ;;  %v1844_v1 = vld [vmem:[#allocation2 + $0xd10] sm:$0xff] }
 0x3fc   :  { %8355 = vmatprep.subr.bf16.mxu1 %v10555_v9  ;;  %v1840_v44 = vld [vmem:[#allocation2 + $0xcf0] sm:$0xff]  ;;  %v10778_v48 = vcombine.low %v1844_v1, %v1848_v6 }
 0x3fd   :  { %8315 = vmatpush2.bf16.msra.mxu0 %v10426_v14  ;;  %v1828_v5 = vld [vmem:[#allocation2 + $0xc90] sm:$0xff] }
 0x3fe   :  { %8366 = vmatprep.subr.bf16.mxu0 %v10675_v17  ;;  %v1708_v17 = vld [vmem:[#allocation2 + $0x8d0] sm:$0xff] }
 0x3ff   :  { %8356 = vmatpush2.bf16.msra.mxu1 %v10554_v39  ;;  %v10779_v39 = vcombine.high %v1844_v1, %v1848_v6  ;;  %v1832_v3 = vld [vmem:[#allocation2 + $0xcb0] sm:$0xff] }
 0x400   :  { %8407 = vmatprep.subr.bf16.mxu1 %v10803_v19  ;;  %v8072_v58 = vpop.f32.mrf.mxu0  ;;  %8317 = vmatmul.mubr.bf16.vlgmr.msra.gmra.mxu0 %v12312_v28  ;;  %v1712_v19 = vld [vmem:[#allocation2 + $0x8f0] sm:$0xff] }
 0x401   :  { %v8073_v60 = vadd.f32 %v8072_v58, %v12437_v30  ;;  %8367 = vmatpush1.bf16.msra.mxu0 %v10674_v36  ;;  %8398 = vmatprep.mubr.bf16.mxu0 %v12322_v40  ;;  %v10643_v36 = vcombine.high %v1708_v17, %v1712_v19  ;;  %v10642_v58 = vcombine.low %v1708_v17, %v1712_v19  ;;  %v1684_v31 = vld [vmem:[#allocation2 + $0x810] sm:$0xff] }
 0x402   :  { %v8113_v62 = vpop.f32.mrf.mxu1  ;;  %8358 = vmatmul.mubr.bf16.vlgmr.msra.gmra.mxu1 %v12317_v46  ;;  %v8074_v61 = vpop.f32.mrf.mxu0  ;;  %8368 = vmatprep.subr.bf16.mxu0 %v10667_v42  ;;  %v1700_v42 = vld [vmem:[#allocation2 + $0x890] sm:$0xff] }
 0x403   :  { %8408 = vmatpush1.bf16.msra.mxu1 %v10802_v18  ;;  %v12446_v57 = vadd.f32 %v8113_v62, %v8073_v60  ;;  %v8075_v7 = vadd.f32 %v8074_v61, %v12441_v15  ;;  %8439 = vmatprep.mubr.bf16.mxu1 %v12328_v43  ;;  %v10786_v15 = vcombine.low %v1852_v4, %v1856_v56  ;;  %v1692_v62 = vld [vmem:[#allocation2 + $0x850] sm:$0xff] }
 0x404   :  { %v8115_v27 = vpop.f32.mrf.mxu1  ;;  %8409 = vmatprep.subr.bf16.mxu1 %v10795_v0  ;;  %v8076_v30 = vpop.f32.mrf.mxu0  ;;  %v10771_v18 = vcombine.high %v1836_v34, %v1840_v44  ;;  %v1704_v0 = vld [vmem:[#allocation2 + $0x8b0] sm:$0xff]  ;;  %v10770_v4 = vcombine.low %v1836_v34, %v1840_v44  ;;  %v10763_v60 = vcombine.high %v1828_v5, %v1832_v3 }
 0x405   :  { %v12451_v9 = vadd.f32 %v8115_v27, %v8075_v7  ;;  %8369 = vmatpush1.bf16.msra.mxu0 %v10666_v55  ;;  %v10635_v56 = vcombine.high %v1700_v42, %v1704_v0  ;;  %v1696_v55 = vld [vmem:[#allocation2 + $0x870] sm:$0xff]  ;;  %v10762_v7 = vcombine.low %v1828_v5, %v1832_v3 }
 0x406   :  { %v8117_v24 = vpop.f32.mrf.mxu1  ;;  %v8077_v25 = vpop.f32.mrf.mxu0  ;;  %8370 = vmatprep.subr.bf16.mxu0 %v10659_v49  ;;  %v1820_v61 = vld [vmem:[#allocation2 + $0xc50] sm:$0xff]  ;;  %v10634_v49 = vcombine.low %v1700_v42, %v1704_v0  ;;  %v10627_v27 = vcombine.high %v1692_v62, %v1696_v55  ;;  %v10626_v6 = vcombine.low %v1692_v62, %v1696_v55 }
 0x407   :  { %8410 = vmatpush1.bf16.msra.mxu1 %v10794_v59  ;;  %v1824_v59 = vld [vmem:[#allocation2 + $0xc70] sm:$0xff] }
 0x408   :  { %v8118_v14 = vpop.f32.mrf.mxu1  ;;  %8411 = vmatprep.subr.bf16.mxu1 %v10787_v21  ;;  %v10755_v21 = vcombine.high %v1820_v61, %v1824_v59  ;;  %v1688_v13 = vld [vmem:[#allocation2 + $0x830] sm:$0xff]  ;;  %v10754_v24 = vcombine.low %v1820_v61, %v1824_v59 }
 0x409   :  { %8371 = vmatpush1.bf16.msra.mxu0 %v10658_v37  ;;  %v1812_v30 = vld [vmem:[#allocation2 + $0xc10] sm:$0xff]  ;;  %v10619_v37 = vcombine.high %v1684_v31, %v1688_v13  ;;  %v10618_v17 = vcombine.low %v1684_v31, %v1688_v13 }
 0x40a   :  { %8372 = vmatprep.subr.bf16.mxu0 %v10651_v33  ;;  %v1816_v1 = vld [vmem:[#allocation2 + $0xc30] sm:$0xff] }
 0x40b   :  { %8412 = vmatpush1.bf16.msra.mxu1 %v10786_v15  ;;  %v10747_v25 = vcombine.high %v1812_v30, %v1816_v1  ;;  %v1804_v15 = vld [vmem:[#allocation2 + $0xbd0] sm:$0xff]  ;;  %v10746_v19 = vcombine.low %v1812_v30, %v1816_v1 }
 0x40c   :  { %8413 = vmatprep.subr.bf16.mxu1 %v10779_v39  ;;  %v1808_v33 = vld [vmem:[#allocation2 + $0xbf0] sm:$0xff] }
 0x40d   :  { %8373 = vmatpush1.bf16.msra.mxu0 %v10650_v47  ;;  %v1932_v14 = vld [vmem:[#allocation2 + $0xfd0] sm:$0xff]  ;;  %v10739_v34 = vcombine.high %v1804_v15, %v1808_v33  ;;  %v10738_v42 = vcombine.low %v1804_v15, %v1808_v33 }
 0x40e   :  { %8374 = vmatprep.subr.bf16.mxu0 %v10643_v36  ;;  %v1936_v39 = vld [vmem:[#allocation2 + $0xff0] sm:$0xff] }
 0x40f   :  { %8414 = vmatpush1.bf16.msra.mxu1 %v10778_v48  ;;  %v10867_v44 = vcombine.high %v1932_v14, %v1936_v39  ;;  %v1796_v47 = vld [vmem:[#allocation2 + $0xb90] sm:$0xff]  ;;  %v10866_v0 = vcombine.low %v1932_v14, %v1936_v39 }
 0x410   :  { %8415 = vmatprep.subr.bf16.mxu1 %v10771_v18  ;;  %v1800_v48 = vld [vmem:[#allocation2 + $0xbb0] sm:$0xff] }
 0x411   :  { %8375 = vmatpush1.bf16.msra.mxu0 %v10642_v58  ;;  %v1924_v36 = vld [vmem:[#allocation2 + $0xf90] sm:$0xff]  ;;  %v10731_v5 = vcombine.high %v1796_v47, %v1800_v48  ;;  %v10730_v62 = vcombine.low %v1796_v47, %v1800_v48 }
 0x412   :  { %8376 = vmatprep.subr.bf16.mxu0 %v10635_v56  ;;  %v1928_v18 = vld [vmem:[#allocation2 + $0xfb0] sm:$0xff] }
 0x413   :  { %8416 = vmatpush1.bf16.msra.mxu1 %v10770_v4  ;;  %v10859_v3 = vcombine.high %v1924_v36, %v1928_v18  ;;  %v1788_v58 = vld [vmem:[#allocation2 + $0xb50] sm:$0xff]  ;;  %v10858_v55 = vcombine.low %v1924_v36, %v1928_v18 }
 0x414   :  { %8417 = vmatprep.subr.bf16.mxu1 %v10763_v60  ;;  %v1792_v4 = vld [vmem:[#allocation2 + $0xb70] sm:$0xff] }
 0x415   :  { %8377 = vmatpush1.bf16.msra.mxu0 %v10634_v49  ;;  %v1916_v56 = vld [vmem:[#allocation2 + $0xf50] sm:$0xff]  ;;  %v10723_v61 = vcombine.high %v1788_v58, %v1792_v4  ;;  %v10722_v31 = vcombine.low %v1788_v58, %v1792_v4 }
 0x416   :  { %8378 = vmatprep.subr.bf16.mxu0 %v10627_v27  ;;  %v1920_v60 = vld [vmem:[#allocation2 + $0xf70] sm:$0xff] }
 0x417   :  { %8418 = vmatpush1.bf16.msra.mxu1 %v10762_v7  ;;  %v10851_v59 = vcombine.high %v1916_v56, %v1920_v60  ;;  %v1780_v49 = vld [vmem:[#allocation2 + $0xb10] sm:$0xff]  ;;  %v10850_v13 = vcombine.low %v1916_v56, %v1920_v60 }
 0x418   :  { %8419 = vmatprep.subr.bf16.mxu1 %v10755_v21  ;;  %v1784_v7 = vld [vmem:[#allocation2 + $0xb30] sm:$0xff] }
 0x419   :  { %8379 = vmatpush1.bf16.msra.mxu0 %v10626_v6  ;;  %v1908_v27 = vld [vmem:[#allocation2 + $0xf10] sm:$0xff]  ;;  %v10715_v30 = vcombine.high %v1780_v49, %v1784_v7  ;;  %v10714_v15 = vcombine.low %v1780_v49, %v1784_v7 }
 0x41a   :  { %8380 = vmatprep.subr.bf16.mxu0 %v10619_v37  ;;  %v1912_v21 = vld [vmem:[#allocation2 + $0xf30] sm:$0xff] }
 0x41b   :  { %8420 = vmatpush1.bf16.msra.mxu1 %v10754_v24  ;;  %v10843_v1 = vcombine.high %v1908_v27, %v1912_v21  ;;  %v1772_v6 = vld [vmem:[#allocation2 + $0xad0] sm:$0xff]  ;;  %v10842_v33 = vcombine.low %v1908_v27, %v1912_v21 }
 0x41c   :  { %8421 = vmatprep.subr.bf16.mxu1 %v10747_v25  ;;  %v1776_v24 = vld [vmem:[#allocation2 + $0xaf0] sm:$0xff] }
 0x41d   :  { %8381 = vmatpush1.bf16.msra.mxu0 %v10618_v17  ;;  %v1900_v37 = vld [vmem:[#allocation2 + $0xed0] sm:$0xff]  ;;  %v10707_v14 = vcombine.high %v1772_v6, %v1776_v24  ;;  %v10706_v47 = vcombine.low %v1772_v6, %v1776_v24 }
 0x41e   :  { %8382 = vmatprep.subr.bf16.mxu0 %v10739_v34  ;;  %v1904_v25 = vld [vmem:[#allocation2 + $0xef0] sm:$0xff] }
 0x41f   :  { %8422 = vmatpush1.bf16.msra.mxu1 %v10746_v19  ;;  %v10835_v39 = vcombine.high %v1900_v37, %v1904_v25  ;;  %v1764_v17 = vld [vmem:[#allocation2 + $0xa90] sm:$0xff]  ;;  %v10834_v48 = vcombine.low %v1900_v37, %v1904_v25 }
 0x420   :  { %8423 = vmatprep.subr.bf16.mxu1 %v10867_v44  ;;  %v1768_v19 = vld [vmem:[#allocation2 + $0xab0] sm:$0xff] }
 0x421   :  { %8383 = vmatpush2.bf16.msra.mxu0 %v10738_v42  ;;  %v1892_v34 = vld [vmem:[#allocation2 + $0xe90] sm:$0xff]  ;;  %v10699_v36 = vcombine.high %v1764_v17, %v1768_v19  ;;  %v10698_v58 = vcombine.low %v1764_v17, %v1768_v19 }
 0x422   :  { %8384 = vmatprep.subr.bf16.mxu0 %v10731_v5  ;;  %v1896_v44 = vld [vmem:[#allocation2 + $0xeb0] sm:$0xff] }
 0x423   :  { %8424 = vmatpush2.bf16.msra.mxu1 %v10866_v0  ;;  %v10827_v18 = vcombine.high %v1892_v34, %v1896_v44  ;;  %v1756_v42 = vld [vmem:[#allocation2 + $0xa50] sm:$0xff]  ;;  %v10826_v4 = vcombine.low %v1892_v34, %v1896_v44 }
 0x424   :  { %8425 = vmatprep.subr.bf16.mxu1 %v10859_v3  ;;  %v1760_v0 = vld [vmem:[#allocation2 + $0xa70] sm:$0xff] }
 0x425   :  { %8385 = vmatpush2.bf16.msra.mxu0 %v10730_v62  ;;  %v1884_v5 = vld [vmem:[#allocation2 + $0xe50] sm:$0xff]  ;;  %v10691_v56 = vcombine.high %v1756_v42, %v1760_v0  ;;  %v10690_v49 = vcombine.low %v1756_v42, %v1760_v0 }
 0x426   :  { %8386 = vmatprep.subr.bf16.mxu0 %v10723_v61  ;;  %v1888_v3 = vld [vmem:[#allocation2 + $0xe70] sm:$0xff] }
 0x427   :  { %8426 = vmatpush2.bf16.msra.mxu1 %v10858_v55  ;;  %v10819_v60 = vcombine.high %v1884_v5, %v1888_v3  ;;  %v1748_v62 = vld [vmem:[#allocation2 + $0xa10] sm:$0xff]  ;;  %v10818_v7 = vcombine.low %v1884_v5, %v1888_v3 }
 0x428   :  { %8427 = vmatprep.subr.bf16.mxu1 %v10851_v59  ;;  %v1752_v55 = vld [vmem:[#allocation2 + $0xa30] sm:$0xff] }
 0x429   :  { %8387 = vmatpush2.bf16.msra.mxu0 %v10722_v31  ;;  %v1876_v61 = vld [vmem:[#allocation2 + $0xe10] sm:$0xff]  ;;  %v10683_v27 = vcombine.high %v1748_v62, %v1752_v55  ;;  %v10682_v6 = vcombine.low %v1748_v62, %v1752_v55 }
 0x42a   :  { %8388 = vmatprep.subr.bf16.mxu0 %v10715_v30  ;;  %v1880_v59 = vld [vmem:[#allocation2 + $0xe30] sm:$0xff] }
 0x42b   :  { %8428 = vmatpush2.bf16.msra.mxu1 %v10850_v13  ;;  %v10811_v21 = vcombine.high %v1876_v61, %v1880_v59  ;;  %v1996_v31 = vld [vmem:[#allocation2 + $0x11d0] sm:$0xff]  ;;  %v10810_v24 = vcombine.low %v1876_v61, %v1880_v59 }
 0x42c   :  { %8429 = vmatprep.subr.bf16.mxu1 %v10843_v1  ;;  %v2000_v13 = vld [vmem:[#allocation2 + $0x11f0] sm:$0xff] }
 0x42d   :  { %8389 = vmatpush2.bf16.msra.mxu0 %v10714_v15  ;;  %v2124_v30 = vld [vmem:[#allocation2 + $0x15d0] sm:$0xff]  ;;  %v10931_v37 = vcombine.high %v1996_v31, %v2000_v13  ;;  %v10930_v17 = vcombine.low %v1996_v31, %v2000_v13 }
 0x42e   :  { %8390 = vmatprep.subr.bf16.mxu0 %v10707_v14  ;;  %v2128_v1 = vld [vmem:[#allocation2 + $0x15f0] sm:$0xff] }
 0x42f   :  { %8430 = vmatpush2.bf16.msra.mxu1 %v10842_v33  ;;  %v11059_v25 = vcombine.high %v2124_v30, %v2128_v1  ;;  %v1988_v15 = vld [vmem:[#allocation2 + $0x1190] sm:$0xff]  ;;  %v11058_v19 = vcombine.low %v2124_v30, %v2128_v1 }
 0x430   :  { %8431 = vmatprep.subr.bf16.mxu1 %v10835_v39  ;;  %v1992_v33 = vld [vmem:[#allocation2 + $0x11b0] sm:$0xff] }
 0x431   :  { %8391 = vmatpush2.bf16.msra.mxu0 %v10706_v47  ;;  %v2116_v14 = vld [vmem:[#allocation2 + $0x1590] sm:$0xff]  ;;  %v10923_v34 = vcombine.high %v1988_v15, %v1992_v33  ;;  %v10922_v3 = vcombine.low %v1988_v15, %v1992_v33 }
 0x432   :  { %8392 = vmatprep.subr.bf16.mxu0 %v10699_v36  ;;  %v2120_v39 = vld [vmem:[#allocation2 + $0x15b0] sm:$0xff] }
 0x433   :  { %8432 = vmatpush2.bf16.msra.mxu1 %v10834_v48  ;;  %v11051_v44 = vcombine.high %v2116_v14, %v2120_v39  ;;  %v1980_v47 = vld [vmem:[#allocation2 + $0x1150] sm:$0xff] }
 0x434   :  { %8433 = vmatprep.subr.bf16.mxu1 %v10827_v18  ;;  %v1984_v48 = vld [vmem:[#allocation2 + $0x1170] sm:$0xff] }
 0x435   :  { %8393 = vmatpush2.bf16.msra.mxu0 %v10698_v58  ;;  %v2108_v18 = vld [vmem:[#allocation2 + $0x1550] sm:$0xff]  ;;  %v10914_v13 = vcombine.low %v1980_v47, %v1984_v48 }
 0x436   :  { %8394 = vmatprep.subr.bf16.mxu0 %v10691_v56  ;;  %v2112_v42 = vld [vmem:[#allocation2 + $0x1570] sm:$0xff]  ;;  %v10915_v56 = vcombine.high %v1980_v47, %v1984_v48 }
 0x437   :  { %8434 = vmatpush2.bf16.msra.mxu1 %v10826_v4  ;;  %v11050_v4 = vcombine.low %v2116_v14, %v2120_v39  ;;  %v11043_v61 = vcombine.high %v2108_v18, %v2112_v42  ;;  %v1972_v59 = vld [vmem:[#allocation2 + $0x1110] sm:$0xff] }
 0x438   :  { %8435 = vmatprep.subr.bf16.mxu1 %v10819_v60  ;;  %v2092_v15 = vld [vmem:[#allocation2 + $0x14d0] sm:$0xff] }
 0x439   :  { %8395 = vmatpush2.bf16.msra.mxu0 %v10690_v49  ;;  %v1976_v49 = vld [vmem:[#allocation2 + $0x1130] sm:$0xff] }
 0x43a   :  { %8396 = vmatprep.subr.bf16.mxu0 %v10683_v27  ;;  %v2104_v27 = vld [vmem:[#allocation2 + $0x1530] sm:$0xff]  ;;  %v10907_v1 = vcombine.high %v1972_v59, %v1976_v49  ;;  %v10906_v14 = vcombine.low %v1972_v59, %v1976_v49 }
 0x43b   :  { %8436 = vmatpush2.bf16.msra.mxu1 %v10818_v7  ;;  %v2100_v7 = vld [vmem:[#allocation2 + $0x1510] sm:$0xff] }
 0x43c   :  { %8437 = vmatprep.subr.bf16.mxu1 %v10811_v21  ;;  %v2096_v33 = vld [vmem:[#allocation2 + $0x14f0] sm:$0xff]  ;;  %v11034_v39 = vcombine.low %v2100_v7, %v2104_v27 }
 0x43d   :  { %8397 = vmatpush2.bf16.msra.mxu0 %v10682_v6  ;;  %v2084_v47 = vld [vmem:[#allocation2 + $0x1490] sm:$0xff] }
 0x43e   :  { %8448 = vmatprep.subr.bf16.mxu0 %v10931_v37  ;;  %v1964_v37 = vld [vmem:[#allocation2 + $0x10d0] sm:$0xff] }
 0x43f   :  { %8438 = vmatpush2.bf16.msra.mxu1 %v10810_v24  ;;  %v11035_v24 = vcombine.high %v2100_v7, %v2104_v27  ;;  %v2088_v48 = vld [vmem:[#allocation2 + $0x14b0] sm:$0xff] }
 0x440   :  { %8489 = vmatprep.subr.bf16.mxu1 %v11059_v25  ;;  %v8154_v36 = vpop.f32.mrf.mxu0  ;;  %8399 = vmatmul.mubr.bf16.vlgmr.msra.gmra.mxu0 %v12336_v38  ;;  %v1968_v25 = vld [vmem:[#allocation2 + $0x10f0] sm:$0xff] }
 0x441   :  { %v8155_v0 = vadd.f32 %v8154_v36, %v12446_v57  ;;  %8449 = vmatpush1.bf16.msra.mxu0 %v10930_v17  ;;  %8480 = vmatprep.mubr.bf16.mxu0 %v12346_v63  ;;  %v10899_v17 = vcombine.high %v1964_v37, %v1968_v25  ;;  %v10898_v36 = vcombine.low %v1964_v37, %v1968_v25  ;;  %v1940_v59 = vld [vmem:[#allocation2 + $0x1010] sm:$0xff] }
 0x442   :  { %v8195_v5 = vpop.f32.mrf.mxu1  ;;  %8440 = vmatmul.mubr.bf16.vlgmr.msra.gmra.mxu1 %v12341_v45  ;;  %v8156_v58 = vpop.f32.mrf.mxu0  ;;  %8450 = vmatprep.subr.bf16.mxu0 %v10923_v34  ;;  %v1956_v34 = vld [vmem:[#allocation2 + $0x1090] sm:$0xff] }
 0x443   :  { %8490 = vmatpush1.bf16.msra.mxu1 %v11058_v19  ;;  %v12456_v60 = vadd.f32 %v8195_v5, %v8155_v0  ;;  %v8157_v62 = vadd.f32 %v8156_v58, %v12451_v9  ;;  %8521 = vmatprep.mubr.bf16.mxu1 %v12352_v2  ;;  %v11042_v9 = vcombine.low %v2108_v18, %v2112_v42  ;;  %v1948_v5 = vld [vmem:[#allocation2 + $0x1050] sm:$0xff] }
 0x444   :  { %v8197_v55 = vpop.f32.mrf.mxu1  ;;  %8491 = vmatprep.subr.bf16.mxu1 %v11051_v44  ;;  %v8158_v57 = vpop.f32.mrf.mxu0  ;;  %v11027_v19 = vcombine.high %v2092_v15, %v2096_v33  ;;  %v1960_v44 = vld [vmem:[#allocation2 + $0x10b0] sm:$0xff]  ;;  %v11026_v18 = vcombine.low %v2092_v15, %v2096_v33  ;;  %v11019_v0 = vcombine.high %v2084_v47, %v2088_v48 }
 0x445   :  { %v12461_v21 = vadd.f32 %v8197_v55, %v8157_v62  ;;  %8451 = vmatpush1.bf16.msra.mxu0 %v10922_v3  ;;  %v10891_v42 = vcombine.high %v1956_v34, %v1960_v44  ;;  %v1952_v3 = vld [vmem:[#allocation2 + $0x1070] sm:$0xff]  ;;  %v11018_v62 = vcombine.low %v2084_v47, %v2088_v48 }
 0x446   :  { %v8199_v31 = vpop.f32.mrf.mxu1  ;;  %v8159_v30 = vpop.f32.mrf.mxu0  ;;  %8452 = vmatprep.subr.bf16.mxu0 %v10915_v56  ;;  %v2076_v58 = vld [vmem:[#allocation2 + $0x1450] sm:$0xff]  ;;  %v10890_v56 = vcombine.low %v1956_v34, %v1960_v44  ;;  %v10883_v55 = vcombine.high %v1948_v5, %v1952_v3  ;;  %v10882_v27 = vcombine.low %v1948_v5, %v1952_v3 }
 0x447   :  { %8492 = vmatpush1.bf16.msra.mxu1 %v11050_v4  ;;  %v2080_v4 = vld [vmem:[#allocation2 + $0x1470] sm:$0xff] }
 0x448   :  { %v8200_v6 = vpop.f32.mrf.mxu1  ;;  %8493 = vmatprep.subr.bf16.mxu1 %v11043_v61  ;;  %v11011_v61 = vcombine.high %v2076_v58, %v2080_v4  ;;  %v1944_v49 = vld [vmem:[#allocation2 + $0x1030] sm:$0xff]  ;;  %v11010_v31 = vcombine.low %v2076_v58, %v2080_v4 }
 0x449   :  { %8453 = vmatpush1.bf16.msra.mxu0 %v10914_v13  ;;  %v2068_v57 = vld [vmem:[#allocation2 + $0x1410] sm:$0xff]  ;;  %v10875_v13 = vcombine.high %v1940_v59, %v1944_v49  ;;  %v10874_v37 = vcombine.low %v1940_v59, %v1944_v49 }
 0x44a   :  { %8454 = vmatprep.subr.bf16.mxu0 %v10907_v1  ;;  %v2072_v7 = vld [vmem:[#allocation2 + $0x1430] sm:$0xff] }
 0x44b   :  { %8494 = vmatpush1.bf16.msra.mxu1 %v11042_v9  ;;  %v11003_v30 = vcombine.high %v2068_v57, %v2072_v7  ;;  %v2060_v9 = vld [vmem:[#allocation2 + $0x13d0] sm:$0xff]  ;;  %v11002_v25 = vcombine.low %v2068_v57, %v2072_v7 }
 0x44c   :  { %8495 = vmatprep.subr.bf16.mxu1 %v11035_v24  ;;  %v2064_v1 = vld [vmem:[#allocation2 + $0x13f0] sm:$0xff] }
 0x44d   :  { %8455 = vmatpush1.bf16.msra.mxu0 %v10906_v14  ;;  %v2188_v6 = vld [vmem:[#allocation2 + $0x17d0] sm:$0xff]  ;;  %v10995_v15 = vcombine.high %v2060_v9, %v2064_v1  ;;  %v10994_v34 = vcombine.low %v2060_v9, %v2064_v1 }
 0x44e   :  { %8456 = vmatprep.subr.bf16.mxu0 %v10899_v17  ;;  %v2192_v24 = vld [vmem:[#allocation2 + $0x17f0] sm:$0xff] }
 0x44f   :  { %8496 = vmatpush1.bf16.msra.mxu1 %v11034_v39  ;;  %v11123_v33 = vcombine.high %v2188_v6, %v2192_v24  ;;  %v2052_v14 = vld [vmem:[#allocation2 + $0x1390] sm:$0xff]  ;;  %v11122_v44 = vcombine.low %v2188_v6, %v2192_v24 }
 0x450   :  { %8497 = vmatprep.subr.bf16.mxu1 %v11027_v19  ;;  %v2056_v39 = vld [vmem:[#allocation2 + $0x13b0] sm:$0xff] }
 0x451   :  { %8457 = vmatpush1.bf16.msra.mxu0 %v10898_v36  ;;  %v2180_v17 = vld [vmem:[#allocation2 + $0x1790] sm:$0xff]  ;;  %v10987_v47 = vcombine.high %v2052_v14, %v2056_v39  ;;  %v10986_v5 = vcombine.low %v2052_v14, %v2056_v39 }
 0x452   :  { %8458 = vmatprep.subr.bf16.mxu0 %v10891_v42  ;;  %v2184_v19 = vld [vmem:[#allocation2 + $0x17b0] sm:$0xff] }
 0x453   :  { %8498 = vmatpush1.bf16.msra.mxu1 %v11026_v18  ;;  %v11115_v48 = vcombine.high %v2180_v17, %v2184_v19  ;;  %v2044_v36 = vld [vmem:[#allocation2 + $0x1350] sm:$0xff]  ;;  %v11114_v3 = vcombine.low %v2180_v17, %v2184_v19 }
 0x454   :  { %8499 = vmatprep.subr.bf16.mxu1 %v11019_v0  ;;  %v2048_v18 = vld [vmem:[#allocation2 + $0x1370] sm:$0xff] }
 0x455   :  { %8459 = vmatpush1.bf16.msra.mxu0 %v10890_v56  ;;  %v2172_v42 = vld [vmem:[#allocation2 + $0x1750] sm:$0xff]  ;;  %v10979_v58 = vcombine.high %v2044_v36, %v2048_v18  ;;  %v10978_v59 = vcombine.low %v2044_v36, %v2048_v18 }
 0x456   :  { %8460 = vmatprep.subr.bf16.mxu0 %v10883_v55  ;;  %v2176_v0 = vld [vmem:[#allocation2 + $0x1770] sm:$0xff] }
 0x457   :  { %8500 = vmatpush1.bf16.msra.mxu1 %v11018_v62  ;;  %v11107_v4 = vcombine.high %v2172_v42, %v2176_v0  ;;  %v2036_v56 = vld [vmem:[#allocation2 + $0x1310] sm:$0xff]  ;;  %v11106_v49 = vcombine.low %v2172_v42, %v2176_v0 }
 0x458   :  { %8501 = vmatprep.subr.bf16.mxu1 %v11011_v61  ;;  %v2040_v62 = vld [vmem:[#allocation2 + $0x1330] sm:$0xff] }
 0x459   :  { %8461 = vmatpush1.bf16.msra.mxu0 %v10882_v27  ;;  %v2164_v55 = vld [vmem:[#allocation2 + $0x1710] sm:$0xff]  ;;  %v10971_v57 = vcombine.high %v2036_v56, %v2040_v62  ;;  %v10970_v9 = vcombine.low %v2036_v56, %v2040_v62 }
 0x45a   :  { %8462 = vmatprep.subr.bf16.mxu0 %v10875_v13  ;;  %v2168_v61 = vld [vmem:[#allocation2 + $0x1730] sm:$0xff] }
 0x45b   :  { %8502 = vmatpush1.bf16.msra.mxu1 %v11010_v31  ;;  %v11099_v7 = vcombine.high %v2164_v55, %v2168_v61  ;;  %v2028_v27 = vld [vmem:[#allocation2 + $0x12d0] sm:$0xff]  ;;  %v11098_v1 = vcombine.low %v2164_v55, %v2168_v61 }
 0x45c   :  { %8503 = vmatprep.subr.bf16.mxu1 %v11003_v30  ;;  %v2032_v31 = vld [vmem:[#allocation2 + $0x12f0] sm:$0xff] }
 0x45d   :  { %8463 = vmatpush1.bf16.msra.mxu0 %v10874_v37  ;;  %v2156_v13 = vld [vmem:[#allocation2 + $0x16d0] sm:$0xff]  ;;  %v10963_v6 = vcombine.high %v2028_v27, %v2032_v31  ;;  %v10962_v14 = vcombine.low %v2028_v27, %v2032_v31 }
 0x45e   :  { %8464 = vmatprep.subr.bf16.mxu0 %v10995_v15  ;;  %v2160_v30 = vld [vmem:[#allocation2 + $0x16f0] sm:$0xff] }
 0x45f   :  { %8504 = vmatpush1.bf16.msra.mxu1 %v11002_v25  ;;  %v11091_v24 = vcombine.high %v2156_v13, %v2160_v30  ;;  %v2020_v37 = vld [vmem:[#allocation2 + $0x1290] sm:$0xff]  ;;  %v11090_v39 = vcombine.low %v2156_v13, %v2160_v30 }
 0x460   :  { %8505 = vmatprep.subr.bf16.mxu1 %v11123_v33  ;;  %v2024_v25 = vld [vmem:[#allocation2 + $0x12b0] sm:$0xff] }
 0x461   :  { %8465 = vmatpush2.bf16.msra.mxu0 %v10994_v34  ;;  %v2148_v15 = vld [vmem:[#allocation2 + $0x1690] sm:$0xff]  ;;  %v10955_v17 = vcombine.high %v2020_v37, %v2024_v25  ;;  %v10954_v36 = vcombine.low %v2020_v37, %v2024_v25 }
 0x462   :  { %8466 = vmatprep.subr.bf16.mxu0 %v10987_v47  ;;  %v2152_v33 = vld [vmem:[#allocation2 + $0x16b0] sm:$0xff] }
 0x463   :  { %8506 = vmatpush2.bf16.msra.mxu1 %v11122_v44  ;;  %v11083_v19 = vcombine.high %v2148_v15, %v2152_v33  ;;  %v2012_v34 = vld [vmem:[#allocation2 + $0x1250] sm:$0xff]  ;;  %v11082_v18 = vcombine.low %v2148_v15, %v2152_v33 }
 0x464   :  { %8507 = vmatprep.subr.bf16.mxu1 %v11115_v48  ;;  %v2016_v44 = vld [vmem:[#allocation2 + $0x1270] sm:$0xff] }
 0x465   :  { %8467 = vmatpush2.bf16.msra.mxu0 %v10986_v5  ;;  %v2140_v47 = vld [vmem:[#allocation2 + $0x1650] sm:$0xff]  ;;  %v10947_v42 = vcombine.high %v2012_v34, %v2016_v44  ;;  %v10946_v56 = vcombine.low %v2012_v34, %v2016_v44 }
 0x466   :  { %8468 = vmatprep.subr.bf16.mxu0 %v10979_v58  ;;  %v2144_v48 = vld [vmem:[#allocation2 + $0x1670] sm:$0xff] }
 0x467   :  { %8508 = vmatpush2.bf16.msra.mxu1 %v11114_v3  ;;  %v11075_v0 = vcombine.high %v2140_v47, %v2144_v48  ;;  %v2004_v5 = vld [vmem:[#allocation2 + $0x1210] sm:$0xff]  ;;  %v11074_v62 = vcombine.low %v2140_v47, %v2144_v48 }
 0x468   :  { %8509 = vmatprep.subr.bf16.mxu1 %v11107_v4  ;;  %v2008_v3 = vld [vmem:[#allocation2 + $0x1230] sm:$0xff] }
 0x469   :  { %8469 = vmatpush2.bf16.msra.mxu0 %v10978_v59  ;;  %v2132_v58 = vld [vmem:[#allocation2 + $0x1610] sm:$0xff]  ;;  %v10939_v55 = vcombine.high %v2004_v5, %v2008_v3  ;;  %v10938_v27 = vcombine.low %v2004_v5, %v2008_v3 }
 0x46a   :  { %8470 = vmatprep.subr.bf16.mxu0 %v10971_v57  ;;  %v2136_v4 = vld [vmem:[#allocation2 + $0x1630] sm:$0xff] }
 0x46b   :  { %8510 = vmatpush2.bf16.msra.mxu1 %v11106_v49  ;;  %v11067_v61 = vcombine.high %v2132_v58, %v2136_v4  ;;  %v2252_v59 = vld [vmem:[#allocation2 + $0x19d0] sm:$0xff]  ;;  %v11066_v31 = vcombine.low %v2132_v58, %v2136_v4 }
 0x46c   :  { %8511 = vmatprep.subr.bf16.mxu1 %v11099_v7  ;;  %v2256_v49 = vld [vmem:[#allocation2 + $0x19f0] sm:$0xff] }
 0x46d   :  { %8471 = vmatpush2.bf16.msra.mxu0 %v10970_v9  ;;  %v2380_v57 = vld [vmem:[#allocation2 + $0x1dd0] sm:$0xff]  ;;  %v11187_v13 = vcombine.high %v2252_v59, %v2256_v49  ;;  %v11186_v37 = vcombine.low %v2252_v59, %v2256_v49 }
 0x46e   :  { %8472 = vmatprep.subr.bf16.mxu0 %v10963_v6  ;;  %v2384_v7 = vld [vmem:[#allocation2 + $0x1df0] sm:$0xff] }
 0x46f   :  { %8512 = vmatpush2.bf16.msra.mxu1 %v11098_v1  ;;  %v11315_v30 = vcombine.high %v2380_v57, %v2384_v7  ;;  %v2244_v9 = vld [vmem:[#allocation2 + $0x1990] sm:$0xff]  ;;  %v11314_v25 = vcombine.low %v2380_v57, %v2384_v7 }
 0x470   :  { %8513 = vmatprep.subr.bf16.mxu1 %v11091_v24  ;;  %v2248_v1 = vld [vmem:[#allocation2 + $0x19b0] sm:$0xff] }
 0x471   :  { %8473 = vmatpush2.bf16.msra.mxu0 %v10962_v14  ;;  %v2372_v6 = vld [vmem:[#allocation2 + $0x1d90] sm:$0xff]  ;;  %v11179_v15 = vcombine.high %v2244_v9, %v2248_v1  ;;  %v11178_v48 = vcombine.low %v2244_v9, %v2248_v1 }
 0x472   :  { %8474 = vmatprep.subr.bf16.mxu0 %v10955_v17  ;;  %v2376_v24 = vld [vmem:[#allocation2 + $0x1db0] sm:$0xff] }
 0x473   :  { %8514 = vmatpush2.bf16.msra.mxu1 %v11090_v39  ;;  %v11307_v33 = vcombine.high %v2372_v6, %v2376_v24  ;;  %v2236_v14 = vld [vmem:[#allocation2 + $0x1950] sm:$0xff] }
 0x474   :  { %8515 = vmatprep.subr.bf16.mxu1 %v11083_v19  ;;  %v2240_v39 = vld [vmem:[#allocation2 + $0x1970] sm:$0xff] }
 0x475   :  { %8475 = vmatpush2.bf16.msra.mxu0 %v10954_v36  ;;  %v2364_v19 = vld [vmem:[#allocation2 + $0x1d50] sm:$0xff]  ;;  %v11170_v57 = vcombine.low %v2236_v14, %v2240_v39 }
 0x476   :  { %8476 = vmatprep.subr.bf16.mxu0 %v10947_v42  ;;  %v2368_v34 = vld [vmem:[#allocation2 + $0x1d70] sm:$0xff]  ;;  %v11171_v42 = vcombine.high %v2236_v14, %v2240_v39 }
 0x477   :  { %8516 = vmatpush2.bf16.msra.mxu1 %v11082_v18  ;;  %v11306_v18 = vcombine.low %v2372_v6, %v2376_v24  ;;  %v11299_v58 = vcombine.high %v2364_v19, %v2368_v34  ;;  %v2228_v4 = vld [vmem:[#allocation2 + $0x1910] sm:$0xff]  ;;  %v11298_v7 = vcombine.low %v2364_v19, %v2368_v34 }
 0x478   :  { %8517 = vmatprep.subr.bf16.mxu1 %v11075_v0  ;;  %v2220_v9 = vld [vmem:[#allocation2 + $0x18d0] sm:$0xff] }
 0x479   :  { %8477 = vmatpush2.bf16.msra.mxu0 %v10946_v56  ;;  %v2232_v56 = vld [vmem:[#allocation2 + $0x1930] sm:$0xff] }
 0x47a   :  { %8478 = vmatprep.subr.bf16.mxu0 %v10939_v55  ;;  %v2360_v55 = vld [vmem:[#allocation2 + $0x1d30] sm:$0xff] }
 0x47b   :  { %8518 = vmatpush2.bf16.msra.mxu1 %v11074_v62  ;;  %v2356_v62 = vld [vmem:[#allocation2 + $0x1d10] sm:$0xff] }
 0x47c   :  { %8519 = vmatprep.subr.bf16.mxu1 %v11067_v61  ;;  %v2224_v1 = vld [vmem:[#allocation2 + $0x18f0] sm:$0xff] }
 0x47d   :  { %8479 = vmatpush2.bf16.msra.mxu0 %v10938_v27  ;;  %v11163_v27 = vcombine.high %v2228_v4, %v2232_v56  ;;  %v2348_v6 = vld [vmem:[#allocation2 + $0x1cd0] sm:$0xff]  ;;  %v11154_v34 = vcombine.low %v2220_v9, %v2224_v1 }
 0x47e   :  { %8530 = vmatprep.subr.bf16.mxu0 %v11187_v13  ;;  %v2352_v24 = vld [vmem:[#allocation2 + $0x1cf0] sm:$0xff] }
 0x47f   :  { %8520 = vmatpush2.bf16.msra.mxu1 %v11066_v31  ;;  %v2212_v14 = vld [vmem:[#allocation2 + $0x1890] sm:$0xff] }
 0x480   :  { %8571 = vmatprep.subr.bf16.mxu1 %v11315_v30  ;;  %v8236_v17 = vpop.f32.mrf.mxu0  ;;  %8481 = vmatmul.mubr.bf16.vlgmr.msra.gmra.mxu0 %v12360_v41  ;;  %v11291_v30 = vcombine.high %v2356_v62, %v2360_v55  ;;  %v2216_v39 = vld [vmem:[#allocation2 + $0x18b0] sm:$0xff] }
 0x481   :  { %v8237_v44 = vadd.f32 %v8236_v17, %v12456_v60  ;;  %8531 = vmatpush1.bf16.msra.mxu0 %v11186_v37  ;;  %8562 = vmatprep.mubr.bf16.mxu0 %v12370_v20  ;;  %v11162_v37 = vcombine.low %v2228_v4, %v2232_v56  ;;  %v2340_v17 = vld [vmem:[#allocation2 + $0x1c90] sm:$0xff] }
 0x482   :  { %v8277_v47 = vpop.f32.mrf.mxu1  ;;  %8522 = vmatmul.mubr.bf16.vlgmr.msra.gmra.mxu1 %v12365_v35  ;;  %v8238_v36 = vpop.f32.mrf.mxu0  ;;  %8532 = vmatprep.subr.bf16.mxu0 %v11179_v15  ;;  %v11155_v15 = vcombine.high %v2220_v9, %v2224_v1  ;;  %v2344_v19 = vld [vmem:[#allocation2 + $0x1cb0] sm:$0xff] }
 0x483   :  { %8572 = vmatpush1.bf16.msra.mxu1 %v11314_v25  ;;  %v12466_v0 = vadd.f32 %v8277_v47, %v8237_v44  ;;  %v8239_v5 = vadd.f32 %v8238_v36, %v12461_v21  ;;  %8603 = vmatprep.mubr.bf16.mxu1 %v12376_v23  ;;  %v11290_v25 = vcombine.low %v2356_v62, %v2360_v55  ;;  %v2204_v36 = vld [vmem:[#allocation2 + $0x1850] sm:$0xff] }
 0x484   :  { %v8279_v3 = vpop.f32.mrf.mxu1  ;;  %8573 = vmatprep.subr.bf16.mxu1 %v11307_v33  ;;  %v8240_v60 = vpop.f32.mrf.mxu0  ;;  %v11283_v33 = vcombine.high %v2348_v6, %v2352_v24  ;;  %v11282_v44 = vcombine.low %v2348_v6, %v2352_v24  ;;  %v11147_v47 = vcombine.high %v2212_v14, %v2216_v39  ;;  %v2200_v62 = vld [vmem:[#allocation2 + $0x1830] sm:$0xff] }
 0x485   :  { %v8942_v61 = vmax.f32 %v12466_v0, 0.0  ;;  %v12472_v59 = vadd.f32 %v8279_v3, %v8239_v5  ;;  %8533 = vmatpush1.bf16.msra.mxu0 %v11178_v48  ;;  %v11275_v48 = vcombine.high %v2340_v17, %v2344_v19  ;;  %v2336_v5 = vld [vmem:[#allocation2 + $0x1c70] sm:$0xff]  ;;  %v11146_v3 = vcombine.low %v2212_v14, %v2216_v39 }
 0x486   :  { %v8281_v49 = vpop.f32.mrf.mxu1  ;;  %v8241_v21 = vpop.f32.mrf.mxu0  ;;  %8534 = vmatprep.subr.bf16.mxu0 %v11171_v42  ;;  %v2332_v42 = vld [vmem:[#allocation2 + $0x1c50] sm:$0xff] }
 0x487   :  { %8574 = vmatpush1.bf16.msra.mxu1 %v11306_v18  ;;  %v8943_v31 = vmax.f32 %v12472_v59, 0.0  ;;  %v2208_v18 = vld [vmem:[#allocation2 + $0x1870] sm:$0xff]  ;;  %v11267_v56 = vcombine.high %v2332_v42, %v2336_v5  ;;  %v11266_v21 = vcombine.low %v2332_v42, %v2336_v5 }
 0x488   :  { %v8282_v13 = vpop.f32.mrf.mxu1  ;;  %8575 = vmatprep.subr.bf16.mxu1 %v11299_v58  ;;  %v11274_v58 = vcombine.low %v2340_v17, %v2344_v19  ;;  %v11139_v4 = vcombine.high %v2204_v36, %v2208_v18  ;;  %v2196_v60 = vld [vmem:[#allocation2 + $0x1810] sm:$0xff] }
 0x489   :  { %8535 = vmatpush1.bf16.msra.mxu0 %v11170_v57  ;;  %v2324_v55 = vld [vmem:[#allocation2 + $0x1c10] sm:$0xff]  ;;  %v11138_v57 = vcombine.low %v2204_v36, %v2208_v18  ;;  %v11130_v6 = vcombine.low %v2196_v60, %v2200_v62 }
 0x48a   :  { %8536 = vmatprep.subr.bf16.mxu0 %v11163_v27  ;;  %v2328_v49 = vld [vmem:[#allocation2 + $0x1c30] sm:$0xff] }
 0x48b   :  { %8576 = vmatpush1.bf16.msra.mxu1 %v11298_v7  ;;  %v11131_v7 = vcombine.high %v2196_v60, %v2200_v62  ;;  %v11259_v27 = vcombine.high %v2324_v55, %v2328_v49  ;;  %v2316_v13 = vld [vmem:[#allocation2 + $0x1bd0] sm:$0xff]  ;;  %v11258_v24 = vcombine.low %v2324_v55, %v2328_v49 }
 0x48c   :  { %8577 = vmatprep.subr.bf16.mxu1 %v11291_v30  ;;  %v2320_v30 = vld [vmem:[#allocation2 + $0x1bf0] sm:$0xff] }
 0x48d   :  { %8537 = vmatpush1.bf16.msra.mxu0 %v11162_v37  ;;  %v2444_v9 = vld [vmem:[#allocation2 + $0x1fd0] sm:$0xff]  ;;  %v11251_v37 = vcombine.high %v2316_v13, %v2320_v30  ;;  %v11250_v17 = vcombine.low %v2316_v13, %v2320_v30 }
 0x48e   :  { %8538 = vmatprep.subr.bf16.mxu0 %v11155_v15  ;;  %v2448_v1 = vld [vmem:[#allocation2 + $0x1ff0] sm:$0xff] }
 0x48f   :  { %8578 = vmatpush1.bf16.msra.mxu1 %v11290_v25  ;;  %v11379_v25 = vcombine.high %v2444_v9, %v2448_v1  ;;  %v2308_v15 = vld [vmem:[#allocation2 + $0x1b90] sm:$0xff]  ;;  %v11378_v19 = vcombine.low %v2444_v9, %v2448_v1 }
 0x490   :  { %8579 = vmatprep.subr.bf16.mxu1 %v11283_v33  ;;  %v2312_v33 = vld [vmem:[#allocation2 + $0x1bb0] sm:$0xff] }
 0x491   :  { %8539 = vmatpush1.bf16.msra.mxu0 %v11154_v34  ;;  %v2436_v14 = vld [vmem:[#allocation2 + $0x1f90] sm:$0xff]  ;;  %v11243_v34 = vcombine.high %v2308_v15, %v2312_v33  ;;  %v11242_v42 = vcombine.low %v2308_v15, %v2312_v33 }
 0x492   :  { %8540 = vmatprep.subr.bf16.mxu0 %v11147_v47  ;;  %v2440_v39 = vld [vmem:[#allocation2 + $0x1fb0] sm:$0xff] }
 0x493   :  { %8580 = vmatpush1.bf16.msra.mxu1 %v11282_v44  ;;  %v11371_v44 = vcombine.high %v2436_v14, %v2440_v39  ;;  %v2300_v47 = vld [vmem:[#allocation2 + $0x1b50] sm:$0xff]  ;;  %v11370_v5 = vcombine.low %v2436_v14, %v2440_v39 }
 0x494   :  { %8581 = vmatprep.subr.bf16.mxu1 %v11275_v48  ;;  %v2304_v48 = vld [vmem:[#allocation2 + $0x1b70] sm:$0xff] }
 0x495   :  { %8541 = vmatpush1.bf16.msra.mxu0 %v11146_v3  ;;  %v2428_v36 = vld [vmem:[#allocation2 + $0x1f50] sm:$0xff]  ;;  %v11235_v3 = vcombine.high %v2300_v47, %v2304_v48  ;;  %v11234_v55 = vcombine.low %v2300_v47, %v2304_v48 }
 0x496   :  { %8542 = vmatprep.subr.bf16.mxu0 %v11139_v4  ;;  %v2432_v18 = vld [vmem:[#allocation2 + $0x1f70] sm:$0xff] }
 0x497   :  { %8582 = vmatpush1.bf16.msra.mxu1 %v11274_v58  ;;  %v11363_v58 = vcombine.high %v2428_v36, %v2432_v18  ;;  %v2292_v4 = vld [vmem:[#allocation2 + $0x1b10] sm:$0xff]  ;;  %v11362_v49 = vcombine.low %v2428_v36, %v2432_v18 }
 0x498   :  { %8583 = vmatprep.subr.bf16.mxu1 %v11267_v56  ;;  %v2296_v56 = vld [vmem:[#allocation2 + $0x1b30] sm:$0xff] }
 0x499   :  { %8543 = vmatpush1.bf16.msra.mxu0 %v11138_v57  ;;  %v2420_v60 = vld [vmem:[#allocation2 + $0x1f10] sm:$0xff]  ;;  %v11227_v57 = vcombine.high %v2292_v4, %v2296_v56  ;;  %v11226_v9 = vcombine.low %v2292_v4, %v2296_v56 }
 0x49a   :  { %8544 = vmatprep.subr.bf16.mxu0 %v11131_v7  ;;  %v2424_v62 = vld [vmem:[#allocation2 + $0x1f30] sm:$0xff] }
 0x49b   :  { %8584 = vmatpush1.bf16.msra.mxu1 %v11266_v21  ;;  %v11355_v21 = vcombine.high %v2420_v60, %v2424_v62  ;;  %v2284_v7 = vld [vmem:[#allocation2 + $0x1ad0] sm:$0xff]  ;;  %v11354_v1 = vcombine.low %v2420_v60, %v2424_v62 }
 0x49c   :  { %8585 = vmatprep.subr.bf16.mxu1 %v11259_v27  ;;  %v2288_v27 = vld [vmem:[#allocation2 + $0x1af0] sm:$0xff] }
 0x49d   :  { %8545 = vmatpush1.bf16.msra.mxu0 %v11130_v6  ;;  %v2412_v13 = vld [vmem:[#allocation2 + $0x1ed0] sm:$0xff]  ;;  %v11219_v6 = vcombine.high %v2284_v7, %v2288_v27  ;;  %v11218_v14 = vcombine.low %v2284_v7, %v2288_v27  ;;  %v1613_v7 = vld [vmem:[#allocation2 + $0x5d8] sm:$0xff] }
 0x49e   :  { %8546 = vmatprep.subr.bf16.mxu0 %v11251_v37  ;;  %v2416_v30 = vld [vmem:[#allocation2 + $0x1ef0] sm:$0xff]  ;;  %v1617_v27 = vld [vmem:[#allocation2 + $0x5f8] sm:$0xff] }
 0x49f   :  { %8586 = vmatpush1.bf16.msra.mxu1 %v11258_v24  ;;  %v11347_v24 = vcombine.high %v2412_v13, %v2416_v30  ;;  %v2276_v37 = vld [vmem:[#allocation2 + $0x1a90] sm:$0xff]  ;;  %v11346_v39 = vcombine.low %v2412_v13, %v2416_v30 }
 0x4a0   :  { %8587 = vmatprep.subr.bf16.mxu1 %v11379_v25  ;;  %v2280_v25 = vld [vmem:[#allocation2 + $0x1ab0] sm:$0xff] }
 0x4a1   :  { %8547 = vmatpush2.bf16.msra.mxu0 %v11250_v17  ;;  %v2404_v15 = vld [vmem:[#allocation2 + $0x1e90] sm:$0xff]  ;;  %v11211_v17 = vcombine.high %v2276_v37, %v2280_v25  ;;  %v11210_v36 = vcombine.low %v2276_v37, %v2280_v25  ;;  %v1605_v37 = vld [vmem:[#allocation2 + $0x598] sm:$0xff] }
 0x4a2   :  { %8548 = vmatprep.subr.bf16.mxu0 %v11243_v34  ;;  %v2408_v33 = vld [vmem:[#allocation2 + $0x1eb0] sm:$0xff]  ;;  %v1609_v25 = vld [vmem:[#allocation2 + $0x5b8] sm:$0xff] }
 0x4a3   :  { %8588 = vmatpush2.bf16.msra.mxu1 %v11378_v19  ;;  %v11339_v19 = vcombine.high %v2404_v15, %v2408_v33  ;;  %v2268_v34 = vld [vmem:[#allocation2 + $0x1a50] sm:$0xff]  ;;  %v11338_v18 = vcombine.low %v2404_v15, %v2408_v33  ;;  %v11593_v15 = vld [vmem:[#allocation13] sm:$0xff] }
 0x4a4   :  { %8589 = vmatprep.subr.bf16.mxu1 %v11371_v44  ;;  %v2272_v44 = vld [vmem:[#allocation2 + $0x1a70] sm:$0xff]  ;;  %v2487_v33 = vrot.slane %v11593_v15, %v12241_v51 }
 0x4a5   :  { %8549 = vmatpush2.bf16.msra.mxu0 %v11242_v42  ;;  %v2396_v47 = vld [vmem:[#allocation2 + $0x1e50] sm:$0xff]  ;;  %v11203_v42 = vcombine.high %v2268_v34, %v2272_v44  ;;  %v11202_v60 = vcombine.low %v2268_v34, %v2272_v44  ;;  %v10541_v34 = vcombine.high %v1605_v37, %v1609_v25  ;;  %v1469_v44 = vld [vmem:[#allocation2 + $0x158] sm:$0xff] }
 0x4a6   :  { %8550 = vmatprep.subr.bf16.mxu0 %v11235_v3  ;;  %v2400_v48 = vld [vmem:[#allocation2 + $0x1e70] sm:$0xff] }
 0x4a7   :  { %8590 = vmatpush2.bf16.msra.mxu1 %v11370_v5  ;;  %v11331_v5 = vcombine.high %v2396_v47, %v2400_v48  ;;  %v2260_v3 = vld [vmem:[#allocation2 + $0x1a10] sm:$0xff]  ;;  %v11330_v62 = vcombine.low %v2396_v47, %v2400_v48  ;;  %v1473_v47 = vld [vmem:[#allocation2 + $0x178] sm:$0xff] }
 0x4a8   :  { %8591 = vmatprep.subr.bf16.mxu1 %v11363_v58  ;;  %v2264_v58 = vld [vmem:[#allocation2 + $0x1a30] sm:$0xff] }
 0x4a9   :  { %8551 = vmatpush2.bf16.msra.mxu0 %v11234_v55  ;;  %v2388_v4 = vld [vmem:[#allocation2 + $0x1e10] sm:$0xff]  ;;  %v11195_v55 = vcombine.high %v2260_v3, %v2264_v58  ;;  %v11194_v13 = vcombine.low %v2260_v3, %v2264_v58  ;;  %v10540_v58 = vcombine.low %v1605_v37, %v1609_v25  ;;  %v1453_v25 = vld [vmem:[#allocation2 + $0xd8] sm:$0xff] }
 0x4aa   :  { %8552 = vmatprep.subr.bf16.mxu0 %v11227_v57  ;;  %v2392_v56 = vld [vmem:[#allocation2 + $0x1e30] sm:$0xff]  ;;  %v1485_v57 = vld [vmem:[#allocation2 + $0x1d8] sm:$0xff] }
 0x4ab   :  { %8592 = vmatpush2.bf16.msra.mxu1 %v11362_v49  ;;  %v11323_v49 = vcombine.high %v2388_v4, %v2392_v56  ;;  %v11322_v30 = vcombine.low %v2388_v4, %v2392_v56  ;;  %v10405_v4 = vcombine.high %v1469_v44, %v1473_v47 }
 0x4ac   :  { %8593 = vmatprep.subr.bf16.mxu1 %v11355_v21  ;;  %v1489_v21 = vld [vmem:[#allocation2 + $0x1f8] sm:$0xff] }
 0x4ad   :  { %8553 = vmatpush2.bf16.msra.mxu0 %v11226_v9  ;;  %v10421_v9 = vcombine.high %v1485_v57, %v1489_v21 }
 0x4ae   :  { %8554 = vmatprep.subr.bf16.mxu0 %v11219_v6  ;;  %v1477_v6 = vld [vmem:[#allocation2 + $0x198] sm:$0xff] }
 0x4af   :  { %8594 = vmatpush2.bf16.msra.mxu1 %v11354_v1  ;;  %v10549_v1 = vcombine.high %v1613_v7, %v1617_v27 }
 0x4b0   :  { %8595 = vmatprep.subr.bf16.mxu1 %v11347_v24  ;;  %v1481_v24 = vld [vmem:[#allocation2 + $0x1b8] sm:$0xff] }
 0x4b1   :  { %8555 = vmatpush2.bf16.msra.mxu0 %v11218_v14  ;;  %v10420_v14 = vcombine.low %v1485_v57, %v1489_v21  ;;  %v10412_v51 = vcombine.low %v1477_v6, %v1481_v24  ;;  %v1589_v21 = vld [vmem:[#allocation2 + $0x518] sm:$0xff] }
 0x4b2   :  { %8556 = vmatprep.subr.bf16.mxu0 %v11211_v17  ;;  %v10413_v17 = vcombine.high %v1477_v6, %v1481_v24 }
 0x4b3   :  { %8596 = vmatpush2.bf16.msra.mxu1 %v11346_v39  ;;  %v10548_v39 = vcombine.low %v1613_v7, %v1617_v27  ;;  %v1593_v7 = vld [vmem:[#allocation2 + $0x538] sm:$0xff] }
 0x4b4   :  { %8597 = vmatprep.subr.bf16.mxu1 %v11339_v19  ;;  %v2491_v19 = vrot.slane %v11593_v15, %v12245_v53  ;;  %v10525_v37 = vcombine.high %v1589_v21, %v1593_v7  ;;  %v1581_v15 = vld [vmem:[#allocation2 + $0x4d8] sm:$0xff] }
 0x4b5   :  { %8557 = vmatpush2.bf16.msra.mxu0 %v11210_v36  ;;  %v1597_v36 = vld [vmem:[#allocation2 + $0x558] sm:$0xff] }
 0x4b6   :  { %8558 = vmatprep.subr.bf16.mxu0 %v11203_v42 }
 0x4b7   :  { %8598 = vmatpush2.bf16.msra.mxu1 %v11338_v18  ;;  %v1601_v18 = vld [vmem:[#allocation2 + $0x578] sm:$0xff] }
 0x4b8   :  { %8599 = vmatprep.subr.bf16.mxu1 %v11331_v5 }
 0x4b9   :  { %8559 = vmatpush2.bf16.msra.mxu0 %v11202_v60 }
 0x4ba   :  { %8560 = vmatprep.subr.bf16.mxu0 %v11195_v55  ;;  %v1461_v55 = vld [vmem:[#allocation2 + $0x118] sm:$0xff] }
 0x4bb   :  { %8600 = vmatpush2.bf16.msra.mxu1 %v11330_v62  ;;  %v10533_v62 = vcombine.high %v1597_v36, %v1601_v18 }
 0x4bc   :  { %8601 = vmatprep.subr.bf16.mxu1 %v11323_v49  ;;  %v1465_v49 = vld [vmem:[#allocation2 + $0x138] sm:$0xff] }
 0x4bd   :  { %8561 = vmatpush2.bf16.msra.mxu0 %v11194_v13  ;;  %v10397_v6 = vcombine.high %v1461_v55, %v1465_v49 }
 0x4be   :  { %8612 = vmatprep.subr.bf16.mxu0 %v10421_v9 }
 0x4bf   :  { %8602 = vmatpush2.bf16.msra.mxu1 %v11322_v30  ;;  %v10404_v30 = vcombine.low %v1469_v44, %v1473_v47  ;;  %v1573_v44 = vld [vmem:[#allocation2 + $0x498] sm:$0xff] }
 0x4c0   :  { %8653 = vmatprep.subr.bf16.mxu1 %v10549_v1  ;;  %v8318_v48 = vpop.f32.mrf.mxu0  ;;  %8563 = vmatmul.mubr.bf16.vlgmr.msra.gmra.mxu0 %v12384_v50  ;;  %v10532_v1 = vcombine.low %v1597_v36, %v1601_v18  ;;  %v1577_v47 = vld [vmem:[#allocation2 + $0x4b8] sm:$0xff] }
 0x4c1   :  { %v8319_v42 = vadd.f32 %v8318_v48, %v2487_v33  ;;  %8613 = vmatpush1.bf16.msra.mxu0 %v10420_v14  ;;  %8644 = vmatprep.mubr.bf16.mxu0 %v12300_v11  ;;  %v1457_v11 = vld [vmem:[#allocation2 + $0xf8] sm:$0xff]  ;;  %v10396_v14 = vcombine.low %v1461_v55, %v1465_v49 }
 0x4c2   :  { %v8359_v5 = vpop.f32.mrf.mxu1  ;;  %8604 = vmatmul.mubr.bf16.vlgmr.msra.gmra.mxu1 %v12390_v8  ;;  %v8320_v3 = vpop.f32.mrf.mxu0  ;;  %8614 = vmatprep.subr.bf16.mxu0 %v10413_v17  ;;  %v1585_v33 = vld [vmem:[#allocation2 + $0x4f8] sm:$0xff]  ;;  %v10388_v48 = vcombine.low %v1453_v25, %v1457_v11 }
 0x4c3   :  { %8654 = vmatpush1.bf16.msra.mxu1 %v10548_v39  ;;  %v12479_v53 = vadd.f32 %v8359_v5, %v8319_v42  ;;  %v8321_v56 = vadd.f32 %v8320_v3, %v2491_v19  ;;  %8685 = vmatprep.mubr.bf16.mxu1 %v12305_v12  ;;  %v10524_v12 = vcombine.low %v1589_v21, %v1593_v7  ;;  %v1445_v19 = vld [vmem:[#allocation2 + $0x98] sm:$0xff] }
 0x4c4   :  { %v8361_v60 = vpop.f32.mrf.mxu1  ;;  %8655 = vmatprep.subr.bf16.mxu1 %v10541_v34  ;;  %v8322_v57 = vpop.f32.mrf.mxu0  ;;  %v10389_v39 = vcombine.high %v1453_v25, %v1457_v11  ;;  %v10517_v17 = vcombine.high %v1581_v15, %v1585_v33  ;;  %v1449_v34 = vld [vmem:[#allocation2 + $0xb8] sm:$0xff]  ;;  %v10516_v36 = vcombine.low %v1581_v15, %v1585_v33  ;;  %v10509_v42 = vcombine.high %v1573_v44, %v1577_v47 }
 0x4c5   :  { %v12483_v27 = vadd.f32 %v8361_v60, %v8321_v56  ;;  %8615 = vmatpush1.bf16.msra.mxu0 %v10412_v51  ;;  %v10381_v18 = vcombine.high %v1445_v19, %v1449_v34  ;;  %v1437_v5 = vld [vmem:[#allocation2 + $0x58] sm:$0xff]  ;;  %v10508_v56 = vcombine.low %v1573_v44, %v1577_v47 }
 0x4c6   :  { %v8363_v13 = vpop.f32.mrf.mxu1  ;;  %v8323_v9 = vpop.f32.mrf.mxu0  ;;  %8616 = vmatprep.subr.bf16.mxu0 %v10405_v4  ;;  %v1441_v51 = vld [vmem:[#allocation2 + $0x78] sm:$0xff]  ;;  %v10380_v4 = vcombine.low %v1445_v19, %v1449_v34 }
 0x4c7   :  { %8656 = vmatpush1.bf16.msra.mxu1 %v10540_v58  ;;  %v1565_v3 = vld [vmem:[#allocation2 + $0x458] sm:$0xff]  ;;  %v10373_v60 = vcombine.high %v1437_v5, %v1441_v51  ;;  %v10372_v7 = vcombine.low %v1437_v5, %v1441_v51 }
 0x4c8   :  { %v8364_v24 = vpop.f32.mrf.mxu1  ;;  %8657 = vmatprep.subr.bf16.mxu1 %v10533_v62  ;;  %v1569_v58 = vld [vmem:[#allocation2 + $0x478] sm:$0xff] }
 0x4c9   :  { %8617 = vmatpush1.bf16.msra.mxu0 %v10404_v30  ;;  %v10501_v62 = vcombine.high %v1565_v3, %v1569_v58  ;;  %v1429_v55 = vld [vmem:[#allocation2 + $0x18] sm:$0xff]  ;;  %v10500_v13 = vcombine.low %v1565_v3, %v1569_v58 }
 0x4ca   :  { %8618 = vmatprep.subr.bf16.mxu0 %v10397_v6  ;;  %v1433_v49 = vld [vmem:[#allocation2 + $0x38] sm:$0xff] }
 0x4cb   :  { %8658 = vmatpush1.bf16.msra.mxu1 %v10532_v1  ;;  %v1557_v57 = vld [vmem:[#allocation2 + $0x418] sm:$0xff]  ;;  %v10365_v30 = vcombine.high %v1429_v55, %v1433_v49  ;;  %v10364_v25 = vcombine.low %v1429_v55, %v1433_v49 }
 0x4cc   :  { %8659 = vmatprep.subr.bf16.mxu1 %v10525_v37  ;;  %v1561_v21 = vld [vmem:[#allocation2 + $0x438] sm:$0xff] }
 0x4cd   :  { %8619 = vmatpush1.bf16.msra.mxu0 %v10396_v14  ;;  %v10493_v9 = vcombine.high %v1557_v57, %v1561_v21  ;;  %v1549_v1 = vld [vmem:[#allocation2 + $0x3d8] sm:$0xff]  ;;  %v10492_v11 = vcombine.low %v1557_v57, %v1561_v21 }
 0x4ce   :  { %8620 = vmatprep.subr.bf16.mxu0 %v10389_v39  ;;  %v1553_v6 = vld [vmem:[#allocation2 + $0x3f8] sm:$0xff] }
 0x4cf   :  { %8660 = vmatpush1.bf16.msra.mxu1 %v10524_v12  ;;  %v1677_v24 = vld [vmem:[#allocation2 + $0x7d8] sm:$0xff]  ;;  %v10485_v15 = vcombine.high %v1549_v1, %v1553_v6  ;;  %v10484_v19 = vcombine.low %v1549_v1, %v1553_v6 }
 0x4d0   :  { %8661 = vmatprep.subr.bf16.mxu1 %v10517_v17  ;;  %v1681_v37 = vld [vmem:[#allocation2 + $0x7f8] sm:$0xff] }
 0x4d1   :  { %8621 = vmatpush1.bf16.msra.mxu0 %v10388_v48  ;;  %v10613_v33 = vcombine.high %v1677_v24, %v1681_v37  ;;  %v1541_v14 = vld [vmem:[#allocation2 + $0x398] sm:$0xff]  ;;  %v10612_v34 = vcombine.low %v1677_v24, %v1681_v37 }
 0x4d2   :  { %8622 = vmatprep.subr.bf16.mxu0 %v10381_v18  ;;  %v1545_v12 = vld [vmem:[#allocation2 + $0x3b8] sm:$0xff] }
 0x4d3   :  { %8662 = vmatpush1.bf16.msra.mxu1 %v10516_v36  ;;  %v1669_v39 = vld [vmem:[#allocation2 + $0x798] sm:$0xff]  ;;  %v10477_v44 = vcombine.high %v1541_v14, %v1545_v12  ;;  %v10476_v5 = vcombine.low %v1541_v14, %v1545_v12 }
 0x4d4   :  { %8663 = vmatprep.subr.bf16.mxu1 %v10509_v42  ;;  %v1673_v17 = vld [vmem:[#allocation2 + $0x7b8] sm:$0xff] }
 0x4d5   :  { %8623 = vmatpush1.bf16.msra.mxu0 %v10380_v4  ;;  %v10605_v47 = vcombine.high %v1669_v39, %v1673_v17  ;;  %v1533_v48 = vld [vmem:[#allocation2 + $0x358] sm:$0xff]  ;;  %v10604_v51 = vcombine.low %v1669_v39, %v1673_v17 }
 0x4d6   :  { %8624 = vmatprep.subr.bf16.mxu0 %v10373_v60  ;;  %v1537_v36 = vld [vmem:[#allocation2 + $0x378] sm:$0xff] }
 0x4d7   :  { %8664 = vmatpush1.bf16.msra.mxu1 %v10508_v56  ;;  %v1661_v18 = vld [vmem:[#allocation2 + $0x758] sm:$0xff]  ;;  %v10469_v3 = vcombine.high %v1533_v48, %v1537_v36  ;;  %v10468_v55 = vcombine.low %v1533_v48, %v1537_v36 }
 0x4d8   :  { %8665 = vmatprep.subr.bf16.mxu1 %v10501_v62  ;;  %v1665_v42 = vld [vmem:[#allocation2 + $0x778] sm:$0xff] }
 0x4d9   :  { %8625 = vmatpush1.bf16.msra.mxu0 %v10372_v7  ;;  %v10597_v58 = vcombine.high %v1661_v18, %v1665_v42  ;;  %v1525_v4 = vld [vmem:[#allocation2 + $0x318] sm:$0xff]  ;;  %v10596_v49 = vcombine.low %v1661_v18, %v1665_v42 }
 0x4da   :  { %8626 = vmatprep.subr.bf16.mxu0 %v10365_v30  ;;  %v1529_v56 = vld [vmem:[#allocation2 + $0x338] sm:$0xff] }
 0x4db   :  { %8666 = vmatpush1.bf16.msra.mxu1 %v10500_v13  ;;  %v1653_v60 = vld [vmem:[#allocation2 + $0x718] sm:$0xff]  ;;  %v10461_v57 = vcombine.high %v1525_v4, %v1529_v56  ;;  %v10460_v1 = vcombine.low %v1525_v4, %v1529_v56 }
 0x4dc   :  { %8667 = vmatprep.subr.bf16.mxu1 %v10493_v9  ;;  %v1657_v62 = vld [vmem:[#allocation2 + $0x738] sm:$0xff] }
 0x4dd   :  { %8627 = vmatpush1.bf16.msra.mxu0 %v10364_v25  ;;  %v10589_v21 = vcombine.high %v1653_v60, %v1657_v62  ;;  %v1517_v7 = vld [vmem:[#allocation2 + $0x2d8] sm:$0xff]  ;;  %v10588_v6 = vcombine.low %v1653_v60, %v1657_v62 }
 0x4de   :  { %8628 = vmatprep.subr.bf16.mxu0 %v10485_v15  ;;  %v1521_v13 = vld [vmem:[#allocation2 + $0x2f8] sm:$0xff] }
 0x4df   :  { %8668 = vmatpush1.bf16.msra.mxu1 %v10492_v11  ;;  %v1645_v30 = vld [vmem:[#allocation2 + $0x6d8] sm:$0xff]  ;;  %v10453_v24 = vcombine.high %v1517_v7, %v1521_v13  ;;  %v10452_v14 = vcombine.low %v1517_v7, %v1521_v13 }
 0x4e0   :  { %8669 = vmatprep.subr.bf16.mxu1 %v10613_v33  ;;  %v1649_v9 = vld [vmem:[#allocation2 + $0x6f8] sm:$0xff] }
 0x4e1   :  { %8629 = vmatpush2.bf16.msra.mxu0 %v10484_v19  ;;  %v10581_v37 = vcombine.high %v1645_v30, %v1649_v9  ;;  %v1509_v25 = vld [vmem:[#allocation2 + $0x298] sm:$0xff]  ;;  %v10580_v12 = vcombine.low %v1645_v30, %v1649_v9 }
 0x4e2   :  { %8630 = vmatprep.subr.bf16.mxu0 %v10477_v44  ;;  %v1513_v11 = vld [vmem:[#allocation2 + $0x2b8] sm:$0xff] }
 0x4e3   :  { %8670 = vmatpush2.bf16.msra.mxu1 %v10612_v34  ;;  %v1637_v15 = vld [vmem:[#allocation2 + $0x698] sm:$0xff]  ;;  %v10445_v39 = vcombine.high %v1509_v25, %v1513_v11  ;;  %v10444_v48 = vcombine.low %v1509_v25, %v1513_v11 }
 0x4e4   :  { %8671 = vmatprep.subr.bf16.mxu1 %v10605_v47  ;;  %v1641_v33 = vld [vmem:[#allocation2 + $0x6b8] sm:$0xff] }
 0x4e5   :  { %8631 = vmatpush2.bf16.msra.mxu0 %v10476_v5  ;;  %v10573_v17 = vcombine.high %v1637_v15, %v1641_v33  ;;  %v1501_v19 = vld [vmem:[#allocation2 + $0x258] sm:$0xff]  ;;  %v10572_v36 = vcombine.low %v1637_v15, %v1641_v33 }
 0x4e6   :  { %8632 = vmatprep.subr.bf16.mxu0 %v10469_v3  ;;  %v1505_v34 = vld [vmem:[#allocation2 + $0x278] sm:$0xff] }
 0x4e7   :  { %8672 = vmatpush2.bf16.msra.mxu1 %v10604_v51  ;;  %v1629_v44 = vld [vmem:[#allocation2 + $0x658] sm:$0xff]  ;;  %v10437_v18 = vcombine.high %v1501_v19, %v1505_v34  ;;  %v10436_v4 = vcombine.low %v1501_v19, %v1505_v34 }
 0x4e8   :  { %8673 = vmatprep.subr.bf16.mxu1 %v10597_v58  ;;  %v1633_v47 = vld [vmem:[#allocation2 + $0x678] sm:$0xff] }
 0x4e9   :  { %8633 = vmatpush2.bf16.msra.mxu0 %v10468_v55  ;;  %v10565_v42 = vcombine.high %v1629_v44, %v1633_v47  ;;  %v1493_v5 = vld [vmem:[#allocation2 + $0x218] sm:$0xff]  ;;  %v10564_v56 = vcombine.low %v1629_v44, %v1633_v47 }
 0x4ea   :  { %8634 = vmatprep.subr.bf16.mxu0 %v10461_v57  ;;  %v1497_v51 = vld [vmem:[#allocation2 + $0x238] sm:$0xff] }
 0x4eb   :  { %8674 = vmatpush2.bf16.msra.mxu1 %v10596_v49  ;;  %v1621_v3 = vld [vmem:[#allocation2 + $0x618] sm:$0xff]  ;;  %v10429_v60 = vcombine.high %v1493_v5, %v1497_v51  ;;  %v10428_v7 = vcombine.low %v1493_v5, %v1497_v51 }
 0x4ec   :  { %8675 = vmatprep.subr.bf16.mxu1 %v10589_v21  ;;  %v1625_v58 = vld [vmem:[#allocation2 + $0x638] sm:$0xff] }
 0x4ed   :  { %8635 = vmatpush2.bf16.msra.mxu0 %v10460_v1  ;;  %v10557_v62 = vcombine.high %v1621_v3, %v1625_v58  ;;  %v1741_v55 = vld [vmem:[#allocation2 + $0x9d8] sm:$0xff]  ;;  %v10556_v13 = vcombine.low %v1621_v3, %v1625_v58 }
 0x4ee   :  { %8636 = vmatprep.subr.bf16.mxu0 %v10453_v24  ;;  %v1745_v49 = vld [vmem:[#allocation2 + $0x9f8] sm:$0xff] }
 0x4ef   :  { %8676 = vmatpush2.bf16.msra.mxu1 %v10588_v6  ;;  %v1869_v57 = vld [vmem:[#allocation2 + $0xdd8] sm:$0xff]  ;;  %v10677_v30 = vcombine.high %v1741_v55, %v1745_v49  ;;  %v10676_v25 = vcombine.low %v1741_v55, %v1745_v49 }
 0x4f0   :  { %8677 = vmatprep.subr.bf16.mxu1 %v10581_v37  ;;  %v1873_v21 = vld [vmem:[#allocation2 + $0xdf8] sm:$0xff] }
 0x4f1   :  { %8637 = vmatpush2.bf16.msra.mxu0 %v10452_v14  ;;  %v10805_v9 = vcombine.high %v1869_v57, %v1873_v21  ;;  %v1733_v1 = vld [vmem:[#allocation2 + $0x998] sm:$0xff]  ;;  %v10804_v11 = vcombine.low %v1869_v57, %v1873_v21 }
 0x4f2   :  { %8638 = vmatprep.subr.bf16.mxu0 %v10445_v39  ;;  %v1737_v6 = vld [vmem:[#allocation2 + $0x9b8] sm:$0xff] }
 0x4f3   :  { %8678 = vmatpush2.bf16.msra.mxu1 %v10580_v12  ;;  %v1861_v24 = vld [vmem:[#allocation2 + $0xd98] sm:$0xff]  ;;  %v10669_v15 = vcombine.high %v1733_v1, %v1737_v6  ;;  %v10668_v47 = vcombine.low %v1733_v1, %v1737_v6 }
 0x4f4   :  { %8679 = vmatprep.subr.bf16.mxu1 %v10573_v17  ;;  %v1865_v37 = vld [vmem:[#allocation2 + $0xdb8] sm:$0xff] }
 0x4f5   :  { %8639 = vmatpush2.bf16.msra.mxu0 %v10444_v48  ;;  %v10797_v33 = vcombine.high %v1861_v24, %v1865_v37  ;;  %v1725_v14 = vld [vmem:[#allocation2 + $0x958] sm:$0xff] }
 0x4f6   :  { %8640 = vmatprep.subr.bf16.mxu0 %v10437_v18  ;;  %v1729_v12 = vld [vmem:[#allocation2 + $0x978] sm:$0xff] }
 0x4f7   :  { %8680 = vmatpush2.bf16.msra.mxu1 %v10572_v36  ;;  %v1853_v17 = vld [vmem:[#allocation2 + $0xd58] sm:$0xff]  ;;  %v10796_v36 = vcombine.low %v1861_v24, %v1865_v37  ;;  %v10661_v18 = vcombine.high %v1725_v14, %v1729_v12 }
 0x4f8   :  { %8681 = vmatprep.subr.bf16.mxu1 %v10565_v42  ;;  %v1857_v19 = vld [vmem:[#allocation2 + $0xd78] sm:$0xff] }
 0x4f9   :  { %8641 = vmatpush2.bf16.msra.mxu0 %v10436_v4  ;;  %v1717_v3 = vld [vmem:[#allocation2 + $0x918] sm:$0xff] }
 0x4fa   :  { %8642 = vmatprep.subr.bf16.mxu0 %v10429_v60  ;;  %v1721_v58 = vld [vmem:[#allocation2 + $0x938] sm:$0xff] }
 0x4fb   :  { %8682 = vmatpush2.bf16.msra.mxu1 %v10564_v56  ;;  %v1849_v4 = vld [vmem:[#allocation2 + $0xd38] sm:$0xff]  ;;  %v10653_v49 = vcombine.high %v1717_v3, %v1721_v58 }
 0x4fc   :  { %8683 = vmatprep.subr.bf16.mxu1 %v10557_v62  ;;  %v10660_v62 = vcombine.low %v1725_v14, %v1729_v12  ;;  %v1701_v24 = vld [vmem:[#allocation2 + $0x898] sm:$0xff] }
 0x4fd   :  { %8643 = vmatpush2.bf16.msra.mxu0 %v10428_v7  ;;  %v1709_v7 = vld [vmem:[#allocation2 + $0x8d8] sm:$0xff] }
 0x4fe   :  { %8694 = vmatprep.subr.bf16.mxu0 %v10677_v30  ;;  %v1841_v30 = vld [vmem:[#allocation2 + $0xcf8] sm:$0xff] }
 0x4ff   :  { %8684 = vmatpush2.bf16.msra.mxu1 %v10556_v13  ;;  %v1837_v13 = vld [vmem:[#allocation2 + $0xcd8] sm:$0xff] }
 0x500   :  { %8735 = vmatprep.subr.bf16.mxu1 %v10805_v9  ;;  %v8400_v39 = vpop.f32.mrf.mxu0  ;;  %8645 = vmatmul.mubr.bf16.vlgmr.msra.gmra.mxu0 %v12312_v28  ;;  %v10789_v28 = vcombine.high %v1853_v17, %v1857_v19  ;;  %v10652_v9 = vcombine.low %v1717_v3, %v1721_v58  ;;  %v10773_v6 = vcombine.high %v1837_v13, %v1841_v30  ;;  %v1705_v37 = vld [vmem:[#allocation2 + $0x8b8] sm:$0xff] }
 0x501   :  { %v8401_v34 = vadd.f32 %v8400_v39, %v12479_v53  ;;  %8695 = vmatpush1.bf16.msra.mxu0 %v10676_v25  ;;  %8726 = vmatprep.mubr.bf16.mxu0 %v12322_v40  ;;  %v1713_v40 = vld [vmem:[#allocation2 + $0x8f8] sm:$0xff]  ;;  %v10637_v14 = vcombine.high %v1701_v24, %v1705_v37 }
 0x502   :  { %v8441_v44 = vpop.f32.mrf.mxu1  ;;  %8686 = vmatmul.mubr.bf16.vlgmr.msra.gmra.mxu1 %v12317_v46  ;;  %v8402_v48 = vpop.f32.mrf.mxu0  ;;  %8696 = vmatprep.subr.bf16.mxu0 %v10669_v15  ;;  %v1845_v46 = vld [vmem:[#allocation2 + $0xd18] sm:$0xff]  ;;  %v10645_v1 = vcombine.high %v1709_v7, %v1713_v40  ;;  %v10644_v15 = vcombine.low %v1709_v7, %v1713_v40 }
 0x503   :  { %8736 = vmatpush1.bf16.msra.mxu1 %v10804_v11  ;;  %v12488_v42 = vadd.f32 %v8441_v44, %v8401_v34  ;;  %v8403_v5 = vadd.f32 %v8402_v48, %v12483_v27  ;;  %8767 = vmatprep.mubr.bf16.mxu1 %v12328_v43  ;;  %v10788_v27 = vcombine.low %v1853_v17, %v1857_v19  ;;  %v1829_v25 = vld [vmem:[#allocation2 + $0xc98] sm:$0xff] }
 0x504   :  { %v8443_v51 = vpop.f32.mrf.mxu1  ;;  %8737 = vmatprep.subr.bf16.mxu1 %v10797_v33  ;;  %v8404_v53 = vpop.f32.mrf.mxu0  ;;  %v10781_v21 = vcombine.high %v1845_v46, %v1849_v4  ;;  %v10780_v43 = vcombine.low %v1845_v46, %v1849_v4  ;;  %v1833_v11 = vld [vmem:[#allocation2 + $0xcb8] sm:$0xff]  ;;  %v10772_v33 = vcombine.low %v1837_v13, %v1841_v30  ;;  %v10636_v44 = vcombine.low %v1701_v24, %v1705_v37 }
 0x505   :  { %v12493_v56 = vadd.f32 %v8443_v51, %v8403_v5  ;;  %8697 = vmatpush1.bf16.msra.mxu0 %v10668_v47  ;;  %v10765_v12 = vcombine.high %v1829_v25, %v1833_v11  ;;  %v1693_v39 = vld [vmem:[#allocation2 + $0x858] sm:$0xff]  ;;  %v10764_v47 = vcombine.low %v1829_v25, %v1833_v11 }
 0x506   :  { %v8445_v60 = vpop.f32.mrf.mxu1  ;;  %v8405_v55 = vpop.f32.mrf.mxu0  ;;  %8698 = vmatprep.subr.bf16.mxu0 %v10661_v18  ;;  %v1697_v17 = vld [vmem:[#allocation2 + $0x878] sm:$0xff] }
 0x507   :  { %8738 = vmatpush1.bf16.msra.mxu1 %v10796_v36  ;;  %v1821_v19 = vld [vmem:[#allocation2 + $0xc58] sm:$0xff]  ;;  %v10629_v48 = vcombine.high %v1693_v39, %v1697_v17  ;;  %v10628_v3 = vcombine.low %v1693_v39, %v1697_v17 }
 0x508   :  { %v8446_v57 = vpop.f32.mrf.mxu1  ;;  %8739 = vmatprep.subr.bf16.mxu1 %v10789_v28  ;;  %v1825_v34 = vld [vmem:[#allocation2 + $0xc78] sm:$0xff] }
 0x509   :  { %8699 = vmatpush1.bf16.msra.mxu0 %v10660_v62  ;;  %v10757_v36 = vcombine.high %v1821_v19, %v1825_v34  ;;  %v1685_v18 = vld [vmem:[#allocation2 + $0x818] sm:$0xff]  ;;  %v10756_v58 = vcombine.low %v1821_v19, %v1825_v34 }
 0x50a   :  { %8700 = vmatprep.subr.bf16.mxu0 %v10653_v49  ;;  %v1689_v5 = vld [vmem:[#allocation2 + $0x838] sm:$0xff] }
 0x50b   :  { %8740 = vmatpush1.bf16.msra.mxu1 %v10788_v27  ;;  %v1813_v51 = vld [vmem:[#allocation2 + $0xc18] sm:$0xff]  ;;  %v10621_v53 = vcombine.high %v1685_v18, %v1689_v5  ;;  %v10620_v27 = vcombine.low %v1685_v18, %v1689_v5 }
 0x50c   :  { %8741 = vmatprep.subr.bf16.mxu1 %v10781_v21  ;;  %v1817_v28 = vld [vmem:[#allocation2 + $0xc38] sm:$0xff] }
 0x50d   :  { %8701 = vmatpush1.bf16.msra.mxu0 %v10652_v9  ;;  %v10749_v46 = vcombine.high %v1813_v51, %v1817_v28  ;;  %v1805_v4 = vld [vmem:[#allocation2 + $0xbd8] sm:$0xff]  ;;  %v10748_v49 = vcombine.low %v1813_v51, %v1817_v28 }
 0x50e   :  { %8702 = vmatprep.subr.bf16.mxu0 %v10645_v1  ;;  %v1809_v60 = vld [vmem:[#allocation2 + $0xbf8] sm:$0xff] }
 0x50f   :  { %8742 = vmatpush1.bf16.msra.mxu1 %v10780_v43  ;;  %v1933_v62 = vld [vmem:[#allocation2 + $0xfd8] sm:$0xff]  ;;  %v10741_v57 = vcombine.high %v1805_v4, %v1809_v60  ;;  %v10740_v9 = vcombine.low %v1805_v4, %v1809_v60 }
 0x510   :  { %8743 = vmatprep.subr.bf16.mxu1 %v10773_v6  ;;  %v1937_v55 = vld [vmem:[#allocation2 + $0xff8] sm:$0xff] }
 0x511   :  { %8703 = vmatpush1.bf16.msra.mxu0 %v10644_v15  ;;  %v10869_v21 = vcombine.high %v1933_v62, %v1937_v55  ;;  %v1797_v7 = vld [vmem:[#allocation2 + $0xb98] sm:$0xff]  ;;  %v10868_v43 = vcombine.low %v1933_v62, %v1937_v55 }
 0x512   :  { %8704 = vmatprep.subr.bf16.mxu0 %v10637_v14  ;;  %v1801_v40 = vld [vmem:[#allocation2 + $0xbb8] sm:$0xff] }
 0x513   :  { %8744 = vmatpush1.bf16.msra.mxu1 %v10772_v33  ;;  %v1925_v13 = vld [vmem:[#allocation2 + $0xf98] sm:$0xff]  ;;  %v10733_v1 = vcombine.high %v1797_v7, %v1801_v40  ;;  %v10732_v15 = vcombine.low %v1797_v7, %v1801_v40 }
 0x514   :  { %8745 = vmatprep.subr.bf16.mxu1 %v10765_v12  ;;  %v1929_v30 = vld [vmem:[#allocation2 + $0xfb8] sm:$0xff] }
 0x515   :  { %8705 = vmatpush1.bf16.msra.mxu0 %v10636_v44  ;;  %v10861_v6 = vcombine.high %v1925_v13, %v1929_v30  ;;  %v1789_v24 = vld [vmem:[#allocation2 + $0xb58] sm:$0xff]  ;;  %v10860_v33 = vcombine.low %v1925_v13, %v1929_v30 }
 0x516   :  { %8706 = vmatprep.subr.bf16.mxu0 %v10629_v48  ;;  %v1793_v37 = vld [vmem:[#allocation2 + $0xb78] sm:$0xff] }
 0x517   :  { %8746 = vmatpush1.bf16.msra.mxu1 %v10764_v47  ;;  %v1917_v25 = vld [vmem:[#allocation2 + $0xf58] sm:$0xff]  ;;  %v10725_v14 = vcombine.high %v1789_v24, %v1793_v37  ;;  %v10724_v44 = vcombine.low %v1789_v24, %v1793_v37 }
 0x518   :  { %8747 = vmatprep.subr.bf16.mxu1 %v10757_v36  ;;  %v1921_v11 = vld [vmem:[#allocation2 + $0xf78] sm:$0xff] }
 0x519   :  { %8707 = vmatpush1.bf16.msra.mxu0 %v10628_v3  ;;  %v10853_v12 = vcombine.high %v1917_v25, %v1921_v11  ;;  %v1781_v39 = vld [vmem:[#allocation2 + $0xb18] sm:$0xff]  ;;  %v10852_v47 = vcombine.low %v1917_v25, %v1921_v11 }
 0x51a   :  { %8708 = vmatprep.subr.bf16.mxu0 %v10621_v53  ;;  %v1785_v17 = vld [vmem:[#allocation2 + $0xb38] sm:$0xff] }
 0x51b   :  { %8748 = vmatpush1.bf16.msra.mxu1 %v10756_v58  ;;  %v1909_v19 = vld [vmem:[#allocation2 + $0xf18] sm:$0xff]  ;;  %v10717_v48 = vcombine.high %v1781_v39, %v1785_v17  ;;  %v10716_v3 = vcombine.low %v1781_v39, %v1785_v17 }
 0x51c   :  { %8749 = vmatprep.subr.bf16.mxu1 %v10749_v46  ;;  %v1913_v34 = vld [vmem:[#allocation2 + $0xf38] sm:$0xff] }
 0x51d   :  { %8709 = vmatpush1.bf16.msra.mxu0 %v10620_v27  ;;  %v10845_v36 = vcombine.high %v1909_v19, %v1913_v34  ;;  %v1773_v18 = vld [vmem:[#allocation2 + $0xad8] sm:$0xff]  ;;  %v10844_v58 = vcombine.low %v1909_v19, %v1913_v34 }
 0x51e   :  { %8710 = vmatprep.subr.bf16.mxu0 %v10741_v57  ;;  %v1777_v5 = vld [vmem:[#allocation2 + $0xaf8] sm:$0xff] }
 0x51f   :  { %8750 = vmatpush1.bf16.msra.mxu1 %v10748_v49  ;;  %v1901_v51 = vld [vmem:[#allocation2 + $0xed8] sm:$0xff]  ;;  %v10709_v53 = vcombine.high %v1773_v18, %v1777_v5  ;;  %v10708_v27 = vcombine.low %v1773_v18, %v1777_v5 }
 0x520   :  { %8751 = vmatprep.subr.bf16.mxu1 %v10869_v21  ;;  %v1905_v28 = vld [vmem:[#allocation2 + $0xef8] sm:$0xff] }
 0x521   :  { %8711 = vmatpush2.bf16.msra.mxu0 %v10740_v9  ;;  %v10837_v46 = vcombine.high %v1901_v51, %v1905_v28  ;;  %v1765_v4 = vld [vmem:[#allocation2 + $0xa98] sm:$0xff]  ;;  %v10836_v49 = vcombine.low %v1901_v51, %v1905_v28 }
 0x522   :  { %8712 = vmatprep.subr.bf16.mxu0 %v10733_v1  ;;  %v1769_v60 = vld [vmem:[#allocation2 + $0xab8] sm:$0xff] }
 0x523   :  { %8752 = vmatpush2.bf16.msra.mxu1 %v10868_v43  ;;  %v1893_v62 = vld [vmem:[#allocation2 + $0xe98] sm:$0xff]  ;;  %v10701_v57 = vcombine.high %v1765_v4, %v1769_v60  ;;  %v10700_v9 = vcombine.low %v1765_v4, %v1769_v60 }
 0x524   :  { %8753 = vmatprep.subr.bf16.mxu1 %v10861_v6  ;;  %v1897_v55 = vld [vmem:[#allocation2 + $0xeb8] sm:$0xff] }
 0x525   :  { %8713 = vmatpush2.bf16.msra.mxu0 %v10732_v15  ;;  %v10829_v21 = vcombine.high %v1893_v62, %v1897_v55  ;;  %v1757_v7 = vld [vmem:[#allocation2 + $0xa58] sm:$0xff]  ;;  %v10828_v43 = vcombine.low %v1893_v62, %v1897_v55 }
 0x526   :  { %8714 = vmatprep.subr.bf16.mxu0 %v10725_v14  ;;  %v1761_v40 = vld [vmem:[#allocation2 + $0xa78] sm:$0xff] }
 0x527   :  { %8754 = vmatpush2.bf16.msra.mxu1 %v10860_v33  ;;  %v1885_v13 = vld [vmem:[#allocation2 + $0xe58] sm:$0xff]  ;;  %v10693_v1 = vcombine.high %v1757_v7, %v1761_v40  ;;  %v10692_v15 = vcombine.low %v1757_v7, %v1761_v40 }
 0x528   :  { %8755 = vmatprep.subr.bf16.mxu1 %v10853_v12  ;;  %v1889_v30 = vld [vmem:[#allocation2 + $0xe78] sm:$0xff] }
 0x529   :  { %8715 = vmatpush2.bf16.msra.mxu0 %v10724_v44  ;;  %v10821_v6 = vcombine.high %v1885_v13, %v1889_v30  ;;  %v1749_v24 = vld [vmem:[#allocation2 + $0xa18] sm:$0xff]  ;;  %v10820_v33 = vcombine.low %v1885_v13, %v1889_v30 }
 0x52a   :  { %8716 = vmatprep.subr.bf16.mxu0 %v10717_v48  ;;  %v1753_v37 = vld [vmem:[#allocation2 + $0xa38] sm:$0xff] }
 0x52b   :  { %8756 = vmatpush2.bf16.msra.mxu1 %v10852_v47  ;;  %v1877_v25 = vld [vmem:[#allocation2 + $0xe18] sm:$0xff]  ;;  %v10685_v14 = vcombine.high %v1749_v24, %v1753_v37  ;;  %v10684_v44 = vcombine.low %v1749_v24, %v1753_v37 }
 0x52c   :  { %8757 = vmatprep.subr.bf16.mxu1 %v10845_v36  ;;  %v1881_v11 = vld [vmem:[#allocation2 + $0xe38] sm:$0xff] }
 0x52d   :  { %8717 = vmatpush2.bf16.msra.mxu0 %v10716_v3  ;;  %v10813_v12 = vcombine.high %v1877_v25, %v1881_v11  ;;  %v1997_v39 = vld [vmem:[#allocation2 + $0x11d8] sm:$0xff]  ;;  %v10812_v47 = vcombine.low %v1877_v25, %v1881_v11 }
 0x52e   :  { %8718 = vmatprep.subr.bf16.mxu0 %v10709_v53  ;;  %v2001_v17 = vld [vmem:[#allocation2 + $0x11f8] sm:$0xff] }
 0x52f   :  { %8758 = vmatpush2.bf16.msra.mxu1 %v10844_v58  ;;  %v2125_v19 = vld [vmem:[#allocation2 + $0x15d8] sm:$0xff]  ;;  %v10933_v48 = vcombine.high %v1997_v39, %v2001_v17  ;;  %v10932_v3 = vcombine.low %v1997_v39, %v2001_v17 }
 0x530   :  { %8759 = vmatprep.subr.bf16.mxu1 %v10837_v46  ;;  %v2129_v34 = vld [vmem:[#allocation2 + $0x15f8] sm:$0xff] }
 0x531   :  { %8719 = vmatpush2.bf16.msra.mxu0 %v10708_v27  ;;  %v11061_v36 = vcombine.high %v2125_v19, %v2129_v34  ;;  %v1989_v18 = vld [vmem:[#allocation2 + $0x1198] sm:$0xff]  ;;  %v11060_v58 = vcombine.low %v2125_v19, %v2129_v34 }
 0x532   :  { %8720 = vmatprep.subr.bf16.mxu0 %v10701_v57  ;;  %v1993_v5 = vld [vmem:[#allocation2 + $0x11b8] sm:$0xff] }
 0x533   :  { %8760 = vmatpush2.bf16.msra.mxu1 %v10836_v49  ;;  %v2117_v51 = vld [vmem:[#allocation2 + $0x1598] sm:$0xff]  ;;  %v10925_v53 = vcombine.high %v1989_v18, %v1993_v5 }
 0x534   :  { %8761 = vmatprep.subr.bf16.mxu1 %v10829_v21  ;;  %v2121_v28 = vld [vmem:[#allocation2 + $0x15b8] sm:$0xff]  ;;  %v10924_v21 = vcombine.low %v1989_v18, %v1993_v5 }
 0x535   :  { %8721 = vmatpush2.bf16.msra.mxu0 %v10700_v9  ;;  %v11053_v46 = vcombine.high %v2117_v51, %v2121_v28  ;;  %v1981_v4 = vld [vmem:[#allocation2 + $0x1158] sm:$0xff]  ;;  %v11052_v40 = vcombine.low %v2117_v51, %v2121_v28 }
 0x536   :  { %8722 = vmatprep.subr.bf16.mxu0 %v10693_v1  ;;  %v1985_v60 = vld [vmem:[#allocation2 + $0x1178] sm:$0xff] }
 0x537   :  { %8762 = vmatpush2.bf16.msra.mxu1 %v10828_v43  ;;  %v2109_v55 = vld [vmem:[#allocation2 + $0x1558] sm:$0xff]  ;;  %v10917_v13 = vcombine.high %v1981_v4, %v1985_v60  ;;  %v10916_v11 = vcombine.low %v1981_v4, %v1985_v60 }
 0x538   :  { %8763 = vmatprep.subr.bf16.mxu1 %v10821_v6  ;;  %v2113_v27 = vld [vmem:[#allocation2 + $0x1578] sm:$0xff] }
 0x539   :  { %8723 = vmatpush2.bf16.msra.mxu0 %v10692_v15  ;;  %v1973_v1 = vld [vmem:[#allocation2 + $0x1118] sm:$0xff] }
 0x53a   :  { %8724 = vmatprep.subr.bf16.mxu0 %v10685_v14  ;;  %v1977_v6 = vld [vmem:[#allocation2 + $0x1138] sm:$0xff] }
 0x53b   :  { %8764 = vmatpush2.bf16.msra.mxu1 %v10820_v33  ;;  %v2105_v24 = vld [vmem:[#allocation2 + $0x1538] sm:$0xff]  ;;  %v10909_v33 = vcombine.high %v1973_v1, %v1977_v6  ;;  %v10908_v34 = vcombine.low %v1973_v1, %v1977_v6 }
 0x53c   :  { %8765 = vmatprep.subr.bf16.mxu1 %v10813_v12  ;;  %v1965_v39 = vld [vmem:[#allocation2 + $0x10d8] sm:$0xff] }
 0x53d   :  { %8725 = vmatpush2.bf16.msra.mxu0 %v10684_v44  ;;  %v2093_v17 = vld [vmem:[#allocation2 + $0x14d8] sm:$0xff] }
 0x53e   :  { %8776 = vmatprep.subr.bf16.mxu0 %v10933_v48  ;;  %v2097_v19 = vld [vmem:[#allocation2 + $0x14f8] sm:$0xff] }
 0x53f   :  { %8766 = vmatpush2.bf16.msra.mxu1 %v10812_v47  ;;  %v11029_v47 = vcombine.high %v2093_v17, %v2097_v19  ;;  %v1957_v48 = vld [vmem:[#allocation2 + $0x1098] sm:$0xff]  ;;  %v11028_v28 = vcombine.low %v2093_v17, %v2097_v19 }
 0x540   :  { %8817 = vmatprep.subr.bf16.mxu1 %v11061_v36  ;;  %v8482_v62 = vpop.f32.mrf.mxu0  ;;  %8727 = vmatmul.mubr.bf16.vlgmr.msra.gmra.mxu0 %v12336_v38  ;;  %v11045_v38 = vcombine.high %v2109_v55, %v2113_v27  ;;  %v1961_v36 = vld [vmem:[#allocation2 + $0x10b8] sm:$0xff] }
 0x541   :  { %v8483_v49 = vadd.f32 %v8482_v62, %v12488_v42  ;;  %8777 = vmatpush1.bf16.msra.mxu0 %v10932_v3  ;;  %8808 = vmatprep.mubr.bf16.mxu0 %v12346_v63  ;;  %v1969_v63 = vld [vmem:[#allocation2 + $0x10f8] sm:$0xff]  ;;  %v10893_v3 = vcombine.high %v1957_v48, %v1961_v36  ;;  %v10892_v62 = vcombine.low %v1957_v48, %v1961_v36 }
 0x542   :  { %v8523_v57 = vpop.f32.mrf.mxu1  ;;  %8768 = vmatmul.mubr.bf16.vlgmr.msra.gmra.mxu1 %v12341_v45  ;;  %v8484_v7 = vpop.f32.mrf.mxu0  ;;  %8778 = vmatprep.subr.bf16.mxu0 %v10925_v53  ;;  %v2101_v45 = vld [vmem:[#allocation2 + $0x1518] sm:$0xff]  ;;  %v10901_v44 = vcombine.high %v1965_v39, %v1969_v63  ;;  %v10900_v51 = vcombine.low %v1965_v39, %v1969_v63 }
 0x543   :  { %8818 = vmatpush1.bf16.msra.mxu1 %v11060_v58  ;;  %v12498_v30 = vadd.f32 %v8523_v57, %v8483_v49  ;;  %v8485_v9 = vadd.f32 %v8484_v7, %v12493_v56  ;;  %8849 = vmatprep.mubr.bf16.mxu1 %v12352_v2  ;;  %v11044_v56 = vcombine.low %v2109_v55, %v2113_v27  ;;  %v2085_v18 = vld [vmem:[#allocation2 + $0x1498] sm:$0xff] }
 0x544   :  { %v8525_v43 = vpop.f32.mrf.mxu1  ;;  %8819 = vmatprep.subr.bf16.mxu1 %v11053_v46  ;;  %v8486_v42 = vpop.f32.mrf.mxu0  ;;  %v11037_v12 = vcombine.high %v2101_v45, %v2105_v24  ;;  %v11036_v2 = vcombine.low %v2101_v45, %v2105_v24  ;;  %v2089_v5 = vld [vmem:[#allocation2 + $0x14b8] sm:$0xff] }
 0x545   :  { %v12503_v37 = vadd.f32 %v8525_v43, %v8485_v9  ;;  %8779 = vmatpush1.bf16.msra.mxu0 %v10924_v21  ;;  %v11021_v58 = vcombine.high %v2085_v18, %v2089_v5  ;;  %v1949_v53 = vld [vmem:[#allocation2 + $0x1058] sm:$0xff]  ;;  %v11020_v55 = vcombine.low %v2085_v18, %v2089_v5 }
 0x546   :  { %v8527_v25 = vpop.f32.mrf.mxu1  ;;  %v8487_v15 = vpop.f32.mrf.mxu0  ;;  %8780 = vmatprep.subr.bf16.mxu0 %v10917_v13  ;;  %v1953_v46 = vld [vmem:[#allocation2 + $0x1078] sm:$0xff] }
 0x547   :  { %8820 = vmatpush1.bf16.msra.mxu1 %v11052_v40  ;;  %v2077_v4 = vld [vmem:[#allocation2 + $0x1458] sm:$0xff]  ;;  %v10885_v27 = vcombine.high %v1949_v53, %v1953_v46  ;;  %v10884_v13 = vcombine.low %v1949_v53, %v1953_v46 }
 0x548   :  { %v8528_v14 = vpop.f32.mrf.mxu1  ;;  %8821 = vmatprep.subr.bf16.mxu1 %v11045_v38  ;;  %v2081_v60 = vld [vmem:[#allocation2 + $0x1478] sm:$0xff] }
 0x549   :  { %8781 = vmatpush1.bf16.msra.mxu0 %v10916_v11  ;;  %v11013_v49 = vcombine.high %v2077_v4, %v2081_v60  ;;  %v1941_v57 = vld [vmem:[#allocation2 + $0x1018] sm:$0xff]  ;;  %v11012_v9 = vcombine.low %v2077_v4, %v2081_v60 }
 0x54a   :  { %8782 = vmatprep.subr.bf16.mxu0 %v10909_v33  ;;  %v1945_v21 = vld [vmem:[#allocation2 + $0x1038] sm:$0xff] }
 0x54b   :  { %8822 = vmatpush1.bf16.msra.mxu1 %v11044_v56  ;;  %v2069_v7 = vld [vmem:[#allocation2 + $0x1418] sm:$0xff]  ;;  %v10877_v43 = vcombine.high %v1941_v57, %v1945_v21  ;;  %v10876_v24 = vcombine.low %v1941_v57, %v1945_v21 }
 0x54c   :  { %8823 = vmatprep.subr.bf16.mxu1 %v11037_v12  ;;  %v2073_v40 = vld [vmem:[#allocation2 + $0x1438] sm:$0xff] }
 0x54d   :  { %8783 = vmatpush1.bf16.msra.mxu0 %v10908_v34  ;;  %v11005_v38 = vcombine.high %v2069_v7, %v2073_v40  ;;  %v2061_v1 = vld [vmem:[#allocation2 + $0x13d8] sm:$0xff]  ;;  %v11004_v25 = vcombine.low %v2069_v7, %v2073_v40 }
 0x54e   :  { %8784 = vmatprep.subr.bf16.mxu0 %v10901_v44  ;;  %v2065_v6 = vld [vmem:[#allocation2 + $0x13f8] sm:$0xff] }
 0x54f   :  { %8824 = vmatpush1.bf16.msra.mxu1 %v11036_v2  ;;  %v2189_v42 = vld [vmem:[#allocation2 + $0x17d8] sm:$0xff]  ;;  %v10997_v11 = vcombine.high %v2061_v1, %v2065_v6  ;;  %v10996_v39 = vcombine.low %v2061_v1, %v2065_v6 }
 0x550   :  { %8825 = vmatprep.subr.bf16.mxu1 %v11029_v47  ;;  %v2193_v45 = vld [vmem:[#allocation2 + $0x17f8] sm:$0xff] }
 0x551   :  { %8785 = vmatpush1.bf16.msra.mxu0 %v10900_v51  ;;  %v11125_v15 = vcombine.high %v2189_v42, %v2193_v45  ;;  %v2053_v56 = vld [vmem:[#allocation2 + $0x1398] sm:$0xff]  ;;  %v11124_v63 = vcombine.low %v2189_v42, %v2193_v45 }
 0x552   :  { %8786 = vmatprep.subr.bf16.mxu0 %v10893_v3  ;;  %v2057_v33 = vld [vmem:[#allocation2 + $0x13b8] sm:$0xff] }
 0x553   :  { %8826 = vmatpush1.bf16.msra.mxu1 %v11028_v28  ;;  %v2181_v14 = vld [vmem:[#allocation2 + $0x1798] sm:$0xff]  ;;  %v10989_v17 = vcombine.high %v2053_v56, %v2057_v33  ;;  %v10988_v48 = vcombine.low %v2053_v56, %v2057_v33 }
 0x554   :  { %8827 = vmatprep.subr.bf16.mxu1 %v11021_v58  ;;  %v2185_v12 = vld [vmem:[#allocation2 + $0x17b8] sm:$0xff] }
 0x555   :  { %8787 = vmatpush1.bf16.msra.mxu0 %v10892_v62  ;;  %v11117_v19 = vcombine.high %v2181_v14, %v2185_v12  ;;  %v2045_v34 = vld [vmem:[#allocation2 + $0x1358] sm:$0xff]  ;;  %v11116_v36 = vcombine.low %v2181_v14, %v2185_v12 }
 0x556   :  { %8788 = vmatprep.subr.bf16.mxu0 %v10885_v27  ;;  %v2049_v2 = vld [vmem:[#allocation2 + $0x1378] sm:$0xff] }
 0x557   :  { %8828 = vmatpush1.bf16.msra.mxu1 %v11020_v55  ;;  %v2173_v44 = vld [vmem:[#allocation2 + $0x1758] sm:$0xff]  ;;  %v10981_v18 = vcombine.high %v2045_v34, %v2049_v2  ;;  %v10980_v53 = vcombine.low %v2045_v34, %v2049_v2 }
 0x558   :  { %8829 = vmatprep.subr.bf16.mxu1 %v11013_v49  ;;  %v2177_v47 = vld [vmem:[#allocation2 + $0x1778] sm:$0xff] }
 0x559   :  { %8789 = vmatpush1.bf16.msra.mxu0 %v10884_v13  ;;  %v11109_v5 = vcombine.high %v2173_v44, %v2177_v47  ;;  %v2037_v51 = vld [vmem:[#allocation2 + $0x1318] sm:$0xff]  ;;  %v11108_v46 = vcombine.low %v2173_v44, %v2177_v47 }
 0x55a   :  { %8790 = vmatprep.subr.bf16.mxu0 %v10877_v43  ;;  %v2041_v28 = vld [vmem:[#allocation2 + $0x1338] sm:$0xff] }
 0x55b   :  { %8830 = vmatpush1.bf16.msra.mxu1 %v11012_v9  ;;  %v2165_v3 = vld [vmem:[#allocation2 + $0x1718] sm:$0xff]  ;;  %v10973_v4 = vcombine.high %v2037_v51, %v2041_v28  ;;  %v10972_v57 = vcombine.low %v2037_v51, %v2041_v28 }
 0x55c   :  { %8831 = vmatprep.subr.bf16.mxu1 %v11005_v38  ;;  %v2169_v58 = vld [vmem:[#allocation2 + $0x1738] sm:$0xff] }
 0x55d   :  { %8791 = vmatpush1.bf16.msra.mxu0 %v10876_v24  ;;  %v11101_v60 = vcombine.high %v2165_v3, %v2169_v58  ;;  %v2029_v62 = vld [vmem:[#allocation2 + $0x12d8] sm:$0xff]  ;;  %v11100_v21 = vcombine.low %v2165_v3, %v2169_v58 }
 0x55e   :  { %8792 = vmatprep.subr.bf16.mxu0 %v10997_v11  ;;  %v2033_v55 = vld [vmem:[#allocation2 + $0x12f8] sm:$0xff] }
 0x55f   :  { %8832 = vmatpush1.bf16.msra.mxu1 %v11004_v25  ;;  %v2157_v27 = vld [vmem:[#allocation2 + $0x16d8] sm:$0xff]  ;;  %v10965_v7 = vcombine.high %v2029_v62, %v2033_v55  ;;  %v10964_v1 = vcombine.low %v2029_v62, %v2033_v55 }
 0x560   :  { %8833 = vmatprep.subr.bf16.mxu1 %v11125_v15  ;;  %v2161_v49 = vld [vmem:[#allocation2 + $0x16f8] sm:$0xff] }
 0x561   :  { %8793 = vmatpush2.bf16.msra.mxu0 %v10996_v39  ;;  %v11093_v40 = vcombine.high %v2157_v27, %v2161_v49  ;;  %v2021_v13 = vld [vmem:[#allocation2 + $0x1298] sm:$0xff]  ;;  %v11092_v6 = vcombine.low %v2157_v27, %v2161_v49 }
 0x562   :  { %8794 = vmatprep.subr.bf16.mxu0 %v10989_v17  ;;  %v2025_v9 = vld [vmem:[#allocation2 + $0x12b8] sm:$0xff] }
 0x563   :  { %8834 = vmatpush2.bf16.msra.mxu1 %v11124_v63  ;;  %v2149_v43 = vld [vmem:[#allocation2 + $0x1698] sm:$0xff]  ;;  %v10957_v42 = vcombine.high %v2021_v13, %v2025_v9  ;;  %v10956_v56 = vcombine.low %v2021_v13, %v2025_v9 }
 0x564   :  { %8835 = vmatprep.subr.bf16.mxu1 %v11117_v19  ;;  %v2153_v38 = vld [vmem:[#allocation2 + $0x16b8] sm:$0xff] }
 0x565   :  { %8795 = vmatpush2.bf16.msra.mxu0 %v10988_v48  ;;  %v11085_v45 = vcombine.high %v2149_v43, %v2153_v38  ;;  %v2013_v24 = vld [vmem:[#allocation2 + $0x1258] sm:$0xff]  ;;  %v11084_v33 = vcombine.low %v2149_v43, %v2153_v38 }
 0x566   :  { %8796 = vmatprep.subr.bf16.mxu0 %v10981_v18  ;;  %v2017_v25 = vld [vmem:[#allocation2 + $0x1278] sm:$0xff] }
 0x567   :  { %8836 = vmatpush2.bf16.msra.mxu1 %v11116_v36  ;;  %v2141_v11 = vld [vmem:[#allocation2 + $0x1658] sm:$0xff]  ;;  %v10949_v14 = vcombine.high %v2013_v24, %v2017_v25  ;;  %v10948_v34 = vcombine.low %v2013_v24, %v2017_v25 }
 0x568   :  { %8837 = vmatprep.subr.bf16.mxu1 %v11109_v5  ;;  %v2145_v15 = vld [vmem:[#allocation2 + $0x1678] sm:$0xff] }
 0x569   :  { %8797 = vmatpush2.bf16.msra.mxu0 %v10980_v53  ;;  %v11077_v12 = vcombine.high %v2141_v11, %v2145_v15  ;;  %v2005_v39 = vld [vmem:[#allocation2 + $0x1218] sm:$0xff]  ;;  %v11076_v2 = vcombine.low %v2141_v11, %v2145_v15 }
 0x56a   :  { %8798 = vmatprep.subr.bf16.mxu0 %v10973_v4  ;;  %v2009_v63 = vld [vmem:[#allocation2 + $0x1238] sm:$0xff] }
 0x56b   :  { %8838 = vmatpush2.bf16.msra.mxu1 %v11108_v46  ;;  %v2133_v17 = vld [vmem:[#allocation2 + $0x1618] sm:$0xff]  ;;  %v10941_v44 = vcombine.high %v2005_v39, %v2009_v63  ;;  %v10940_v51 = vcombine.low %v2005_v39, %v2009_v63 }
 0x56c   :  { %8839 = vmatprep.subr.bf16.mxu1 %v11101_v60  ;;  %v2137_v19 = vld [vmem:[#allocation2 + $0x1638] sm:$0xff] }
 0x56d   :  { %8799 = vmatpush2.bf16.msra.mxu0 %v10972_v57  ;;  %v11069_v47 = vcombine.high %v2133_v17, %v2137_v19  ;;  %v2253_v48 = vld [vmem:[#allocation2 + $0x19d8] sm:$0xff]  ;;  %v11068_v28 = vcombine.low %v2133_v17, %v2137_v19 }
 0x56e   :  { %8800 = vmatprep.subr.bf16.mxu0 %v10965_v7  ;;  %v2257_v36 = vld [vmem:[#allocation2 + $0x19f8] sm:$0xff] }
 0x56f   :  { %8840 = vmatpush2.bf16.msra.mxu1 %v11100_v21  ;;  %v2381_v18 = vld [vmem:[#allocation2 + $0x1dd8] sm:$0xff]  ;;  %v11189_v3 = vcombine.high %v2253_v48, %v2257_v36  ;;  %v11188_v62 = vcombine.low %v2253_v48, %v2257_v36 }
 0x570   :  { %8841 = vmatprep.subr.bf16.mxu1 %v11093_v40  ;;  %v2385_v5 = vld [vmem:[#allocation2 + $0x1df8] sm:$0xff] }
 0x571   :  { %8801 = vmatpush2.bf16.msra.mxu0 %v10964_v1  ;;  %v11317_v58 = vcombine.high %v2381_v18, %v2385_v5  ;;  %v2245_v53 = vld [vmem:[#allocation2 + $0x1998] sm:$0xff]  ;;  %v11316_v55 = vcombine.low %v2381_v18, %v2385_v5 }
 0x572   :  { %8802 = vmatprep.subr.bf16.mxu0 %v10957_v42  ;;  %v2249_v46 = vld [vmem:[#allocation2 + $0x19b8] sm:$0xff] }
 0x573   :  { %8842 = vmatpush2.bf16.msra.mxu1 %v11092_v6  ;;  %v2373_v4 = vld [vmem:[#allocation2 + $0x1d98] sm:$0xff]  ;;  %v11181_v27 = vcombine.high %v2245_v53, %v2249_v46  ;;  %v11180_v38 = vcombine.low %v2245_v53, %v2249_v46 }
 0x574   :  { %8843 = vmatprep.subr.bf16.mxu1 %v11085_v45  ;;  %v2377_v60 = vld [vmem:[#allocation2 + $0x1db8] sm:$0xff] }
 0x575   :  { %8803 = vmatpush2.bf16.msra.mxu0 %v10956_v56  ;;  %v11309_v49 = vcombine.high %v2373_v4, %v2377_v60  ;;  %v2237_v57 = vld [vmem:[#allocation2 + $0x1958] sm:$0xff]  ;;  %v11308_v6 = vcombine.low %v2373_v4, %v2377_v60 }
 0x576   :  { %8804 = vmatprep.subr.bf16.mxu0 %v10949_v14  ;;  %v2241_v21 = vld [vmem:[#allocation2 + $0x1978] sm:$0xff] }
 0x577   :  { %8844 = vmatpush2.bf16.msra.mxu1 %v11084_v33  ;;  %v2365_v40 = vld [vmem:[#allocation2 + $0x1d58] sm:$0xff]  ;;  %v11173_v42 = vcombine.high %v2237_v57, %v2241_v21  ;;  %v11172_v39 = vcombine.low %v2237_v57, %v2241_v21 }
 0x578   :  { %8845 = vmatprep.subr.bf16.mxu1 %v11077_v12  ;;  %v2369_v13 = vld [vmem:[#allocation2 + $0x1d78] sm:$0xff] }
 0x579   :  { %8805 = vmatpush2.bf16.msra.mxu0 %v10948_v34  ;;  %v2229_v11 = vld [vmem:[#allocation2 + $0x1918] sm:$0xff]  ;;  %v11300_v63 = vcombine.low %v2365_v40, %v2369_v13 }
 0x57a   :  { %8806 = vmatprep.subr.bf16.mxu0 %v10941_v44  ;;  %v2233_v15 = vld [vmem:[#allocation2 + $0x1938] sm:$0xff] }
 0x57b   :  { %8846 = vmatpush2.bf16.msra.mxu1 %v11076_v2  ;;  %v2361_v56 = vld [vmem:[#allocation2 + $0x1d38] sm:$0xff]  ;;  %v11165_v17 = vcombine.high %v2229_v11, %v2233_v15  ;;  %v11164_v48 = vcombine.low %v2229_v11, %v2233_v15 }
 0x57c   :  { %8847 = vmatprep.subr.bf16.mxu1 %v11069_v47  ;;  %v2221_v2 = vld [vmem:[#allocation2 + $0x18d8] sm:$0xff] }
 0x57d   :  { %8807 = vmatpush2.bf16.msra.mxu0 %v10940_v51  ;;  %v2225_v44 = vld [vmem:[#allocation2 + $0x18f8] sm:$0xff] }
 0x57e   :  { %8858 = vmatprep.subr.bf16.mxu0 %v11189_v3  ;;  %v2353_v47 = vld [vmem:[#allocation2 + $0x1cf8] sm:$0xff]  ;;  %v11157_v18 = vcombine.high %v2221_v2, %v2225_v44  ;;  %v11156_v53 = vcombine.low %v2221_v2, %v2225_v44 }
 0x57f   :  { %8848 = vmatpush2.bf16.msra.mxu1 %v11068_v28  ;;  %v2213_v51 = vld [vmem:[#allocation2 + $0x1898] sm:$0xff] }
 0x580   :  { %8899 = vmatprep.subr.bf16.mxu1 %v11317_v58  ;;  %v8564_v7 = vpop.f32.mrf.mxu0  ;;  %8809 = vmatmul.mubr.bf16.vlgmr.msra.gmra.mxu0 %v12360_v41  ;;  %v11301_v41 = vcombine.high %v2365_v40, %v2369_v13  ;;  %v2217_v28 = vld [vmem:[#allocation2 + $0x18b8] sm:$0xff] }
 0x581   :  { %v8565_v9 = vadd.f32 %v8564_v7, %v12498_v30  ;;  %8859 = vmatpush1.bf16.msra.mxu0 %v11188_v62  ;;  %8890 = vmatprep.mubr.bf16.mxu0 %v12370_v20  ;;  %v2341_v3 = vld [vmem:[#allocation2 + $0x1c98] sm:$0xff]  ;;  %v11149_v4 = vcombine.high %v2213_v51, %v2217_v28  ;;  %v11148_v57 = vcombine.low %v2213_v51, %v2217_v28 }
 0x582   :  { %v8605_v43 = vpop.f32.mrf.mxu1  ;;  %8850 = vmatmul.mubr.bf16.vlgmr.msra.gmra.mxu1 %v12365_v35  ;;  %v8566_v1 = vpop.f32.mrf.mxu0  ;;  %8860 = vmatprep.subr.bf16.mxu0 %v11181_v27  ;;  %v2357_v35 = vld [vmem:[#allocation2 + $0x1d18] sm:$0xff] }
 0x583   :  { %8900 = vmatpush1.bf16.msra.mxu1 %v11316_v55  ;;  %v12508_v45 = vadd.f32 %v8605_v43, %v8565_v9  ;;  %v8567_v24 = vadd.f32 %v8566_v1, %v12503_v37  ;;  %8931 = vmatprep.mubr.bf16.mxu1 %v12376_v23  ;;  %v11293_v34 = vcombine.high %v2357_v35, %v2361_v56  ;;  %v2349_v23 = vld [vmem:[#allocation2 + $0x1cd8] sm:$0xff] }
 0x584   :  { %v8607_v25 = vpop.f32.mrf.mxu1  ;;  %8901 = vmatprep.subr.bf16.mxu1 %v11309_v49  ;;  %v8568_v30 = vpop.f32.mrf.mxu0  ;;  %v11292_v36 = vcombine.low %v2357_v35, %v2361_v56  ;;  %v11285_v5 = vcombine.high %v2349_v23, %v2353_v47  ;;  %v2345_v58 = vld [vmem:[#allocation2 + $0x1cb8] sm:$0xff]  ;;  %v11284_v46 = vcombine.low %v2349_v23, %v2353_v47 }
 0x585   :  { %v8944_v33 = vmax.f32 %v12508_v45, 0.0  ;;  %v12514_v14 = vadd.f32 %v8607_v25, %v8567_v24  ;;  %8861 = vmatpush1.bf16.msra.mxu0 %v11180_v38  ;;  %v11277_v60 = vcombine.high %v2341_v3, %v2345_v58  ;;  %v2205_v62 = vld [vmem:[#allocation2 + $0x1858] sm:$0xff]  ;;  %v11276_v21 = vcombine.low %v2341_v3, %v2345_v58 }
 0x586   :  { %v8609_v12 = vpop.f32.mrf.mxu1  ;;  %v8569_v37 = vpop.f32.mrf.mxu0  ;;  %8862 = vmatprep.subr.bf16.mxu0 %v11173_v42  ;;  %v2209_v55 = vld [vmem:[#allocation2 + $0x1878] sm:$0xff] }
 0x587   :  { %8902 = vmatpush1.bf16.msra.mxu1 %v11308_v6  ;;  %v8945_v19 = vmax.f32 %v12514_v14, 0.0  ;;  %v2333_v27 = vld [vmem:[#allocation2 + $0x1c58] sm:$0xff]  ;;  %v11141_v7 = vcombine.high %v2205_v62, %v2209_v55  ;;  %v11140_v1 = vcombine.low %v2205_v62, %v2209_v55 }
 0x588   :  { %v8610_v20 = vpop.f32.mrf.mxu1  ;;  %8903 = vmatprep.subr.bf16.mxu1 %v11301_v41  ;;  %v2337_v49 = vld [vmem:[#allocation2 + $0x1c78] sm:$0xff] }
 0x589   :  { %8863 = vmatpush1.bf16.msra.mxu0 %v11172_v39  ;;  %v11269_v40 = vcombine.high %v2333_v27, %v2337_v49  ;;  %v2197_v13 = vld [vmem:[#allocation2 + $0x1818] sm:$0xff]  ;;  %v11268_v6 = vcombine.low %v2333_v27, %v2337_v49 }
 0x58a   :  { %8864 = vmatprep.subr.bf16.mxu0 %v11165_v17  ;;  %v2201_v9 = vld [vmem:[#allocation2 + $0x1838] sm:$0xff] }
 0x58b   :  { %8904 = vmatpush1.bf16.msra.mxu1 %v11300_v63  ;;  %v2325_v43 = vld [vmem:[#allocation2 + $0x1c18] sm:$0xff]  ;;  %v11133_v42 = vcombine.high %v2197_v13, %v2201_v9  ;;  %v11132_v30 = vcombine.low %v2197_v13, %v2201_v9 }
 0x58c   :  { %8905 = vmatprep.subr.bf16.mxu1 %v11293_v34  ;;  %v2329_v38 = vld [vmem:[#allocation2 + $0x1c38] sm:$0xff] }
 0x58d   :  { %8865 = vmatpush1.bf16.msra.mxu0 %v11164_v48  ;;  %v11261_v24 = vcombine.high %v2325_v43, %v2329_v38  ;;  %v2317_v25 = vld [vmem:[#allocation2 + $0x1bd8] sm:$0xff]  ;;  %v11260_v35 = vcombine.low %v2325_v43, %v2329_v38 }
 0x58e   :  { %8866 = vmatprep.subr.bf16.mxu0 %v11157_v18  ;;  %v2321_v41 = vld [vmem:[#allocation2 + $0x1bf8] sm:$0xff] }
 0x58f   :  { %8906 = vmatpush1.bf16.msra.mxu1 %v11292_v36  ;;  %v2445_v11 = vld [vmem:[#allocation2 + $0x1fd8] sm:$0xff]  ;;  %v11253_v56 = vcombine.high %v2317_v25, %v2321_v41  ;;  %v11252_v20 = vcombine.low %v2317_v25, %v2321_v41 }
 0x590   :  { %8907 = vmatprep.subr.bf16.mxu1 %v11285_v5  ;;  %v2449_v15 = vld [vmem:[#allocation2 + $0x1ff8] sm:$0xff] }
 0x591   :  { %8867 = vmatpush1.bf16.msra.mxu0 %v11156_v53  ;;  %v11381_v12 = vcombine.high %v2445_v11, %v2449_v15  ;;  %v2309_v39 = vld [vmem:[#allocation2 + $0x1b98] sm:$0xff]  ;;  %v11380_v34 = vcombine.low %v2445_v11, %v2449_v15 }
 0x592   :  { %8868 = vmatprep.subr.bf16.mxu0 %v11149_v4  ;;  %v2313_v37 = vld [vmem:[#allocation2 + $0x1bb8] sm:$0xff] }
 0x593   :  { %8908 = vmatpush1.bf16.msra.mxu1 %v11284_v46  ;;  %v2437_v63 = vld [vmem:[#allocation2 + $0x1f98] sm:$0xff]  ;;  %v11245_v2 = vcombine.high %v2309_v39, %v2313_v37  ;;  %v11244_v18 = vcombine.low %v2309_v39, %v2313_v37 }
 0x594   :  { %8909 = vmatprep.subr.bf16.mxu1 %v11277_v60  ;;  %v2441_v17 = vld [vmem:[#allocation2 + $0x1fb8] sm:$0xff] }
 0x595   :  { %8869 = vmatpush1.bf16.msra.mxu0 %v11148_v57  ;;  %v11373_v44 = vcombine.high %v2437_v63, %v2441_v17  ;;  %v2301_v23 = vld [vmem:[#allocation2 + $0x1b58] sm:$0xff]  ;;  %v11372_v5 = vcombine.low %v2437_v63, %v2441_v17 }
 0x596   :  { %8870 = vmatprep.subr.bf16.mxu0 %v11141_v7  ;;  %v2305_v47 = vld [vmem:[#allocation2 + $0x1b78] sm:$0xff] }
 0x597   :  { %8910 = vmatpush1.bf16.msra.mxu1 %v11276_v21  ;;  %v2429_v48 = vld [vmem:[#allocation2 + $0x1f58] sm:$0xff]  ;;  %v11237_v51 = vcombine.high %v2301_v23, %v2305_v47  ;;  %v11236_v4 = vcombine.low %v2301_v23, %v2305_v47 }
 0x598   :  { %8911 = vmatprep.subr.bf16.mxu1 %v11269_v40  ;;  %v2433_v36 = vld [vmem:[#allocation2 + $0x1f78] sm:$0xff] }
 0x599   :  { %8871 = vmatpush1.bf16.msra.mxu0 %v11140_v1  ;;  %v11365_v28 = vcombine.high %v2429_v48, %v2433_v36  ;;  %v2293_v3 = vld [vmem:[#allocation2 + $0x1b18] sm:$0xff]  ;;  %v11364_v60 = vcombine.low %v2429_v48, %v2433_v36 }
 0x59a   :  { %8872 = vmatprep.subr.bf16.mxu0 %v11133_v42  ;;  %v2297_v58 = vld [vmem:[#allocation2 + $0x1b38] sm:$0xff] }
 0x59b   :  { %8912 = vmatpush1.bf16.msra.mxu1 %v11268_v6  ;;  %v2421_v53 = vld [vmem:[#allocation2 + $0x1f18] sm:$0xff]  ;;  %v11229_v62 = vcombine.high %v2293_v3, %v2297_v58  ;;  %v11228_v7 = vcombine.low %v2293_v3, %v2297_v58 }
 0x59c   :  { %8913 = vmatprep.subr.bf16.mxu1 %v11261_v24  ;;  %v2425_v46 = vld [vmem:[#allocation2 + $0x1f38] sm:$0xff] }
 0x59d   :  { %8873 = vmatpush1.bf16.msra.mxu0 %v11132_v30  ;;  %v11357_v55 = vcombine.high %v2421_v53, %v2425_v46  ;;  %v2285_v27 = vld [vmem:[#allocation2 + $0x1ad8] sm:$0xff]  ;;  %v11356_v40 = vcombine.low %v2421_v53, %v2425_v46 }
 0x59e   :  { %8874 = vmatprep.subr.bf16.mxu0 %v11253_v56  ;;  %v2289_v49 = vld [vmem:[#allocation2 + $0x1af8] sm:$0xff] }
 0x59f   :  { %8914 = vmatpush1.bf16.msra.mxu1 %v11260_v35  ;;  %v2413_v57 = vld [vmem:[#allocation2 + $0x1ed8] sm:$0xff]  ;;  %v11221_v13 = vcombine.high %v2285_v27, %v2289_v49  ;;  %v11220_v42 = vcombine.low %v2285_v27, %v2289_v49 }
 0x5a0   :  { %8915 = vmatprep.subr.bf16.mxu1 %v11381_v12  ;;  %v2417_v21 = vld [vmem:[#allocation2 + $0x1ef8] sm:$0xff] }
 0x5a1   :  { %8875 = vmatpush2.bf16.msra.mxu0 %v11252_v20  ;;  %v11349_v9 = vcombine.high %v2413_v57, %v2417_v21  ;;  %v2277_v43 = vld [vmem:[#allocation2 + $0x1a98] sm:$0xff]  ;;  %v11348_v24 = vcombine.low %v2413_v57, %v2417_v21 }
 0x5a2   :  { %8876 = vmatprep.subr.bf16.mxu0 %v11245_v2  ;;  %v2281_v38 = vld [vmem:[#allocation2 + $0x1ab8] sm:$0xff] }
 0x5a3   :  { %8916 = vmatpush2.bf16.msra.mxu1 %v11380_v34  ;;  %v2405_v1 = vld [vmem:[#allocation2 + $0x1e98] sm:$0xff]  ;;  %v11213_v25 = vcombine.high %v2277_v43, %v2281_v38  ;;  %v11212_v56 = vcombine.low %v2277_v43, %v2281_v38 }
 0x5a4   :  { %8917 = vmatprep.subr.bf16.mxu1 %v11373_v44  ;;  %v2409_v6 = vld [vmem:[#allocation2 + $0x1eb8] sm:$0xff] }
 0x5a5   :  { %8877 = vmatpush2.bf16.msra.mxu0 %v11244_v18  ;;  %v11341_v41 = vcombine.high %v2405_v1, %v2409_v6  ;;  %v2269_v11 = vld [vmem:[#allocation2 + $0x1a58] sm:$0xff]  ;;  %v11340_v12 = vcombine.low %v2405_v1, %v2409_v6 }
 0x5a6   :  { %8878 = vmatprep.subr.bf16.mxu0 %v11237_v51  ;;  %v2273_v15 = vld [vmem:[#allocation2 + $0x1a78] sm:$0xff] }
 0x5a7   :  { %8918 = vmatpush2.bf16.msra.mxu1 %v11372_v5  ;;  %v2397_v30 = vld [vmem:[#allocation2 + $0x1e58] sm:$0xff]  ;;  %v11205_v39 = vcombine.high %v2269_v11, %v2273_v15  ;;  %v11204_v2 = vcombine.low %v2269_v11, %v2273_v15 }
 0x5a8   :  { %8919 = vmatprep.subr.bf16.mxu1 %v11365_v28  ;;  %v2401_v35 = vld [vmem:[#allocation2 + $0x1e78] sm:$0xff] }
 0x5a9   :  { %8879 = vmatpush2.bf16.msra.mxu0 %v11236_v4  ;;  %v11333_v37 = vcombine.high %v2397_v30, %v2401_v35  ;;  %v2261_v63 = vld [vmem:[#allocation2 + $0x1a18] sm:$0xff]  ;;  %v11332_v44 = vcombine.low %v2397_v30, %v2401_v35 }
 0x5aa   :  { %8880 = vmatprep.subr.bf16.mxu0 %v11229_v62  ;;  %v2265_v17 = vld [vmem:[#allocation2 + $0x1a38] sm:$0xff] }
 0x5ab   :  { %8920 = vmatpush2.bf16.msra.mxu1 %v11364_v60  ;;  %v2389_v20 = vld [vmem:[#allocation2 + $0x1e18] sm:$0xff]  ;;  %v11197_v23 = vcombine.high %v2261_v63, %v2265_v17  ;;  %v11196_v48 = vcombine.low %v2261_v63, %v2265_v17 }
 0x5ac   :  { %8921 = vmatprep.subr.bf16.mxu1 %v11357_v55  ;;  %v2393_v34 = vld [vmem:[#allocation2 + $0x1e38] sm:$0xff] }
 0x5ad   :  { %8881 = vmatpush2.bf16.msra.mxu0 %v11228_v7  ;;  %v11325_v47 = vcombine.high %v2389_v20, %v2393_v34  ;;  %v11324_v36 = vcombine.low %v2389_v20, %v2393_v34  ;;  %v11594_v18 = vld [vmem:[#allocation13] sm:$0xff] }
 0x5ae   :  { %8882 = vmatprep.subr.bf16.mxu0 %v11221_v13  ;;  %v2495_v5 = vrot.slane %v11594_v18, %v12243_v52  ;;  %v2499_v51 = vrot.slane %v11594_v18, %v12247_v54 }
 0x5af   :  { %8922 = vmatpush2.bf16.msra.mxu1 %v11356_v40 }
 0x5b0   :  { %8923 = vmatprep.subr.bf16.mxu1 %v11349_v9 }
 0x5b1   :  { %8883 = vmatpush2.bf16.msra.mxu0 %v11220_v42 }
 0x5b2   :  { %8884 = vmatprep.subr.bf16.mxu0 %v11213_v25 }
 0x5b3   :  { %8924 = vmatpush2.bf16.msra.mxu1 %v11348_v24 }
 0x5b4   :  { %8925 = vmatprep.subr.bf16.mxu1 %v11341_v41 }
 0x5b5   :  { %8885 = vmatpush2.bf16.msra.mxu0 %v11212_v56 }
 0x5b6   :  { %8886 = vmatprep.subr.bf16.mxu0 %v11205_v39 }
 0x5b7   :  { %8926 = vmatpush2.bf16.msra.mxu1 %v11340_v12 }
 0x5b8   :  { %8927 = vmatprep.subr.bf16.mxu1 %v11333_v37 }
 0x5b9   :  { %8887 = vmatpush2.bf16.msra.mxu0 %v11204_v2 }
 0x5ba   :  { %8888 = vmatprep.subr.bf16.mxu0 %v11197_v23 }
 0x5bb   :  { %8928 = vmatpush2.bf16.msra.mxu1 %v11332_v44 }
 0x5bc   :  { %8929 = vmatprep.subr.bf16.mxu1 %v11325_v47 }
 0x5bd   :  { %8889 = vmatpush2.bf16.msra.mxu0 %v11196_v48 }
 0x5bf   :  { %8930 = vmatpush2.bf16.msra.mxu1 %v11324_v36 }
 0x5c0   :  { %v8646_v28 = vpop.f32.mrf.mxu0  ;;  %8891 = vmatmul.mubr.bf16.vlgmr.msra.gmra.mxu0 %v12384_v50 }
 0x5c1   :  { %v8647_v3 = vadd.f32 %v8646_v28, %v2495_v5 }
 0x5c2   :  { %v8687_v58 = vpop.f32.mrf.mxu1  ;;  %8932 = vmatmul.mubr.bf16.vlgmr.msra.gmra.mxu1 %v12390_v8  ;;  %v8648_v53 = vpop.f32.mrf.mxu0 }
 0x5c3   :  { %v8688_v46 = vadd.f32 %v8687_v58, %v8647_v3  ;;  %v8649_v4 = vadd.f32 %v8648_v53, %v2499_v51 }
 0x5c4   :  { %v8689_v60 = vpop.f32.mrf.mxu1  ;;  %v8650_v62 = vpop.f32.mrf.mxu0 }
 0x5c5   :  { %v8690_v55 = vadd.f32 %v8689_v60, %v8649_v4 }
 0x5c6   :  { %v8691_v27 = vpop.f32.mrf.mxu1  ;;  %v8651_v49 = vpop.f32.mrf.mxu0 }
 0x5c8   :  { %v8692_v57 = vpop.f32.mrf.mxu1 }
 0x600   :  { %v8728_v52 = vpop.f32.mrf.mxu0 }
 0x601   :  { %v8729_v21 = vadd.f32 %v8728_v52, %v8688_v46 }
 0x602   :  { %v8769_v7 = vpop.f32.mrf.mxu1  ;;  %v8730_v54 = vpop.f32.mrf.mxu0 }
 0x603   :  { %v8770_v40 = vadd.f32 %v8769_v7, %v8729_v21  ;;  %v8731_v13 = vadd.f32 %v8730_v54, %v8690_v55 }
 0x604   :  { %v8771_v50 = vpop.f32.mrf.mxu1  ;;  %v8732_v9 = vpop.f32.mrf.mxu0 }
 0x605   :  { %v8772_v43 = vadd.f32 %v8771_v50, %v8731_v13 }
 0x606   :  { %v8773_v38 = vpop.f32.mrf.mxu1  ;;  %v8733_v8 = vpop.f32.mrf.mxu0 }
 0x608   :  { %v8774_v1 = vpop.f32.mrf.mxu1 }
 0x640   :  { %v8810_v6 = vpop.f32.mrf.mxu0 }
 0x641   :  { %v8811_v35 = vadd.f32 %v8810_v6, %v8770_v40 }
 0x642   :  { %v8851_v42 = vpop.f32.mrf.mxu1  ;;  %v8812_v24 = vpop.f32.mrf.mxu0 }
 0x643   :  { %v8813_v56 = vadd.f32 %v8812_v24, %v8772_v43  ;;  %v8852_v12 = vadd.f32 %v8851_v42, %v8811_v35 }
 0x644   :  { %v8853_v25 = vpop.f32.mrf.mxu1  ;;  %v8814_v41 = vpop.f32.mrf.mxu0 }
 0x645   :  { %v8854_v37 = vadd.f32 %v8853_v25, %v8813_v56 }
 0x646   :  { %v8855_v11 = vpop.f32.mrf.mxu1  ;;  %v8815_v15 = vpop.f32.mrf.mxu0 }
 0x648   :  { %v8856_v30 = vpop.f32.mrf.mxu1 }
 0x680   :  { %v8892_v39 = vpop.f32.mrf.mxu0 }
 0x681   :  { %v8893_v63 = vadd.f32 %v8892_v39, %v8852_v12 }
 0x682   :  { %v8933_v17 = vpop.f32.mrf.mxu1  ;;  %v8894_v20 = vpop.f32.mrf.mxu0 }
 0x683   :  { %v12521_v34 = vadd.f32 %v8933_v17, %v8893_v63  ;;  %v8895_v2 = vadd.f32 %v8894_v20, %v8854_v37 }
 0x684   :  { %v8935_v44 = vpop.f32.mrf.mxu1  ;;  %v8896_v23 = vpop.f32.mrf.mxu0 }
 0x685   :  { %v8946_v47 = vmax.f32 %v12521_v34, 0.0  ;;  %v12524_v48 = vadd.f32 %v8935_v44, %v8895_v2 }
 0x686   :  { %v8937_v36 = vpop.f32.mrf.mxu1  ;;  %v8897_v18 = vpop.f32.mrf.mxu0 }
 0x687   :  { %v8947_v5 = vmax.f32 %v12524_v48, 0.0 }
 0x688   :  { %v8938_v51 = vpop.f32.mrf.mxu1 }
 0x689   :  { %12037 = dma.done.wait [#allocation6 + $0x1], 16384 }
 0x68a   :  { %12038 = vsyncadd [#allocation6 + $0x1], 4294950912  ;;  %v9081_v28 = vpack.c.bf16 %v8941_v16, %v8941_v16  ;;  %v9083_v3 = vpack.c.bf16 %v8943_v31, %v8943_v31  ;;  %v11595_v58 = vld [vmem:[#allocation3 + $0x74] ss:$8 sps:$4 sm:$0xff]   ;;  %v11599_v46 = vld [vmem:[#allocation3 + $0x70] ss:$8 sps:$4 sm:$0xff]   ;;  %v9087_v10 = vpack.c.bf16 %v8947_v5, %v8947_v5 }
 0x68b   :  { %v11597_v53 = vld [vmem:[#allocation3 + $0x174] ss:$8 sps:$4 sm:$0xff]   ;;  %9740 = vmatprep.subr.bf16.mxu0 %v11595_v58  ;;  %v11600_v4 = vld [vmem:[#allocation3 + $0x170] ss:$8 sps:$4 sm:$0xff]   ;;  %v11601_v60 = vld [vmem:[#allocation3 + $0x64] ss:$8 sps:$4 sm:$0xff]  }
 0x68c   :  { %9772 = vmatprep.mubr.bf16.mxu0 %v9081_v28  ;;  %9813 = vmatprep.mubr.bf16.mxu1 %v9083_v3  ;;  %v11603_v62 = vld [vmem:[#allocation3 + $0x164] ss:$8 sps:$4 sm:$0xff]   ;;  %v11605_v55 = vld [vmem:[#allocation3 + $0x60] ss:$8 sps:$4 sm:$0xff]   ;;  %v11607_v16 = vld [vmem:[#allocation3 + $0x54] ss:$8 sps:$4 sm:$0xff]  }
 0x68d   :  { %9781 = vmatprep.subr.bf16.mxu1 %v11597_v53  ;;  %9741 = vmatpush1.bf16.msra.mxu0 %v11599_v46  ;;  %v11606_v32 = vld [vmem:[#allocation3 + $0x160] ss:$8 sps:$4 sm:$0xff]   ;;  %v11609_v59 = vld [vmem:[#allocation3 + $0x154] ss:$8 sps:$4 sm:$0xff]   ;;  %v11611_v27 = vld [vmem:[#allocation3 + $0x50] ss:$8 sps:$4 sm:$0xff]  }
 0x68e   :  { %9782 = vmatpush1.bf16.msra.mxu1 %v11600_v4  ;;  %9742 = vmatprep.subr.bf16.mxu0 %v11601_v60  ;;  %v11612_v31 = vld [vmem:[#allocation3 + $0x150] ss:$8 sps:$4 sm:$0xff]   ;;  %v11613_v49 = vld [vmem:[#allocation3 + $0x44] ss:$8 sps:$4 sm:$0xff]   ;;  %v11617_v52 = vld [vmem:[#allocation3 + $0x40] ss:$8 sps:$4 sm:$0xff]  }
 0x68f   :  { %9783 = vmatprep.subr.bf16.mxu1 %v11603_v62  ;;  %v11615_v57 = vld [vmem:[#allocation3 + $0x144] ss:$8 sps:$4 sm:$0xff]   ;;  %v11618_v21 = vld [vmem:[#allocation3 + $0x140] ss:$8 sps:$4 sm:$0xff]   ;;  %v11619_v7 = vld [vmem:[#allocation3 + $0x34] ss:$8 sps:$4 sm:$0xff]  }
 0x690   :  { %v11621_v54 = vld [vmem:[#allocation3 + $0x134] ss:$8 sps:$4 sm:$0xff]   ;;  %v11623_v40 = vld [vmem:[#allocation3 + $0x30] ss:$8 sps:$4 sm:$0xff]   ;;  %v11625_v50 = vld [vmem:[#allocation3 + $0x24] ss:$8 sps:$4 sm:$0xff]  }
 0x691   :  { %9743 = vmatpush1.bf16.msra.mxu0 %v11605_v55  ;;  %v11624_v13 = vld [vmem:[#allocation3 + $0x130] ss:$8 sps:$4 sm:$0xff]   ;;  %v11627_v9 = vld [vmem:[#allocation3 + $0x124] ss:$8 sps:$4 sm:$0xff]   ;;  %v11629_v43 = vld [vmem:[#allocation3 + $0x20] ss:$8 sps:$4 sm:$0xff]  }
 0x692   :  { %9784 = vmatpush1.bf16.msra.mxu1 %v11606_v32  ;;  %9744 = vmatprep.subr.bf16.mxu0 %v11607_v16  ;;  %v11630_v38 = vld [vmem:[#allocation3 + $0x120] ss:$8 sps:$4 sm:$0xff]   ;;  %v11631_v8 = vld [vmem:[#allocation3 + $0x14] ss:$8 sps:$4 sm:$0xff]   ;;  %v11635_v6 = vld [vmem:[#allocation3 + $0x10] ss:$8 sps:$4 sm:$0xff]  }
 0x693   :  { %9785 = vmatprep.subr.bf16.mxu1 %v11609_v59  ;;  %v11633_v1 = vld [vmem:[#allocation3 + $0x114] ss:$8 sps:$4 sm:$0xff]   ;;  %v11636_v42 = vld [vmem:[#allocation3 + $0x110] ss:$8 sps:$4 sm:$0xff]   ;;  %v11637_v24 = vld [vmem:[#allocation3 + $0x4] ss:$8 sps:$4 sm:$0xff]  }
 0x694   :  { %v11639_v25 = vld [vmem:[#allocation3 + $0x104] ss:$8 sps:$4 sm:$0xff]   ;;  %v11641_v41 = vld [vmem:[#allocation3] ss:$8 sps:$4 sm:$0xff]   ;;  %v11643_v15 = vld [vmem:[#allocation3 + $0xf4] ss:$8 sps:$4 sm:$0xff]  }
 0x695   :  { %9745 = vmatpush1.bf16.msra.mxu0 %v11611_v27  ;;  %v11642_v11 = vld [vmem:[#allocation3 + $0x100] ss:$8 sps:$4 sm:$0xff]   ;;  %v11645_v30 = vld [vmem:[#allocation3 + $0x1f4] ss:$8 sps:$4 sm:$0xff]   ;;  %v11647_v35 = vld [vmem:[#allocation3 + $0xf0] ss:$8 sps:$4 sm:$0xff]  }
 0x696   :  { %9786 = vmatpush1.bf16.msra.mxu1 %v11612_v31  ;;  %9746 = vmatprep.subr.bf16.mxu0 %v11613_v49  ;;  %v11648_v56 = vld [vmem:[#allocation3 + $0x1f0] ss:$8 sps:$4 sm:$0xff]   ;;  %v11649_v12 = vld [vmem:[#allocation3 + $0xe4] ss:$8 sps:$4 sm:$0xff]   ;;  %v11653_v37 = vld [vmem:[#allocation3 + $0xe0] ss:$8 sps:$4 sm:$0xff]  }
 0x697   :  { %9787 = vmatprep.subr.bf16.mxu1 %v11615_v57  ;;  %v11651_v39 = vld [vmem:[#allocation3 + $0x1e4] ss:$8 sps:$4 sm:$0xff]   ;;  %v11654_v63 = vld [vmem:[#allocation3 + $0x1e0] ss:$8 sps:$4 sm:$0xff]   ;;  %v11655_v17 = vld [vmem:[#allocation3 + $0xd4] ss:$8 sps:$4 sm:$0xff]  }
 0x698   :  { %v11657_v20 = vld [vmem:[#allocation3 + $0x1d4] ss:$8 sps:$4 sm:$0xff]   ;;  %v11659_v2 = vld [vmem:[#allocation3 + $0xd0] ss:$8 sps:$4 sm:$0xff]   ;;  %v11661_v23 = vld [vmem:[#allocation3 + $0xc4] ss:$8 sps:$4 sm:$0xff]  }
 0x699   :  { %9747 = vmatpush1.bf16.msra.mxu0 %v11617_v52  ;;  %v11660_v44 = vld [vmem:[#allocation3 + $0x1d0] ss:$8 sps:$4 sm:$0xff]   ;;  %v11663_v36 = vld [vmem:[#allocation3 + $0x1c4] ss:$8 sps:$4 sm:$0xff]   ;;  %v11665_v18 = vld [vmem:[#allocation3 + $0xc0] ss:$8 sps:$4 sm:$0xff]  }
 0x69a   :  { %9788 = vmatpush1.bf16.msra.mxu1 %v11618_v21  ;;  %9748 = vmatprep.subr.bf16.mxu0 %v11619_v7  ;;  %v11666_v51 = vld [vmem:[#allocation3 + $0x1c0] ss:$8 sps:$4 sm:$0xff]   ;;  %v11667_v28 = vld [vmem:[#allocation3 + $0xb4] ss:$8 sps:$4 sm:$0xff]   ;;  %v11671_v58 = vld [vmem:[#allocation3 + $0xb0] ss:$8 sps:$4 sm:$0xff]   ;;  %v9080_v7 = vpack.c.bf16 %v8940_v22, %v8940_v22 }
 0x69b   :  { %9789 = vmatprep.subr.bf16.mxu1 %v11621_v54  ;;  %v11669_v3 = vld [vmem:[#allocation3 + $0x1b4] ss:$8 sps:$4 sm:$0xff]   ;;  %v11672_v53 = vld [vmem:[#allocation3 + $0x1b0] ss:$8 sps:$4 sm:$0xff]   ;;  %v11673_v46 = vld [vmem:[#allocation3 + $0xa4] ss:$8 sps:$4 sm:$0xff]   ;;  %v9082_v54 = vpack.c.bf16 %v8942_v61, %v8942_v61 }
 0x69c   :  { %v11675_v4 = vld [vmem:[#allocation3 + $0x1a4] ss:$8 sps:$4 sm:$0xff]   ;;  %v11677_v60 = vld [vmem:[#allocation3 + $0xa0] ss:$8 sps:$4 sm:$0xff]   ;;  %v11679_v55 = vld [vmem:[#allocation3 + $0x94] ss:$8 sps:$4 sm:$0xff]  }
 0x69d   :  { %9749 = vmatpush1.bf16.msra.mxu0 %v11623_v40  ;;  %v11678_v62 = vld [vmem:[#allocation3 + $0x1a0] ss:$8 sps:$4 sm:$0xff]   ;;  %v11681_v32 = vld [vmem:[#allocation3 + $0x194] ss:$8 sps:$4 sm:$0xff]   ;;  %v11683_v16 = vld [vmem:[#allocation3 + $0x90] ss:$8 sps:$4 sm:$0xff]  }
 0x69e   :  { %9790 = vmatpush1.bf16.msra.mxu1 %v11624_v13  ;;  %9750 = vmatprep.subr.bf16.mxu0 %v11625_v50  ;;  %v11684_v59 = vld [vmem:[#allocation3 + $0x190] ss:$8 sps:$4 sm:$0xff]   ;;  %v11685_v27 = vld [vmem:[#allocation3 + $0x84] ss:$8 sps:$4 sm:$0xff]   ;;  %v11689_v49 = vld [vmem:[#allocation3 + $0x80] ss:$8 sps:$4 sm:$0xff]  }
 0x69f   :  { %9791 = vmatprep.subr.bf16.mxu1 %v11627_v9  ;;  %v11687_v31 = vld [vmem:[#allocation3 + $0x184] ss:$8 sps:$4 sm:$0xff]   ;;  %v11690_v57 = vld [vmem:[#allocation3 + $0x180] ss:$8 sps:$4 sm:$0xff]   ;;  %v11693_v52 = vld [vmem:[#allocation3 + $0x274] ss:$8 sps:$4 sm:$0xff]  }
 0x6a0   :  { %v11696_v21 = vld [vmem:[#allocation3 + $0x374] ss:$8 sps:$4 sm:$0xff]   ;;  %v11691_v40 = vld [vmem:[#allocation3 + $0x270] ss:$8 sps:$4 sm:$0xff]   ;;  %v11699_v50 = vld [vmem:[#allocation3 + $0x264] ss:$8 sps:$4 sm:$0xff]  }
 0x6a1   :  { %9751 = vmatpush1.bf16.msra.mxu0 %v11629_v43  ;;  %v11694_v13 = vld [vmem:[#allocation3 + $0x370] ss:$8 sps:$4 sm:$0xff]   ;;  %v11702_v9 = vld [vmem:[#allocation3 + $0x364] ss:$8 sps:$4 sm:$0xff]   ;;  %v9085_v43 = vpack.c.bf16 %v8945_v19, %v8945_v19  ;;  %v11697_v22 = vld [vmem:[#allocation3 + $0x260] ss:$8 sps:$4 sm:$0xff]  }
 0x6a2   :  { %9792 = vmatpush1.bf16.msra.mxu1 %v11630_v38  ;;  %9752 = vmatprep.subr.bf16.mxu0 %v11631_v8  ;;  %v11700_v0 = vld [vmem:[#allocation3 + $0x360] ss:$8 sps:$4 sm:$0xff]   ;;  %v11705_v61 = vld [vmem:[#allocation3 + $0x254] ss:$8 sps:$4 sm:$0xff]   ;;  %v11703_v8 = vld [vmem:[#allocation3 + $0x250] ss:$8 sps:$4 sm:$0xff]  }
 0x6a3   :  { %9793 = vmatprep.subr.bf16.mxu1 %v11633_v1  ;;  %v11708_v38 = vld [vmem:[#allocation3 + $0x354] ss:$8 sps:$4 sm:$0xff]   ;;  %v11706_v14 = vld [vmem:[#allocation3 + $0x350] ss:$8 sps:$4 sm:$0xff]   ;;  %v11711_v19 = vld [vmem:[#allocation3 + $0x244] ss:$8 sps:$4 sm:$0xff]  }
 0x6a4   :  { %v11714_v48 = vld [vmem:[#allocation3 + $0x344] ss:$8 sps:$4 sm:$0xff]   ;;  %v11709_v5 = vld [vmem:[#allocation3 + $0x240] ss:$8 sps:$4 sm:$0xff]  }
 0x6a5   :  { %9753 = vmatpush1.bf16.msra.mxu0 %v11635_v6  ;;  %v11712_v1 = vld [vmem:[#allocation3 + $0x340] ss:$8 sps:$4 sm:$0xff]   ;;  %v11717_v6 = vld [vmem:[#allocation3 + $0x234] ss:$8 sps:$4 sm:$0xff]  }
 0x6a6   :  { %9794 = vmatpush1.bf16.msra.mxu1 %v11636_v42  ;;  %9754 = vmatprep.subr.bf16.mxu0 %v11637_v24  ;;  %v11720_v42 = vld [vmem:[#allocation3 + $0x334] ss:$8 sps:$4 sm:$0xff]   ;;  %v11715_v24 = vld [vmem:[#allocation3 + $0x230] ss:$8 sps:$4 sm:$0xff]  }
 0x6a7   :  { %9795 = vmatprep.subr.bf16.mxu1 %v11639_v25  ;;  %v11718_v25 = vld [vmem:[#allocation3 + $0x330] ss:$8 sps:$4 sm:$0xff]  }
 0x6a9   :  { %9755 = vmatpush1.bf16.msra.mxu0 %v11641_v41  ;;  %v11723_v41 = vld [vmem:[#allocation3 + $0x224] ss:$8 sps:$4 sm:$0xff]  }
 0x6aa   :  { %9796 = vmatpush1.bf16.msra.mxu1 %v11642_v11  ;;  %9756 = vmatprep.subr.bf16.mxu0 %v11643_v15  ;;  %v11726_v11 = vld [vmem:[#allocation3 + $0x324] ss:$8 sps:$4 sm:$0xff]   ;;  %v11721_v15 = vld [vmem:[#allocation3 + $0x220] ss:$8 sps:$4 sm:$0xff]  }
 0x6ab   :  { %9797 = vmatprep.subr.bf16.mxu1 %v11645_v30  ;;  %v11724_v30 = vld [vmem:[#allocation3 + $0x320] ss:$8 sps:$4 sm:$0xff]  }
 0x6ad   :  { %9757 = vmatpush2.bf16.msra.mxu0 %v11647_v35  ;;  %v11729_v35 = vld [vmem:[#allocation3 + $0x214] ss:$8 sps:$4 sm:$0xff]  }
 0x6ae   :  { %9798 = vmatpush2.bf16.msra.mxu1 %v11648_v56  ;;  %9758 = vmatprep.subr.bf16.mxu0 %v11649_v12  ;;  %v11732_v56 = vld [vmem:[#allocation3 + $0x314] ss:$8 sps:$4 sm:$0xff]   ;;  %v11727_v12 = vld [vmem:[#allocation3 + $0x210] ss:$8 sps:$4 sm:$0xff]  }
 0x6af   :  { %9799 = vmatprep.subr.bf16.mxu1 %v11651_v39  ;;  %v11730_v39 = vld [vmem:[#allocation3 + $0x310] ss:$8 sps:$4 sm:$0xff]  }
 0x6b1   :  { %9759 = vmatpush2.bf16.msra.mxu0 %v11653_v37  ;;  %v11735_v37 = vld [vmem:[#allocation3 + $0x204] ss:$8 sps:$4 sm:$0xff]  }
 0x6b2   :  { %9800 = vmatpush2.bf16.msra.mxu1 %v11654_v63  ;;  %9760 = vmatprep.subr.bf16.mxu0 %v11655_v17  ;;  %v11738_v63 = vld [vmem:[#allocation3 + $0x304] ss:$8 sps:$4 sm:$0xff]   ;;  %v11733_v17 = vld [vmem:[#allocation3 + $0x200] ss:$8 sps:$4 sm:$0xff]  }
 0x6b3   :  { %9801 = vmatprep.subr.bf16.mxu1 %v11657_v20  ;;  %v11736_v20 = vld [vmem:[#allocation3 + $0x300] ss:$8 sps:$4 sm:$0xff]  }
 0x6b5   :  { %9761 = vmatpush2.bf16.msra.mxu0 %v11659_v2  ;;  %v11741_v2 = vld [vmem:[#allocation3 + $0x2f4] ss:$8 sps:$4 sm:$0xff]  }
 0x6b6   :  { %9802 = vmatpush2.bf16.msra.mxu1 %v11660_v44  ;;  %9762 = vmatprep.subr.bf16.mxu0 %v11661_v23  ;;  %v11744_v44 = vld [vmem:[#allocation3 + $0x3f4] ss:$8 sps:$4 sm:$0xff]   ;;  %v11739_v23 = vld [vmem:[#allocation3 + $0x2f0] ss:$8 sps:$4 sm:$0xff]  }
 0x6b7   :  { %9803 = vmatprep.subr.bf16.mxu1 %v11663_v36  ;;  %v11742_v36 = vld [vmem:[#allocation3 + $0x3f0] ss:$8 sps:$4 sm:$0xff]  }
 0x6b9   :  { %9763 = vmatpush2.bf16.msra.mxu0 %v11665_v18  ;;  %v11747_v18 = vld [vmem:[#allocation3 + $0x2e4] ss:$8 sps:$4 sm:$0xff]  }
 0x6ba   :  { %9804 = vmatpush2.bf16.msra.mxu1 %v11666_v51  ;;  %9764 = vmatprep.subr.bf16.mxu0 %v11667_v28  ;;  %v11750_v51 = vld [vmem:[#allocation3 + $0x3e4] ss:$8 sps:$4 sm:$0xff]   ;;  %v11745_v28 = vld [vmem:[#allocation3 + $0x2e0] ss:$8 sps:$4 sm:$0xff]  }
 0x6bb   :  { %9805 = vmatprep.subr.bf16.mxu1 %v11669_v3  ;;  %v11748_v3 = vld [vmem:[#allocation3 + $0x3e0] ss:$8 sps:$4 sm:$0xff]  }
 0x6bd   :  { %9765 = vmatpush2.bf16.msra.mxu0 %v11671_v58  ;;  %v11753_v58 = vld [vmem:[#allocation3 + $0x2d4] ss:$8 sps:$4 sm:$0xff]  }
 0x6be   :  { %9806 = vmatpush2.bf16.msra.mxu1 %v11672_v53  ;;  %9766 = vmatprep.subr.bf16.mxu0 %v11673_v46  ;;  %v11756_v53 = vld [vmem:[#allocation3 + $0x3d4] ss:$8 sps:$4 sm:$0xff]   ;;  %v11751_v46 = vld [vmem:[#allocation3 + $0x2d0] ss:$8 sps:$4 sm:$0xff]  }
 0x6bf   :  { %9807 = vmatprep.subr.bf16.mxu1 %v11675_v4  ;;  %v11754_v4 = vld [vmem:[#allocation3 + $0x3d0] ss:$8 sps:$4 sm:$0xff]  }
 0x6c1   :  { %9767 = vmatpush2.bf16.msra.mxu0 %v11677_v60  ;;  %v11759_v60 = vld [vmem:[#allocation3 + $0x2c4] ss:$8 sps:$4 sm:$0xff]  }
 0x6c2   :  { %9808 = vmatpush2.bf16.msra.mxu1 %v11678_v62  ;;  %9768 = vmatprep.subr.bf16.mxu0 %v11679_v55  ;;  %v11762_v62 = vld [vmem:[#allocation3 + $0x3c4] ss:$8 sps:$4 sm:$0xff]   ;;  %v11757_v55 = vld [vmem:[#allocation3 + $0x2c0] ss:$8 sps:$4 sm:$0xff]  }
 0x6c3   :  { %9809 = vmatprep.subr.bf16.mxu1 %v11681_v32  ;;  %v11760_v32 = vld [vmem:[#allocation3 + $0x3c0] ss:$8 sps:$4 sm:$0xff]  }
 0x6c5   :  { %9769 = vmatpush2.bf16.msra.mxu0 %v11683_v16  ;;  %v11765_v16 = vld [vmem:[#allocation3 + $0x2b4] ss:$8 sps:$4 sm:$0xff]  }
 0x6c6   :  { %9810 = vmatpush2.bf16.msra.mxu1 %v11684_v59  ;;  %9770 = vmatprep.subr.bf16.mxu0 %v11685_v27  ;;  %v11768_v59 = vld [vmem:[#allocation3 + $0x3b4] ss:$8 sps:$4 sm:$0xff]   ;;  %v11763_v27 = vld [vmem:[#allocation3 + $0x2b0] ss:$8 sps:$4 sm:$0xff]  }
 0x6c7   :  { %9811 = vmatprep.subr.bf16.mxu1 %v11687_v31  ;;  %v11766_v31 = vld [vmem:[#allocation3 + $0x3b0] ss:$8 sps:$4 sm:$0xff]  }
 0x6c9   :  { %9771 = vmatpush2.bf16.msra.mxu0 %v11689_v49  ;;  %v11771_v49 = vld [vmem:[#allocation3 + $0x2a4] ss:$8 sps:$4 sm:$0xff]  }
 0x6ca   :  { %9812 = vmatpush2.bf16.msra.mxu1 %v11690_v57  ;;  %9822 = vmatprep.subr.bf16.mxu0 %v11693_v52  ;;  %v11774_v57 = vld [vmem:[#allocation3 + $0x3a4] ss:$8 sps:$4 sm:$0xff]   ;;  %v11769_v52 = vld [vmem:[#allocation3 + $0x2a0] ss:$8 sps:$4 sm:$0xff]  }
 0x6cb   :  { %9863 = vmatprep.subr.bf16.mxu1 %v11696_v21  ;;  %v11772_v21 = vld [vmem:[#allocation3 + $0x3a0] ss:$8 sps:$4 sm:$0xff]  }
 0x6cc   :  { %9773 = vmatmul.mubr.bf16.vlgmr.msra.gmra.mxu0 %v9080_v7  ;;  %v11777_v7 = vld [vmem:[#allocation3 + $0x294] ss:$8 sps:$4 sm:$0xff]  }
 0x6cd   :  { %9814 = vmatmul.mubr.bf16.vlgmr.msra.gmra.mxu1 %v9082_v54  ;;  %9823 = vmatpush1.bf16.msra.mxu0 %v11691_v40  ;;  %v11780_v54 = vld [vmem:[#allocation3 + $0x394] ss:$8 sps:$4 sm:$0xff]   ;;  %v11775_v40 = vld [vmem:[#allocation3 + $0x290] ss:$8 sps:$4 sm:$0xff]  }
 0x6ce   :  { %9864 = vmatpush1.bf16.msra.mxu1 %v11694_v13  ;;  %9824 = vmatprep.subr.bf16.mxu0 %v11699_v50  ;;  %v11778_v13 = vld [vmem:[#allocation3 + $0x390] ss:$8 sps:$4 sm:$0xff]   ;;  %v11783_v50 = vld [vmem:[#allocation3 + $0x284] ss:$8 sps:$4 sm:$0xff]  }
 0x6cf   :  { %9865 = vmatprep.subr.bf16.mxu1 %v11702_v9  ;;  %9854 = vmatprep.mubr.bf16.mxu0 %v9085_v43  ;;  %v11786_v9 = vld [vmem:[#allocation3 + $0x384] ss:$8 sps:$4 sm:$0xff]   ;;  %v11781_v43 = vld [vmem:[#allocation3 + $0x280] ss:$8 sps:$4 sm:$0xff]  }
 0x6d0   :  { %9895 = vmatprep.mubr.bf16.mxu1 %v9087_v10  ;;  %v11784_v10 = vld [vmem:[#allocation3 + $0x380] ss:$8 sps:$4 sm:$0xff]  }
 0x6d1   :  { %9825 = vmatpush1.bf16.msra.mxu0 %v11697_v22  ;;  %v9084_v22 = vpack.c.bf16 %v8944_v33, %v8944_v33 }
 0x6d2   :  { %9866 = vmatpush1.bf16.msra.mxu1 %v11700_v0  ;;  %9826 = vmatprep.subr.bf16.mxu0 %v11705_v61  ;;  %v9086_v0 = vpack.c.bf16 %v8946_v47, %v8946_v47 }
 0x6d3   :  { %9867 = vmatprep.subr.bf16.mxu1 %v11708_v38 }
 0x6d5   :  { %9827 = vmatpush1.bf16.msra.mxu0 %v11703_v8 }
 0x6d6   :  { %9868 = vmatpush1.bf16.msra.mxu1 %v11706_v14  ;;  %9828 = vmatprep.subr.bf16.mxu0 %v11711_v19 }
 0x6d7   :  { %9869 = vmatprep.subr.bf16.mxu1 %v11714_v48 }
 0x6d9   :  { %9829 = vmatpush1.bf16.msra.mxu0 %v11709_v5 }
 0x6da   :  { %9870 = vmatpush1.bf16.msra.mxu1 %v11712_v1  ;;  %9830 = vmatprep.subr.bf16.mxu0 %v11717_v6  ;;  %v9088_v6 = vld [vmem:[#allocation15] sm:$0x3] }
 0x6db   :  { %9871 = vmatprep.subr.bf16.mxu1 %v11720_v42  ;;  %v9093_v45 = vrot.slane %v9088_v6, %v12217_v26  ;;  %v9097_v33 = vrot.slane %v9088_v6, %v12221_v29 }
 0x6dd   :  { %9831 = vmatpush1.bf16.msra.mxu0 %v11715_v24 }
 0x6de   :  { %9872 = vmatpush1.bf16.msra.mxu1 %v11718_v25  ;;  %9832 = vmatprep.subr.bf16.mxu0 %v11723_v41 }
 0x6df   :  { %9873 = vmatprep.subr.bf16.mxu1 %v11726_v11 }
 0x6e1   :  { %9833 = vmatpush1.bf16.msra.mxu0 %v11721_v15 }
 0x6e2   :  { %9874 = vmatpush1.bf16.msra.mxu1 %v11724_v30  ;;  %9834 = vmatprep.subr.bf16.mxu0 %v11729_v35 }
 0x6e3   :  { %9875 = vmatprep.subr.bf16.mxu1 %v11732_v56 }
 0x6e5   :  { %9835 = vmatpush1.bf16.msra.mxu0 %v11727_v12 }
 0x6e6   :  { %9876 = vmatpush1.bf16.msra.mxu1 %v11730_v39  ;;  %9836 = vmatprep.subr.bf16.mxu0 %v11735_v37 }
 0x6e7   :  { %9877 = vmatprep.subr.bf16.mxu1 %v11738_v63 }
 0x6e9   :  { %9837 = vmatpush1.bf16.msra.mxu0 %v11733_v17 }
 0x6ea   :  { %9878 = vmatpush1.bf16.msra.mxu1 %v11736_v20  ;;  %9838 = vmatprep.subr.bf16.mxu0 %v11741_v2 }
 0x6eb   :  { %9879 = vmatprep.subr.bf16.mxu1 %v11744_v44 }
 0x6ed   :  { %9839 = vmatpush2.bf16.msra.mxu0 %v11739_v23 }
 0x6ee   :  { %9880 = vmatpush2.bf16.msra.mxu1 %v11742_v36  ;;  %9840 = vmatprep.subr.bf16.mxu0 %v11747_v18 }
 0x6ef   :  { %9881 = vmatprep.subr.bf16.mxu1 %v11750_v51 }
 0x6f1   :  { %9841 = vmatpush2.bf16.msra.mxu0 %v11745_v28 }
 0x6f2   :  { %9882 = vmatpush2.bf16.msra.mxu1 %v11748_v3  ;;  %9842 = vmatprep.subr.bf16.mxu0 %v11753_v58 }
 0x6f3   :  { %9883 = vmatprep.subr.bf16.mxu1 %v11756_v53 }
 0x6f5   :  { %9843 = vmatpush2.bf16.msra.mxu0 %v11751_v46 }
 0x6f6   :  { %9884 = vmatpush2.bf16.msra.mxu1 %v11754_v4  ;;  %9844 = vmatprep.subr.bf16.mxu0 %v11759_v60 }
 0x6f7   :  { %9885 = vmatprep.subr.bf16.mxu1 %v11762_v62 }
 0x6f9   :  { %9845 = vmatpush2.bf16.msra.mxu0 %v11757_v55 }
 0x6fa   :  { %9886 = vmatpush2.bf16.msra.mxu1 %v11760_v32  ;;  %9846 = vmatprep.subr.bf16.mxu0 %v11765_v16 }
 0x6fb   :  { %9887 = vmatprep.subr.bf16.mxu1 %v11768_v59 }
 0x6fd   :  { %9847 = vmatpush2.bf16.msra.mxu0 %v11763_v27 }
 0x6fe   :  { %9888 = vmatpush2.bf16.msra.mxu1 %v11766_v31  ;;  %9848 = vmatprep.subr.bf16.mxu0 %v11771_v49 }
 0x6ff   :  { %9889 = vmatprep.subr.bf16.mxu1 %v11774_v57 }
 0x701   :  { %9849 = vmatpush2.bf16.msra.mxu0 %v11769_v52 }
 0x702   :  { %9890 = vmatpush2.bf16.msra.mxu1 %v11772_v21  ;;  %9850 = vmatprep.subr.bf16.mxu0 %v11777_v7 }
 0x703   :  { %9891 = vmatprep.subr.bf16.mxu1 %v11780_v54 }
 0x705   :  { %9851 = vmatpush2.bf16.msra.mxu0 %v11775_v40 }
 0x706   :  { %9892 = vmatpush2.bf16.msra.mxu1 %v11778_v13  ;;  %9852 = vmatprep.subr.bf16.mxu0 %v11783_v50 }
 0x707   :  { %9893 = vmatprep.subr.bf16.mxu1 %v11786_v9 }
 0x709   :  { %9853 = vmatpush2.bf16.msra.mxu0 %v11781_v43 }
 0x70a   :  { %9894 = vmatpush2.bf16.msra.mxu1 %v11784_v10 }
 0x70c   :  { %9855 = vmatmul.mubr.bf16.vlgmr.msra.gmra.mxu0 %v9084_v22 }
 0x70d   :  { %9896 = vmatmul.mubr.bf16.vlgmr.msra.gmra.mxu1 %v9086_v0 }
 0x78c   :  { %v9774_v61 = vpop.f32.mrf.mxu0 }
 0x78d   :  { %v9815_v38 = vpop.f32.mrf.mxu1  ;;  %v9775_v34 = vadd.f32 %v9774_v61, %v9093_v45 }
 0x78e   :  { %v9776_v8 = vpop.f32.mrf.mxu0 }
 0x78f   :  { %v9817_v14 = vpop.f32.mrf.mxu1  ;;  %v9777_v42 = vadd.f32 %v9776_v8, %v9097_v33  ;;  %v9816_v47 = vadd.f32 %v9815_v38, %v9775_v34 }
 0x790   :  { %v9778_v19 = vpop.f32.mrf.mxu0 }
 0x791   :  { %v9819_v48 = vpop.f32.mrf.mxu1  ;;  %v9818_v41 = vadd.f32 %v9817_v14, %v9777_v42 }
 0x792   :  { %v9779_v5 = vpop.f32.mrf.mxu0 }
 0x793   :  { %v9820_v1 = vpop.f32.mrf.mxu1 }
 0x7cc   :  { %v9856_v24 = vpop.f32.mrf.mxu0 }
 0x7cd   :  { %v9897_v25 = vpop.f32.mrf.mxu1  ;;  %v9857_v11 = vadd.f32 %v9856_v24, %v9816_v47 }
 0x7ce   :  { %v9858_v15 = vpop.f32.mrf.mxu0 }
 0x7cf   :  { %v9899_v30 = vpop.f32.mrf.mxu1  ;;  %v9898_v35 = vadd.f32 %v9897_v25, %v9857_v11  ;;  %v9859_v56 = vadd.f32 %v9858_v15, %v9818_v41 }
 0x7d0   :  { %v9860_v12 = vpop.f32.mrf.mxu0 }
 0x7d1   :  { %v9901_v39 = vpop.f32.mrf.mxu1  ;;  %v9904_v37 = vmax.f32 %v9898_v35, 0.0  ;;  %v9900_v63 = vadd.f32 %v9899_v30, %v9859_v56 }
 0x7d2   :  { %v9861_v17 = vpop.f32.mrf.mxu0 }
 0x7d3   :  { %v9902_v20 = vpop.f32.mrf.mxu1  ;;  %v9905_v26 = vmax.f32 %v9900_v63, 0.0 }
 0x7d4   :  { %12039 = dma.done.wait [#allocation6 + $0x2], 2048 }
 0x7d5   :  { %12040 = vsyncadd [#allocation6 + $0x2], 4294965248  ;;  %v9943_v29 = vpack.c.bf16 %v9905_v26, %v9905_v26  ;;  %v11787_v2 = vld [vmem:[#allocation4 + $0x78] sm:$0xff]   ;;  %v11789_v23 = vld [vmem:[#allocation4 + $0x70] sm:$0xff]   ;;  %v9942_v16 = vpack.c.bf16 %v9904_v37, %v9904_v37 }
 0x7d6   :  { %v11788_v44 = vld [vmem:[#allocation4 + $0x38] sm:$0xff]   ;;  %11537 = vmatprep.subr.bf16.mxu0 %v11787_v2  ;;  %v11790_v36 = vld [vmem:[#allocation4 + $0x30] sm:$0xff]   ;;  %v11791_v18 = vld [vmem:[#allocation4 + $0x68] sm:$0xff]  }
 0x7d7   :  { %10079 = vmatprep.mubr.bf16.mxu0 %v9943_v29  ;;  %11538 = vmatpush3.bf16.msra.mxu0 %v11788_v44  ;;  %v11792_v51 = vld [vmem:[#allocation4 + $0x28] sm:$0xff]   ;;  %v11793_v28 = vld [vmem:[#allocation4 + $0x60] sm:$0xff]   ;;  %v11795_v58 = vld [vmem:[#allocation4 + $0x58] sm:$0xff]  }
 0x7d8   :  { %11539 = vmatprep.subr.bf16.mxu0 %v11789_v23  ;;  %v11794_v3 = vld [vmem:[#allocation4 + $0x20] sm:$0xff]   ;;  %v11796_v53 = vld [vmem:[#allocation4 + $0x18] sm:$0xff]   ;;  %v11797_v46 = vld [vmem:[#allocation4 + $0x50] sm:$0xff]  }
 0x7d9   :  { %v11798_v4 = vld [vmem:[#allocation4 + $0x10] sm:$0xff]   ;;  %v11799_v60 = vld [vmem:[#allocation4 + $0x48] sm:$0xff]   ;;  %v11801_v55 = vld [vmem:[#allocation4 + $0x40] sm:$0xff]  }
 0x7da   :  { %v11800_v62 = vld [vmem:[#allocation4 + $0x8] sm:$0xff]   ;;  %v11802_v32 = vld [vmem:[#allocation4] sm:$0xff]  }
 0x7db   :  { %11540 = vmatpush3.bf16.msra.mxu0 %v11790_v36  ;;  %v11510_v27 = vld [vmem:[#allocation16] ss:$0 sm:$0xff] }
 0x7dc   :  { %11541 = vmatprep.subr.bf16.mxu0 %v11791_v18 }
 0x7df   :  { %11542 = vmatpush3.bf16.msra.mxu0 %v11792_v51 }
 0x7e0   :  { %11543 = vmatprep.subr.bf16.mxu0 %v11793_v28 }
 0x7e3   :  { %11544 = vmatpush3.bf16.msra.mxu0 %v11794_v3 }
 0x7e4   :  { %11545 = vmatprep.subr.bf16.mxu0 %v11795_v58 }
 0x7e7   :  { %11546 = vmatpush3.bf16.msra.mxu0 %v11796_v53 }
 0x7e8   :  { %11547 = vmatprep.subr.bf16.mxu0 %v11797_v46 }
 0x7eb   :  { %11548 = vmatpush3.bf16.msra.mxu0 %v11798_v4 }
 0x7ec   :  { %11549 = vmatprep.subr.bf16.mxu0 %v11799_v60 }
 0x7ef   :  { %11550 = vmatpush3.bf16.msra.mxu0 %v11800_v62 }
 0x7f0   :  { %11551 = vmatprep.subr.bf16.mxu0 %v11801_v55 }
 0x7f3   :  { %11552 = vmatpush3.bf16.msra.mxu0 %v11802_v32 }
 0x7f6   :  { %10080 = vmatmul.mubr.bf16.vlgmr.msra.gmra.mxu0 %v9942_v16 }
 0x8b6   :  { %v11553_v59 = vpop.f32.mrf.mxu0 }
 0x8b8   :  { %v11554_v31 = vpop.f32.mrf.mxu0 }
 0x8b9   :  { %v11555_v49 = vadd.f32 %v11554_v31, %v11553_v59 }
 0x8ba   :  { %v11556_v57 = vpop.f32.mrf.mxu0 }
 0x8bb   :  { %v10082_v52 = vadd.f32 %v11555_v49, %v11510_v27 }
 0x8bc   :  { %v11557_v21 = vpop.f32.mrf.mxu0 }
 0x8bd   :  { %v10087_v7 = vmax.f32 %v10082_v52, 0.0 }
 0x8be   :  { %12041 = dma.done.wait [#allocation6 + $0x3], 512 }
 0x8bf   :  { %12042 = vsyncadd [#allocation6 + $0x3], 4294966784  ;;  %v12058_v54 = vmov 0.0   ;;  %vm12059_vm0 = vmmov 0   ;;  %v11803_v40 = vld [vmem:[#allocation5 + $0x18] sm:$0xff]   ;;  %v11804_v13 = vld [vmem:[#allocation5 + $0x10] sm:$0xff]   ;;  %v10100_v43 = vpack.c.bf16 %v10087_v7, %v10087_v7 }
 0x8c0   :  { %11564 = vmatprep.subr.bf16.mxu1 %v12058_v54  ;;  %11572 = vmatprep.mubr.msk.bf16.mxu1 %vm12059_vm0, %v12058_v54  ;;  %v11805_v50 = vld [vmem:[#allocation5 + $0x8] sm:$0xff]   ;;  %v11806_v9 = vld [vmem:[#allocation5] sm:$0xff]   ;;  %vm10132_vm1 = vcmask 523264   ;;  %s12060_s9 = smov [#allocation19]  }
 0x8c1   :  { %11565 = vmatpush3.bf16.msra.mxu1 %v11803_v40  ;;  %v11527_v10 = vld [vmem:[#allocation18] ss:$0 sm:$0xff]  ;;  %s10183_s5 = sshll.u32 %s12060_s9, 4  ;;  %s10184_s5 = int_to_ptr.vmem [resolvable:$true] %s10183_s5 }
 0x8c2   :  { %11566 = vmatprep.subr.bf16.mxu1 %v12058_v54  ;;  %s12007_s25 = scalar_lea.vmem %s10184_s5, 128  ;;  %p12012_p9 = scmp.lt.s32.totalorder %s10184_s5, %s10184_s5 }
 0x8c3   :  { %p12008_p8 = scmp.ne.s32.totalorder %s10184_s5, %s12007_s25  ;;  %p12013_p10 = scmp.lt.s32.totalorder %s12007_s25, %s12007_s25 }
 0x8c5   :  { %11567 = vmatpush3.bf16.msra.mxu1 %v11804_v13  ;;  %p12014_p11 = por %p12013_p10, %p12012_p9 }
 0x8c6   :  { %11568 = vmatprep.subr.bf16.mxu1 %v12058_v54 }
 0x8c7   :  { %p12015_p12 = pnand %p12014_p11, %p12008_p8 }
 0x8c9   :  { %11569 = vmatpush3.bf16.msra.mxu1 %v11805_v50 }
 0x8ca   :  { %11570 = vmatprep.subr.bf16.mxu1 %v12058_v54 }
 0x8cd   :  { %11571 = vmatpush3.bf16.msra.mxu1 %v11806_v9 }
 0x8d0   :  { %11573 = vmatmul.mubr.msk.bf16.vlgmr.msra.gmra.mxu1 %vm10132_vm1, %v10100_v43 }
 0x990   :  { %v10170_v22 = vpop.f32.mrf.mxu1 }
 0x991   :  { %v10171_v0 = vadd.f32 %v11527_v10, %v10170_v22 }
 0x992   :  { %v11574_v61 = vpop.f32.mrf.mxu1 }
 0x993   :  { %10176 = vst [vmem:[#allocation19] sm:$0xff] %v10171_v0 }
 0x994   :  { %v10173_v38 = vpop.f32.mrf.mxu1 }
 0x995   :  { %12018 = shalt.err (!%p12015_p12)
}
 0x996   :  { %10186 = dma.vmem_to_hbm [thread:$0]  %s10184_s5, 128, %s12567_s11, [#allocation9]   ;;  %v11575_v8 = vpop.f32.mrf.mxu1 }
 0x997   :  { %12043 = dma.done.wait [#allocation9], 128  }
 0x998   :  { %12044 = vsyncadd [#allocation9], 4294967168 }
 0x999   :  { %10190 = vsyncpa [#allocation8], 1 }
 0x99a   :  { %10191 = vsyncpa [#allocation11], 1 }
 0x99b   :  { %10192 = vsyncpa [#allocation14], 1 }
 0x99c   :  { %10193 = vsyncpa [#allocation17], 1 }
 0x99d   :  { %10194 = vsyncpa [#allocation9], 1 }
 0x99e   :  { %10195 = vsyncmov [#allocation6] }
 0x9a1   :  { %s10196_s0 = vpop.sfrf %10195 }
 0x9a2   :  { %p11533_p13 = scmp.ne.s32.totalorder %s10196_s0, 0 }
 0x9a4   :  { %10200 = shalt.err (%p11533_p13)  }
 0x9a5   :  { %10202 = vsyncmov [#allocation6 + $0x1] }
 0x9a8   :  { %s10203_s28 = vpop.sfrf %10202 }
 0x9a9   :  { %p11534_p0 = scmp.ne.s32.totalorder %s10203_s28, 0 }
 0x9ab   :  { %10207 = shalt.err (%p11534_p0)  }
 0x9ac   :  { %10209 = vsyncmov [#allocation6 + $0x2] }
 0x9af   :  { %s10210_s29 = vpop.sfrf %10209 }
 0x9b0   :  { %p11535_p1 = scmp.ne.s32.totalorder %s10210_s29, 0 }
 0x9b2   :  { %10214 = shalt.err (%p11535_p1)  }
 0x9b3   :  { %10216 = vsyncmov [#allocation6 + $0x3] }
 0x9b6   :  { %s10217_s11 = vpop.sfrf %10216 }
 0x9b7   :  { %p11536_p2 = scmp.ne.s32.totalorder %s10217_s11, 0 }
 0x9b9   :  { %10221 = shalt.err (%p11536_p2)  }

</bundles_post_ra>
